<compile_context>
chip_gen: v5e
topology: v5e:2x2
jax: 0.10.0
libtpu: 0.0.40
codegen_flags: <defaults>
</compile_context>

<pallas_src>
import functools

import jax
import jax.numpy as jnp
from jax.experimental import pallas as pl
from jax.experimental.pallas import tpu as pltpu


# ----------------------------------------------------------------------------
# Generic fused matmul (+bias, +activation, +optional residual) Pallas kernel
# ----------------------------------------------------------------------------

def _apply_act(x, act):
    if act == "none":
        return x
    if act == "relu":
        return jnp.maximum(x, 0.0)
    if act == "relu_p1_eps":          # F.relu(x + 1) + 1e-8  (temperature head)
        return jnp.maximum(x + 1.0, 0.0) + 1e-8
    raise ValueError(f"unknown act {act}")


def _mm_kernel(x_ref, w_ref, b_ref, o_ref, *, act):
    acc = jnp.dot(x_ref[...], w_ref[...], preferred_element_type=jnp.float32)
    acc = acc + b_ref[...]
    acc = _apply_act(acc, act)
    o_ref[...] = acc.astype(o_ref.dtype)


def _mm_res_kernel(x_ref, w_ref, b_ref, r_ref, o_ref, *, act):
    acc = jnp.dot(x_ref[...], w_ref[...], preferred_element_type=jnp.float32)
    acc = acc + b_ref[...]
    acc = _apply_act(acc, act)
    acc = acc + r_ref[...]            # residual add (ResnetBlock skip)
    o_ref[...] = acc.astype(o_ref.dtype)


def _round_up(x, m):
    return (x + m - 1) // m * m


def fused_matmul(x, w, b, *, act="none", residual=None):
    """y = act(x @ w + b) (+ residual).   x:(M,K)  w:(K,C)  b:(C,)  -> (M,C)."""
    M, K = x.shape
    K2, C = w.shape
    assert K == K2, (K, K2)

    # Row tile: lane-dense, divisible by 8; rows are padded so every tile is
    # full (padded rows are discarded by the caller).
    TM = 256 if M >= 256 else _round_up(M, 8)
    Mp = _round_up(M, TM)
    if Mp != M:
        x = jnp.pad(x, ((0, Mp - M), (0, 0)))
        if residual is not None:
            residual = jnp.pad(residual, ((0, Mp - M), (0, 0)))

    b2 = b.reshape(1, C).astype(jnp.float32)

    in_specs = [
        pl.BlockSpec((TM, K), lambda i: (i, 0)),   # activations: tiled over rows
        pl.BlockSpec((K, C), lambda i: (0, 0)),    # weights: small resident block
        pl.BlockSpec((1, C), lambda i: (0, 0)),    # folded bias
    ]
    args = [x, w, b2]
    if residual is None:
        kernel = functools.partial(_mm_kernel, act=act)
    else:
        kernel = functools.partial(_mm_res_kernel, act=act)
        in_specs.append(pl.BlockSpec((TM, C), lambda i: (i, 0)))
        args.append(residual)

    out = pl.pallas_call(
        kernel,
        out_shape=jax.ShapeDtypeStruct((Mp, C), jnp.float32),
        grid_spec=pltpu.PrefetchScalarGridSpec(
            num_scalar_prefetch=0,
            grid=(Mp // TM,),
            in_specs=in_specs,
            out_specs=pl.BlockSpec((TM, C), lambda i: (i, 0)),
        ),
        compiler_params=pltpu.CompilerParams(
            dimension_semantics=("parallel",),
        ),
    )(*args)
    return out[:M]


# ----------------------------------------------------------------------------
# Squeeze-Excite Pallas kernel (cusnet.SE, reduction_ratio=5)
# ----------------------------------------------------------------------------

def _se_kernel(x_ref, w1_ref, b1_ref, w2_ref, b2_ref, o_ref):
    x = x_ref[0]                                            # (HW, C)
    pooled = jnp.mean(x, axis=0, keepdims=True)             # squeeze  (1, C)
    h = jnp.dot(pooled, w1_ref[...], preferred_element_type=jnp.float32)
    h = jnp.maximum(h + b1_ref[...], 0.0)                   # FC -> ReLU
    g = jnp.dot(h, w2_ref[...], preferred_element_type=jnp.float32) + b2_ref[...]
    g = 1.0 / (1.0 + jnp.exp(-g))                           # sigmoid gate (EUP)
    o_ref[0] = (x * g).astype(o_ref.dtype)                  # channel-wise excite


def se_block(x_nhwc, w1, b1, w2, b2):
    N, H, W, C = x_nhwc.shape
    HW = H * W
    Cr = w1.shape[1]
    x2 = x_nhwc.reshape(N, HW, C)
    out = pl.pallas_call(
        _se_kernel,
        out_shape=jax.ShapeDtypeStruct((N, HW, C), jnp.float32),
        grid_spec=pltpu.PrefetchScalarGridSpec(
            num_scalar_prefetch=0,
            grid=(N,),
            in_specs=[
                pl.BlockSpec((1, HW, C), lambda n: (n, 0, 0)),
                pl.BlockSpec((C, Cr), lambda n: (0, 0)),
                pl.BlockSpec((1, Cr), lambda n: (0, 0)),
                pl.BlockSpec((Cr, C), lambda n: (0, 0)),
                pl.BlockSpec((1, C), lambda n: (0, 0)),
            ],
            out_specs=pl.BlockSpec((1, HW, C), lambda n: (n, 0, 0)),
        ),
        compiler_params=pltpu.CompilerParams(
            dimension_semantics=("parallel",),
        ),
    )(x2, w1, b1.reshape(1, Cr), w2, b2.reshape(1, C))
    return out.reshape(N, H, W, C)


# ----------------------------------------------------------------------------
# Conv helpers: reflect-pad im2col (XLA layout plumbing) + Pallas matmul
# ----------------------------------------------------------------------------

def _reflect_im2col(x_nhwc, ksize, dilation, pad):
    """Reflect-pad and gather the ksize*ksize dilated taps.

    Returns (N, H, W, ksize*ksize*C), tap-major then channel — i.e. the weight
    matrix layout is torch_weight.permute(2, 3, 1, 0).reshape(k*k*Cin, Cout).
    """
    N, H, W, C = x_nhwc.shape
    xp = jnp.pad(x_nhwc, ((0, 0), (pad, pad), (pad, pad), (0, 0)), mode="reflect")
    cols = []
    for kh in range(ksize):
        for kw in range(ksize):
            cols.append(xp[:, kh * dilation:kh * dilation + H,
                           kw * dilation:kw * dilation + W, :])
    return jnp.concatenate(cols, axis=-1)


def conv5_dil2(x_nhwc, w, b, act="none"):
    """Conv2d(k=5, stride=1, padding=4, dilation=2, reflect) as fused matmul."""
    N, H, W, _ = x_nhwc.shape
    cols = _reflect_im2col(x_nhwc, 5, 2, 4).reshape(N * H * W, -1)
    y = fused_matmul(cols, w, b, act=act)
    return y.reshape(N, H, W, w.shape[1])


def conv3(x_nhwc, w, b, act="none", residual=None):
    """ReflectionPad2d(1) + Conv2d(k=3) as fused matmul (optional residual)."""
    N, H, W, _ = x_nhwc.shape
    cols = _reflect_im2col(x_nhwc, 3, 1, 1).reshape(N * H * W, -1)
    cout = w.shape[1]
    res2 = None if residual is None else residual.reshape(N * H * W, cout)
    y = fused_matmul(cols, w, b, act=act, residual=res2)
    return y.reshape(N, H, W, cout)


def _fold_bn(w_mat, b_vec, gamma, beta, mean, var, eps=1e-5):
    """Fold eval-mode BatchNorm into the preceding conv's (W, b)."""
    scale = gamma / jnp.sqrt(var + eps)
    return w_mat * scale[None, :], (b_vec - mean) * scale + beta


def resnet_block(x_nhwc, p):
    """CycleGAN-style ResnetBlock: x + BN(conv3(ReLU(BN(conv3(pad(x))))))."""
    w1, b1 = _fold_bn(p["w1"], p["b1"], *p["bn1"])
    w2, b2 = _fold_bn(p["w2"], p["b2"], *p["bn2"])
    h = conv3(x_nhwc, w1, b1, act="relu")
    return conv3(h, w2, b2, act="none", residual=x_nhwc)


# ----------------------------------------------------------------------------
# OODCalibNet forward
# ----------------------------------------------------------------------------

def ood_calib_net_forward(params, logits, image, dae_diff, *, nclass):
    to_nhwc = lambda t: jnp.transpose(t, (0, 2, 3, 1))
    logits_n = to_nhwc(logits)
    image_n = to_nhwc(image)
    dae_n = to_nhwc(dae_diff)

    _logits = logits_n[..., :nclass]
    _meanmap = logits_n[..., nclass:2 * nclass]
    _stdmap = logits_n[..., 2 * nclass:3 * nclass]

    def branch(x, p):
        h = conv5_dil2(x, p["conv_w"], p["conv_b"], act="none")
        h = resnet_block(h, p["res1"])
        h = resnet_block(h, p["res2"])
        return h

    img_out = branch(image_n, params["img"])
    logits_out = branch(_logits, params["logits"])
    std_out = branch(_stdmap, params["std"])
    mean_out = branch(_meanmap, params["mean"])
    dae_out = branch(dae_n, params["diff"])

    comb = jnp.concatenate([img_out, logits_out, dae_out, mean_out, std_out],
                           axis=-1)                               # (N,H,W,80)

    comb = se_block(comb, params["se_w1"], params["se_b1"],
                    params["se_w2"], params["se_b2"])

    N, H, W, c5 = comb.shape
    x = fused_matmul(comb.reshape(N * H * W, c5),
                     params["comb_conv_w"], params["comb_conv_b"], act="none")
    x = x.reshape(N, H, W, -1)                                    # 1x1 conv -> 64
    x = resnet_block(x, params["res1_comb"])
    x = resnet_block(x, params["res2_comb"])

    # conv_out (5x5 dilated, 64 -> 1) fused with relu(t+1)+1e-8 and the
    # channel repeat: the single output column is tiled to nclass identical
    # columns so the MXU writes a lane-contiguous (M, nclass) slab directly.
    cols = _reflect_im2col(x, 5, 2, 4).reshape(N * H * W, -1)
    w_rep = jnp.tile(params["out_w"], (1, nclass))
    b_rep = jnp.tile(params["out_b"], (nclass,))
    temp = fused_matmul(cols, w_rep, b_rep, act="relu_p1_eps")
    temp = temp.reshape(N, H, W, nclass)
    return jnp.transpose(temp, (0, 3, 1, 2))                      # NCHW, like torch


# ----------------------------------------------------------------------------
# Deterministic parameter init (structure mirrors the PyTorch module)
# ----------------------------------------------------------------------------

def init_params(key, nclass, interm_dim=16):
    keys = iter(jax.random.split(key, 64))

    def conv(k, cin, cout, ksz, scale=0.05):
        kw_, kb_ = jax.random.split(k)
        w = jax.random.normal(kw_, (ksz * ksz * cin, cout), jnp.float32) * scale
        b = jax.random.normal(kb_, (cout,), jnp.float32) * scale
        return w, b

    def bn(c):  # (gamma, beta, running_mean, running_var) — fresh-module defaults
        return (jnp.ones((c,), jnp.float32), jnp.zeros((c,), jnp.float32),
                jnp.zeros((c,), jnp.float32), jnp.ones((c,), jnp.float32))

    def resblock(dim):
        w1, b1 = conv(next(keys), dim, dim, 3)
        w2, b2 = conv(next(keys), dim, dim, 3)
        return {"w1": w1, "b1": b1, "bn1": bn(dim),
                "w2": w2, "b2": b2, "bn2": bn(dim)}

    def branch(cin):
        cw, cb = conv(next(keys), cin, interm_dim, 5)
        return {"conv_w": cw, "conv_b": cb,
                "res1": resblock(interm_dim), "res2": resblock(interm_dim)}

    p = {
        "img": branch(3),
        "logits": branch(nclass),
        "diff": branch(nclass),
        "mean": branch(nclass),
        "std": branch(nclass),
    }
    c5 = interm_dim * 5
    cr = c5 // 5                                   # reduction_ratio = 5
    k1, k2 = jax.random.split(next(keys))
    p["se_w1"] = jax.random.normal(k1, (c5, cr), jnp.float32) * 0.05
    p["se_b1"] = jnp.zeros((cr,), jnp.float32)
    p["se_w2"] = jax.random.normal(k2, (cr, c5), jnp.float32) * 0.05
    p["se_b2"] = jnp.zeros((c5,), jnp.float32)
    p["comb_conv_w"], p["comb_conv_b"] = conv(next(keys), c5, interm_dim * 4, 1)
    p["res1_comb"] = resblock(interm_dim * 4)
    p["res2_comb"] = resblock(interm_dim * 4)
    p["out_w"], p["out_b"] = conv(next(keys), interm_dim * 4, 1, 5)
    return p


if __name__ == "__main__":
    nclass = 4
    interm_dim = 16
    N, H, W = 2, 16, 16

    key = jax.random.PRNGKey(0)
    kp, kl, ki, kd = jax.random.split(key, 4)
    params = init_params(kp, nclass, interm_dim)

    logits = jax.random.normal(kl, (N, 3 * nclass, H, W), jnp.float32)
    image = jax.random.normal(ki, (N, 3, H, W), jnp.float32)
    dae_diff = jax.random.normal(kd, (N, nclass, H, W), jnp.float32)

    fwd = jax.jit(functools.partial(ood_calib_net_forward, nclass=nclass))
    out = fwd(params, logits, image, dae_diff)
    out = jax.block_until_ready(out)

    # Shape / dtype / semantics checks.
    assert out.shape == (N, nclass, H, W), out.shape
    assert out.dtype == jnp.float32
    assert bool(jnp.all(jnp.isfinite(out)))
    # temperature = relu(t + 1) + 1e-8  =>  strictly positive
    assert bool(jnp.all(out > 0.0))
    # repeat(1, nclass, 1, 1): every class channel carries the same map
    assert bool(jnp.allclose(out, out[:, :1, :, :], rtol=1e-6, atol=1e-6))

    print("KERNEL_OK")
</pallas_src>

<mosaic_0001>
module attributes {stable_mosaic.version = 11 : i64} {
  func.func @_mm_kernel(%arg0: i32, %arg1: memref<256x100xf32, #tpu.memory_space<vmem>>, %arg2: memref<100x16xf32, #tpu.memory_space<vmem>>, %arg3: memref<1x16xf32, #tpu.memory_space<vmem>>, %arg4: memref<256x16xf32, #tpu.memory_space<vmem>>) attributes {dimension_semantics = [#tpu.dimension_semantics<parallel>], iteration_bounds = array<i64: 2>, scalar_prefetch = 0 : i64, scratch_operands = 0 : i64, tpu.core_type = #tpu.core_type<tc>, window_params = [{transform_indices = @transform_0, window_bounds = array<i64: 256, 100>}, {pipeline_mode = #tpu.pipeline_mode<synchronous>, transform_indices = @transform_1, window_bounds = array<i64: 100, 16>}, {pipeline_mode = #tpu.pipeline_mode<synchronous>, transform_indices = @transform_2, window_bounds = array<i64: 1, 16>}, {transform_indices = @transform_3, window_bounds = array<i64: 256, 16>}]} {
    %c0 = arith.constant 0 : index
    %c0_0 = arith.constant 0 : index
    %0 = vector.load %arg1[%c0, %c0_0] : memref<256x100xf32, #tpu.memory_space<vmem>>, vector<256x100xf32>
    %c0_1 = arith.constant 0 : index
    %c0_2 = arith.constant 0 : index
    %1 = vector.load %arg2[%c0_1, %c0_2] : memref<100x16xf32, #tpu.memory_space<vmem>>, vector<100x16xf32>
    %cst = arith.constant dense<0.000000e+00> : vector<256x16xf32>
    %2 = tpu.matmul %0, %1, %cst {dimension_numbers = #tpu.dot_dimension_numbers<[1], [0], [0], [1], [0, 0, 1, 1], [], []>} : vector<256x100xf32>, vector<100x16xf32>, vector<256x16xf32> -> vector<256x16xf32>
    %c0_3 = arith.constant 0 : index
    %c0_4 = arith.constant 0 : index
    %3 = vector.load %arg3[%c0_3, %c0_4] : memref<1x16xf32, #tpu.memory_space<vmem>>, vector<1x16xf32>
    %4 = vector.broadcast %3 : vector<1x16xf32> to vector<256x16xf32>
    %5 = arith.addf %2, %4 : vector<256x16xf32>
    %c0_5 = arith.constant 0 : index
    %c0_6 = arith.constant 0 : index
    %6 = vector.load %arg4[%c0_5, %c0_6] : memref<256x16xf32, #tpu.memory_space<vmem>>, vector<256x16xf32>
    tpu.vector_store %arg4[%c0_5, %c0_6], %5 {strides = array<i32>} : memref<256x16xf32, #tpu.memory_space<vmem>>, vector<256x16xf32>,
    return
  }
  func.func @transform_0(%arg0: i32) -> (i32, i32) {
    %c0_i32 = arith.constant 0 : i32
    %c0_i32_0 = arith.constant 0 : i32
    return %arg0, %c0_i32 : i32, i32
  }
  func.func @transform_1(%arg0: i32) -> (i32, i32) {
    %c0_i32 = arith.constant 0 : i32
    %c0_i32_0 = arith.constant 0 : i32
    %c0_i32_1 = arith.constant 0 : i32
    return %c0_i32, %c0_i32_0 : i32, i32
  }
  func.func @transform_2(%arg0: i32) -> (i32, i32) {
    %c0_i32 = arith.constant 0 : i32
    %c0_i32_0 = arith.constant 0 : i32
    %c0_i32_1 = arith.constant 0 : i32
    return %c0_i32, %c0_i32_0 : i32, i32
  }
  func.func @transform_3(%arg0: i32) -> (i32, i32) {
    %c0_i32 = arith.constant 0 : i32
    %c0_i32_0 = arith.constant 0 : i32
    return %arg0, %c0_i32 : i32, i32
  }
}

module attributes {stable_mosaic.version = 11 : i64} {
  func.func @_mm_kernel(%arg0: i32, %arg1: memref<256x144xf32, #tpu.memory_space<vmem>>, %arg2: memref<144x16xf32, #tpu.memory_space<vmem>>, %arg3: memref<1x16xf32, #tpu.memory_space<vmem>>, %arg4: memref<256x16xf32, #tpu.memory_space<vmem>>) attributes {dimension_semantics = [#tpu.dimension_semantics<parallel>], iteration_bounds = array<i64: 2>, scalar_prefetch = 0 : i64, scratch_operands = 0 : i64, tpu.core_type = #tpu.core_type<tc>, window_params = [{transform_indices = @transform_0, window_bounds = array<i64: 256, 144>}, {pipeline_mode = #tpu.pipeline_mode<synchronous>, transform_indices = @transform_1, window_bounds = array<i64: 144, 16>}, {pipeline_mode = #tpu.pipeline_mode<synchronous>, transform_indices = @transform_2, window_bounds = array<i64: 1, 16>}, {transform_indices = @transform_3, window_bounds = array<i64: 256, 16>}]} {
    %c0 = arith.constant 0 : index
    %c0_0 = arith.constant 0 : index
    %0 = vector.load %arg1[%c0, %c0_0] : memref<256x144xf32, #tpu.memory_space<vmem>>, vector<256x144xf32>
    %c0_1 = arith.constant 0 : index
    %c0_2 = arith.constant 0 : index
    %1 = vector.load %arg2[%c0_1, %c0_2] : memref<144x16xf32, #tpu.memory_space<vmem>>, vector<144x16xf32>
    %cst = arith.constant dense<0.000000e+00> : vector<256x16xf32>
    %2 = tpu.matmul %0, %1, %cst {dimension_numbers = #tpu.dot_dimension_numbers<[1], [0], [0], [1], [0, 0, 1, 1], [], []>} : vector<256x144xf32>, vector<144x16xf32>, vector<256x16xf32> -> vector<256x16xf32>
    %c0_3 = arith.constant 0 : index
    %c0_4 = arith.constant 0 : index
    %3 = vector.load %arg3[%c0_3, %c0_4] : memref<1x16xf32, #tpu.memory_space<vmem>>, vector<1x16xf32>
    %4 = vector.broadcast %3 : vector<1x16xf32> to vector<256x16xf32>
    %5 = arith.addf %2, %4 : vector<256x16xf32>
    %cst_5 = arith.constant 0.000000e+00 : f32
    %6 = vector.broadcast %cst_5 : f32 to vector<256x16xf32>
    %7 = arith.maximumf %5, %6 : vector<256x16xf32>
    %c0_6 = arith.constant 0 : index
    %c0_7 = arith.constant 0 : index
    %8 = vector.load %arg4[%c0_6, %c0_7] : memref<256x16xf32, #tpu.memory_space<vmem>>, vector<256x16xf32>
    tpu.vector_store %arg4[%c0_6, %c0_7], %7 {strides = array<i32>} : memref<256x16xf32, #tpu.memory_space<vmem>>, vector<256x16xf32>,
    return
  }
  func.func @transform_0(%arg0: i32) -> (i32, i32) {
    %c0_i32 = arith.constant 0 : i32
    %c0_i32_0 = arith.constant 0 : i32
    return %arg0, %c0_i32 : i32, i32
  }
  func.func @transform_1(%arg0: i32) -> (i32, i32) {
    %c0_i32 = arith.constant 0 : i32
    %c0_i32_0 = arith.constant 0 : i32
    %c0_i32_1 = arith.constant 0 : i32
    return %c0_i32, %c0_i32_0 : i32, i32
  }
  func.func @transform_2(%arg0: i32) -> (i32, i32) {
    %c0_i32 = arith.constant 0 : i32
    %c0_i32_0 = arith.constant 0 : i32
    %c0_i32_1 = arith.constant 0 : i32
    return %c0_i32, %c0_i32_0 : i32, i32
  }
  func.func @transform_3(%arg0: i32) -> (i32, i32) {
    %c0_i32 = arith.constant 0 : i32
    %c0_i32_0 = arith.constant 0 : i32
    return %arg0, %c0_i32 : i32, i32
  }
}

module attributes {stable_mosaic.version = 11 : i64} {
  func.func @_mm_res_kernel(%arg0: i32, %arg1: memref<256x144xf32, #tpu.memory_space<vmem>>, %arg2: memref<144x16xf32, #tpu.memory_space<vmem>>, %arg3: memref<1x16xf32, #tpu.memory_space<vmem>>, %arg4: memref<256x16xf32, #tpu.memory_space<vmem>>, %arg5: memref<256x16xf32, #tpu.memory_space<vmem>>) attributes {dimension_semantics = [#tpu.dimension_semantics<parallel>], iteration_bounds = array<i64: 2>, scalar_prefetch = 0 : i64, scratch_operands = 0 : i64, tpu.core_type = #tpu.core_type<tc>, window_params = [{transform_indices = @transform_0, window_bounds = array<i64: 256, 144>}, {pipeline_mode = #tpu.pipeline_mode<synchronous>, transform_indices = @transform_1, window_bounds = array<i64: 144, 16>}, {pipeline_mode = #tpu.pipeline_mode<synchronous>, transform_indices = @transform_2, window_bounds = array<i64: 1, 16>}, {transform_indices = @transform_3, window_bounds = array<i64: 256, 16>}, {transform_indices = @transform_4, window_bounds = array<i64: 256, 16>}]} {
    %c0 = arith.constant 0 : index
    %c0_0 = arith.constant 0 : index
    %0 = vector.load %arg1[%c0, %c0_0] : memref<256x144xf32, #tpu.memory_space<vmem>>, vector<256x144xf32>
    %c0_1 = arith.constant 0 : index
    %c0_2 = arith.constant 0 : index
    %1 = vector.load %arg2[%c0_1, %c0_2] : memref<144x16xf32, #tpu.memory_space<vmem>>, vector<144x16xf32>
    %cst = arith.constant dense<0.000000e+00> : vector<256x16xf32>
    %2 = tpu.matmul %0, %1, %cst {dimension_numbers = #tpu.dot_dimension_numbers<[1], [0], [0], [1], [0, 0, 1, 1], [], []>} : vector<256x144xf32>, vector<144x16xf32>, vector<256x16xf32> -> vector<256x16xf32>
    %c0_3 = arith.constant 0 : index
    %c0_4 = arith.constant 0 : index
    %3 = vector.load %arg3[%c0_3, %c0_4] : memref<1x16xf32, #tpu.memory_space<vmem>>, vector<1x16xf32>
    %4 = vector.broadcast %3 : vector<1x16xf32> to vector<256x16xf32>
    %5 = arith.addf %2, %4 : vector<256x16xf32>
    %c0_5 = arith.constant 0 : index
    %c0_6 = arith.constant 0 : index
    %6 = vector.load %arg4[%c0_5, %c0_6] : memref<256x16xf32, #tpu.memory_space<vmem>>, vector<256x16xf32>
    %7 = arith.addf %5, %6 : vector<256x16xf32>
    %c0_7 = arith.constant 0 : index
    %c0_8 = arith.constant 0 : index
    %8 = vector.load %arg5[%c0_7, %c0_8] : memref<256x16xf32, #tpu.memory_space<vmem>>, vector<256x16xf32>
    tpu.vector_store %arg5[%c0_7, %c0_8], %7 {strides = array<i32>} : memref<256x16xf32, #tpu.memory_space<vmem>>, vector<256x16xf32>,
    return
  }
  func.func @transform_0(%arg0: i32) -> (i32, i32) {
    %c0_i32 = arith.constant 0 : i32
    %c0_i32_0 = arith.constant 0 : i32
    return %arg0, %c0_i32 : i32, i32
  }
  func.func @transform_1(%arg0: i32) -> (i32, i32) {
    %c0_i32 = arith.constant 0 : i32
    %c0_i32_0 = arith.constant 0 : i32
    %c0_i32_1 = arith.constant 0 : i32
    return %c0_i32, %c0_i32_0 : i32, i32
  }
  func.func @transform_2(%arg0: i32) -> (i32, i32) {
    %c0_i32 = arith.constant 0 : i32
    %c0_i32_0 = arith.constant 0 : i32
    %c0_i32_1 = arith.constant 0 : i32
    return %c0_i32, %c0_i32_0 : i32, i32
  }
  func.func @transform_3(%arg0: i32) -> (i32, i32) {
    %c0_i32 = arith.constant 0 : i32
    %c0_i32_0 = arith.constant 0 : i32
    return %arg0, %c0_i32 : i32, i32
  }
  func.func @transform_4(%arg0: i32) -> (i32, i32) {
    %c0_i32 = arith.constant 0 : i32
    %c0_i32_0 = arith.constant 0 : i32
    return %arg0, %c0_i32 : i32, i32
  }
}

module attributes {stable_mosaic.version = 11 : i64} {
  func.func @_mm_kernel(%arg0: i32, %arg1: memref<256x75xf32, #tpu.memory_space<vmem>>, %arg2: memref<75x16xf32, #tpu.memory_space<vmem>>, %arg3: memref<1x16xf32, #tpu.memory_space<vmem>>, %arg4: memref<256x16xf32, #tpu.memory_space<vmem>>) attributes {dimension_semantics = [#tpu.dimension_semantics<parallel>], iteration_bounds = array<i64: 2>, scalar_prefetch = 0 : i64, scratch_operands = 0 : i64, tpu.core_type = #tpu.core_type<tc>, window_params = [{transform_indices = @transform_0, window_bounds = array<i64: 256, 75>}, {pipeline_mode = #tpu.pipeline_mode<synchronous>, transform_indices = @transform_1, window_bounds = array<i64: 75, 16>}, {pipeline_mode = #tpu.pipeline_mode<synchronous>, transform_indices = @transform_2, window_bounds = array<i64: 1, 16>}, {transform_indices = @transform_3, window_bounds = array<i64: 256, 16>}]} {
    %c0 = arith.constant 0 : index
    %c0_0 = arith.constant 0 : index
    %0 = vector.load %arg1[%c0, %c0_0] : memref<256x75xf32, #tpu.memory_space<vmem>>, vector<256x75xf32>
    %c0_1 = arith.constant 0 : index
    %c0_2 = arith.constant 0 : index
    %1 = vector.load %arg2[%c0_1, %c0_2] : memref<75x16xf32, #tpu.memory_space<vmem>>, vector<75x16xf32>
    %cst = arith.constant dense<0.000000e+00> : vector<256x16xf32>
    %2 = tpu.matmul %0, %1, %cst {dimension_numbers = #tpu.dot_dimension_numbers<[1], [0], [0], [1], [0, 0, 1, 1], [], []>} : vector<256x75xf32>, vector<75x16xf32>, vector<256x16xf32> -> vector<256x16xf32>
    %c0_3 = arith.constant 0 : index
    %c0_4 = arith.constant 0 : index
    %3 = vector.load %arg3[%c0_3, %c0_4] : memref<1x16xf32, #tpu.memory_space<vmem>>, vector<1x16xf32>
    %4 = vector.broadcast %3 : vector<1x16xf32> to vector<256x16xf32>
    %5 = arith.addf %2, %4 : vector<256x16xf32>
    %c0_5 = arith.constant 0 : index
    %c0_6 = arith.constant 0 : index
    %6 = vector.load %arg4[%c0_5, %c0_6] : memref<256x16xf32, #tpu.memory_space<vmem>>, vector<256x16xf32>
    tpu.vector_store %arg4[%c0_5, %c0_6], %5 {strides = array<i32>} : memref<256x16xf32, #tpu.memory_space<vmem>>, vector<256x16xf32>,
    return
  }
  func.func @transform_0(%arg0: i32) -> (i32, i32) {
    %c0_i32 = arith.constant 0 : i32
    %c0_i32_0 = arith.constant 0 : i32
    return %arg0, %c0_i32 : i32, i32
  }
  func.func @transform_1(%arg0: i32) -> (i32, i32) {
    %c0_i32 = arith.constant 0 : i32
    %c0_i32_0 = arith.constant 0 : i32
    %c0_i32_1 = arith.constant 0 : i32
    return %c0_i32, %c0_i32_0 : i32, i32
  }
  func.func @transform_2(%arg0: i32) -> (i32, i32) {
    %c0_i32 = arith.constant 0 : i32
    %c0_i32_0 = arith.constant 0 : i32
    %c0_i32_1 = arith.constant 0 : i32
    return %c0_i32, %c0_i32_0 : i32, i32
  }
  func.func @transform_3(%arg0: i32) -> (i32, i32) {
    %c0_i32 = arith.constant 0 : i32
    %c0_i32_0 = arith.constant 0 : i32
    return %arg0, %c0_i32 : i32, i32
  }
}

module attributes {stable_mosaic.version = 11 : i64} {
  func.func @_se_kernel(%arg0: i32, %arg1: memref<1x256x80xf32, #tpu.memory_space<vmem>>, %arg2: memref<80x16xf32, #tpu.memory_space<vmem>>, %arg3: memref<1x16xf32, #tpu.memory_space<vmem>>, %arg4: memref<16x80xf32, #tpu.memory_space<vmem>>, %arg5: memref<1x80xf32, #tpu.memory_space<vmem>>, %arg6: memref<1x256x80xf32, #tpu.memory_space<vmem>>) attributes {dimension_semantics = [#tpu.dimension_semantics<parallel>], iteration_bounds = array<i64: 2>, scalar_prefetch = 0 : i64, scratch_operands = 0 : i64, tpu.core_type = #tpu.core_type<tc>, window_params = [{transform_indices = @transform_0, window_bounds = array<i64: 1, 256, 80>}, {pipeline_mode = #tpu.pipeline_mode<synchronous>, transform_indices = @transform_1, window_bounds = array<i64: 80, 16>}, {pipeline_mode = #tpu.pipeline_mode<synchronous>, transform_indices = @transform_2, window_bounds = array<i64: 1, 16>}, {pipeline_mode = #tpu.pipeline_mode<synchronous>, transform_indices = @transform_3, window_bounds = array<i64: 16, 80>}, {pipeline_mode = #tpu.pipeline_mode<synchronous>, transform_indices = @transform_4, window_bounds = array<i64: 1, 80>}, {transform_indices = @transform_5, window_bounds = array<i64: 1, 256, 80>}]} {
    %c0 = arith.constant 0 : index
    %c0_0 = arith.constant 0 : index
    %c0_1 = arith.constant 0 : index
    %0 = vector.load %arg1[%c0, %c0_0, %c0_1] : memref<1x256x80xf32, #tpu.memory_space<vmem>>, vector<1x256x80xf32>
    %1 = vector.shape_cast %0 : vector<1x256x80xf32> to vector<256x80xf32>
    %cst = arith.constant dense<0.000000e+00> : vector<80xf32>
    %2 = vector.multi_reduction <add>, %1, %cst [0] : vector<256x80xf32> to vector<80xf32>
    %3 = vector.shape_cast %2 : vector<80xf32> to vector<1x80xf32>
    %cst_2 = arith.constant 2.560000e+02 : f32
    %4 = vector.broadcast %cst_2 : f32 to vector<1x80xf32>
    %5 = arith.divf %3, %4 : vector<1x80xf32>
    %c0_3 = arith.constant 0 : index
    %c0_4 = arith.constant 0 : index
    %6 = vector.load %arg2[%c0_3, %c0_4] : memref<80x16xf32, #tpu.memory_space<vmem>>, vector<80x16xf32>
    %cst_5 = arith.constant dense<0.000000e+00> : vector<1x16xf32>
    %7 = tpu.matmul %5, %6, %cst_5 {dimension_numbers = #tpu.dot_dimension_numbers<[1], [0], [0], [1], [0, 0, 1, 1], [], []>} : vector<1x80xf32>, vector<80x16xf32>, vector<1x16xf32> -> vector<1x16xf32>
    %c0_6 = arith.constant 0 : index
    %c0_7 = arith.constant 0 : index
    %8 = vector.load %arg3[%c0_6, %c0_7] : memref<1x16xf32, #tpu.memory_space<vmem>>, vector<1x16xf32>
    %9 = arith.addf %7, %8 : vector<1x16xf32>
    %cst_8 = arith.constant 0.000000e+00 : f32
    %10 = vector.broadcast %cst_8 : f32 to vector<1x16xf32>
    %11 = arith.maximumf %9, %10 : vector<1x16xf32>
    %c0_9 = arith.constant 0 : index
    %c0_10 = arith.constant 0 : index
    %12 = vector.load %arg4[%c0_9, %c0_10] : memref<16x80xf32, #tpu.memory_space<vmem>>, vector<16x80xf32>
    %cst_11 = arith.constant dense<0.000000e+00> : vector<1x80xf32>
    %13 = tpu.matmul %11, %12, %cst_11 {dimension_numbers = #tpu.dot_dimension_numbers<[1], [0], [0], [1], [0, 0, 1, 1], [], []>} : vector<1x16xf32>, vector<16x80xf32>, vector<1x80xf32> -> vector<1x80xf32>
    %c0_12 = arith.constant 0 : index
    %c0_13 = arith.constant 0 : index
    %14 = vector.load %arg5[%c0_12, %c0_13] : memref<1x80xf32, #tpu.memory_space<vmem>>, vector<1x80xf32>
    %15 = arith.addf %13, %14 : vector<1x80xf32>
    %cst_14 = arith.constant 0.000000e+00 : f32
    %16 = vector.broadcast %cst_14 : f32 to vector<1x80xf32>
    %17 = arith.subf %16, %15 : vector<1x80xf32>
    %18 = math.exp %17 : vector<1x80xf32>
    %cst_15 = arith.constant 1.000000e+00 : f32
    %19 = vector.broadcast %cst_15 : f32 to vector<1x80xf32>
    %20 = arith.addf %19, %18 : vector<1x80xf32>
    %cst_16 = arith.constant 1.000000e+00 : f32
    %21 = vector.broadcast %cst_16 : f32 to vector<1x80xf32>
    %22 = arith.divf %21, %20 : vector<1x80xf32>
    %23 = vector.broadcast %22 : vector<1x80xf32> to vector<256x80xf32>
    %24 = arith.mulf %1, %23 : vector<256x80xf32>
    %c0_17 = arith.constant 0 : index
    %c0_18 = arith.constant 0 : index
    %c0_19 = arith.constant 0 : index
    %25 = vector.load %arg6[%c0_17, %c0_18, %c0_19] : memref<1x256x80xf32, #tpu.memory_space<vmem>>, vector<1x256x80xf32>
    %26 = vector.shape_cast %25 : vector<1x256x80xf32> to vector<256x80xf32>
    %27 = vector.shape_cast %24 : vector<256x80xf32> to vector<1x256x80xf32>
    tpu.vector_store %arg6[%c0_17, %c0_18, %c0_19], %27 {strides = array<i32>} : memref<1x256x80xf32, #tpu.memory_space<vmem>>, vector<1x256x80xf32>,
    return
  }
  func.func @transform_0(%arg0: i32) -> (i32, i32, i32) {
    %c0_i32 = arith.constant 0 : i32
    %c0_i32_0 = arith.constant 0 : i32
    %c0_i32_1 = arith.constant 0 : i32
    return %arg0, %c0_i32, %c0_i32_0 : i32, i32, i32
  }
  func.func @transform_1(%arg0: i32) -> (i32, i32) {
    %c0_i32 = arith.constant 0 : i32
    %c0_i32_0 = arith.constant 0 : i32
    %c0_i32_1 = arith.constant 0 : i32
    return %c0_i32, %c0_i32_0 : i32, i32
  }
  func.func @transform_2(%arg0: i32) -> (i32, i32) {
    %c0_i32 = arith.constant 0 : i32
    %c0_i32_0 = arith.constant 0 : i32
    %c0_i32_1 = arith.constant 0 : i32
    return %c0_i32, %c0_i32_0 : i32, i32
  }
  func.func @transform_3(%arg0: i32) -> (i32, i32) {
    %c0_i32 = arith.constant 0 : i32
    %c0_i32_0 = arith.constant 0 : i32
    %c0_i32_1 = arith.constant 0 : i32
    return %c0_i32, %c0_i32_0 : i32, i32
  }
  func.func @transform_4(%arg0: i32) -> (i32, i32) {
    %c0_i32 = arith.constant 0 : i32
    %c0_i32_0 = arith.constant 0 : i32
    %c0_i32_1 = arith.constant 0 : i32
    return %c0_i32, %c0_i32_0 : i32, i32
  }
  func.func @transform_5(%arg0: i32) -> (i32, i32, i32) {
    %c0_i32 = arith.constant 0 : i32
    %c0_i32_0 = arith.constant 0 : i32
    %c0_i32_1 = arith.constant 0 : i32
    return %arg0, %c0_i32, %c0_i32_0 : i32, i32, i32
  }
}

module attributes {stable_mosaic.version = 11 : i64} {
  func.func @_mm_kernel(%arg0: i32, %arg1: memref<256x80xf32, #tpu.memory_space<vmem>>, %arg2: memref<80x64xf32, #tpu.memory_space<vmem>>, %arg3: memref<1x64xf32, #tpu.memory_space<vmem>>, %arg4: memref<256x64xf32, #tpu.memory_space<vmem>>) attributes {dimension_semantics = [#tpu.dimension_semantics<parallel>], iteration_bounds = array<i64: 2>, scalar_prefetch = 0 : i64, scratch_operands = 0 : i64, tpu.core_type = #tpu.core_type<tc>, window_params = [{transform_indices = @transform_0, window_bounds = array<i64: 256, 80>}, {pipeline_mode = #tpu.pipeline_mode<synchronous>, transform_indices = @transform_1, window_bounds = array<i64: 80, 64>}, {pipeline_mode = #tpu.pipeline_mode<synchronous>, transform_indices = @transform_2, window_bounds = array<i64: 1, 64>}, {transform_indices = @transform_3, window_bounds = array<i64: 256, 64>}]} {
    %c0 = arith.constant 0 : index
    %c0_0 = arith.constant 0 : index
    %0 = vector.load %arg1[%c0, %c0_0] : memref<256x80xf32, #tpu.memory_space<vmem>>, vector<256x80xf32>
    %c0_1 = arith.constant 0 : index
    %c0_2 = arith.constant 0 : index
    %1 = vector.load %arg2[%c0_1, %c0_2] : memref<80x64xf32, #tpu.memory_space<vmem>>, vector<80x64xf32>
    %cst = arith.constant dense<0.000000e+00> : vector<256x64xf32>
    %2 = tpu.matmul %0, %1, %cst {dimension_numbers = #tpu.dot_dimension_numbers<[1], [0], [0], [1], [0, 0, 1, 1], [], []>} : vector<256x80xf32>, vector<80x64xf32>, vector<256x64xf32> -> vector<256x64xf32>
    %c0_3 = arith.constant 0 : index
    %c0_4 = arith.constant 0 : index
    %3 = vector.load %arg3[%c0_3, %c0_4] : memref<1x64xf32, #tpu.memory_space<vmem>>, vector<1x64xf32>
    %4 = vector.broadcast %3 : vector<1x64xf32> to vector<256x64xf32>
    %5 = arith.addf %2, %4 : vector<256x64xf32>
    %c0_5 = arith.constant 0 : index
    %c0_6 = arith.constant 0 : index
    %6 = vector.load %arg4[%c0_5, %c0_6] : memref<256x64xf32, #tpu.memory_space<vmem>>, vector<256x64xf32>
    tpu.vector_store %arg4[%c0_5, %c0_6], %5 {strides = array<i32>} : memref<256x64xf32, #tpu.memory_space<vmem>>, vector<256x64xf32>,
    return
  }
  func.func @transform_0(%arg0: i32) -> (i32, i32) {
    %c0_i32 = arith.constant 0 : i32
    %c0_i32_0 = arith.constant 0 : i32
    return %arg0, %c0_i32 : i32, i32
  }
  func.func @transform_1(%arg0: i32) -> (i32, i32) {
    %c0_i32 = arith.constant 0 : i32
    %c0_i32_0 = arith.constant 0 : i32
    %c0_i32_1 = arith.constant 0 : i32
    return %c0_i32, %c0_i32_0 : i32, i32
  }
  func.func @transform_2(%arg0: i32) -> (i32, i32) {
    %c0_i32 = arith.constant 0 : i32
    %c0_i32_0 = arith.constant 0 : i32
    %c0_i32_1 = arith.constant 0 : i32
    return %c0_i32, %c0_i32_0 : i32, i32
  }
  func.func @transform_3(%arg0: i32) -> (i32, i32) {
    %c0_i32 = arith.constant 0 : i32
    %c0_i32_0 = arith.constant 0 : i32
    return %arg0, %c0_i32 : i32, i32
  }
}

module attributes {stable_mosaic.version = 11 : i64} {
  func.func @_mm_kernel(%arg0: i32, %arg1: memref<256x576xf32, #tpu.memory_space<vmem>>, %arg2: memref<576x64xf32, #tpu.memory_space<vmem>>, %arg3: memref<1x64xf32, #tpu.memory_space<vmem>>, %arg4: memref<256x64xf32, #tpu.memory_space<vmem>>) attributes {dimension_semantics = [#tpu.dimension_semantics<parallel>], iteration_bounds = array<i64: 2>, scalar_prefetch = 0 : i64, scratch_operands = 0 : i64, tpu.core_type = #tpu.core_type<tc>, window_params = [{transform_indices = @transform_0, window_bounds = array<i64: 256, 576>}, {pipeline_mode = #tpu.pipeline_mode<synchronous>, transform_indices = @transform_1, window_bounds = array<i64: 576, 64>}, {pipeline_mode = #tpu.pipeline_mode<synchronous>, transform_indices = @transform_2, window_bounds = array<i64: 1, 64>}, {transform_indices = @transform_3, window_bounds = array<i64: 256, 64>}]} {
    %c0 = arith.constant 0 : index
    %c0_0 = arith.constant 0 : index
    %0 = vector.load %arg1[%c0, %c0_0] : memref<256x576xf32, #tpu.memory_space<vmem>>, vector<256x576xf32>
    %c0_1 = arith.constant 0 : index
    %c0_2 = arith.constant 0 : index
    %1 = vector.load %arg2[%c0_1, %c0_2] : memref<576x64xf32, #tpu.memory_space<vmem>>, vector<576x64xf32>
    %cst = arith.constant dense<0.000000e+00> : vector<256x64xf32>
    %2 = tpu.matmul %0, %1, %cst {dimension_numbers = #tpu.dot_dimension_numbers<[1], [0], [0], [1], [0, 0, 1, 1], [], []>} : vector<256x576xf32>, vector<576x64xf32>, vector<256x64xf32> -> vector<256x64xf32>
    %c0_3 = arith.constant 0 : index
    %c0_4 = arith.constant 0 : index
    %3 = vector.load %arg3[%c0_3, %c0_4] : memref<1x64xf32, #tpu.memory_space<vmem>>, vector<1x64xf32>
    %4 = vector.broadcast %3 : vector<1x64xf32> to vector<256x64xf32>
    %5 = arith.addf %2, %4 : vector<256x64xf32>
    %cst_5 = arith.constant 0.000000e+00 : f32
    %6 = vector.broadcast %cst_5 : f32 to vector<256x64xf32>
    %7 = arith.maximumf %5, %6 : vector<256x64xf32>
    %c0_6 = arith.constant 0 : index
    %c0_7 = arith.constant 0 : index
    %8 = vector.load %arg4[%c0_6, %c0_7] : memref<256x64xf32, #tpu.memory_space<vmem>>, vector<256x64xf32>
    tpu.vector_store %arg4[%c0_6, %c0_7], %7 {strides = array<i32>} : memref<256x64xf32, #tpu.memory_space<vmem>>, vector<256x64xf32>,
    return
  }
  func.func @transform_0(%arg0: i32) -> (i32, i32) {
    %c0_i32 = arith.constant 0 : i32
    %c0_i32_0 = arith.constant 0 : i32
    return %arg0, %c0_i32 : i32, i32
  }
  func.func @transform_1(%arg0: i32) -> (i32, i32) {
    %c0_i32 = arith.constant 0 : i32
    %c0_i32_0 = arith.constant 0 : i32
    %c0_i32_1 = arith.constant 0 : i32
    return %c0_i32, %c0_i32_0 : i32, i32
  }
  func.func @transform_2(%arg0: i32) -> (i32, i32) {
    %c0_i32 = arith.constant 0 : i32
    %c0_i32_0 = arith.constant 0 : i32
    %c0_i32_1 = arith.constant 0 : i32
    return %c0_i32, %c0_i32_0 : i32, i32
  }
  func.func @transform_3(%arg0: i32) -> (i32, i32) {
    %c0_i32 = arith.constant 0 : i32
    %c0_i32_0 = arith.constant 0 : i32
    return %arg0, %c0_i32 : i32, i32
  }
}

module attributes {stable_mosaic.version = 11 : i64} {
  func.func @_mm_res_kernel(%arg0: i32, %arg1: memref<256x576xf32, #tpu.memory_space<vmem>>, %arg2: memref<576x64xf32, #tpu.memory_space<vmem>>, %arg3: memref<1x64xf32, #tpu.memory_space<vmem>>, %arg4: memref<256x64xf32, #tpu.memory_space<vmem>>, %arg5: memref<256x64xf32, #tpu.memory_space<vmem>>) attributes {dimension_semantics = [#tpu.dimension_semantics<parallel>], iteration_bounds = array<i64: 2>, scalar_prefetch = 0 : i64, scratch_operands = 0 : i64, tpu.core_type = #tpu.core_type<tc>, window_params = [{transform_indices = @transform_0, window_bounds = array<i64: 256, 576>}, {pipeline_mode = #tpu.pipeline_mode<synchronous>, transform_indices = @transform_1, window_bounds = array<i64: 576, 64>}, {pipeline_mode = #tpu.pipeline_mode<synchronous>, transform_indices = @transform_2, window_bounds = array<i64: 1, 64>}, {transform_indices = @transform_3, window_bounds = array<i64: 256, 64>}, {transform_indices = @transform_4, window_bounds = array<i64: 256, 64>}]} {
    %c0 = arith.constant 0 : index
    %c0_0 = arith.constant 0 : index
    %0 = vector.load %arg1[%c0, %c0_0] : memref<256x576xf32, #tpu.memory_space<vmem>>, vector<256x576xf32>
    %c0_1 = arith.constant 0 : index
    %c0_2 = arith.constant 0 : index
    %1 = vector.load %arg2[%c0_1, %c0_2] : memref<576x64xf32, #tpu.memory_space<vmem>>, vector<576x64xf32>
    %cst = arith.constant dense<0.000000e+00> : vector<256x64xf32>
    %2 = tpu.matmul %0, %1, %cst {dimension_numbers = #tpu.dot_dimension_numbers<[1], [0], [0], [1], [0, 0, 1, 1], [], []>} : vector<256x576xf32>, vector<576x64xf32>, vector<256x64xf32> -> vector<256x64xf32>
    %c0_3 = arith.constant 0 : index
    %c0_4 = arith.constant 0 : index
    %3 = vector.load %arg3[%c0_3, %c0_4] : memref<1x64xf32, #tpu.memory_space<vmem>>, vector<1x64xf32>
    %4 = vector.broadcast %3 : vector<1x64xf32> to vector<256x64xf32>
    %5 = arith.addf %2, %4 : vector<256x64xf32>
    %c0_5 = arith.constant 0 : index
    %c0_6 = arith.constant 0 : index
    %6 = vector.load %arg4[%c0_5, %c0_6] : memref<256x64xf32, #tpu.memory_space<vmem>>, vector<256x64xf32>
    %7 = arith.addf %5, %6 : vector<256x64xf32>
    %c0_7 = arith.constant 0 : index
    %c0_8 = arith.constant 0 : index
    %8 = vector.load %arg5[%c0_7, %c0_8] : memref<256x64xf32, #tpu.memory_space<vmem>>, vector<256x64xf32>
    tpu.vector_store %arg5[%c0_7, %c0_8], %7 {strides = array<i32>} : memref<256x64xf32, #tpu.memory_space<vmem>>, vector<256x64xf32>,
    return
  }
  func.func @transform_0(%arg0: i32) -> (i32, i32) {
    %c0_i32 = arith.constant 0 : i32
    %c0_i32_0 = arith.constant 0 : i32
    return %arg0, %c0_i32 : i32, i32
  }
  func.func @transform_1(%arg0: i32) -> (i32, i32) {
    %c0_i32 = arith.constant 0 : i32
    %c0_i32_0 = arith.constant 0 : i32
    %c0_i32_1 = arith.constant 0 : i32
    return %c0_i32, %c0_i32_0 : i32, i32
  }
  func.func @transform_2(%arg0: i32) -> (i32, i32) {
    %c0_i32 = arith.constant 0 : i32
    %c0_i32_0 = arith.constant 0 : i32
    %c0_i32_1 = arith.constant 0 : i32
    return %c0_i32, %c0_i32_0 : i32, i32
  }
  func.func @transform_3(%arg0: i32) -> (i32, i32) {
    %c0_i32 = arith.constant 0 : i32
    %c0_i32_0 = arith.constant 0 : i32
    return %arg0, %c0_i32 : i32, i32
  }
  func.func @transform_4(%arg0: i32) -> (i32, i32) {
    %c0_i32 = arith.constant 0 : i32
    %c0_i32_0 = arith.constant 0 : i32
    return %arg0, %c0_i32 : i32, i32
  }
}

module attributes {stable_mosaic.version = 11 : i64} {
  func.func @_mm_kernel(%arg0: i32, %arg1: memref<256x1600xf32, #tpu.memory_space<vmem>>, %arg2: memref<1600x4xf32, #tpu.memory_space<vmem>>, %arg3: memref<1x4xf32, #tpu.memory_space<vmem>>, %arg4: memref<256x4xf32, #tpu.memory_space<vmem>>) attributes {dimension_semantics = [#tpu.dimension_semantics<parallel>], iteration_bounds = array<i64: 2>, scalar_prefetch = 0 : i64, scratch_operands = 0 : i64, tpu.core_type = #tpu.core_type<tc>, window_params = [{transform_indices = @transform_0, window_bounds = array<i64: 256, 1600>}, {pipeline_mode = #tpu.pipeline_mode<synchronous>, transform_indices = @transform_1, window_bounds = array<i64: 1600, 4>}, {pipeline_mode = #tpu.pipeline_mode<synchronous>, transform_indices = @transform_2, window_bounds = array<i64: 1, 4>}, {transform_indices = @transform_3, window_bounds = array<i64: 256, 4>}]} {
    %c0 = arith.constant 0 : index
    %c0_0 = arith.constant 0 : index
    %0 = vector.load %arg1[%c0, %c0_0] : memref<256x1600xf32, #tpu.memory_space<vmem>>, vector<256x1600xf32>
    %c0_1 = arith.constant 0 : index
    %c0_2 = arith.constant 0 : index
    %1 = vector.load %arg2[%c0_1, %c0_2] : memref<1600x4xf32, #tpu.memory_space<vmem>>, vector<1600x4xf32>
    %cst = arith.constant dense<0.000000e+00> : vector<256x4xf32>
    %2 = tpu.matmul %0, %1, %cst {dimension_numbers = #tpu.dot_dimension_numbers<[1], [0], [0], [1], [0, 0, 1, 1], [], []>} : vector<256x1600xf32>, vector<1600x4xf32>, vector<256x4xf32> -> vector<256x4xf32>
    %c0_3 = arith.constant 0 : index
    %c0_4 = arith.constant 0 : index
    %3 = vector.load %arg3[%c0_3, %c0_4] : memref<1x4xf32, #tpu.memory_space<vmem>>, vector<1x4xf32>
    %4 = vector.broadcast %3 : vector<1x4xf32> to vector<256x4xf32>
    %5 = arith.addf %2, %4 : vector<256x4xf32>
    %cst_5 = arith.constant 1.000000e+00 : f32
    %6 = vector.broadcast %cst_5 : f32 to vector<256x4xf32>
    %7 = arith.addf %5, %6 : vector<256x4xf32>
    %cst_6 = arith.constant 0.000000e+00 : f32
    %8 = vector.broadcast %cst_6 : f32 to vector<256x4xf32>
    %9 = arith.maximumf %7, %8 : vector<256x4xf32>
    %cst_7 = arith.constant 9.99999993E-9 : f32
    %10 = vector.broadcast %cst_7 : f32 to vector<256x4xf32>
    %11 = arith.addf %9, %10 : vector<256x4xf32>
    %c0_8 = arith.constant 0 : index
    %c0_9 = arith.constant 0 : index
    %12 = vector.load %arg4[%c0_8, %c0_9] : memref<256x4xf32, #tpu.memory_space<vmem>>, vector<256x4xf32>
    tpu.vector_store %arg4[%c0_8, %c0_9], %11 {strides = array<i32>} : memref<256x4xf32, #tpu.memory_space<vmem>>, vector<256x4xf32>,
    return
  }
  func.func @transform_0(%arg0: i32) -> (i32, i32) {
    %c0_i32 = arith.constant 0 : i32
    %c0_i32_0 = arith.constant 0 : i32
    return %arg0, %c0_i32 : i32, i32
  }
  func.func @transform_1(%arg0: i32) -> (i32, i32) {
    %c0_i32 = arith.constant 0 : i32
    %c0_i32_0 = arith.constant 0 : i32
    %c0_i32_1 = arith.constant 0 : i32
    return %c0_i32, %c0_i32_0 : i32, i32
  }
  func.func @transform_2(%arg0: i32) -> (i32, i32) {
    %c0_i32 = arith.constant 0 : i32
    %c0_i32_0 = arith.constant 0 : i32
    %c0_i32_1 = arith.constant 0 : i32
    return %c0_i32, %c0_i32_0 : i32, i32
  }
  func.func @transform_3(%arg0: i32) -> (i32, i32) {
    %c0_i32 = arith.constant 0 : i32
    %c0_i32_0 = arith.constant 0 : i32
    return %arg0, %c0_i32 : i32, i32
  }
}

</mosaic_0001>

<bundles_post_ra>
// kernel: ood_calib_net_forward.42
= control target key start
LH: loop header
LB: loop body
LE: loop exit
PB: predicated region body
PF: predicated region fallthrough
CT: control target
= control target key end

     0   :  { %s646_s12 = smov 0   ;;  %s878_s0 = inlined_call_operand.vmem [shape: f32[512,100], index: 0, kind: input, shape index: {}]   ;;  %s879_s1 = inlined_call_operand.vmem [shape: f32[100,16], index: 1, kind: input, shape index: {}]   ;;  %s880_s2 = inlined_call_operand.vmem [shape: f32[1,16], index: 2, kind: input, shape index: {}]   ;;  %s881_s3 = inlined_call_operand.vmem [shape: f32[512,16], index: 3, kind: output, shape index: {}]  }
   0x1 LB: > { %s526_s13 = sadd.s32 4294967295, %s624_s12   ;;  %p530_p0 = scmp.ge.s32.totalorder %s624_s12, 1  ;;  %s624_s12 = sphi %s646_s12, %s13_s12  }
   0x2   : > { %p138_p1 = scmp.lt.s32.totalorder %s624_s12, 3 }
   0x4   : > { %p139_p2 = pnand %p530_p0, %p138_p1 }
   0x5   : > { %s531_s24 = sshll.u32 (!%p139_p2), %s526_s13, 5 }
   0x6   : > { %142 = sbr.rel (%p139_p2) target bundleno = 229 (0xe5), region = 32  ;;  %p163_p3 = scmp.lt.s32.totalorder (!%p139_p2), %s531_s24, 63 }
   0xb   : > { %v218_v0 = vld [vmem:[%s879_s1 + $0x60] sm:$0xf]  ;;  %vm320_vm0 = vcmask 1043456   ;;  %v217_v1 = vld [vmem:[%s879_s1 + $0x58] sm:$0xff]  ;;  %v216_v2 = vld [vmem:[%s879_s1 + $0x50] sm:$0xff]  ;;  %s883_s24 = smov (!%p163_p3, %s531_s24), 63 }
   0xc   : > { %571 = vmatpush.msk.msra.mxu2 %vm320_vm0, %v218_v0  ;;  %572 = vmatpush.msk.msra.mxu3 %vm320_vm0, %v218_v0  ;;  %v215_v3 = vld [vmem:[%s879_s1 + $0x48] sm:$0xff]  ;;  %v214_v4 = vld [vmem:[%s879_s1 + $0x40] sm:$0xff]  ;;  %v213_v5 = vld [vmem:[%s879_s1 + $0x38] sm:$0xff]  ;;  %s532_s8 = sshll.u32 %s883_s24, 3  ;;  %vm223_vm1 = vcmask 818176   ;;  %vm437_vm2 = vcmask 130048  }
   0xd   : > { %535 = vmatpush.msk.msra.mxu0 %vm320_vm0, %v218_v0  ;;  %570 = vmatpush.msk.msra.mxu1 %vm320_vm0, %v218_v0  ;;  %v212_v6 = vld [vmem:[%s879_s1 + $0x30] sm:$0xff]  ;;  %v211_v7 = vld [vmem:[%s879_s1 + $0x28] sm:$0xff]  ;;  %v210_v8 = vld [vmem:[%s879_s1 + $0x20] sm:$0xff]  ;;  %s698_s16 = scalar_lea.vmem %s878_s0, %s532_s8  ;;  %s777_s23 = scalar_lea.vmem %s881_s3, %s532_s8 }
   0xe   : > { %574 = vmatpush.msra.mxu2 %v217_v1  ;;  %575 = vmatpush.msra.mxu3 %v217_v1  ;;  %v209_v9 = vld [vmem:[%s879_s1 + $0x18] sm:$0xff]  ;;  %v208_v10 = vld [vmem:[%s879_s1 + $0x10] sm:$0xff]  ;;  %v207_v11 = vld [vmem:[%s879_s1 + $0x8] sm:$0xff] }
   0xf   : > { %328 = vmatpush.msra.mxu0 %v217_v1  ;;  %573 = vmatpush.msra.mxu1 %v217_v1  ;;  %v206_v12 = vld [vmem:[%s879_s1] sm:$0xff]  ;;  %v191_v17 = vld [vmem:[%s698_s16 + $0x88] sm:$0xff]  ;;  %v192_v21 = vld [vmem:[%s698_s16 + $0x90] sm:$0xff] }
  0x10   : > { %577 = vmatpush.msra.mxu2 %v216_v2  ;;  %578 = vmatpush.msra.mxu3 %v216_v2  ;;  %v190_v13 = vld [vmem:[%s698_s16 + $0x80] sm:$0xff]  ;;  %v199_v18 = vld [vmem:[%s698_s16 + $0xc8] sm:$0xff]  ;;  %v200_v22 = vld [vmem:[%s698_s16 + $0xd0] sm:$0xff] }
  0x11   : > { %329 = vmatpush.msra.mxu0 %v216_v2  ;;  %576 = vmatpush.msra.mxu1 %v216_v2  ;;  %v198_v14 = vld [vmem:[%s698_s16 + $0xc0] sm:$0xff]  ;;  %v175_v19 = vld [vmem:[%s698_s16 + $0x8] sm:$0xff]  ;;  %v176_v23 = vld [vmem:[%s698_s16 + $0x10] sm:$0xff] }
  0x12   : > { %580 = vmatpush.msra.mxu2 %v215_v3  ;;  %581 = vmatpush.msra.mxu3 %v215_v3  ;;  %v174_v15 = vld [vmem:[%s698_s16] sm:$0xff]  ;;  %v183_v20 = vld [vmem:[%s698_s16 + $0x48] sm:$0xff]  ;;  %v184_v24 = vld [vmem:[%s698_s16 + $0x50] sm:$0xff] }
  0x13   : > { %330 = vmatpush.msra.mxu0 %v215_v3  ;;  %579 = vmatpush.msra.mxu1 %v215_v3  ;;  %v182_v16 = vld [vmem:[%s698_s16 + $0x40] sm:$0xff]  ;;  %v193_v25 = vld [vmem:[%s698_s16 + $0x98] sm:$0xff]  ;;  %v195_v33 = vld [vmem:[%s698_s16 + $0xa8] sm:$0xff] }
  0x14   : > { %583 = vmatpush.msra.mxu2 %v214_v4  ;;  %584 = vmatpush.msra.mxu3 %v214_v4  ;;  %v201_v26 = vld [vmem:[%s698_s16 + $0xd8] sm:$0xff]  ;;  %v194_v29 = vld [vmem:[%s698_s16 + $0xa0] sm:$0xff]  ;;  %v203_v34 = vld [vmem:[%s698_s16 + $0xe8] sm:$0xff] }
  0x15   : > { %331 = vmatpush.msra.mxu0 %v214_v4  ;;  %582 = vmatpush.msra.mxu1 %v214_v4  ;;  %v177_v27 = vld [vmem:[%s698_s16 + $0x18] sm:$0xff]  ;;  %v202_v30 = vld [vmem:[%s698_s16 + $0xe0] sm:$0xff]  ;;  %v179_v35 = vld [vmem:[%s698_s16 + $0x28] sm:$0xff] }
  0x16   : > { %586 = vmatpush.msra.mxu2 %v213_v5  ;;  %587 = vmatpush.msra.mxu3 %v213_v5  ;;  %v185_v28 = vld [vmem:[%s698_s16 + $0x58] sm:$0xff]  ;;  %v178_v31 = vld [vmem:[%s698_s16 + $0x20] sm:$0xff]  ;;  %v187_v36 = vld [vmem:[%s698_s16 + $0x68] sm:$0xff] }
  0x17   : > { %332 = vmatpush.msra.mxu0 %v213_v5  ;;  %585 = vmatpush.msra.mxu1 %v213_v5  ;;  %v186_v32 = vld [vmem:[%s698_s16 + $0x60] sm:$0xff]  ;;  %v196_v37 = vld [vmem:[%s698_s16 + $0xb0] sm:$0xff]  ;;  %v197_v41 = vld [vmem:[%s698_s16 + $0xb8] sm:$0xff] }
  0x18   : > { %589 = vmatpush.msra.mxu2 %v212_v6  ;;  %590 = vmatpush.msra.mxu3 %v212_v6  ;;  %v204_v38 = vld [vmem:[%s698_s16 + $0xf0] sm:$0xff]  ;;  %v205_v42 = vld [vmem:[%s698_s16 + $0xf8] sm:$0xff]  ;;  %v770_v45 = vld [vmem:[%s880_s2] ss:$0 sm:$0xff] }
  0x19   : > { %333 = vmatpush.msra.mxu0 %v212_v6  ;;  %588 = vmatpush.msra.mxu1 %v212_v6  ;;  %v180_v39 = vld [vmem:[%s698_s16 + $0x30] sm:$0xff]  ;;  %v181_v43 = vld [vmem:[%s698_s16 + $0x38] sm:$0xff] }
  0x1a   : > { %592 = vmatpush.msra.mxu2 %v211_v7  ;;  %593 = vmatpush.msra.mxu3 %v211_v7  ;;  %v188_v40 = vld [vmem:[%s698_s16 + $0x70] sm:$0xff]  ;;  %v189_v44 = vld [vmem:[%s698_s16 + $0x78] sm:$0xff] }
  0x1b   : > { %334 = vmatpush.msra.mxu0 %v211_v7  ;;  %591 = vmatpush.msra.mxu1 %v211_v7 }
  0x1c   : > { %595 = vmatpush.msra.mxu2 %v210_v8  ;;  %596 = vmatpush.msra.mxu3 %v210_v8 }
  0x1d   : > { %335 = vmatpush.msra.mxu0 %v210_v8  ;;  %594 = vmatpush.msra.mxu1 %v210_v8 }
  0x1e   : > { %598 = vmatpush.msra.mxu2 %v209_v9  ;;  %599 = vmatpush.msra.mxu3 %v209_v9 }
  0x1f   : > { %336 = vmatpush.msra.mxu0 %v209_v9  ;;  %597 = vmatpush.msra.mxu1 %v209_v9 }
  0x20   : > { %601 = vmatpush.msra.mxu2 %v208_v10  ;;  %602 = vmatpush.msra.mxu3 %v208_v10 }
  0x21   : > { %337 = vmatpush.msra.mxu0 %v208_v10  ;;  %600 = vmatpush.msra.mxu1 %v208_v10 }
  0x22   : > { %604 = vmatpush.msra.mxu2 %v207_v11  ;;  %605 = vmatpush.msra.mxu3 %v207_v11 }
  0x23   : > { %338 = vmatpush.msra.mxu0 %v207_v11  ;;  %603 = vmatpush.msra.mxu1 %v207_v11 }
  0x24   : > { %607 = vmatpush.msra.mxu2 %v206_v12  ;;  %608 = vmatpush.msra.mxu3 %v206_v12 }
  0x25   : > { %552 = vmatmul.msk.f32.vlgmr.msra.gmra.mxu2 %vm223_vm1, %v190_v13  ;;  %560 = vmatmul.msk.f32.vlgmr.msra.gmra.mxu3 %vm223_vm1, %v198_v14 }
  0x26   : > { %339 = vmatpush.msra.mxu0 %v206_v12  ;;  %606 = vmatpush.msra.mxu1 %v206_v12 }
  0x27   : > { %536 = vmatmul.msk.f32.vlgmr.msra.gmra.mxu0 %vm223_vm1, %v174_v15  ;;  %544 = vmatmul.msk.f32.vlgmr.msra.gmra.mxu1 %vm223_vm1, %v182_v16 }
  0x2d   : > { %553 = vmatmul.msk.f32.gmra.mxu2 %vm223_vm1, %v191_v17  ;;  %561 = vmatmul.msk.f32.gmra.mxu3 %vm223_vm1, %v199_v18 }
  0x2f   : > { %537 = vmatmul.msk.f32.gmra.mxu0 %vm223_vm1, %v175_v19  ;;  %545 = vmatmul.msk.f32.gmra.mxu1 %vm223_vm1, %v183_v20 }
  0x35   : > { %554 = vmatmul.msk.f32.gmra.mxu2 %vm223_vm1, %v192_v21  ;;  %562 = vmatmul.msk.f32.gmra.mxu3 %vm223_vm1, %v200_v22 }
  0x37   : > { %538 = vmatmul.msk.f32.gmra.mxu0 %vm223_vm1, %v176_v23  ;;  %546 = vmatmul.msk.f32.gmra.mxu1 %vm223_vm1, %v184_v24 }
  0x3d   : > { %555 = vmatmul.msk.f32.gmra.mxu2 %vm223_vm1, %v193_v25  ;;  %563 = vmatmul.msk.f32.gmra.mxu3 %vm223_vm1, %v201_v26 }
  0x3f   : > { %539 = vmatmul.msk.f32.gmra.mxu0 %vm223_vm1, %v177_v27  ;;  %547 = vmatmul.msk.f32.gmra.mxu1 %vm223_vm1, %v185_v28 }
  0x45   : > { %556 = vmatmul.msk.f32.gmra.mxu2 %vm223_vm1, %v194_v29  ;;  %564 = vmatmul.msk.f32.gmra.mxu3 %vm223_vm1, %v202_v30 }
  0x47   : > { %540 = vmatmul.msk.f32.gmra.mxu0 %vm223_vm1, %v178_v31  ;;  %548 = vmatmul.msk.f32.gmra.mxu1 %vm223_vm1, %v186_v32 }
  0x4d   : > { %557 = vmatmul.msk.f32.gmra.mxu2 %vm223_vm1, %v195_v33  ;;  %565 = vmatmul.msk.f32.gmra.mxu3 %vm223_vm1, %v203_v34 }
  0x4f   : > { %541 = vmatmul.msk.f32.gmra.mxu0 %vm223_vm1, %v179_v35  ;;  %549 = vmatmul.msk.f32.gmra.mxu1 %vm223_vm1, %v187_v36 }
  0x55   : > { %558 = vmatmul.msk.f32.gmra.mxu2 %vm223_vm1, %v196_v37  ;;  %566 = vmatmul.msk.f32.gmra.mxu3 %vm223_vm1, %v204_v38 }
  0x57   : > { %542 = vmatmul.msk.f32.gmra.mxu0 %vm223_vm1, %v180_v39  ;;  %550 = vmatmul.msk.f32.gmra.mxu1 %vm223_vm1, %v188_v40 }
  0x5d   : > { %559 = vmatmul.msk.f32.gmra.mxu2 %vm223_vm1, %v197_v41  ;;  %567 = vmatmul.msk.f32.gmra.mxu3 %vm223_vm1, %v205_v42 }
  0x5f   : > { %543 = vmatmul.msk.f32.gmra.mxu0 %vm223_vm1, %v181_v43  ;;  %551 = vmatmul.msk.f32.gmra.mxu1 %vm223_vm1, %v189_v44 }
  0xa4   : > { %v341_v46 = vpop.f32.mrf.mxu0  ;;  %v365_v47 = vpop.f32.mrf.mxu1 }
  0xa5   : > { %v342_v48 = vadd.f32 %v770_v45, %v341_v46  ;;  %v366_v49 = vadd.f32 %v770_v45, %v365_v47 }
  0xa7   : > { %438 = vst.msk [vmem:[%s777_s23] sm:$0xff] %vm437_vm2, %v342_v48 }
  0xa8   : > { %446 = vst.msk [vmem:[%s777_s23 + $0x40] sm:$0xff] %vm437_vm2, %v366_v49  ;;  %v389_v50 = vpop.f32.mrf.mxu2  ;;  %v413_v51 = vpop.f32.mrf.mxu3 }
  0xa9   : > { %v390_v52 = vadd.f32 %v770_v45, %v389_v50  ;;  %v414_v53 = vadd.f32 %v770_v45, %v413_v51 }
  0xab   : > { %454 = vst.msk [vmem:[%s777_s23 + $0x80] sm:$0xff] %vm437_vm2, %v390_v52 }
  0xac   : > { %462 = vst.msk [vmem:[%s777_s23 + $0xc0] sm:$0xff] %vm437_vm2, %v414_v53  ;;  %v344_v54 = vpop.f32.mrf.mxu0  ;;  %v368_v55 = vpop.f32.mrf.mxu1 }
  0xad   : > { %v345_v56 = vadd.f32 %v770_v45, %v344_v54  ;;  %v369_v57 = vadd.f32 %v770_v45, %v368_v55 }
  0xaf   : > { %439 = vst.msk [vmem:[%s777_s23 + $0x8] sm:$0xff] %vm437_vm2, %v345_v56 }
  0xb0   : > { %447 = vst.msk [vmem:[%s777_s23 + $0x48] sm:$0xff] %vm437_vm2, %v369_v57  ;;  %v392_v58 = vpop.f32.mrf.mxu2  ;;  %v416_v59 = vpop.f32.mrf.mxu3 }
  0xb1   : > { %v393_v60 = vadd.f32 %v770_v45, %v392_v58  ;;  %v417_v61 = vadd.f32 %v770_v45, %v416_v59 }
  0xb3   : > { %455 = vst.msk [vmem:[%s777_s23 + $0x88] sm:$0xff] %vm437_vm2, %v393_v60 }
  0xb4   : > { %463 = vst.msk [vmem:[%s777_s23 + $0xc8] sm:$0xff] %vm437_vm2, %v417_v61  ;;  %v347_v62 = vpop.f32.mrf.mxu0  ;;  %v371_v63 = vpop.f32.mrf.mxu1 }
  0xb5   : > { %v348_v0 = vadd.f32 %v770_v45, %v347_v62  ;;  %v372_v1 = vadd.f32 %v770_v45, %v371_v63 }
  0xb7   : > { %440 = vst.msk [vmem:[%s777_s23 + $0x10] sm:$0xff] %vm437_vm2, %v348_v0 }
  0xb8   : > { %448 = vst.msk [vmem:[%s777_s23 + $0x50] sm:$0xff] %vm437_vm2, %v372_v1  ;;  %v395_v2 = vpop.f32.mrf.mxu2  ;;  %v419_v3 = vpop.f32.mrf.mxu3 }
  0xb9   : > { %v396_v4 = vadd.f32 %v770_v45, %v395_v2  ;;  %v420_v5 = vadd.f32 %v770_v45, %v419_v3 }
  0xbb   : > { %456 = vst.msk [vmem:[%s777_s23 + $0x90] sm:$0xff] %vm437_vm2, %v396_v4 }
  0xbc   : > { %464 = vst.msk [vmem:[%s777_s23 + $0xd0] sm:$0xff] %vm437_vm2, %v420_v5  ;;  %v350_v6 = vpop.f32.mrf.mxu0  ;;  %v374_v7 = vpop.f32.mrf.mxu1 }
  0xbd   : > { %v351_v8 = vadd.f32 %v770_v45, %v350_v6  ;;  %v375_v9 = vadd.f32 %v770_v45, %v374_v7 }
  0xbf   : > { %441 = vst.msk [vmem:[%s777_s23 + $0x18] sm:$0xff] %vm437_vm2, %v351_v8 }
  0xc0   : > { %449 = vst.msk [vmem:[%s777_s23 + $0x58] sm:$0xff] %vm437_vm2, %v375_v9  ;;  %v398_v10 = vpop.f32.mrf.mxu2  ;;  %v422_v11 = vpop.f32.mrf.mxu3 }
  0xc1   : > { %v399_v12 = vadd.f32 %v770_v45, %v398_v10  ;;  %v423_v13 = vadd.f32 %v770_v45, %v422_v11 }
  0xc3   : > { %457 = vst.msk [vmem:[%s777_s23 + $0x98] sm:$0xff] %vm437_vm2, %v399_v12 }
  0xc4   : > { %465 = vst.msk [vmem:[%s777_s23 + $0xd8] sm:$0xff] %vm437_vm2, %v423_v13  ;;  %v353_v14 = vpop.f32.mrf.mxu0  ;;  %v377_v15 = vpop.f32.mrf.mxu1 }
  0xc5   : > { %v354_v16 = vadd.f32 %v770_v45, %v353_v14  ;;  %v378_v17 = vadd.f32 %v770_v45, %v377_v15 }
  0xc7   : > { %442 = vst.msk [vmem:[%s777_s23 + $0x20] sm:$0xff] %vm437_vm2, %v354_v16 }
  0xc8   : > { %450 = vst.msk [vmem:[%s777_s23 + $0x60] sm:$0xff] %vm437_vm2, %v378_v17  ;;  %v401_v18 = vpop.f32.mrf.mxu2  ;;  %v425_v19 = vpop.f32.mrf.mxu3 }
  0xc9   : > { %v402_v20 = vadd.f32 %v770_v45, %v401_v18  ;;  %v426_v21 = vadd.f32 %v770_v45, %v425_v19 }
  0xcb   : > { %458 = vst.msk [vmem:[%s777_s23 + $0xa0] sm:$0xff] %vm437_vm2, %v402_v20 }
  0xcc   : > { %466 = vst.msk [vmem:[%s777_s23 + $0xe0] sm:$0xff] %vm437_vm2, %v426_v21  ;;  %v356_v22 = vpop.f32.mrf.mxu0  ;;  %v380_v23 = vpop.f32.mrf.mxu1 }
  0xcd   : > { %v357_v24 = vadd.f32 %v770_v45, %v356_v22  ;;  %v381_v25 = vadd.f32 %v770_v45, %v380_v23 }
  0xcf   : > { %443 = vst.msk [vmem:[%s777_s23 + $0x28] sm:$0xff] %vm437_vm2, %v357_v24 }
  0xd0   : > { %451 = vst.msk [vmem:[%s777_s23 + $0x68] sm:$0xff] %vm437_vm2, %v381_v25  ;;  %v404_v26 = vpop.f32.mrf.mxu2  ;;  %v428_v27 = vpop.f32.mrf.mxu3 }
  0xd1   : > { %v405_v28 = vadd.f32 %v770_v45, %v404_v26  ;;  %v429_v29 = vadd.f32 %v770_v45, %v428_v27 }
  0xd3   : > { %459 = vst.msk [vmem:[%s777_s23 + $0xa8] sm:$0xff] %vm437_vm2, %v405_v28 }
  0xd4   : > { %467 = vst.msk [vmem:[%s777_s23 + $0xe8] sm:$0xff] %vm437_vm2, %v429_v29  ;;  %v359_v30 = vpop.f32.mrf.mxu0  ;;  %v383_v31 = vpop.f32.mrf.mxu1 }
  0xd5   : > { %v360_v32 = vadd.f32 %v770_v45, %v359_v30  ;;  %v384_v33 = vadd.f32 %v770_v45, %v383_v31 }
  0xd7   : > { %444 = vst.msk [vmem:[%s777_s23 + $0x30] sm:$0xff] %vm437_vm2, %v360_v32 }
  0xd8   : > { %452 = vst.msk [vmem:[%s777_s23 + $0x70] sm:$0xff] %vm437_vm2, %v384_v33  ;;  %v407_v34 = vpop.f32.mrf.mxu2  ;;  %v431_v35 = vpop.f32.mrf.mxu3 }
  0xd9   : > { %v408_v36 = vadd.f32 %v770_v45, %v407_v34  ;;  %v432_v37 = vadd.f32 %v770_v45, %v431_v35 }
  0xdb   : > { %460 = vst.msk [vmem:[%s777_s23 + $0xb0] sm:$0xff] %vm437_vm2, %v408_v36 }
  0xdc   : > { %468 = vst.msk [vmem:[%s777_s23 + $0xf0] sm:$0xff] %vm437_vm2, %v432_v37  ;;  %v362_v38 = vpop.f32.mrf.mxu0  ;;  %v386_v39 = vpop.f32.mrf.mxu1 }
  0xdd   : > { %v363_v40 = vadd.f32 %v770_v45, %v362_v38  ;;  %v387_v41 = vadd.f32 %v770_v45, %v386_v39 }
  0xdf   : > { %445 = vst.msk [vmem:[%s777_s23 + $0x38] sm:$0xff] %vm437_vm2, %v363_v40 }
  0xe0   : > { %453 = vst.msk [vmem:[%s777_s23 + $0x78] sm:$0xff] %vm437_vm2, %v387_v41  ;;  %v410_v42 = vpop.f32.mrf.mxu2  ;;  %v434_v43 = vpop.f32.mrf.mxu3 }
  0xe1   : > { %v411_v44 = vadd.f32 %v770_v45, %v410_v42  ;;  %v435_v46 = vadd.f32 %v770_v45, %v434_v43 }
  0xe3   : > { %461 = vst.msk [vmem:[%s777_s23 + $0xb8] sm:$0xff] %vm437_vm2, %v411_v44 }
  0xe4   : > { %469 = vst.msk [vmem:[%s777_s23 + $0xf8] sm:$0xff] %vm437_vm2, %v435_v46 }
  0xe5 PF: > { %s13_s12 = sadd.s32 1, %s624_s12  }
  0xe6   : > { %p10_p4 = scmp.ge.s32.totalorder %s13_s12, 4  }
  0xe8   :  { %12 = sbr.rel (!%p10_p4) target bundleno = 1 (0x1), region = 62 }

// kernel: ood_calib_net_forward.43
= control target key start
LH: loop header
LB: loop body
LE: loop exit
PB: predicated region body
PF: predicated region fallthrough
CT: control target
= control target key end

     0   :  { %s822_s12 = smov 0   ;;  %s1118_s0 = inlined_call_operand.vmem [shape: f32[512,144], index: 0, kind: input, shape index: {}]   ;;  %s1119_s1 = inlined_call_operand.vmem [shape: f32[144,16], index: 1, kind: input, shape index: {}]   ;;  %s1120_s2 = inlined_call_operand.vmem [shape: f32[1,16], index: 2, kind: input, shape index: {}]   ;;  %s1121_s3 = inlined_call_operand.vmem [shape: f32[512,16], index: 3, kind: output, shape index: {}]  }
   0x1 LB: > { %s706_s13 = sadd.s32 4294967295, %s800_s12   ;;  %p710_p0 = scmp.ge.s32.totalorder %s800_s12, 1  ;;  %s800_s12 = sphi %s822_s12, %s13_s12  }
   0x2   : > { %p139_p1 = scmp.lt.s32.totalorder %s800_s12, 3 }
   0x4   : > { %p140_p2 = pnand %p710_p0, %p139_p1 }
   0x5   : > { %s711_s18 = sshll.u32 (!%p140_p2), %s706_s13, 5 }
   0x6   : > { %143 = sbr.rel (%p140_p2) target bundleno = 303 (0x12f), region = 32  ;;  %p165_p3 = scmp.lt.s32.totalorder (!%p140_p2), %s711_s18, 63 }
   0xb   : > { %v256_v0 = vld [vmem:[%s1119_s1 + $0x78] sm:$0xff]  ;;  %v255_v1 = vld [vmem:[%s1119_s1 + $0x70] sm:$0xff]  ;;  %v839_v2 = vld [vmem:[%s1119_s1 + $0x88] sm:$0xff]  ;;  %s1123_s18 = smov (!%p165_p3, %s711_s18), 63  ;;  %vm263_vm0 = vcmask 130048  }
   0xc   : > { %360 = vmatpush.msra.mxu0 %v256_v0  ;;  %751 = vmatpush.msra.mxu2 %v256_v0  ;;  %v844_v3 = vld [vmem:[%s1119_s1 + $0x80] sm:$0xff]  ;;  %v254_v4 = vld [vmem:[%s1119_s1 + $0x68] sm:$0xff]  ;;  %s750_s27 = sshll.u32 %s1123_s18, 4  ;;  %v252_v6 = vld [vmem:[%s1119_s1 + $0x58] sm:$0xff]  ;;  %s715_s6 = sshll.u32 %s1123_s18, 3 }
   0xd   : > { %752 = vmatpush.msra.mxu3 %v256_v0  ;;  %487 = vmatpush.msra.mxu1 %v839_v2  ;;  %v253_v5 = vld [vmem:[%s1119_s1 + $0x60] sm:$0xff]  ;;  %s860_s30 = scalar_lea.vmem %s1118_s0, %s750_s27  ;;  %v251_v8 = vld [vmem:[%s1119_s1 + $0x50] sm:$0xff]  ;;  %v250_v9 = vld [vmem:[%s1119_s1 + $0x48] sm:$0xff]  ;;  %s1006_s9 = scalar_lea.vmem %s1121_s3, %s715_s6 }
   0xe   : > { %361 = vmatpush.msra.mxu0 %v255_v1  ;;  %753 = vmatpush.msra.mxu2 %v255_v1  ;;  %v178_v7 = vld [vmem:[%s860_s30 + $0x8] sm:$0xff]  ;;  %v249_v10 = vld [vmem:[%s1119_s1 + $0x40] sm:$0xff]  ;;  %v180_v11 = vld [vmem:[%s860_s30 + $0x18] sm:$0xff] }
   0xf   : > { %754 = vmatpush.msra.mxu3 %v255_v1  ;;  %488 = vmatpush.msra.mxu1 %v844_v3  ;;  %v248_v12 = vld [vmem:[%s1119_s1 + $0x38] sm:$0xff]  ;;  %v247_v13 = vld [vmem:[%s1119_s1 + $0x30] sm:$0xff]  ;;  %v246_v14 = vld [vmem:[%s1119_s1 + $0x28] sm:$0xff] }
  0x10   : > { %362 = vmatpush.msra.mxu0 %v254_v4  ;;  %755 = vmatpush.msra.mxu2 %v254_v4  ;;  %v245_v15 = vld [vmem:[%s1119_s1 + $0x20] sm:$0xff]  ;;  %v182_v16 = vld [vmem:[%s860_s30 + $0x28] sm:$0xff]  ;;  %v244_v17 = vld [vmem:[%s1119_s1 + $0x18] sm:$0xff] }
  0x11   : > { %756 = vmatpush.msra.mxu3 %v254_v4  ;;  %716 = vmatmul.msk.f32.vlgmr.msra.gmra.mxu1 %vm263_vm0, %v178_v7  ;;  %v243_v18 = vld [vmem:[%s1119_s1 + $0x10] sm:$0xff]  ;;  %v242_v19 = vld [vmem:[%s1119_s1 + $0x8] sm:$0xff]  ;;  %v241_v20 = vld [vmem:[%s1119_s1] sm:$0xff] }
  0x12   : > { %363 = vmatpush.msra.mxu0 %v253_v5  ;;  %757 = vmatpush.msra.mxu2 %v253_v5  ;;  %v177_v21 = vld [vmem:[%s860_s30] sm:$0xff]  ;;  %v207_v22 = vld [vmem:[%s860_s30 + $0xf0] sm:$0xff]  ;;  %v184_v24 = vld [vmem:[%s860_s30 + $0x38] sm:$0xff] }
  0x13   : > { %758 = vmatpush.msra.mxu3 %v253_v5  ;;  %v239_v23 = vld [vmem:[%s860_s30 + $0x1f0] sm:$0xff]  ;;  %v209_v26 = vld [vmem:[%s860_s30 + $0x100] sm:$0xff]  ;;  %v214_v27 = vld [vmem:[%s860_s30 + $0x128] sm:$0xff] }
  0x14   : > { %364 = vmatpush.msra.mxu0 %v252_v6  ;;  %759 = vmatpush.msra.mxu2 %v252_v6  ;;  %v179_v25 = vld [vmem:[%s860_s30 + $0x10] sm:$0xff]  ;;  %v186_v28 = vld [vmem:[%s860_s30 + $0x48] sm:$0xff]  ;;  %v181_v29 = vld [vmem:[%s860_s30 + $0x20] sm:$0xff] }
  0x15   : > { %760 = vmatpush.msra.mxu3 %v252_v6  ;;  %v211_v30 = vld [vmem:[%s860_s30 + $0x110] sm:$0xff]  ;;  %v216_v31 = vld [vmem:[%s860_s30 + $0x138] sm:$0xff]  ;;  %v213_v34 = vld [vmem:[%s860_s30 + $0x120] sm:$0xff] }
  0x16   : > { %365 = vmatpush.msra.mxu0 %v251_v8  ;;  %761 = vmatpush.msra.mxu2 %v251_v8  ;;  %v188_v32 = vld [vmem:[%s860_s30 + $0x58] sm:$0xff]  ;;  %v183_v33 = vld [vmem:[%s860_s30 + $0x30] sm:$0xff]  ;;  %v218_v35 = vld [vmem:[%s860_s30 + $0x148] sm:$0xff] }
  0x17   : > { %762 = vmatpush.msra.mxu3 %v251_v8  ;;  %v190_v36 = vld [vmem:[%s860_s30 + $0x68] sm:$0xff]  ;;  %v185_v37 = vld [vmem:[%s860_s30 + $0x40] sm:$0xff]  ;;  %v215_v38 = vld [vmem:[%s860_s30 + $0x130] sm:$0xff] }
  0x18   : > { %366 = vmatpush.msra.mxu0 %v250_v9  ;;  %763 = vmatpush.msra.mxu2 %v250_v9  ;;  %v220_v39 = vld [vmem:[%s860_s30 + $0x158] sm:$0xff]  ;;  %v187_v41 = vld [vmem:[%s860_s30 + $0x50] sm:$0xff]  ;;  %v217_v42 = vld [vmem:[%s860_s30 + $0x140] sm:$0xff] }
  0x19   : > { %764 = vmatpush.msra.mxu3 %v250_v9  ;;  %717 = vmatmul.msk.f32.gmra.mxu1 %vm263_vm0, %v180_v11  ;;  %v192_v40 = vld [vmem:[%s860_s30 + $0x78] sm:$0xff]  ;;  %v222_v43 = vld [vmem:[%s860_s30 + $0x168] sm:$0xff]  ;;  %v189_v45 = vld [vmem:[%s860_s30 + $0x60] sm:$0xff] }
  0x1a   : > { %367 = vmatpush.msra.mxu0 %v249_v10  ;;  %765 = vmatpush.msra.mxu2 %v249_v10  ;;  %v194_v44 = vld [vmem:[%s860_s30 + $0x88] sm:$0xff]  ;;  %v219_v46 = vld [vmem:[%s860_s30 + $0x150] sm:$0xff]  ;;  %v224_v47 = vld [vmem:[%s860_s30 + $0x178] sm:$0xff] }
  0x1b   : > { %766 = vmatpush.msra.mxu3 %v249_v10  ;;  %v196_v48 = vld [vmem:[%s860_s30 + $0x98] sm:$0xff]  ;;  %v191_v49 = vld [vmem:[%s860_s30 + $0x70] sm:$0xff]  ;;  %v221_v50 = vld [vmem:[%s860_s30 + $0x160] sm:$0xff] }
  0x1c   : > { %368 = vmatpush.msra.mxu0 %v248_v12  ;;  %767 = vmatpush.msra.mxu2 %v248_v12  ;;  %v226_v51 = vld [vmem:[%s860_s30 + $0x188] sm:$0xff]  ;;  %v193_v53 = vld [vmem:[%s860_s30 + $0x80] sm:$0xff]  ;;  %v223_v54 = vld [vmem:[%s860_s30 + $0x170] sm:$0xff] }
  0x1d   : > { %768 = vmatpush.msra.mxu3 %v248_v12  ;;  %v198_v52 = vld [vmem:[%s860_s30 + $0xa8] sm:$0xff]  ;;  %v228_v55 = vld [vmem:[%s860_s30 + $0x198] sm:$0xff]  ;;  %v195_v57 = vld [vmem:[%s860_s30 + $0x90] sm:$0xff] }
  0x1e   : > { %369 = vmatpush.msra.mxu0 %v247_v13  ;;  %769 = vmatpush.msra.mxu2 %v247_v13  ;;  %v200_v56 = vld [vmem:[%s860_s30 + $0xb8] sm:$0xff]  ;;  %v225_v58 = vld [vmem:[%s860_s30 + $0x180] sm:$0xff]  ;;  %v230_v59 = vld [vmem:[%s860_s30 + $0x1a8] sm:$0xff] }
  0x1f   : > { %770 = vmatpush.msra.mxu3 %v247_v13  ;;  %v202_v60 = vld [vmem:[%s860_s30 + $0xc8] sm:$0xff]  ;;  %v197_v61 = vld [vmem:[%s860_s30 + $0xa0] sm:$0xff]  ;;  %v227_v62 = vld [vmem:[%s860_s30 + $0x190] sm:$0xff] }
  0x20   : > { %370 = vmatpush.msra.mxu0 %v246_v14  ;;  %771 = vmatpush.msra.mxu2 %v246_v14  ;;  %v232_v63 = vld [vmem:[%s860_s30 + $0x1b8] sm:$0xff]  ;;  %v199_v1 = vld [vmem:[%s860_s30 + $0xb0] sm:$0xff]  ;;  %v206_v4 = vld [vmem:[%s860_s30 + $0xe8] sm:$0xff] }
  0x21   : > { %772 = vmatpush.msra.mxu3 %v246_v14  ;;  %718 = vmatmul.msk.f32.gmra.mxu1 %vm263_vm0, %v182_v16  ;;  %v204_v0 = vld [vmem:[%s860_s30 + $0xd8] sm:$0xff]  ;;  %v201_v5 = vld [vmem:[%s860_s30 + $0xc0] sm:$0xff]  ;;  %v231_v6 = vld [vmem:[%s860_s30 + $0x1b0] sm:$0xff] }
  0x22   : > { %371 = vmatpush.msra.mxu0 %v245_v15  ;;  %773 = vmatpush.msra.mxu2 %v245_v15  ;;  %v236_v7 = vld [vmem:[%s860_s30 + $0x1d8] sm:$0xff]  ;;  %v203_v10 = vld [vmem:[%s860_s30 + $0xd0] sm:$0xff]  ;;  %v233_v11 = vld [vmem:[%s860_s30 + $0x1c0] sm:$0xff] }
  0x23   : > { %774 = vmatpush.msra.mxu3 %v245_v15  ;;  %v208_v8 = vld [vmem:[%s860_s30 + $0xf8] sm:$0xff]  ;;  %v238_v12 = vld [vmem:[%s860_s30 + $0x1e8] sm:$0xff]  ;;  %v205_v15 = vld [vmem:[%s860_s30 + $0xe0] sm:$0xff] }
  0x24   : > { %372 = vmatpush.msra.mxu0 %v244_v17  ;;  %775 = vmatpush.msra.mxu2 %v244_v17  ;;  %v210_v13 = vld [vmem:[%s860_s30 + $0x108] sm:$0xff]  ;;  %v235_v16 = vld [vmem:[%s860_s30 + $0x1d0] sm:$0xff] }
  0x25   : > { %776 = vmatpush.msra.mxu3 %v244_v17  ;;  %v240_v17 = vld [vmem:[%s860_s30 + $0x1f8] sm:$0xff] }
  0x26   : > { %373 = vmatpush.msra.mxu0 %v243_v18  ;;  %777 = vmatpush.msra.mxu2 %v243_v18 }
  0x27   : > { %778 = vmatpush.msra.mxu3 %v243_v18  ;;  %v212_v18 = vld [vmem:[%s860_s30 + $0x118] sm:$0xff] }
  0x28   : > { %374 = vmatpush.msra.mxu0 %v242_v19  ;;  %779 = vmatpush.msra.mxu2 %v242_v19 }
  0x29   : > { %780 = vmatpush.msra.mxu3 %v242_v19  ;;  %719 = vmatmul.msk.f32.gmra.mxu1 %vm263_vm0, %v184_v24 }
  0x2a   : > { %375 = vmatpush.msra.mxu0 %v241_v20  ;;  %781 = vmatpush.msra.mxu2 %v241_v20 }
  0x2b   : > { %782 = vmatpush.msra.mxu3 %v241_v20  ;;  %376 = vmatmul.f32.vlgmr.msra.gmra.mxu0 %v177_v21  ;;  %v237_v20 = vld [vmem:[%s860_s30 + $0x1e0] sm:$0xff] }
  0x2c   : > { %421 = vmatmul.f32.vlgmr.msra.gmra.mxu2 %v207_v22  ;;  %469 = vmatmul.f32.vlgmr.msra.gmra.mxu3 %v239_v23  ;;  %v999_v21 = vld [vmem:[%s1120_s2] ss:$0 sm:$0xff] }
  0x2d   : > { %783 = vmatpush.msrb.mxu3 %v839_v2  ;;  %v229_v2 = vld [vmem:[%s860_s30 + $0x1a0] sm:$0xff] }
  0x2f   : > { %784 = vmatpush.msrb.mxu3 %v844_v3  ;;  %v234_v3 = vld [vmem:[%s860_s30 + $0x1c8] sm:$0xff] }
  0x31   : > { %720 = vmatmul.msk.f32.gmra.mxu1 %vm263_vm0, %v186_v28 }
  0x33   : > { %379 = vmatmul.f32.gmra.mxu0 %v179_v25 }
  0x34   : > { %424 = vmatmul.f32.gmra.mxu2 %v209_v26  ;;  %734 = vmatmul.msk.f32.vlgmr.msrb.gmra.mxu3 %vm263_vm0, %v214_v27 }
  0x39   : > { %721 = vmatmul.msk.f32.gmra.mxu1 %vm263_vm0, %v188_v32 }
  0x3b   : > { %382 = vmatmul.f32.gmra.mxu0 %v181_v29 }
  0x3c   : > { %427 = vmatmul.f32.gmra.mxu2 %v211_v30  ;;  %735 = vmatmul.msk.f32.gmra.mxu3 %vm263_vm0, %v216_v31 }
  0x41   : > { %722 = vmatmul.msk.f32.gmra.mxu1 %vm263_vm0, %v190_v36 }
  0x43   : > { %385 = vmatmul.f32.gmra.mxu0 %v183_v33 }
  0x44   : > { %430 = vmatmul.f32.gmra.mxu2 %v213_v34  ;;  %736 = vmatmul.msk.f32.gmra.mxu3 %vm263_vm0, %v218_v35 }
  0x49   : > { %723 = vmatmul.msk.f32.gmra.mxu1 %vm263_vm0, %v192_v40 }
  0x4b   : > { %388 = vmatmul.f32.gmra.mxu0 %v185_v37 }
  0x4c   : > { %433 = vmatmul.f32.gmra.mxu2 %v215_v38  ;;  %737 = vmatmul.msk.f32.gmra.mxu3 %vm263_vm0, %v220_v39 }
  0x51   : > { %724 = vmatmul.msk.f32.gmra.mxu1 %vm263_vm0, %v194_v44 }
  0x53   : > { %391 = vmatmul.f32.gmra.mxu0 %v187_v41 }
  0x54   : > { %436 = vmatmul.f32.gmra.mxu2 %v217_v42  ;;  %738 = vmatmul.msk.f32.gmra.mxu3 %vm263_vm0, %v222_v43 }
  0x59   : > { %725 = vmatmul.msk.f32.gmra.mxu1 %vm263_vm0, %v196_v48 }
  0x5b   : > { %394 = vmatmul.f32.gmra.mxu0 %v189_v45 }
  0x5c   : > { %439 = vmatmul.f32.gmra.mxu2 %v219_v46  ;;  %739 = vmatmul.msk.f32.gmra.mxu3 %vm263_vm0, %v224_v47 }
  0x61   : > { %726 = vmatmul.msk.f32.gmra.mxu1 %vm263_vm0, %v198_v52 }
  0x63   : > { %397 = vmatmul.f32.gmra.mxu0 %v191_v49 }
  0x64   : > { %442 = vmatmul.f32.gmra.mxu2 %v221_v50  ;;  %740 = vmatmul.msk.f32.gmra.mxu3 %vm263_vm0, %v226_v51 }
  0x69   : > { %727 = vmatmul.msk.f32.gmra.mxu1 %vm263_vm0, %v200_v56 }
  0x6b   : > { %400 = vmatmul.f32.gmra.mxu0 %v193_v53 }
  0x6c   : > { %445 = vmatmul.f32.gmra.mxu2 %v223_v54  ;;  %741 = vmatmul.msk.f32.gmra.mxu3 %vm263_vm0, %v228_v55 }
  0x71   : > { %728 = vmatmul.msk.f32.gmra.mxu1 %vm263_vm0, %v202_v60 }
  0x73   : > { %403 = vmatmul.f32.gmra.mxu0 %v195_v57 }
  0x74   : > { %448 = vmatmul.f32.gmra.mxu2 %v225_v58  ;;  %742 = vmatmul.msk.f32.gmra.mxu3 %vm263_vm0, %v230_v59 }
  0x79   : > { %729 = vmatmul.msk.f32.gmra.mxu1 %vm263_vm0, %v204_v0 }
  0x7b   : > { %406 = vmatmul.f32.gmra.mxu0 %v197_v61 }
  0x7c   : > { %451 = vmatmul.f32.gmra.mxu2 %v227_v62  ;;  %743 = vmatmul.msk.f32.gmra.mxu3 %vm263_vm0, %v232_v63 }
  0x81   : > { %730 = vmatmul.msk.f32.gmra.mxu1 %vm263_vm0, %v206_v4 }
  0x83   : > { %409 = vmatmul.f32.gmra.mxu0 %v199_v1 }
  0x84   : > { %454 = vmatmul.f32.gmra.mxu2 %v229_v2  ;;  %744 = vmatmul.msk.f32.gmra.mxu3 %vm263_vm0, %v234_v3 }
  0x89   : > { %731 = vmatmul.msk.f32.gmra.mxu1 %vm263_vm0, %v208_v8 }
  0x8b   : > { %412 = vmatmul.f32.gmra.mxu0 %v201_v5 }
  0x8c   : > { %457 = vmatmul.f32.gmra.mxu2 %v231_v6  ;;  %745 = vmatmul.msk.f32.gmra.mxu3 %vm263_vm0, %v236_v7 }
  0x8e   : > { %v490_v9 = vpop.f32.mrf.mxu1 }
  0x91   : > { %732 = vmatmul.msk.f32.gmra.mxu1 %vm263_vm0, %v210_v13 }
  0x93   : > { %415 = vmatmul.f32.gmra.mxu0 %v203_v10 }
  0x94   : > { %460 = vmatmul.f32.gmra.mxu2 %v233_v11  ;;  %746 = vmatmul.msk.f32.gmra.mxu3 %vm263_vm0, %v238_v12 }
  0x96   : > { %v493_v14 = vpop.f32.mrf.mxu1 }
  0x99   : > { %733 = vmatmul.msk.f32.gmra.mxu1 %vm263_vm0, %v212_v18 }
  0x9b   : > { %418 = vmatmul.f32.gmra.mxu0 %v205_v15 }
  0x9c   : > { %463 = vmatmul.f32.gmra.mxu2 %v235_v16  ;;  %747 = vmatmul.msk.f32.gmra.mxu3 %vm263_vm0, %v240_v17 }
  0x9e   : > { %v496_v19 = vpop.f32.mrf.mxu1 }
  0xa4   : > { %466 = vmatmul.f32.gmra.mxu2 %v237_v20 }
  0xa6   : > { %v499_v24 = vpop.f32.mrf.mxu1 }
  0xa8   : > { %v377_v22 = vpop.f32.mrf.mxu0 }
  0xa9   : > { %v378_v23 = vadd.f32 %v999_v21, %v377_v22 }
  0xab   : > { %v491_v25 = vadd.f32 %v490_v9, %v378_v23 }
  0xad   : > { %v586_v26 = vmax.f32 %v491_v25, 0.0 }
  0xae   : > { %v502_v31 = vpop.f32.mrf.mxu1 }
  0xaf   : > { %618 = vst.msk [vmem:[%s1006_s9] sm:$0xff] %vm263_vm0, %v586_v26  ;;  %v1010_v27 = vpop.f32.mrf.mxu2  ;;  %v1012_v28 = vpop.f32.mrf.mxu3 }
  0xb0   : > { %v380_v29 = vpop.f32.mrf.mxu0 }
  0xb1   : > { %v381_v30 = vadd.f32 %v999_v21, %v380_v29 }
  0xb3   : > { %v494_v32 = vadd.f32 %v493_v14, %v381_v30 }
  0xb5   : > { %v587_v33 = vmax.f32 %v494_v32, 0.0 }
  0xb6   : > { %v505_v38 = vpop.f32.mrf.mxu1 }
  0xb7   : > { %619 = vst.msk [vmem:[%s1006_s9 + $0x8] sm:$0xff] %vm263_vm0, %v587_v33  ;;  %v1017_v34 = vpop.f32.mrf.mxu2  ;;  %v544_v35 = vpop.f32.mrf.mxu3 }
  0xb8   : > { %v383_v36 = vpop.f32.mrf.mxu0 }
  0xb9   : > { %v384_v37 = vadd.f32 %v999_v21, %v383_v36 }
  0xbb   : > { %v497_v39 = vadd.f32 %v496_v19, %v384_v37 }
  0xbd   : > { %v588_v40 = vmax.f32 %v497_v39, 0.0 }
  0xbe   : > { %v508_v45 = vpop.f32.mrf.mxu1 }
  0xbf   : > { %620 = vst.msk [vmem:[%s1006_s9 + $0x10] sm:$0xff] %vm263_vm0, %v588_v40  ;;  %v1022_v41 = vpop.f32.mrf.mxu2  ;;  %v547_v42 = vpop.f32.mrf.mxu3 }
  0xc0   : > { %v386_v43 = vpop.f32.mrf.mxu0 }
  0xc1   : > { %v387_v44 = vadd.f32 %v999_v21, %v386_v43 }
  0xc3   : > { %v500_v46 = vadd.f32 %v499_v24, %v387_v44 }
  0xc5   : > { %v589_v47 = vmax.f32 %v500_v46, 0.0 }
  0xc6   : > { %v511_v54 = vpop.f32.mrf.mxu1 }
  0xc7   : > { %621 = vst.msk [vmem:[%s1006_s9 + $0x18] sm:$0xff] %vm263_vm0, %v589_v47  ;;  %v431_v48 = vpop.f32.mrf.mxu2  ;;  %v550_v49 = vpop.f32.mrf.mxu3 }
  0xc8   : > { %v432_v50 = vadd.f32 %v999_v21, %v431_v48  ;;  %v389_v51 = vpop.f32.mrf.mxu0 }
  0xc9   : > { %v390_v52 = vadd.f32 %v999_v21, %v389_v51 }
  0xca   : > { %v545_v53 = vadd.f32 %v544_v35, %v432_v50 }
  0xcb   : > { %v503_v55 = vadd.f32 %v502_v31, %v390_v52 }
  0xcc   : > { %v604_v56 = vmax.f32 %v545_v53, 0.0 }
  0xcd   : > { %v590_v57 = vmax.f32 %v503_v55, 0.0 }
  0xce   : > { %636 = vst.msk [vmem:[%s1006_s9 + $0x90] sm:$0xff] %vm263_vm0, %v604_v56  ;;  %v514_v0 = vpop.f32.mrf.mxu1 }
  0xcf   : > { %622 = vst.msk [vmem:[%s1006_s9 + $0x20] sm:$0xff] %vm263_vm0, %v590_v57  ;;  %v434_v58 = vpop.f32.mrf.mxu2  ;;  %v553_v59 = vpop.f32.mrf.mxu3 }
  0xd0   : > { %v435_v60 = vadd.f32 %v999_v21, %v434_v58  ;;  %v392_v61 = vpop.f32.mrf.mxu0 }
  0xd1   : > { %v393_v62 = vadd.f32 %v999_v21, %v392_v61 }
  0xd2   : > { %v548_v63 = vadd.f32 %v547_v42, %v435_v60 }
  0xd3   : > { %v506_v1 = vadd.f32 %v505_v38, %v393_v62 }
  0xd4   : > { %v605_v2 = vmax.f32 %v548_v63, 0.0 }
  0xd5   : > { %v591_v3 = vmax.f32 %v506_v1, 0.0 }
  0xd6   : > { %637 = vst.msk [vmem:[%s1006_s9 + $0x98] sm:$0xff] %vm263_vm0, %v605_v2  ;;  %v517_v10 = vpop.f32.mrf.mxu1 }
  0xd7   : > { %623 = vst.msk [vmem:[%s1006_s9 + $0x28] sm:$0xff] %vm263_vm0, %v591_v3  ;;  %v437_v4 = vpop.f32.mrf.mxu2  ;;  %v556_v5 = vpop.f32.mrf.mxu3 }
  0xd8   : > { %v438_v6 = vadd.f32 %v999_v21, %v437_v4  ;;  %v395_v7 = vpop.f32.mrf.mxu0 }
  0xd9   : > { %v396_v8 = vadd.f32 %v999_v21, %v395_v7 }
  0xda   : > { %v551_v9 = vadd.f32 %v550_v49, %v438_v6 }
  0xdb   : > { %v509_v11 = vadd.f32 %v508_v45, %v396_v8 }
  0xdc   : > { %v606_v12 = vmax.f32 %v551_v9, 0.0  ;;  %v423_v9 = vadd.f32 %v999_v21, %v1010_v27 }
  0xdd   : > { %v592_v13 = vmax.f32 %v509_v11, 0.0 }
  0xde   : > { %638 = vst.msk [vmem:[%s1006_s9 + $0xa0] sm:$0xff] %vm263_vm0, %v606_v12  ;;  %v520_v20 = vpop.f32.mrf.mxu1 }
  0xdf   : > { %624 = vst.msk [vmem:[%s1006_s9 + $0x30] sm:$0xff] %vm263_vm0, %v592_v13  ;;  %v440_v14 = vpop.f32.mrf.mxu2  ;;  %v559_v15 = vpop.f32.mrf.mxu3 }
  0xe0   : > { %v441_v16 = vadd.f32 %v999_v21, %v440_v14  ;;  %v398_v17 = vpop.f32.mrf.mxu0 }
  0xe1   : > { %v399_v18 = vadd.f32 %v999_v21, %v398_v17 }
  0xe2   : > { %v554_v19 = vadd.f32 %v553_v59, %v441_v16 }
  0xe3   : > { %v512_v22 = vadd.f32 %v511_v54, %v399_v18 }
  0xe4   : > { %v607_v23 = vmax.f32 %v554_v19, 0.0 }
  0xe5   : > { %v593_v24 = vmax.f32 %v512_v22, 0.0  ;;  %v426_v22 = vadd.f32 %v999_v21, %v1017_v34 }
  0xe6   : > { %639 = vst.msk [vmem:[%s1006_s9 + $0xa8] sm:$0xff] %vm263_vm0, %v607_v23  ;;  %v523_v33 = vpop.f32.mrf.mxu1 }
  0xe7   : > { %625 = vst.msk [vmem:[%s1006_s9 + $0x38] sm:$0xff] %vm263_vm0, %v593_v24  ;;  %v443_v25 = vpop.f32.mrf.mxu2  ;;  %v562_v26 = vpop.f32.mrf.mxu3 }
  0xe8   : > { %v444_v29 = vadd.f32 %v999_v21, %v443_v25  ;;  %v401_v30 = vpop.f32.mrf.mxu0 }
  0xe9   : > { %v402_v31 = vadd.f32 %v999_v21, %v401_v30 }
  0xea   : > { %v557_v32 = vadd.f32 %v556_v5, %v444_v29 }
  0xeb   : > { %v515_v35 = vadd.f32 %v514_v0, %v402_v31 }
  0xec   : > { %v608_v36 = vmax.f32 %v557_v32, 0.0 }
  0xed   : > { %v594_v37 = vmax.f32 %v515_v35, 0.0 }
  0xee   : > { %640 = vst.msk [vmem:[%s1006_s9 + $0xb0] sm:$0xff] %vm263_vm0, %v608_v36  ;;  %v526_v45 = vpop.f32.mrf.mxu1 }
  0xef   : > { %626 = vst.msk [vmem:[%s1006_s9 + $0x40] sm:$0xff] %vm263_vm0, %v594_v37  ;;  %v446_v38 = vpop.f32.mrf.mxu2  ;;  %v565_v39 = vpop.f32.mrf.mxu3  ;;  %v429_v37 = vadd.f32 %v999_v21, %v1022_v41 }
  0xf0   : > { %v447_v40 = vadd.f32 %v999_v21, %v446_v38  ;;  %v404_v42 = vpop.f32.mrf.mxu0 }
  0xf1   : > { %v405_v43 = vadd.f32 %v999_v21, %v404_v42 }
  0xf2   : > { %v560_v44 = vadd.f32 %v559_v15, %v447_v40 }
  0xf3   : > { %v518_v46 = vadd.f32 %v517_v10, %v405_v43 }
  0xf4   : > { %v609_v47 = vmax.f32 %v560_v44, 0.0 }
  0xf5   : > { %v595_v48 = vmax.f32 %v518_v46, 0.0 }
  0xf6   : > { %641 = vst.msk [vmem:[%s1006_s9 + $0xb8] sm:$0xff] %vm263_vm0, %v609_v47  ;;  %v529_v55 = vpop.f32.mrf.mxu1  ;;  %v471_v47 = vadd.f32 %v999_v21, %v1012_v28 }
  0xf7   : > { %627 = vst.msk [vmem:[%s1006_s9 + $0x48] sm:$0xff] %vm263_vm0, %v595_v48  ;;  %v449_v49 = vpop.f32.mrf.mxu2  ;;  %v568_v50 = vpop.f32.mrf.mxu3 }
  0xf8   : > { %v450_v51 = vadd.f32 %v999_v21, %v449_v49  ;;  %v407_v52 = vpop.f32.mrf.mxu0 }
  0xf9   : > { %v408_v53 = vadd.f32 %v999_v21, %v407_v52 }
  0xfa   : > { %v563_v54 = vadd.f32 %v562_v26, %v450_v51 }
  0xfb   : > { %v521_v56 = vadd.f32 %v520_v20, %v408_v53 }
  0xfc   : > { %v610_v57 = vmax.f32 %v563_v54, 0.0 }
  0xfd   : > { %v596_v58 = vmax.f32 %v521_v56, 0.0 }
  0xfe   : > { %642 = vst.msk [vmem:[%s1006_s9 + $0xc0] sm:$0xff] %vm263_vm0, %v610_v57  ;;  %v532_v1 = vpop.f32.mrf.mxu1 }
  0xff   : > { %628 = vst.msk [vmem:[%s1006_s9 + $0x50] sm:$0xff] %vm263_vm0, %v596_v58  ;;  %v452_v59 = vpop.f32.mrf.mxu2  ;;  %v571_v60 = vpop.f32.mrf.mxu3 }
 0x100   : > { %v453_v61 = vadd.f32 %v999_v21, %v452_v59  ;;  %v410_v62 = vpop.f32.mrf.mxu0 }
 0x101   : > { %v411_v63 = vadd.f32 %v999_v21, %v410_v62 }
 0x102   : > { %v566_v0 = vadd.f32 %v565_v39, %v453_v61 }
 0x103   : > { %v524_v2 = vadd.f32 %v523_v33, %v411_v63 }
 0x104   : > { %v611_v3 = vmax.f32 %v566_v0, 0.0 }
 0x105   : > { %v597_v4 = vmax.f32 %v524_v2, 0.0 }
 0x106   : > { %643 = vst.msk [vmem:[%s1006_s9 + $0xc8] sm:$0xff] %vm263_vm0, %v611_v3  ;;  %v535_v12 = vpop.f32.mrf.mxu1 }
 0x107   : > { %629 = vst.msk [vmem:[%s1006_s9 + $0x58] sm:$0xff] %vm263_vm0, %v597_v4  ;;  %v455_v5 = vpop.f32.mrf.mxu2  ;;  %v574_v6 = vpop.f32.mrf.mxu3  ;;  %v536_v14 = vadd.f32 %v535_v12, %v423_v9 }
 0x108   : > { %v456_v7 = vadd.f32 %v999_v21, %v455_v5  ;;  %v413_v8 = vpop.f32.mrf.mxu0 }
 0x109   : > { %v414_v10 = vadd.f32 %v999_v21, %v413_v8  ;;  %v601_v17 = vmax.f32 %v536_v14, 0.0 }
 0x10a   : > { %v569_v11 = vadd.f32 %v568_v50, %v456_v7 }
 0x10b   : > { %v527_v13 = vadd.f32 %v526_v45, %v414_v10  ;;  %633 = vst.msk [vmem:[%s1006_s9 + $0x78] sm:$0xff] %vm263_vm0, %v601_v17 }
 0x10c   : > { %v612_v15 = vmax.f32 %v569_v11, 0.0 }
 0x10d   : > { %v598_v16 = vmax.f32 %v527_v13, 0.0 }
 0x10e   : > { %644 = vst.msk [vmem:[%s1006_s9 + $0xd0] sm:$0xff] %vm263_vm0, %v612_v15  ;;  %v538_v25 = vpop.f32.mrf.mxu1 }
 0x10f   : > { %630 = vst.msk [vmem:[%s1006_s9 + $0x60] sm:$0xff] %vm263_vm0, %v598_v16  ;;  %v458_v18 = vpop.f32.mrf.mxu2  ;;  %v577_v19 = vpop.f32.mrf.mxu3  ;;  %v539_v29 = vadd.f32 %v538_v25, %v426_v22 }
 0x110   : > { %v459_v27 = vadd.f32 %v999_v21, %v458_v18  ;;  %v416_v20 = vpop.f32.mrf.mxu0 }
 0x111   : > { %v417_v23 = vadd.f32 %v999_v21, %v416_v20  ;;  %v602_v32 = vmax.f32 %v539_v29, 0.0 }
 0x112   : > { %v572_v24 = vadd.f32 %v571_v60, %v459_v27 }
 0x113   : > { %v530_v26 = vadd.f32 %v529_v55, %v417_v23  ;;  %634 = vst.msk [vmem:[%s1006_s9 + $0x80] sm:$0xff] %vm263_vm0, %v602_v32 }
 0x114   : > { %v613_v30 = vmax.f32 %v572_v24, 0.0 }
 0x115   : > { %v599_v31 = vmax.f32 %v530_v26, 0.0 }
 0x116   : > { %645 = vst.msk [vmem:[%s1006_s9 + $0xd8] sm:$0xff] %vm263_vm0, %v613_v30  ;;  %v541_v40 = vpop.f32.mrf.mxu1 }
 0x117   : > { %631 = vst.msk [vmem:[%s1006_s9 + $0x68] sm:$0xff] %vm263_vm0, %v599_v31  ;;  %v461_v33 = vpop.f32.mrf.mxu2  ;;  %v580_v35 = vpop.f32.mrf.mxu3  ;;  %v542_v43 = vadd.f32 %v541_v40, %v429_v37 }
 0x118   : > { %v462_v34 = vadd.f32 %v999_v21, %v461_v33  ;;  %v419_v36 = vpop.f32.mrf.mxu0 }
 0x119   : > { %v420_v38 = vadd.f32 %v999_v21, %v419_v36  ;;  %v603_v46 = vmax.f32 %v542_v43, 0.0 }
 0x11a   : > { %v575_v39 = vadd.f32 %v574_v6, %v462_v34 }
 0x11b   : > { %v533_v42 = vadd.f32 %v532_v1, %v420_v38  ;;  %635 = vst.msk [vmem:[%s1006_s9 + $0x88] sm:$0xff] %vm263_vm0, %v603_v46 }
 0x11c   : > { %v614_v44 = vmax.f32 %v575_v39, 0.0 }
 0x11d   : > { %v600_v45 = vmax.f32 %v533_v42, 0.0 }
 0x11e   : > { %646 = vst.msk [vmem:[%s1006_s9 + $0xe0] sm:$0xff] %vm263_vm0, %v614_v44 }
 0x11f   : > { %632 = vst.msk [vmem:[%s1006_s9 + $0x70] sm:$0xff] %vm263_vm0, %v600_v45  ;;  %v464_v41 = vpop.f32.mrf.mxu2  ;;  %v583_v48 = vpop.f32.mrf.mxu3 }
 0x120   : > { %v465_v49 = vadd.f32 %v999_v21, %v464_v41  ;;  %v584_v50 = vadd.f32 %v583_v48, %v471_v47 }
 0x122   : > { %v578_v51 = vadd.f32 %v577_v19, %v465_v49  ;;  %v617_v52 = vmax.f32 %v584_v50, 0.0 }
 0x124   : > { %v615_v53 = vmax.f32 %v578_v51, 0.0  ;;  %649 = vst.msk [vmem:[%s1006_s9 + $0xf8] sm:$0xff] %vm263_vm0, %v617_v52 }
 0x126   : > { %647 = vst.msk [vmem:[%s1006_s9 + $0xe8] sm:$0xff] %vm263_vm0, %v615_v53 }
 0x127   : > { %v467_v28 = vpop.f32.mrf.mxu2 }
 0x128   : > { %v468_v54 = vadd.f32 %v999_v21, %v467_v28 }
 0x12a   : > { %v581_v55 = vadd.f32 %v580_v35, %v468_v54 }
 0x12c   : > { %v616_v56 = vmax.f32 %v581_v55, 0.0 }
 0x12e   : > { %648 = vst.msk [vmem:[%s1006_s9 + $0xf0] sm:$0xff] %vm263_vm0, %v616_v56 }
 0x12f PF: > { %s13_s12 = sadd.s32 1, %s800_s12  }
 0x130   : > { %p10_p4 = scmp.ge.s32.totalorder %s13_s12, 4  }
 0x132   :  { %12 = sbr.rel (!%p10_p4) target bundleno = 1 (0x1), region = 62 }

// kernel: ood_calib_net_forward.44
= control target key start
LH: loop header
LB: loop body
LE: loop exit
PB: predicated region body
PF: predicated region fallthrough
CT: control target
= control target key end

     0   :  { %s922_s15 = smov 0   ;;  %s1255_s0 = inlined_call_operand.vmem [shape: f32[512,144], index: 0, kind: input, shape index: {}]   ;;  %s1256_s1 = inlined_call_operand.vmem [shape: f32[144,16], index: 1, kind: input, shape index: {}]   ;;  %s1257_s2 = inlined_call_operand.vmem [shape: f32[1,16], index: 2, kind: input, shape index: {}]   ;;  %s1258_s3 = inlined_call_operand.vmem [shape: f32[512,16], index: 3, kind: input, shape index: {}]   ;;  %s1259_s4 = inlined_call_operand.vmem [shape: f32[512,16], index: 4, kind: output, shape index: {}]  }
   0x1 LB: > { %s799_s16 = sadd.s32 4294967295, %s895_s15   ;;  %p803_p0 = scmp.ge.s32.totalorder %s895_s15, 1  ;;  %s895_s15 = sphi %s922_s15, %s14_s15  }
   0x2   : > { %p175_p1 = scmp.lt.s32.totalorder %s895_s15, 3 }
   0x4   : > { %p176_p2 = pnand %p803_p0, %p175_p1 }
   0x5   : > { %s804_s21 = sshll.u32 (!%p176_p2), %s799_s16, 5 }
   0x6   : > { %179 = sbr.rel (%p176_p2) target bundleno = 303 (0x12f), region = 36  ;;  %p208_p3 = scmp.lt.s32.totalorder (!%p176_p2), %s804_s21, 63 }
   0xb   : > { %v305_v0 = vld [vmem:[%s1256_s1 + $0x78] sm:$0xff]  ;;  %v304_v1 = vld [vmem:[%s1256_s1 + $0x70] sm:$0xff]  ;;  %v939_v2 = vld [vmem:[%s1256_s1 + $0x88] sm:$0xff]  ;;  %s1261_s21 = smov (!%p208_p3, %s804_s21), 63  ;;  %vm312_vm0 = vcmask 130048  }
   0xc   : > { %409 = vmatpush.msra.mxu0 %v305_v0  ;;  %846 = vmatpush.msra.mxu2 %v305_v0  ;;  %v944_v3 = vld [vmem:[%s1256_s1 + $0x80] sm:$0xff]  ;;  %v303_v4 = vld [vmem:[%s1256_s1 + $0x68] sm:$0xff]  ;;  %s845_s30 = sshll.u32 %s1261_s21, 4  ;;  %v301_v6 = vld [vmem:[%s1256_s1 + $0x58] sm:$0xff]  ;;  %s808_s9 = sshll.u32 %s1261_s21, 3 }
   0xd   : > { %847 = vmatpush.msra.mxu3 %v305_v0  ;;  %536 = vmatpush.msra.mxu1 %v939_v2  ;;  %v302_v5 = vld [vmem:[%s1256_s1 + $0x60] sm:$0xff]  ;;  %s960_s7 = scalar_lea.vmem %s1255_s0, %s845_s30  ;;  %v300_v8 = vld [vmem:[%s1256_s1 + $0x50] sm:$0xff]  ;;  %v299_v9 = vld [vmem:[%s1256_s1 + $0x48] sm:$0xff]  ;;  %s1105_s14 = scalar_lea.vmem %s1258_s3, %s808_s9 }
   0xe   : > { %410 = vmatpush.msra.mxu0 %v304_v1  ;;  %848 = vmatpush.msra.mxu2 %v304_v1  ;;  %v227_v7 = vld [vmem:[%s960_s7 + $0x8] sm:$0xff]  ;;  %v298_v10 = vld [vmem:[%s1256_s1 + $0x40] sm:$0xff]  ;;  %v229_v11 = vld [vmem:[%s960_s7 + $0x18] sm:$0xff]  ;;  %s1112_s16 = scalar_lea.vmem %s1259_s4, %s808_s9 }
   0xf   : > { %849 = vmatpush.msra.mxu3 %v304_v1  ;;  %537 = vmatpush.msra.mxu1 %v944_v3  ;;  %v297_v12 = vld [vmem:[%s1256_s1 + $0x38] sm:$0xff]  ;;  %v296_v13 = vld [vmem:[%s1256_s1 + $0x30] sm:$0xff]  ;;  %v295_v14 = vld [vmem:[%s1256_s1 + $0x28] sm:$0xff] }
  0x10   : > { %411 = vmatpush.msra.mxu0 %v303_v4  ;;  %850 = vmatpush.msra.mxu2 %v303_v4  ;;  %v294_v15 = vld [vmem:[%s1256_s1 + $0x20] sm:$0xff]  ;;  %v231_v16 = vld [vmem:[%s960_s7 + $0x28] sm:$0xff]  ;;  %v293_v17 = vld [vmem:[%s1256_s1 + $0x18] sm:$0xff] }
  0x11   : > { %851 = vmatpush.msra.mxu3 %v303_v4  ;;  %811 = vmatmul.msk.f32.vlgmr.msra.gmra.mxu1 %vm312_vm0, %v227_v7  ;;  %v292_v18 = vld [vmem:[%s1256_s1 + $0x10] sm:$0xff]  ;;  %v291_v19 = vld [vmem:[%s1256_s1 + $0x8] sm:$0xff]  ;;  %v290_v20 = vld [vmem:[%s1256_s1] sm:$0xff] }
  0x12   : > { %412 = vmatpush.msra.mxu0 %v302_v5  ;;  %852 = vmatpush.msra.mxu2 %v302_v5  ;;  %v226_v21 = vld [vmem:[%s960_s7] sm:$0xff]  ;;  %v256_v22 = vld [vmem:[%s960_s7 + $0xf0] sm:$0xff]  ;;  %v233_v24 = vld [vmem:[%s960_s7 + $0x38] sm:$0xff] }
  0x13   : > { %853 = vmatpush.msra.mxu3 %v302_v5  ;;  %v288_v23 = vld [vmem:[%s960_s7 + $0x1f0] sm:$0xff]  ;;  %v258_v26 = vld [vmem:[%s960_s7 + $0x100] sm:$0xff]  ;;  %v263_v27 = vld [vmem:[%s960_s7 + $0x128] sm:$0xff] }
  0x14   : > { %413 = vmatpush.msra.mxu0 %v301_v6  ;;  %854 = vmatpush.msra.mxu2 %v301_v6  ;;  %v228_v25 = vld [vmem:[%s960_s7 + $0x10] sm:$0xff]  ;;  %v235_v28 = vld [vmem:[%s960_s7 + $0x48] sm:$0xff]  ;;  %v230_v29 = vld [vmem:[%s960_s7 + $0x20] sm:$0xff] }
  0x15   : > { %855 = vmatpush.msra.mxu3 %v301_v6  ;;  %v260_v30 = vld [vmem:[%s960_s7 + $0x110] sm:$0xff]  ;;  %v265_v31 = vld [vmem:[%s960_s7 + $0x138] sm:$0xff]  ;;  %v262_v34 = vld [vmem:[%s960_s7 + $0x120] sm:$0xff] }
  0x16   : > { %414 = vmatpush.msra.mxu0 %v300_v8  ;;  %856 = vmatpush.msra.mxu2 %v300_v8  ;;  %v237_v32 = vld [vmem:[%s960_s7 + $0x58] sm:$0xff]  ;;  %v232_v33 = vld [vmem:[%s960_s7 + $0x30] sm:$0xff]  ;;  %v267_v35 = vld [vmem:[%s960_s7 + $0x148] sm:$0xff] }
  0x17   : > { %857 = vmatpush.msra.mxu3 %v300_v8  ;;  %v239_v36 = vld [vmem:[%s960_s7 + $0x68] sm:$0xff]  ;;  %v234_v37 = vld [vmem:[%s960_s7 + $0x40] sm:$0xff]  ;;  %v264_v38 = vld [vmem:[%s960_s7 + $0x130] sm:$0xff] }
  0x18   : > { %415 = vmatpush.msra.mxu0 %v299_v9  ;;  %858 = vmatpush.msra.mxu2 %v299_v9  ;;  %v269_v39 = vld [vmem:[%s960_s7 + $0x158] sm:$0xff]  ;;  %v236_v41 = vld [vmem:[%s960_s7 + $0x50] sm:$0xff]  ;;  %v266_v42 = vld [vmem:[%s960_s7 + $0x140] sm:$0xff] }
  0x19   : > { %859 = vmatpush.msra.mxu3 %v299_v9  ;;  %812 = vmatmul.msk.f32.gmra.mxu1 %vm312_vm0, %v229_v11  ;;  %v241_v40 = vld [vmem:[%s960_s7 + $0x78] sm:$0xff]  ;;  %v271_v43 = vld [vmem:[%s960_s7 + $0x168] sm:$0xff]  ;;  %v238_v45 = vld [vmem:[%s960_s7 + $0x60] sm:$0xff] }
  0x1a   : > { %416 = vmatpush.msra.mxu0 %v298_v10  ;;  %860 = vmatpush.msra.mxu2 %v298_v10  ;;  %v243_v44 = vld [vmem:[%s960_s7 + $0x88] sm:$0xff]  ;;  %v268_v46 = vld [vmem:[%s960_s7 + $0x150] sm:$0xff]  ;;  %v273_v47 = vld [vmem:[%s960_s7 + $0x178] sm:$0xff] }
  0x1b   : > { %861 = vmatpush.msra.mxu3 %v298_v10  ;;  %v245_v48 = vld [vmem:[%s960_s7 + $0x98] sm:$0xff]  ;;  %v240_v49 = vld [vmem:[%s960_s7 + $0x70] sm:$0xff]  ;;  %v270_v50 = vld [vmem:[%s960_s7 + $0x160] sm:$0xff] }
  0x1c   : > { %417 = vmatpush.msra.mxu0 %v297_v12  ;;  %862 = vmatpush.msra.mxu2 %v297_v12  ;;  %v275_v51 = vld [vmem:[%s960_s7 + $0x188] sm:$0xff]  ;;  %v242_v53 = vld [vmem:[%s960_s7 + $0x80] sm:$0xff]  ;;  %v272_v54 = vld [vmem:[%s960_s7 + $0x170] sm:$0xff] }
  0x1d   : > { %863 = vmatpush.msra.mxu3 %v297_v12  ;;  %v247_v52 = vld [vmem:[%s960_s7 + $0xa8] sm:$0xff]  ;;  %v277_v55 = vld [vmem:[%s960_s7 + $0x198] sm:$0xff]  ;;  %v244_v57 = vld [vmem:[%s960_s7 + $0x90] sm:$0xff] }
  0x1e   : > { %418 = vmatpush.msra.mxu0 %v296_v13  ;;  %864 = vmatpush.msra.mxu2 %v296_v13  ;;  %v249_v56 = vld [vmem:[%s960_s7 + $0xb8] sm:$0xff]  ;;  %v274_v58 = vld [vmem:[%s960_s7 + $0x180] sm:$0xff]  ;;  %v279_v59 = vld [vmem:[%s960_s7 + $0x1a8] sm:$0xff] }
  0x1f   : > { %865 = vmatpush.msra.mxu3 %v296_v13  ;;  %v251_v60 = vld [vmem:[%s960_s7 + $0xc8] sm:$0xff]  ;;  %v246_v61 = vld [vmem:[%s960_s7 + $0xa0] sm:$0xff]  ;;  %v276_v62 = vld [vmem:[%s960_s7 + $0x190] sm:$0xff] }
  0x20   : > { %419 = vmatpush.msra.mxu0 %v295_v14  ;;  %866 = vmatpush.msra.mxu2 %v295_v14  ;;  %v281_v63 = vld [vmem:[%s960_s7 + $0x1b8] sm:$0xff]  ;;  %v248_v1 = vld [vmem:[%s960_s7 + $0xb0] sm:$0xff]  ;;  %v255_v4 = vld [vmem:[%s960_s7 + $0xe8] sm:$0xff] }
  0x21   : > { %867 = vmatpush.msra.mxu3 %v295_v14  ;;  %813 = vmatmul.msk.f32.gmra.mxu1 %vm312_vm0, %v231_v16  ;;  %v253_v0 = vld [vmem:[%s960_s7 + $0xd8] sm:$0xff]  ;;  %v250_v5 = vld [vmem:[%s960_s7 + $0xc0] sm:$0xff]  ;;  %v280_v6 = vld [vmem:[%s960_s7 + $0x1b0] sm:$0xff] }
  0x22   : > { %420 = vmatpush.msra.mxu0 %v294_v15  ;;  %868 = vmatpush.msra.mxu2 %v294_v15  ;;  %v285_v7 = vld [vmem:[%s960_s7 + $0x1d8] sm:$0xff]  ;;  %v252_v10 = vld [vmem:[%s960_s7 + $0xd0] sm:$0xff]  ;;  %v282_v11 = vld [vmem:[%s960_s7 + $0x1c0] sm:$0xff] }
  0x23   : > { %869 = vmatpush.msra.mxu3 %v294_v15  ;;  %v257_v8 = vld [vmem:[%s960_s7 + $0xf8] sm:$0xff]  ;;  %v287_v12 = vld [vmem:[%s960_s7 + $0x1e8] sm:$0xff]  ;;  %v254_v15 = vld [vmem:[%s960_s7 + $0xe0] sm:$0xff] }
  0x24   : > { %421 = vmatpush.msra.mxu0 %v293_v17  ;;  %870 = vmatpush.msra.mxu2 %v293_v17  ;;  %v259_v13 = vld [vmem:[%s960_s7 + $0x108] sm:$0xff]  ;;  %v284_v16 = vld [vmem:[%s960_s7 + $0x1d0] sm:$0xff] }
  0x25   : > { %871 = vmatpush.msra.mxu3 %v293_v17  ;;  %v289_v17 = vld [vmem:[%s960_s7 + $0x1f8] sm:$0xff] }
  0x26   : > { %422 = vmatpush.msra.mxu0 %v292_v18  ;;  %872 = vmatpush.msra.mxu2 %v292_v18 }
  0x27   : > { %873 = vmatpush.msra.mxu3 %v292_v18  ;;  %v261_v18 = vld [vmem:[%s960_s7 + $0x118] sm:$0xff] }
  0x28   : > { %423 = vmatpush.msra.mxu0 %v291_v19  ;;  %874 = vmatpush.msra.mxu2 %v291_v19 }
  0x29   : > { %875 = vmatpush.msra.mxu3 %v291_v19  ;;  %814 = vmatmul.msk.f32.gmra.mxu1 %vm312_vm0, %v233_v24  ;;  %v635_v24 = vld [vmem:[%s1105_s14] sm:$0xff] }
  0x2a   : > { %424 = vmatpush.msra.mxu0 %v290_v20  ;;  %876 = vmatpush.msra.mxu2 %v290_v20 }
  0x2b   : > { %877 = vmatpush.msra.mxu3 %v290_v20  ;;  %425 = vmatmul.f32.vlgmr.msra.gmra.mxu0 %v226_v21  ;;  %v286_v20 = vld [vmem:[%s960_s7 + $0x1e0] sm:$0xff] }
  0x2c   : > { %470 = vmatmul.f32.vlgmr.msra.gmra.mxu2 %v256_v22  ;;  %518 = vmatmul.f32.vlgmr.msra.gmra.mxu3 %v288_v23  ;;  %v1100_v21 = vld [vmem:[%s1257_s2] ss:$0 sm:$0xff] }
  0x2d   : > { %878 = vmatpush.msrb.mxu3 %v939_v2  ;;  %v278_v2 = vld [vmem:[%s960_s7 + $0x1a0] sm:$0xff] }
  0x2f   : > { %879 = vmatpush.msrb.mxu3 %v944_v3  ;;  %v283_v3 = vld [vmem:[%s960_s7 + $0x1c8] sm:$0xff] }
  0x31   : > { %815 = vmatmul.msk.f32.gmra.mxu1 %vm312_vm0, %v235_v28 }
  0x33   : > { %428 = vmatmul.f32.gmra.mxu0 %v228_v25 }
  0x34   : > { %473 = vmatmul.f32.gmra.mxu2 %v258_v26  ;;  %829 = vmatmul.msk.f32.vlgmr.msrb.gmra.mxu3 %vm312_vm0, %v263_v27 }
  0x39   : > { %816 = vmatmul.msk.f32.gmra.mxu1 %vm312_vm0, %v237_v32  ;;  %v636_v32 = vld [vmem:[%s1105_s14 + $0x8] sm:$0xff] }
  0x3b   : > { %431 = vmatmul.f32.gmra.mxu0 %v230_v29 }
  0x3c   : > { %476 = vmatmul.f32.gmra.mxu2 %v260_v30  ;;  %830 = vmatmul.msk.f32.gmra.mxu3 %vm312_vm0, %v265_v31 }
  0x41   : > { %817 = vmatmul.msk.f32.gmra.mxu1 %vm312_vm0, %v239_v36 }
  0x43   : > { %434 = vmatmul.f32.gmra.mxu0 %v232_v33 }
  0x44   : > { %479 = vmatmul.f32.gmra.mxu2 %v262_v34  ;;  %831 = vmatmul.msk.f32.gmra.mxu3 %vm312_vm0, %v267_v35 }
  0x49   : > { %818 = vmatmul.msk.f32.gmra.mxu1 %vm312_vm0, %v241_v40  ;;  %v637_v40 = vld [vmem:[%s1105_s14 + $0x10] sm:$0xff] }
  0x4b   : > { %437 = vmatmul.f32.gmra.mxu0 %v234_v37 }
  0x4c   : > { %482 = vmatmul.f32.gmra.mxu2 %v264_v38  ;;  %832 = vmatmul.msk.f32.gmra.mxu3 %vm312_vm0, %v269_v39 }
  0x51   : > { %819 = vmatmul.msk.f32.gmra.mxu1 %vm312_vm0, %v243_v44 }
  0x53   : > { %440 = vmatmul.f32.gmra.mxu0 %v236_v41 }
  0x54   : > { %485 = vmatmul.f32.gmra.mxu2 %v266_v42  ;;  %833 = vmatmul.msk.f32.gmra.mxu3 %vm312_vm0, %v271_v43 }
  0x59   : > { %820 = vmatmul.msk.f32.gmra.mxu1 %vm312_vm0, %v245_v48  ;;  %v638_v48 = vld [vmem:[%s1105_s14 + $0x18] sm:$0xff] }
  0x5b   : > { %443 = vmatmul.f32.gmra.mxu0 %v238_v45 }
  0x5c   : > { %488 = vmatmul.f32.gmra.mxu2 %v268_v46  ;;  %834 = vmatmul.msk.f32.gmra.mxu3 %vm312_vm0, %v273_v47 }
  0x61   : > { %821 = vmatmul.msk.f32.gmra.mxu1 %vm312_vm0, %v247_v52 }
  0x63   : > { %446 = vmatmul.f32.gmra.mxu0 %v240_v49 }
  0x64   : > { %491 = vmatmul.f32.gmra.mxu2 %v270_v50  ;;  %835 = vmatmul.msk.f32.gmra.mxu3 %vm312_vm0, %v275_v51 }
  0x69   : > { %822 = vmatmul.msk.f32.gmra.mxu1 %vm312_vm0, %v249_v56  ;;  %v653_v56 = vld [vmem:[%s1105_s14 + $0x90] sm:$0xff] }
  0x6b   : > { %449 = vmatmul.f32.gmra.mxu0 %v242_v53 }
  0x6c   : > { %494 = vmatmul.f32.gmra.mxu2 %v272_v54  ;;  %836 = vmatmul.msk.f32.gmra.mxu3 %vm312_vm0, %v277_v55 }
  0x71   : > { %823 = vmatmul.msk.f32.gmra.mxu1 %vm312_vm0, %v251_v60 }
  0x73   : > { %452 = vmatmul.f32.gmra.mxu0 %v244_v57 }
  0x74   : > { %497 = vmatmul.f32.gmra.mxu2 %v274_v58  ;;  %837 = vmatmul.msk.f32.gmra.mxu3 %vm312_vm0, %v279_v59  ;;  %v639_v59 = vld [vmem:[%s1105_s14 + $0x20] sm:$0xff] }
  0x79   : > { %824 = vmatmul.msk.f32.gmra.mxu1 %vm312_vm0, %v253_v0 }
  0x7b   : > { %455 = vmatmul.f32.gmra.mxu0 %v246_v61 }
  0x7c   : > { %500 = vmatmul.f32.gmra.mxu2 %v276_v62  ;;  %838 = vmatmul.msk.f32.gmra.mxu3 %vm312_vm0, %v281_v63 }
  0x81   : > { %825 = vmatmul.msk.f32.gmra.mxu1 %vm312_vm0, %v255_v4  ;;  %v654_v4 = vld [vmem:[%s1105_s14 + $0x98] sm:$0xff] }
  0x83   : > { %458 = vmatmul.f32.gmra.mxu0 %v248_v1 }
  0x84   : > { %503 = vmatmul.f32.gmra.mxu2 %v278_v2  ;;  %839 = vmatmul.msk.f32.gmra.mxu3 %vm312_vm0, %v283_v3 }
  0x89   : > { %826 = vmatmul.msk.f32.gmra.mxu1 %vm312_vm0, %v257_v8 }
  0x8b   : > { %461 = vmatmul.f32.gmra.mxu0 %v250_v5 }
  0x8c   : > { %506 = vmatmul.f32.gmra.mxu2 %v280_v6  ;;  %840 = vmatmul.msk.f32.gmra.mxu3 %vm312_vm0, %v285_v7  ;;  %v640_v7 = vld [vmem:[%s1105_s14 + $0x28] sm:$0xff] }
  0x8e   : > { %v539_v9 = vpop.f32.mrf.mxu1 }
  0x91   : > { %827 = vmatmul.msk.f32.gmra.mxu1 %vm312_vm0, %v259_v13 }
  0x93   : > { %464 = vmatmul.f32.gmra.mxu0 %v252_v10 }
  0x94   : > { %509 = vmatmul.f32.gmra.mxu2 %v282_v11  ;;  %841 = vmatmul.msk.f32.gmra.mxu3 %vm312_vm0, %v287_v12 }
  0x96   : > { %v542_v14 = vpop.f32.mrf.mxu1 }
  0x99   : > { %828 = vmatmul.msk.f32.gmra.mxu1 %vm312_vm0, %v261_v18 }
  0x9b   : > { %467 = vmatmul.f32.gmra.mxu0 %v254_v15 }
  0x9c   : > { %512 = vmatmul.f32.gmra.mxu2 %v284_v16  ;;  %842 = vmatmul.msk.f32.gmra.mxu3 %vm312_vm0, %v289_v17  ;;  %v655_v16 = vld [vmem:[%s1105_s14 + $0xa0] sm:$0xff] }
  0x9e   : > { %v545_v19 = vpop.f32.mrf.mxu1 }
  0xa4   : > { %515 = vmatmul.f32.gmra.mxu2 %v286_v20 }
  0xa6   : > { %v548_v25 = vpop.f32.mrf.mxu1 }
  0xa8   : > { %v426_v22 = vpop.f32.mrf.mxu0 }
  0xa9   : > { %v427_v23 = vadd.f32 %v1100_v21, %v426_v22 }
  0xab   : > { %v540_v26 = vadd.f32 %v539_v9, %v427_v23 }
  0xad   : > { %v667_v27 = vadd.f32 %v635_v24, %v540_v26 }
  0xae   : > { %v551_v33 = vpop.f32.mrf.mxu1 }
  0xaf   : > { %699 = vst.msk [vmem:[%s1112_s16] sm:$0xff] %vm312_vm0, %v667_v27  ;;  %v1116_v28 = vpop.f32.mrf.mxu2  ;;  %v1118_v29 = vpop.f32.mrf.mxu3 }
  0xb0   : > { %v429_v30 = vpop.f32.mrf.mxu0 }
  0xb1   : > { %v430_v31 = vadd.f32 %v1100_v21, %v429_v30 }
  0xb3   : > { %v543_v34 = vadd.f32 %v542_v14, %v430_v31  ;;  %v656_v31 = vld [vmem:[%s1105_s14 + $0xa8] sm:$0xff] }
  0xb5   : > { %v668_v35 = vadd.f32 %v636_v32, %v543_v34  ;;  %v642_v34 = vld [vmem:[%s1105_s14 + $0x38] sm:$0xff] }
  0xb6   : > { %v554_v41 = vpop.f32.mrf.mxu1 }
  0xb7   : > { %700 = vst.msk [vmem:[%s1112_s16 + $0x8] sm:$0xff] %vm312_vm0, %v668_v35  ;;  %v1124_v36 = vpop.f32.mrf.mxu2  ;;  %v593_v37 = vpop.f32.mrf.mxu3 }
  0xb8   : > { %v432_v38 = vpop.f32.mrf.mxu0 }
  0xb9   : > { %v433_v39 = vadd.f32 %v1100_v21, %v432_v38 }
  0xbb   : > { %v546_v42 = vadd.f32 %v545_v19, %v433_v39  ;;  %v641_v19 = vld [vmem:[%s1105_s14 + $0x30] sm:$0xff] }
  0xbd   : > { %v669_v43 = vadd.f32 %v637_v40, %v546_v42 }
  0xbe   : > { %v557_v49 = vpop.f32.mrf.mxu1 }
  0xbf   : > { %701 = vst.msk [vmem:[%s1112_s16 + $0x10] sm:$0xff] %vm312_vm0, %v669_v43  ;;  %v1130_v44 = vpop.f32.mrf.mxu2  ;;  %v596_v45 = vpop.f32.mrf.mxu3 }
  0xc0   : > { %v435_v46 = vpop.f32.mrf.mxu0 }
  0xc1   : > { %v436_v47 = vadd.f32 %v1100_v21, %v435_v46 }
  0xc3   : > { %v549_v50 = vadd.f32 %v548_v25, %v436_v47 }
  0xc5   : > { %v670_v51 = vadd.f32 %v638_v48, %v549_v50  ;;  %v643_v48 = vld [vmem:[%s1105_s14 + $0x40] sm:$0xff] }
  0xc6   : > { %v560_v60 = vpop.f32.mrf.mxu1 }
  0xc7   : > { %702 = vst.msk [vmem:[%s1112_s16 + $0x18] sm:$0xff] %vm312_vm0, %v670_v51  ;;  %v480_v52 = vpop.f32.mrf.mxu2  ;;  %v599_v53 = vpop.f32.mrf.mxu3 }
  0xc8   : > { %v481_v54 = vadd.f32 %v1100_v21, %v480_v52  ;;  %v438_v55 = vpop.f32.mrf.mxu0 }
  0xc9   : > { %v439_v57 = vadd.f32 %v1100_v21, %v438_v55 }
  0xca   : > { %v594_v58 = vadd.f32 %v593_v37, %v481_v54 }
  0xcb   : > { %v552_v61 = vadd.f32 %v551_v33, %v439_v57  ;;  %v658_v57 = vld [vmem:[%s1105_s14 + $0xb8] sm:$0xff] }
  0xcc   : > { %v685_v62 = vadd.f32 %v653_v56, %v594_v58 }
  0xcd   : > { %v671_v63 = vadd.f32 %v639_v59, %v552_v61 }
  0xce   : > { %717 = vst.msk [vmem:[%s1112_s16 + $0x90] sm:$0xff] %vm312_vm0, %v685_v62  ;;  %v563_v8 = vpop.f32.mrf.mxu1 }
  0xcf   : > { %703 = vst.msk [vmem:[%s1112_s16 + $0x20] sm:$0xff] %vm312_vm0, %v671_v63  ;;  %v483_v0 = vpop.f32.mrf.mxu2  ;;  %v602_v1 = vpop.f32.mrf.mxu3 }
  0xd0   : > { %v484_v2 = vadd.f32 %v1100_v21, %v483_v0  ;;  %v441_v3 = vpop.f32.mrf.mxu0 }
  0xd1   : > { %v442_v5 = vadd.f32 %v1100_v21, %v441_v3 }
  0xd2   : > { %v597_v6 = vadd.f32 %v596_v45, %v484_v2  ;;  %v657_v45 = vld [vmem:[%s1105_s14 + $0xb0] sm:$0xff] }
  0xd3   : > { %v555_v9 = vadd.f32 %v554_v41, %v442_v5  ;;  %v659_v5 = vld [vmem:[%s1105_s14 + $0xc0] sm:$0xff] }
  0xd4   : > { %v686_v10 = vadd.f32 %v654_v4, %v597_v6 }
  0xd5   : > { %v672_v11 = vadd.f32 %v640_v7, %v555_v9 }
  0xd6   : > { %718 = vst.msk [vmem:[%s1112_s16 + $0x98] sm:$0xff] %vm312_vm0, %v686_v10  ;;  %v566_v20 = vpop.f32.mrf.mxu1 }
  0xd7   : > { %704 = vst.msk [vmem:[%s1112_s16 + $0x28] sm:$0xff] %vm312_vm0, %v672_v11  ;;  %v486_v12 = vpop.f32.mrf.mxu2  ;;  %v605_v13 = vpop.f32.mrf.mxu3 }
  0xd8   : > { %v487_v14 = vadd.f32 %v1100_v21, %v486_v12  ;;  %v444_v15 = vpop.f32.mrf.mxu0 }
  0xd9   : > { %v445_v17 = vadd.f32 %v1100_v21, %v444_v15 }
  0xda   : > { %v600_v18 = vadd.f32 %v599_v53, %v487_v14 }
  0xdb   : > { %v558_v22 = vadd.f32 %v557_v49, %v445_v17  ;;  %v660_v17 = vld [vmem:[%s1105_s14 + $0xc8] sm:$0xff] }
  0xdc   : > { %v687_v23 = vadd.f32 %v655_v16, %v600_v18 }
  0xdd   : > { %v673_v24 = vadd.f32 %v641_v19, %v558_v22 }
  0xde   : > { %719 = vst.msk [vmem:[%s1112_s16 + $0xa0] sm:$0xff] %vm312_vm0, %v687_v23  ;;  %v569_v35 = vpop.f32.mrf.mxu1 }
  0xdf   : > { %705 = vst.msk [vmem:[%s1112_s16 + $0x30] sm:$0xff] %vm312_vm0, %v673_v24  ;;  %v489_v25 = vpop.f32.mrf.mxu2  ;;  %v608_v26 = vpop.f32.mrf.mxu3 }
  0xe0   : > { %v490_v27 = vadd.f32 %v1100_v21, %v489_v25  ;;  %v447_v30 = vpop.f32.mrf.mxu0 }
  0xe1   : > { %v448_v32 = vadd.f32 %v1100_v21, %v447_v30 }
  0xe2   : > { %v603_v33 = vadd.f32 %v602_v1, %v490_v27 }
  0xe3   : > { %v561_v37 = vadd.f32 %v560_v60, %v448_v32  ;;  %v644_v60 = vld [vmem:[%s1105_s14 + $0x48] sm:$0xff]  ;;  %v472_v32 = vadd.f32 %v1100_v21, %v1116_v28 }
  0xe4   : > { %v688_v38 = vadd.f32 %v656_v31, %v603_v33  ;;  %v661_v33 = vld [vmem:[%s1105_s14 + $0xd0] sm:$0xff] }
  0xe5   : > { %v674_v39 = vadd.f32 %v642_v34, %v561_v37  ;;  %v647_v37 = vld [vmem:[%s1105_s14 + $0x60] sm:$0xff] }
  0xe6   : > { %720 = vst.msk [vmem:[%s1112_s16 + $0xa8] sm:$0xff] %vm312_vm0, %v688_v38  ;;  %v572_v49 = vpop.f32.mrf.mxu1 }
  0xe7   : > { %706 = vst.msk [vmem:[%s1112_s16 + $0x38] sm:$0xff] %vm312_vm0, %v674_v39  ;;  %v492_v40 = vpop.f32.mrf.mxu2  ;;  %v611_v41 = vpop.f32.mrf.mxu3  ;;  %v650_v39 = vld [vmem:[%s1105_s14 + $0x78] sm:$0xff] }
  0xe8   : > { %v493_v42 = vadd.f32 %v1100_v21, %v492_v40  ;;  %v450_v43 = vpop.f32.mrf.mxu0 }
  0xe9   : > { %v451_v46 = vadd.f32 %v1100_v21, %v450_v43 }
  0xea   : > { %v606_v47 = vadd.f32 %v605_v13, %v493_v42 }
  0xeb   : > { %v564_v50 = vadd.f32 %v563_v8, %v451_v46  ;;  %v645_v8 = vld [vmem:[%s1105_s14 + $0x50] sm:$0xff] }
  0xec   : > { %v689_v51 = vadd.f32 %v657_v45, %v606_v47 }
  0xed   : > { %v675_v52 = vadd.f32 %v643_v48, %v564_v50  ;;  %v662_v50 = vld [vmem:[%s1105_s14 + $0xd8] sm:$0xff] }
  0xee   : > { %721 = vst.msk [vmem:[%s1112_s16 + $0xb0] sm:$0xff] %vm312_vm0, %v689_v51  ;;  %v575_v61 = vpop.f32.mrf.mxu1 }
  0xef   : > { %707 = vst.msk [vmem:[%s1112_s16 + $0x40] sm:$0xff] %vm312_vm0, %v675_v52  ;;  %v495_v53 = vpop.f32.mrf.mxu2  ;;  %v614_v54 = vpop.f32.mrf.mxu3 }
  0xf0   : > { %v496_v55 = vadd.f32 %v1100_v21, %v495_v53  ;;  %v453_v56 = vpop.f32.mrf.mxu0  ;;  %v648_v53 = vld [vmem:[%s1105_s14 + $0x68] sm:$0xff] }
  0xf1   : > { %v454_v58 = vadd.f32 %v1100_v21, %v453_v56 }
  0xf2   : > { %v609_v59 = vadd.f32 %v608_v26, %v496_v55  ;;  %v651_v55 = vld [vmem:[%s1105_s14 + $0x80] sm:$0xff] }
  0xf3   : > { %v567_v62 = vadd.f32 %v566_v20, %v454_v58  ;;  %v646_v20 = vld [vmem:[%s1105_s14 + $0x58] sm:$0xff] }
  0xf4   : > { %v690_v63 = vadd.f32 %v658_v57, %v609_v59 }
  0xf5   : > { %v676_v0 = vadd.f32 %v644_v60, %v567_v62 }
  0xf6   : > { %722 = vst.msk [vmem:[%s1112_s16 + $0xb8] sm:$0xff] %vm312_vm0, %v690_v63  ;;  %v578_v9 = vpop.f32.mrf.mxu1 }
  0xf7   : > { %708 = vst.msk [vmem:[%s1112_s16 + $0x48] sm:$0xff] %vm312_vm0, %v676_v0  ;;  %v498_v1 = vpop.f32.mrf.mxu2  ;;  %v617_v2 = vpop.f32.mrf.mxu3  ;;  %v478_v0 = vadd.f32 %v1100_v21, %v1130_v44  ;;  %v520_v44 = vadd.f32 %v1100_v21, %v1118_v29 }
  0xf8   : > { %v499_v3 = vadd.f32 %v1100_v21, %v498_v1  ;;  %v456_v4 = vpop.f32.mrf.mxu0  ;;  %v663_v1 = vld [vmem:[%s1105_s14 + $0xe0] sm:$0xff] }
  0xf9   : > { %v457_v6 = vadd.f32 %v1100_v21, %v456_v4  ;;  %v649_v4 = vld [vmem:[%s1105_s14 + $0x70] sm:$0xff] }
  0xfa   : > { %v612_v7 = vadd.f32 %v611_v41, %v499_v3 }
  0xfb   : > { %v570_v10 = vadd.f32 %v569_v35, %v457_v6  ;;  %v652_v6 = vld [vmem:[%s1105_s14 + $0x88] sm:$0xff] }
  0xfc   : > { %v691_v11 = vadd.f32 %v659_v5, %v612_v7 }
  0xfd   : > { %v677_v12 = vadd.f32 %v645_v8, %v570_v10 }
  0xfe   : > { %723 = vst.msk [vmem:[%s1112_s16 + $0xc0] sm:$0xff] %vm312_vm0, %v691_v11  ;;  %v581_v22 = vpop.f32.mrf.mxu1 }
  0xff   : > { %709 = vst.msk [vmem:[%s1112_s16 + $0x50] sm:$0xff] %vm312_vm0, %v677_v12  ;;  %v501_v13 = vpop.f32.mrf.mxu2  ;;  %v620_v14 = vpop.f32.mrf.mxu3 }
 0x100   : > { %v502_v15 = vadd.f32 %v1100_v21, %v501_v13  ;;  %v459_v16 = vpop.f32.mrf.mxu0 }
 0x101   : > { %v460_v18 = vadd.f32 %v1100_v21, %v459_v16 }
 0x102   : > { %v615_v19 = vadd.f32 %v614_v54, %v502_v15 }
 0x103   : > { %v573_v23 = vadd.f32 %v572_v49, %v460_v18  ;;  %v475_v49 = vadd.f32 %v1100_v21, %v1124_v36 }
 0x104   : > { %v692_v24 = vadd.f32 %v660_v17, %v615_v19  ;;  %v664_v17 = vld [vmem:[%s1105_s14 + $0xe8] sm:$0xff] }
 0x105   : > { %v678_v25 = vadd.f32 %v646_v20, %v573_v23  ;;  %v665_v23 = vld [vmem:[%s1105_s14 + $0xf0] sm:$0xff] }
 0x106   : > { %724 = vst.msk [vmem:[%s1112_s16 + $0xc8] sm:$0xff] %vm312_vm0, %v692_v24  ;;  %v584_v38 = vpop.f32.mrf.mxu1 }
 0x107   : > { %710 = vst.msk [vmem:[%s1112_s16 + $0x58] sm:$0xff] %vm312_vm0, %v678_v25  ;;  %v504_v26 = vpop.f32.mrf.mxu2  ;;  %v623_v27 = vpop.f32.mrf.mxu3  ;;  %v585_v41 = vadd.f32 %v584_v38, %v472_v32 }
 0x108   : > { %v505_v30 = vadd.f32 %v1100_v21, %v504_v26  ;;  %v462_v31 = vpop.f32.mrf.mxu0 }
 0x109   : > { %v463_v34 = vadd.f32 %v1100_v21, %v462_v31  ;;  %v682_v45 = vadd.f32 %v650_v39, %v585_v41 }
 0x10a   : > { %v618_v35 = vadd.f32 %v617_v2, %v505_v30 }
 0x10b   : > { %v576_v40 = vadd.f32 %v575_v61, %v463_v34  ;;  %714 = vst.msk [vmem:[%s1112_s16 + $0x78] sm:$0xff] %vm312_vm0, %v682_v45 }
 0x10c   : > { %v693_v42 = vadd.f32 %v661_v33, %v618_v35 }
 0x10d   : > { %v679_v43 = vadd.f32 %v647_v37, %v576_v40 }
 0x10e   : > { %725 = vst.msk [vmem:[%s1112_s16 + $0xd0] sm:$0xff] %vm312_vm0, %v693_v42  ;;  %v587_v54 = vpop.f32.mrf.mxu1 }
 0x10f   : > { %711 = vst.msk [vmem:[%s1112_s16 + $0x60] sm:$0xff] %vm312_vm0, %v679_v43  ;;  %v507_v28 = vpop.f32.mrf.mxu2  ;;  %v626_v46 = vpop.f32.mrf.mxu3  ;;  %v588_v57 = vadd.f32 %v587_v54, %v475_v49 }
 0x110   : > { %v508_v47 = vadd.f32 %v1100_v21, %v507_v28  ;;  %v465_v48 = vpop.f32.mrf.mxu0 }
 0x111   : > { %v466_v51 = vadd.f32 %v1100_v21, %v465_v48  ;;  %v683_v60 = vadd.f32 %v651_v55, %v588_v57 }
 0x112   : > { %v621_v52 = vadd.f32 %v620_v14, %v508_v47  ;;  %v666_v14 = vld [vmem:[%s1105_s14 + $0xf8] sm:$0xff] }
 0x113   : > { %v579_v56 = vadd.f32 %v578_v9, %v466_v51  ;;  %715 = vst.msk [vmem:[%s1112_s16 + $0x80] sm:$0xff] %vm312_vm0, %v683_v60 }
 0x114   : > { %v694_v58 = vadd.f32 %v662_v50, %v621_v52 }
 0x115   : > { %v680_v59 = vadd.f32 %v648_v53, %v579_v56 }
 0x116   : > { %726 = vst.msk [vmem:[%s1112_s16 + $0xd8] sm:$0xff] %vm312_vm0, %v694_v58  ;;  %v590_v5 = vpop.f32.mrf.mxu1 }
 0x117   : > { %712 = vst.msk [vmem:[%s1112_s16 + $0x68] sm:$0xff] %vm312_vm0, %v680_v59  ;;  %v510_v36 = vpop.f32.mrf.mxu2  ;;  %v629_v61 = vpop.f32.mrf.mxu3  ;;  %v591_v8 = vadd.f32 %v590_v5, %v478_v0 }
 0x118   : > { %v511_v62 = vadd.f32 %v1100_v21, %v510_v36  ;;  %v468_v63 = vpop.f32.mrf.mxu0 }
 0x119   : > { %v469_v2 = vadd.f32 %v1100_v21, %v468_v63  ;;  %v684_v11 = vadd.f32 %v652_v6, %v591_v8 }
 0x11a   : > { %v624_v3 = vadd.f32 %v623_v27, %v511_v62 }
 0x11b   : > { %v582_v7 = vadd.f32 %v581_v22, %v469_v2  ;;  %716 = vst.msk [vmem:[%s1112_s16 + $0x88] sm:$0xff] %vm312_vm0, %v684_v11 }
 0x11c   : > { %v695_v9 = vadd.f32 %v663_v1, %v624_v3 }
 0x11d   : > { %v681_v10 = vadd.f32 %v649_v4, %v582_v7 }
 0x11e   : > { %727 = vst.msk [vmem:[%s1112_s16 + $0xe0] sm:$0xff] %vm312_vm0, %v695_v9 }
 0x11f   : > { %713 = vst.msk [vmem:[%s1112_s16 + $0x70] sm:$0xff] %vm312_vm0, %v681_v10  ;;  %v513_v12 = vpop.f32.mrf.mxu2  ;;  %v632_v13 = vpop.f32.mrf.mxu3 }
 0x120   : > { %v514_v15 = vadd.f32 %v1100_v21, %v513_v12  ;;  %v633_v16 = vadd.f32 %v632_v13, %v520_v44 }
 0x122   : > { %v627_v18 = vadd.f32 %v626_v46, %v514_v15  ;;  %v698_v19 = vadd.f32 %v666_v14, %v633_v16 }
 0x124   : > { %v696_v20 = vadd.f32 %v664_v17, %v627_v18  ;;  %730 = vst.msk [vmem:[%s1112_s16 + $0xf8] sm:$0xff] %vm312_vm0, %v698_v19 }
 0x126   : > { %728 = vst.msk [vmem:[%s1112_s16 + $0xe8] sm:$0xff] %vm312_vm0, %v696_v20 }
 0x127   : > { %v516_v29 = vpop.f32.mrf.mxu2 }
 0x128   : > { %v517_v22 = vadd.f32 %v1100_v21, %v516_v29 }
 0x12a   : > { %v630_v24 = vadd.f32 %v629_v61, %v517_v22 }
 0x12c   : > { %v697_v25 = vadd.f32 %v665_v23, %v630_v24 }
 0x12e   : > { %729 = vst.msk [vmem:[%s1112_s16 + $0xf0] sm:$0xff] %vm312_vm0, %v697_v25 }
 0x12f PF: > { %s14_s15 = sadd.s32 1, %s895_s15  }
 0x130   : > { %p11_p4 = scmp.ge.s32.totalorder %s14_s15, 4  }
 0x132   :  { %13 = sbr.rel (!%p11_p4) target bundleno = 1 (0x1), region = 69 }

// kernel: ood_calib_net_forward.32
= control target key start
LH: loop header
LB: loop body
LE: loop exit
PB: predicated region body
PF: predicated region fallthrough
CT: control target
= control target key end

     0   :  { %s634_s12 = smov 0   ;;  %s857_s0 = inlined_call_operand.vmem [shape: f32[512,75], index: 0, kind: input, shape index: {}]   ;;  %s858_s1 = inlined_call_operand.vmem [shape: f32[75,16], index: 1, kind: input, shape index: {}]   ;;  %s859_s2 = inlined_call_operand.vmem [shape: f32[1,16], index: 2, kind: input, shape index: {}]   ;;  %s860_s3 = inlined_call_operand.vmem [shape: f32[512,16], index: 3, kind: output, shape index: {}]  }
   0x1 LB: > { %s523_s13 = sadd.s32 4294967295, %s612_s12   ;;  %p527_p0 = scmp.ge.s32.totalorder %s612_s12, 1  ;;  %s612_s12 = sphi %s634_s12, %s13_s12  }
   0x2   : > { %p138_p1 = scmp.lt.s32.totalorder %s612_s12, 3 }
   0x4   : > { %p139_p2 = pnand %p527_p0, %p138_p1 }
   0x5   : > { %s528_s18 = sshll.u32 (!%p139_p2), %s523_s13, 5 }
   0x6   : > { %142 = sbr.rel (%p139_p2) target bundleno = 223 (0xdf), region = 32  ;;  %p163_p3 = scmp.lt.s32.totalorder (!%p139_p2), %s528_s18, 63 }
   0xb   : > { %v215_v0 = vld [vmem:[%s858_s1 + $0x48] sm:$0x7]  ;;  %vm317_vm0 = vcmask 1042432   ;;  %v214_v1 = vld [vmem:[%s858_s1 + $0x40] sm:$0xff]  ;;  %v213_v2 = vld [vmem:[%s858_s1 + $0x38] sm:$0xff]  ;;  %s862_s18 = smov (!%p163_p3, %s528_s18), 63 }
   0xc   : > { %568 = vmatpush.msk.msra.mxu2 %vm317_vm0, %v215_v0  ;;  %569 = vmatpush.msk.msra.mxu3 %vm317_vm0, %v215_v0  ;;  %v212_v3 = vld [vmem:[%s858_s1 + $0x30] sm:$0xff]  ;;  %v211_v4 = vld [vmem:[%s858_s1 + $0x28] sm:$0xff]  ;;  %v210_v5 = vld [vmem:[%s858_s1 + $0x20] sm:$0xff]  ;;  %s529_s29 = sshll.u32 %s862_s18, 3  ;;  %vm220_vm1 = vcmask 613376   ;;  %vm434_vm2 = vcmask 130048  }
   0xd   : > { %532 = vmatpush.msk.msra.mxu0 %vm317_vm0, %v215_v0  ;;  %567 = vmatpush.msk.msra.mxu1 %vm317_vm0, %v215_v0  ;;  %v209_v6 = vld [vmem:[%s858_s1 + $0x18] sm:$0xff]  ;;  %v208_v7 = vld [vmem:[%s858_s1 + $0x10] sm:$0xff]  ;;  %v207_v8 = vld [vmem:[%s858_s1 + $0x8] sm:$0xff]  ;;  %s677_s9 = scalar_lea.vmem %s857_s0, %s529_s29  ;;  %s756_s17 = scalar_lea.vmem %s860_s3, %s529_s29 }
   0xe   : > { %571 = vmatpush.msra.mxu2 %v214_v1  ;;  %572 = vmatpush.msra.mxu3 %v214_v1  ;;  %v206_v9 = vld [vmem:[%s858_s1] sm:$0xff]  ;;  %v191_v14 = vld [vmem:[%s677_s9 + $0x88] sm:$0xff]  ;;  %v192_v18 = vld [vmem:[%s677_s9 + $0x90] sm:$0xff] }
   0xf   : > { %328 = vmatpush.msra.mxu0 %v214_v1  ;;  %570 = vmatpush.msra.mxu1 %v214_v1  ;;  %v190_v10 = vld [vmem:[%s677_s9 + $0x80] sm:$0xff]  ;;  %v199_v15 = vld [vmem:[%s677_s9 + $0xc8] sm:$0xff]  ;;  %v200_v19 = vld [vmem:[%s677_s9 + $0xd0] sm:$0xff] }
  0x10   : > { %574 = vmatpush.msra.mxu2 %v213_v2  ;;  %575 = vmatpush.msra.mxu3 %v213_v2  ;;  %v198_v11 = vld [vmem:[%s677_s9 + $0xc0] sm:$0xff]  ;;  %v175_v16 = vld [vmem:[%s677_s9 + $0x8] sm:$0xff]  ;;  %v176_v20 = vld [vmem:[%s677_s9 + $0x10] sm:$0xff] }
  0x11   : > { %329 = vmatpush.msra.mxu0 %v213_v2  ;;  %573 = vmatpush.msra.mxu1 %v213_v2  ;;  %v174_v12 = vld [vmem:[%s677_s9] sm:$0xff]  ;;  %v183_v17 = vld [vmem:[%s677_s9 + $0x48] sm:$0xff]  ;;  %v184_v21 = vld [vmem:[%s677_s9 + $0x50] sm:$0xff] }
  0x12   : > { %577 = vmatpush.msra.mxu2 %v212_v3  ;;  %578 = vmatpush.msra.mxu3 %v212_v3  ;;  %v182_v13 = vld [vmem:[%s677_s9 + $0x40] sm:$0xff]  ;;  %v193_v22 = vld [vmem:[%s677_s9 + $0x98] sm:$0xff]  ;;  %v195_v30 = vld [vmem:[%s677_s9 + $0xa8] sm:$0xff] }
  0x13   : > { %330 = vmatpush.msra.mxu0 %v212_v3  ;;  %576 = vmatpush.msra.mxu1 %v212_v3  ;;  %v201_v23 = vld [vmem:[%s677_s9 + $0xd8] sm:$0xff]  ;;  %v194_v26 = vld [vmem:[%s677_s9 + $0xa0] sm:$0xff]  ;;  %v203_v31 = vld [vmem:[%s677_s9 + $0xe8] sm:$0xff] }
  0x14   : > { %580 = vmatpush.msra.mxu2 %v211_v4  ;;  %581 = vmatpush.msra.mxu3 %v211_v4  ;;  %v177_v24 = vld [vmem:[%s677_s9 + $0x18] sm:$0xff]  ;;  %v202_v27 = vld [vmem:[%s677_s9 + $0xe0] sm:$0xff]  ;;  %v179_v32 = vld [vmem:[%s677_s9 + $0x28] sm:$0xff] }
  0x15   : > { %331 = vmatpush.msra.mxu0 %v211_v4  ;;  %579 = vmatpush.msra.mxu1 %v211_v4  ;;  %v185_v25 = vld [vmem:[%s677_s9 + $0x58] sm:$0xff]  ;;  %v178_v28 = vld [vmem:[%s677_s9 + $0x20] sm:$0xff]  ;;  %v187_v33 = vld [vmem:[%s677_s9 + $0x68] sm:$0xff] }
  0x16   : > { %583 = vmatpush.msra.mxu2 %v210_v5  ;;  %584 = vmatpush.msra.mxu3 %v210_v5  ;;  %v186_v29 = vld [vmem:[%s677_s9 + $0x60] sm:$0xff]  ;;  %v196_v34 = vld [vmem:[%s677_s9 + $0xb0] sm:$0xff]  ;;  %v197_v38 = vld [vmem:[%s677_s9 + $0xb8] sm:$0xff] }
  0x17   : > { %332 = vmatpush.msra.mxu0 %v210_v5  ;;  %582 = vmatpush.msra.mxu1 %v210_v5  ;;  %v204_v35 = vld [vmem:[%s677_s9 + $0xf0] sm:$0xff]  ;;  %v205_v39 = vld [vmem:[%s677_s9 + $0xf8] sm:$0xff]  ;;  %v749_v42 = vld [vmem:[%s859_s2] ss:$0 sm:$0xff] }
  0x18   : > { %586 = vmatpush.msra.mxu2 %v209_v6  ;;  %587 = vmatpush.msra.mxu3 %v209_v6  ;;  %v180_v36 = vld [vmem:[%s677_s9 + $0x30] sm:$0xff]  ;;  %v181_v40 = vld [vmem:[%s677_s9 + $0x38] sm:$0xff] }
  0x19   : > { %333 = vmatpush.msra.mxu0 %v209_v6  ;;  %585 = vmatpush.msra.mxu1 %v209_v6  ;;  %v188_v37 = vld [vmem:[%s677_s9 + $0x70] sm:$0xff]  ;;  %v189_v41 = vld [vmem:[%s677_s9 + $0x78] sm:$0xff] }
  0x1a   : > { %589 = vmatpush.msra.mxu2 %v208_v7  ;;  %590 = vmatpush.msra.mxu3 %v208_v7 }
  0x1b   : > { %334 = vmatpush.msra.mxu0 %v208_v7  ;;  %588 = vmatpush.msra.mxu1 %v208_v7 }
  0x1c   : > { %592 = vmatpush.msra.mxu2 %v207_v8  ;;  %593 = vmatpush.msra.mxu3 %v207_v8 }
  0x1d   : > { %335 = vmatpush.msra.mxu0 %v207_v8  ;;  %591 = vmatpush.msra.mxu1 %v207_v8 }
  0x1e   : > { %595 = vmatpush.msra.mxu2 %v206_v9  ;;  %596 = vmatpush.msra.mxu3 %v206_v9 }
  0x1f   : > { %549 = vmatmul.msk.f32.vlgmr.msra.gmra.mxu2 %vm220_vm1, %v190_v10  ;;  %557 = vmatmul.msk.f32.vlgmr.msra.gmra.mxu3 %vm220_vm1, %v198_v11 }
  0x20   : > { %336 = vmatpush.msra.mxu0 %v206_v9  ;;  %594 = vmatpush.msra.mxu1 %v206_v9 }
  0x21   : > { %533 = vmatmul.msk.f32.vlgmr.msra.gmra.mxu0 %vm220_vm1, %v174_v12  ;;  %541 = vmatmul.msk.f32.vlgmr.msra.gmra.mxu1 %vm220_vm1, %v182_v13 }
  0x27   : > { %550 = vmatmul.msk.f32.gmra.mxu2 %vm220_vm1, %v191_v14  ;;  %558 = vmatmul.msk.f32.gmra.mxu3 %vm220_vm1, %v199_v15 }
  0x29   : > { %534 = vmatmul.msk.f32.gmra.mxu0 %vm220_vm1, %v175_v16  ;;  %542 = vmatmul.msk.f32.gmra.mxu1 %vm220_vm1, %v183_v17 }
  0x2f   : > { %551 = vmatmul.msk.f32.gmra.mxu2 %vm220_vm1, %v192_v18  ;;  %559 = vmatmul.msk.f32.gmra.mxu3 %vm220_vm1, %v200_v19 }
  0x31   : > { %535 = vmatmul.msk.f32.gmra.mxu0 %vm220_vm1, %v176_v20  ;;  %543 = vmatmul.msk.f32.gmra.mxu1 %vm220_vm1, %v184_v21 }
  0x37   : > { %552 = vmatmul.msk.f32.gmra.mxu2 %vm220_vm1, %v193_v22  ;;  %560 = vmatmul.msk.f32.gmra.mxu3 %vm220_vm1, %v201_v23 }
  0x39   : > { %536 = vmatmul.msk.f32.gmra.mxu0 %vm220_vm1, %v177_v24  ;;  %544 = vmatmul.msk.f32.gmra.mxu1 %vm220_vm1, %v185_v25 }
  0x3f   : > { %553 = vmatmul.msk.f32.gmra.mxu2 %vm220_vm1, %v194_v26  ;;  %561 = vmatmul.msk.f32.gmra.mxu3 %vm220_vm1, %v202_v27 }
  0x41   : > { %537 = vmatmul.msk.f32.gmra.mxu0 %vm220_vm1, %v178_v28  ;;  %545 = vmatmul.msk.f32.gmra.mxu1 %vm220_vm1, %v186_v29 }
  0x47   : > { %554 = vmatmul.msk.f32.gmra.mxu2 %vm220_vm1, %v195_v30  ;;  %562 = vmatmul.msk.f32.gmra.mxu3 %vm220_vm1, %v203_v31 }
  0x49   : > { %538 = vmatmul.msk.f32.gmra.mxu0 %vm220_vm1, %v179_v32  ;;  %546 = vmatmul.msk.f32.gmra.mxu1 %vm220_vm1, %v187_v33 }
  0x4f   : > { %555 = vmatmul.msk.f32.gmra.mxu2 %vm220_vm1, %v196_v34  ;;  %563 = vmatmul.msk.f32.gmra.mxu3 %vm220_vm1, %v204_v35 }
  0x51   : > { %539 = vmatmul.msk.f32.gmra.mxu0 %vm220_vm1, %v180_v36  ;;  %547 = vmatmul.msk.f32.gmra.mxu1 %vm220_vm1, %v188_v37 }
  0x57   : > { %556 = vmatmul.msk.f32.gmra.mxu2 %vm220_vm1, %v197_v38  ;;  %564 = vmatmul.msk.f32.gmra.mxu3 %vm220_vm1, %v205_v39 }
  0x59   : > { %540 = vmatmul.msk.f32.gmra.mxu0 %vm220_vm1, %v181_v40  ;;  %548 = vmatmul.msk.f32.gmra.mxu1 %vm220_vm1, %v189_v41 }
  0x9e   : > { %v338_v43 = vpop.f32.mrf.mxu0  ;;  %v362_v44 = vpop.f32.mrf.mxu1 }
  0x9f   : > { %v339_v45 = vadd.f32 %v749_v42, %v338_v43  ;;  %v363_v46 = vadd.f32 %v749_v42, %v362_v44 }
  0xa1   : > { %435 = vst.msk [vmem:[%s756_s17] sm:$0xff] %vm434_vm2, %v339_v45 }
  0xa2   : > { %443 = vst.msk [vmem:[%s756_s17 + $0x40] sm:$0xff] %vm434_vm2, %v363_v46  ;;  %v386_v47 = vpop.f32.mrf.mxu2  ;;  %v410_v48 = vpop.f32.mrf.mxu3 }
  0xa3   : > { %v387_v49 = vadd.f32 %v749_v42, %v386_v47  ;;  %v411_v50 = vadd.f32 %v749_v42, %v410_v48 }
  0xa5   : > { %451 = vst.msk [vmem:[%s756_s17 + $0x80] sm:$0xff] %vm434_vm2, %v387_v49 }
  0xa6   : > { %459 = vst.msk [vmem:[%s756_s17 + $0xc0] sm:$0xff] %vm434_vm2, %v411_v50  ;;  %v341_v51 = vpop.f32.mrf.mxu0  ;;  %v365_v52 = vpop.f32.mrf.mxu1 }
  0xa7   : > { %v342_v53 = vadd.f32 %v749_v42, %v341_v51  ;;  %v366_v54 = vadd.f32 %v749_v42, %v365_v52 }
  0xa9   : > { %436 = vst.msk [vmem:[%s756_s17 + $0x8] sm:$0xff] %vm434_vm2, %v342_v53 }
  0xaa   : > { %444 = vst.msk [vmem:[%s756_s17 + $0x48] sm:$0xff] %vm434_vm2, %v366_v54  ;;  %v389_v55 = vpop.f32.mrf.mxu2  ;;  %v413_v56 = vpop.f32.mrf.mxu3 }
  0xab   : > { %v390_v57 = vadd.f32 %v749_v42, %v389_v55  ;;  %v414_v58 = vadd.f32 %v749_v42, %v413_v56 }
  0xad   : > { %452 = vst.msk [vmem:[%s756_s17 + $0x88] sm:$0xff] %vm434_vm2, %v390_v57 }
  0xae   : > { %460 = vst.msk [vmem:[%s756_s17 + $0xc8] sm:$0xff] %vm434_vm2, %v414_v58  ;;  %v344_v59 = vpop.f32.mrf.mxu0  ;;  %v368_v60 = vpop.f32.mrf.mxu1 }
  0xaf   : > { %v345_v61 = vadd.f32 %v749_v42, %v344_v59  ;;  %v369_v62 = vadd.f32 %v749_v42, %v368_v60 }
  0xb1   : > { %437 = vst.msk [vmem:[%s756_s17 + $0x10] sm:$0xff] %vm434_vm2, %v345_v61 }
  0xb2   : > { %445 = vst.msk [vmem:[%s756_s17 + $0x50] sm:$0xff] %vm434_vm2, %v369_v62  ;;  %v392_v63 = vpop.f32.mrf.mxu2  ;;  %v416_v0 = vpop.f32.mrf.mxu3 }
  0xb3   : > { %v393_v1 = vadd.f32 %v749_v42, %v392_v63  ;;  %v417_v2 = vadd.f32 %v749_v42, %v416_v0 }
  0xb5   : > { %453 = vst.msk [vmem:[%s756_s17 + $0x90] sm:$0xff] %vm434_vm2, %v393_v1 }
  0xb6   : > { %461 = vst.msk [vmem:[%s756_s17 + $0xd0] sm:$0xff] %vm434_vm2, %v417_v2  ;;  %v347_v3 = vpop.f32.mrf.mxu0  ;;  %v371_v4 = vpop.f32.mrf.mxu1 }
  0xb7   : > { %v348_v5 = vadd.f32 %v749_v42, %v347_v3  ;;  %v372_v6 = vadd.f32 %v749_v42, %v371_v4 }
  0xb9   : > { %438 = vst.msk [vmem:[%s756_s17 + $0x18] sm:$0xff] %vm434_vm2, %v348_v5 }
  0xba   : > { %446 = vst.msk [vmem:[%s756_s17 + $0x58] sm:$0xff] %vm434_vm2, %v372_v6  ;;  %v395_v7 = vpop.f32.mrf.mxu2  ;;  %v419_v8 = vpop.f32.mrf.mxu3 }
  0xbb   : > { %v396_v9 = vadd.f32 %v749_v42, %v395_v7  ;;  %v420_v10 = vadd.f32 %v749_v42, %v419_v8 }
  0xbd   : > { %454 = vst.msk [vmem:[%s756_s17 + $0x98] sm:$0xff] %vm434_vm2, %v396_v9 }
  0xbe   : > { %462 = vst.msk [vmem:[%s756_s17 + $0xd8] sm:$0xff] %vm434_vm2, %v420_v10  ;;  %v350_v11 = vpop.f32.mrf.mxu0  ;;  %v374_v12 = vpop.f32.mrf.mxu1 }
  0xbf   : > { %v351_v13 = vadd.f32 %v749_v42, %v350_v11  ;;  %v375_v14 = vadd.f32 %v749_v42, %v374_v12 }
  0xc1   : > { %439 = vst.msk [vmem:[%s756_s17 + $0x20] sm:$0xff] %vm434_vm2, %v351_v13 }
  0xc2   : > { %447 = vst.msk [vmem:[%s756_s17 + $0x60] sm:$0xff] %vm434_vm2, %v375_v14  ;;  %v398_v15 = vpop.f32.mrf.mxu2  ;;  %v422_v16 = vpop.f32.mrf.mxu3 }
  0xc3   : > { %v399_v17 = vadd.f32 %v749_v42, %v398_v15  ;;  %v423_v18 = vadd.f32 %v749_v42, %v422_v16 }
  0xc5   : > { %455 = vst.msk [vmem:[%s756_s17 + $0xa0] sm:$0xff] %vm434_vm2, %v399_v17 }
  0xc6   : > { %463 = vst.msk [vmem:[%s756_s17 + $0xe0] sm:$0xff] %vm434_vm2, %v423_v18  ;;  %v353_v19 = vpop.f32.mrf.mxu0  ;;  %v377_v20 = vpop.f32.mrf.mxu1 }
  0xc7   : > { %v354_v21 = vadd.f32 %v749_v42, %v353_v19  ;;  %v378_v22 = vadd.f32 %v749_v42, %v377_v20 }
  0xc9   : > { %440 = vst.msk [vmem:[%s756_s17 + $0x28] sm:$0xff] %vm434_vm2, %v354_v21 }
  0xca   : > { %448 = vst.msk [vmem:[%s756_s17 + $0x68] sm:$0xff] %vm434_vm2, %v378_v22  ;;  %v401_v23 = vpop.f32.mrf.mxu2  ;;  %v425_v24 = vpop.f32.mrf.mxu3 }
  0xcb   : > { %v402_v25 = vadd.f32 %v749_v42, %v401_v23  ;;  %v426_v26 = vadd.f32 %v749_v42, %v425_v24 }
  0xcd   : > { %456 = vst.msk [vmem:[%s756_s17 + $0xa8] sm:$0xff] %vm434_vm2, %v402_v25 }
  0xce   : > { %464 = vst.msk [vmem:[%s756_s17 + $0xe8] sm:$0xff] %vm434_vm2, %v426_v26  ;;  %v356_v27 = vpop.f32.mrf.mxu0  ;;  %v380_v28 = vpop.f32.mrf.mxu1 }
  0xcf   : > { %v357_v29 = vadd.f32 %v749_v42, %v356_v27  ;;  %v381_v30 = vadd.f32 %v749_v42, %v380_v28 }
  0xd1   : > { %441 = vst.msk [vmem:[%s756_s17 + $0x30] sm:$0xff] %vm434_vm2, %v357_v29 }
  0xd2   : > { %449 = vst.msk [vmem:[%s756_s17 + $0x70] sm:$0xff] %vm434_vm2, %v381_v30  ;;  %v404_v31 = vpop.f32.mrf.mxu2  ;;  %v428_v32 = vpop.f32.mrf.mxu3 }
  0xd3   : > { %v405_v33 = vadd.f32 %v749_v42, %v404_v31  ;;  %v429_v34 = vadd.f32 %v749_v42, %v428_v32 }
  0xd5   : > { %457 = vst.msk [vmem:[%s756_s17 + $0xb0] sm:$0xff] %vm434_vm2, %v405_v33 }
  0xd6   : > { %465 = vst.msk [vmem:[%s756_s17 + $0xf0] sm:$0xff] %vm434_vm2, %v429_v34  ;;  %v359_v35 = vpop.f32.mrf.mxu0  ;;  %v383_v36 = vpop.f32.mrf.mxu1 }
  0xd7   : > { %v360_v37 = vadd.f32 %v749_v42, %v359_v35  ;;  %v384_v38 = vadd.f32 %v749_v42, %v383_v36 }
  0xd9   : > { %442 = vst.msk [vmem:[%s756_s17 + $0x38] sm:$0xff] %vm434_vm2, %v360_v37 }
  0xda   : > { %450 = vst.msk [vmem:[%s756_s17 + $0x78] sm:$0xff] %vm434_vm2, %v384_v38  ;;  %v407_v39 = vpop.f32.mrf.mxu2  ;;  %v431_v40 = vpop.f32.mrf.mxu3 }
  0xdb   : > { %v408_v41 = vadd.f32 %v749_v42, %v407_v39  ;;  %v432_v43 = vadd.f32 %v749_v42, %v431_v40 }
  0xdd   : > { %458 = vst.msk [vmem:[%s756_s17 + $0xb8] sm:$0xff] %vm434_vm2, %v408_v41 }
  0xde   : > { %466 = vst.msk [vmem:[%s756_s17 + $0xf8] sm:$0xff] %vm434_vm2, %v432_v43 }
  0xdf PF: > { %s13_s12 = sadd.s32 1, %s612_s12  }
  0xe0   : > { %p10_p4 = scmp.ge.s32.totalorder %s13_s12, 4  }
  0xe2   :  { %12 = sbr.rel (!%p10_p4) target bundleno = 1 (0x1), region = 62 }

// kernel: ood_calib_net_forward.57
= control target key start
LH: loop header
LB: loop body
LE: loop exit
PB: predicated region body
PF: predicated region fallthrough
CT: control target
= control target key end

     0   :  { %s605_s18 = smov 0   ;;  %s932_s0 = inlined_call_operand.vmem [shape: f32[2,256,80], index: 0, kind: input, shape index: {}]   ;;  %s933_s1 = inlined_call_operand.vmem [shape: f32[80,16], index: 1, kind: input, shape index: {}]   ;;  %s934_s2 = inlined_call_operand.vmem [shape: f32[1,16], index: 2, kind: input, shape index: {}]   ;;  %s935_s3 = inlined_call_operand.vmem [shape: f32[16,80], index: 3, kind: input, shape index: {}]   ;;  %s936_s4 = inlined_call_operand.vmem [shape: f32[1,80], index: 4, kind: input, shape index: {}]   ;;  %s937_s5 = inlined_call_operand.vmem [shape: f32[2,256,80], index: 5, kind: output, shape index: {}]  }
   0x1 LB: > { %s536_s19 = sadd.s32 4294967295, %s572_s18   ;;  %p540_p0 = scmp.ge.s32.totalorder %s572_s18, 1  ;;  %s572_s18 = sphi %s605_s18, %s15_s18  }
   0x2   : > { %p187_p1 = scmp.lt.s32.totalorder %s572_s18, 3 }
   0x4   : > { %p188_p2 = pnand %p540_p0, %p187_p1 }
   0x5   : > { %p215_p3 = scmp.lt.s32.totalorder (!%p188_p2), %s536_s19, 1 }
   0x6   : > { %191 = sbr.rel (%p188_p2) target bundleno = 416 (0x1a0), region = 40 }
   0xb   : > { %v344_v0 = vld [vmem:[%s933_s1 + $0x48] sm:$0xff]  ;;  %v343_v1 = vld [vmem:[%s933_s1 + $0x40] sm:$0xff]  ;;  %v342_v2 = vld [vmem:[%s933_s1 + $0x38] sm:$0xff]  ;;  %s939_s19 = smov (!%p215_p3, %s536_s19), 1  ;;  %vm257_vm0 = vcmask 654336   ;;  %vm373_vm2 = vcmask 130048  }
   0xc   : > { %355 = vmatpush.msra.mxu0 %v344_v0  ;;  %v341_v3 = vld [vmem:[%s933_s1 + $0x30] sm:$0xff]  ;;  %s549_s28 = sshll.u32 %s939_s19, 8  ;;  %v340_v4 = vld [vmem:[%s933_s1 + $0x28] sm:$0xff]  ;;  %v339_v12 = vld [vmem:[%s933_s1 + $0x20] sm:$0xff] }
   0xd   : > { %s636_s8 = scalar_lea.vmem %s932_s0, %s549_s28  ;;  %v338_v16 = vld [vmem:[%s933_s1 + $0x18] sm:$0xff]  ;;  %v337_v20 = vld [vmem:[%s933_s1 + $0x10] sm:$0xff]  ;;  %v336_v24 = vld [vmem:[%s933_s1 + $0x8] sm:$0xff]  ;;  %s831_s7 = scalar_lea.vmem %s937_s5, %s549_s28 }
   0xe   : > { %356 = vmatpush.msra.mxu0 %v343_v1  ;;  %v639_v5 = vld [vmem:[%s636_s8] sm:$0xff]  ;;  %v642_v6 = vld [vmem:[%s636_s8 + $0x8] sm:$0xff]  ;;  %v645_v7 = vld [vmem:[%s636_s8 + $0x10] sm:$0xff] }
   0xf   : > { %v648_v8 = vld [vmem:[%s636_s8 + $0x18] sm:$0xff]  ;;  %v258_v9 = vsel %vm257_vm0, %v639_v5, 0.0  ;;  %v259_v10 = vsel %vm257_vm0, %v642_v6, 0.0  ;;  %v261_v11 = vsel %vm257_vm0, %v645_v7, 0.0  ;;  %v660_v13 = vld [vmem:[%s636_s8 + $0x20] sm:$0xff]  ;;  %v668_v17 = vld [vmem:[%s636_s8 + $0x28] sm:$0xff] }
  0x10   : > { %357 = vmatpush.msra.mxu0 %v342_v2  ;;  %v260_v14 = vadd.f32 %v259_v10, %v258_v9  ;;  %v263_v15 = vsel %vm257_vm0, %v648_v8, 0.0  ;;  %v265_v19 = vsel %vm257_vm0, %v660_v13, 0.0  ;;  %v676_v21 = vld [vmem:[%s636_s8 + $0x30] sm:$0xff]  ;;  %v267_v23 = vsel %vm257_vm0, %v668_v17, 0.0  ;;  %v684_v25 = vld [vmem:[%s636_s8 + $0x38] sm:$0xff]  ;;  %v335_v28 = vld [vmem:[%s933_s1] sm:$0xff] }
  0x11   : > { %v269_v27 = vsel %vm257_vm0, %v676_v21, 0.0  ;;  %v692_v29 = vld [vmem:[%s636_s8 + $0x40] sm:$0xff]  ;;  %v271_v31 = vsel %vm257_vm0, %v684_v25, 0.0  ;;  %v697_v32 = vld [vmem:[%s636_s8 + $0x48] sm:$0xff]  ;;  %v702_v35 = vld [vmem:[%s636_s8 + $0x50] sm:$0xff] }
  0x12   : > { %358 = vmatpush.msra.mxu0 %v341_v3  ;;  %v262_v18 = vadd.f32 %v261_v11, %v260_v14  ;;  %v273_v34 = vsel %vm257_vm0, %v692_v29, 0.0  ;;  %v275_v37 = vsel %vm257_vm0, %v697_v32, 0.0  ;;  %v707_v38 = vld [vmem:[%s636_s8 + $0x58] sm:$0xff]  ;;  %v277_v40 = vsel %vm257_vm0, %v702_v35, 0.0  ;;  %v712_v41 = vld [vmem:[%s636_s8 + $0x60] sm:$0xff]  ;;  %v717_v44 = vld [vmem:[%s636_s8 + $0x68] sm:$0xff] }
  0x13   : > { %v279_v43 = vsel %vm257_vm0, %v707_v38, 0.0  ;;  %v281_v46 = vsel %vm257_vm0, %v712_v41, 0.0  ;;  %v722_v47 = vld [vmem:[%s636_s8 + $0x70] sm:$0xff]  ;;  %v283_v49 = vsel %vm257_vm0, %v717_v44, 0.0  ;;  %v727_v50 = vld [vmem:[%s636_s8 + $0x78] sm:$0xff]  ;;  %v732_v53 = vld [vmem:[%s636_s8 + $0x80] sm:$0xff] }
  0x14   : > { %359 = vmatpush.msra.mxu0 %v340_v4  ;;  %v264_v22 = vadd.f32 %v263_v15, %v262_v18  ;;  %v285_v52 = vsel %vm257_vm0, %v722_v47, 0.0  ;;  %v287_v55 = vsel %vm257_vm0, %v727_v50, 0.0  ;;  %v737_v56 = vld [vmem:[%s636_s8 + $0x88] sm:$0xff]  ;;  %v289_v58 = vsel %vm257_vm0, %v732_v53, 0.0  ;;  %v742_v59 = vld [vmem:[%s636_s8 + $0x90] sm:$0xff]  ;;  %v747_v62 = vld [vmem:[%s636_s8 + $0x98] sm:$0xff] }
  0x15   : > { %v291_v61 = vsel %vm257_vm0, %v737_v56, 0.0  ;;  %v293_v0 = vsel %vm257_vm0, %v742_v59, 0.0  ;;  %v752_v1 = vld [vmem:[%s636_s8 + $0xa0] sm:$0xff]  ;;  %v295_v3 = vsel %vm257_vm0, %v747_v62, 0.0  ;;  %v757_v4 = vld [vmem:[%s636_s8 + $0xa8] sm:$0xff]  ;;  %v762_v11 = vld [vmem:[%s636_s8 + $0xb0] sm:$0xff] }
  0x16   : > { %360 = vmatpush.msra.mxu0 %v339_v12  ;;  %v266_v26 = vadd.f32 %v265_v19, %v264_v22  ;;  %v297_v10 = vsel %vm257_vm0, %v752_v1, 0.0  ;;  %v299_v14 = vsel %vm257_vm0, %v757_v4, 0.0  ;;  %v767_v15 = vld [vmem:[%s636_s8 + $0xb8] sm:$0xff]  ;;  %v301_v18 = vsel %vm257_vm0, %v762_v11, 0.0  ;;  %v772_v19 = vld [vmem:[%s636_s8 + $0xc0] sm:$0xff] }
  0x17   : > { %v303_v22 = vsel %vm257_vm0, %v767_v15, 0.0 }
  0x18   : > { %361 = vmatpush.msra.mxu0 %v338_v16  ;;  %v268_v30 = vadd.f32 %v267_v23, %v266_v26  ;;  %v777_v23 = vld [vmem:[%s636_s8 + $0xc8] sm:$0xff]  ;;  %v305_v26 = vsel %vm257_vm0, %v772_v19, 0.0 }
  0x1a   : > { %362 = vmatpush.msra.mxu0 %v337_v20  ;;  %v270_v33 = vadd.f32 %v269_v27, %v268_v30  ;;  %v782_v27 = vld [vmem:[%s636_s8 + $0xd0] sm:$0xff]  ;;  %v307_v30 = vsel %vm257_vm0, %v777_v23, 0.0 }
  0x1c   : > { %363 = vmatpush.msra.mxu0 %v336_v24  ;;  %v272_v36 = vadd.f32 %v271_v31, %v270_v33  ;;  %v787_v31 = vld [vmem:[%s636_s8 + $0xd8] sm:$0xff] }
  0x1e   : > { %364 = vmatpush.msra.mxu0 %v335_v28  ;;  %v274_v39 = vadd.f32 %v273_v34, %v272_v36  ;;  %v574_v34 = vmov 256.0   ;;  %v309_v36 = vsel %vm257_vm0, %v782_v27, 0.0 }
  0x1f   : > { %560 = vrcp.f32 %v574_v34 }
  0x20   : > { %v276_v42 = vadd.f32 %v275_v37, %v274_v39  ;;  %v792_v37 = vld [vmem:[%s636_s8 + $0xe0] sm:$0xff] }
  0x22   : > { %v278_v45 = vadd.f32 %v277_v40, %v276_v42  ;;  %v311_v40 = vsel %vm257_vm0, %v787_v31, 0.0  ;;  %v797_v42 = vld [vmem:[%s636_s8 + $0xe8] sm:$0xff] }
  0x24   : > { %v280_v48 = vadd.f32 %v279_v43, %v278_v45  ;;  %v313_v45 = vsel %vm257_vm0, %v792_v37, 0.0 }
  0x26   : > { %v282_v51 = vadd.f32 %v281_v46, %v280_v48  ;;  %v561_v46 = vpop.eup %560  ;;  %v802_v48 = vld [vmem:[%s636_s8 + $0xf0] sm:$0xff] }
  0x27   : > { %vm332_vm1 = vweird.f32 %v561_v46 }
  0x28   : > { %v284_v54 = vadd.f32 %v283_v49, %v282_v51  ;;  %v315_v51 = vsel %vm257_vm0, %v797_v42, 0.0 }
  0x2a   : > { %v286_v57 = vadd.f32 %v285_v52, %v284_v54  ;;  %v807_v52 = vld [vmem:[%s636_s8 + $0xf8] sm:$0xff] }
  0x2c   : > { %v288_v60 = vadd.f32 %v287_v55, %v286_v57  ;;  %v317_v55 = vsel %vm257_vm0, %v802_v48, 0.0  ;;  %v328_v57 = vmul.f32 256.0, %v561_v46 }
  0x2e   : > { %v290_v63 = vadd.f32 %v289_v58, %v288_v60  ;;  %v319_v60 = vsel %vm257_vm0, %v807_v52, 0.0 }
  0x30   : > { %v292_v2 = vadd.f32 %v291_v61, %v290_v63  ;;  %v329_v63 = vsub.f32 1.0, %v328_v57 }
  0x32   : > { %v294_v9 = vadd.f32 %v293_v0, %v292_v2 }
  0x34   : > { %v296_v12 = vadd.f32 %v295_v3, %v294_v9  ;;  %v330_v3 = vmul.f32 %v561_v46, %v329_v63 }
  0x36   : > { %v298_v16 = vadd.f32 %v297_v10, %v296_v12  ;;  %v331_v12 = vadd.f32 %v561_v46, %v330_v3 }
  0x38   : > { %v300_v20 = vadd.f32 %v299_v14, %v298_v16 }
  0x3a   : > { %v302_v24 = vadd.f32 %v301_v18, %v300_v20  ;;  %v333_v18 = vsel %vm332_vm1, %v561_v46, %v331_v12 }
  0x3c   : > { %v304_v28 = vadd.f32 %v303_v22, %v302_v24  ;;  %v371_v24 = vld [vmem:[%s935_s3 + $0x8] sm:$0xff] }
  0x3d   : > { %391 = vmatpush.msra.mxu1 %v371_v24 }
  0x3e   : > { %v306_v33 = vadd.f32 %v305_v26, %v304_v28  ;;  %v370_v26 = vld [vmem:[%s935_s3] sm:$0xff] }
  0x3f   : > { %392 = vmatpush.msra.mxu1 %v370_v26  ;;  %v345_v28 = vld [vmem:[%s934_s2] sm:$0x1] }
  0x40   : > { %v308_v39 = vadd.f32 %v307_v30, %v306_v33 }
  0x42   : > { %v310_v43 = vadd.f32 %v309_v36, %v308_v39  ;;  %v372_v36 = vld [vmem:[%s936_s4] sm:$0x1] }
  0x44   : > { %v312_v49 = vadd.f32 %v311_v40, %v310_v43 }
  0x46   : > { %v314_v54 = vadd.f32 %v313_v45, %v312_v49 }
  0x48   : > { %v316_v58 = vadd.f32 %v315_v51, %v314_v54 }
  0x4a   : > { %v318_v61 = vadd.f32 %v317_v55, %v316_v58 }
  0x4c   : > { %v320_v0 = vadd.f32 %v319_v60, %v318_v61 }
  0x4e   : > { %v321_v2 = vrot.slane %v320_v0, 4 }
  0x50   : > { %v322_v9 = vadd.f32 %v321_v2, %v320_v0 }
  0x52   : > { %v323_v10 = vrot.slane %v322_v9, 2 }
  0x54   : > { %v324_v14 = vadd.f32 %v323_v10, %v322_v9 }
  0x56   : > { %v325_v16 = vrot.slane %v324_v14, 1 }
  0x58   : > { %v326_v20 = vadd.f32 %v325_v16, %v324_v14 }
  0x5a   : > { %v334_v22 = vmul.f32 %v333_v18, %v326_v20 }
  0x5c   : > { %545 = vmatmul.msk.f32.vlgmr.msra.gmra.mxu0 %vm257_vm0, %v334_v22 }
  0xd9   : > { %v366_v30 = vpop.f32.mrf.mxu0 }
  0xda   : > { %v367_v33 = vadd.f32 %v366_v30, %v345_v28 }
  0xdc   : > { %v369_v34 = vmax.f32 %v367_v33, 0.0 }
  0xde   : > { %546 = vmatmul.msk.f32.vlgmr.msra.gmra.mxu1 %vm373_vm2, %v369_v34 }
 0x15b   : > { %v394_v39 = vpop.f32.mrf.mxu1 }
 0x15c   : > { %v395_v40 = vadd.f32 %v394_v39, %v372_v36 }
 0x15e   : > { %v397_v43 = vsub.f32 0.0, %v395_v40 }
 0x160   : > { %v398_v45 = vmul.f32 1.442695, %v397_v43 }
 0x162   : > { %562 = vpow2.f32 %v398_v45 }
 0x168   : > { %v563_v46 = vpop.eup %562 }
 0x169   : > { %v400_v49 = vadd.f32 1.0, %v563_v46 }
 0x16b   : > { %564 = vrcp.f32 %v400_v49  ;;  %v412_v57 = vand.u32 2147483648, %v400_v49  ;;  %v410_v60 = vand.u32 2147483647, %v400_v49  ;;  %vm406_vm4 = vweird.f32 %v400_v49 }
 0x16d   : > { %v413_v63 = vor.u32 1.1754944e-38, %v412_v57  ;;  %vm411_vm6 = vcmp.eq.f32.partialorder %v410_v60, 8.507059e+37 }
 0x171   : > { %v565_v51 = vpop.eup %564 }
 0x172   : > { %v402_v54 = vmul.f32 %v565_v51, %v400_v49  ;;  %vm407_vm3 = vweird.f32 %v565_v51 }
 0x173   : > { %vm408_vm5 = vmor %vm406_vm4, %vm407_vm3 }
 0x174   : > { %v403_v55 = vsub.f32 1.0, %v402_v54 }
 0x176   : > { %v404_v58 = vmul.f32 %v565_v51, %v403_v55 }
 0x178   : > { %v405_v61 = vadd.f32 %v565_v51, %v404_v58 }
 0x17a   : > { %v409_v0 = vsel %vm408_vm5, %v565_v51, %v405_v61 }
 0x17b   : > { %v414_v2 = vsel %vm411_vm6, %v413_v63, %v409_v0 }
 0x17c   : > { %v416_v3 = vperm.slane %v414_v2, 0 }
 0x17e   : > { %v417_v9 = vmul.f32 %v416_v3, %v639_v5  ;;  %v418_v10 = vmul.f32 %v416_v3, %v642_v6  ;;  %v419_v12 = vmul.f32 %v416_v3, %v645_v7  ;;  %v420_v14 = vmul.f32 %v416_v3, %v648_v8 }
 0x17f   : > { %v421_v16 = vmul.f32 %v416_v3, %v660_v13  ;;  %v422_v18 = vmul.f32 %v416_v3, %v668_v17  ;;  %v423_v5 = vmul.f32 %v416_v3, %v676_v21  ;;  %v424_v6 = vmul.f32 %v416_v3, %v684_v25 }
 0x180   : > { %449 = vst.msk [vmem:[%s831_s7] sm:$0xff] %vm257_vm0, %v417_v9  ;;  %v425_v7 = vmul.f32 %v416_v3, %v692_v29  ;;  %v426_v8 = vmul.f32 %v416_v3, %v697_v32  ;;  %v427_v13 = vmul.f32 %v416_v3, %v702_v35  ;;  %v428_v17 = vmul.f32 %v416_v3, %v707_v38 }
 0x181   : > { %450 = vst.msk [vmem:[%s831_s7 + $0x8] sm:$0xff] %vm257_vm0, %v418_v10  ;;  %v429_v21 = vmul.f32 %v416_v3, %v712_v41  ;;  %v430_v25 = vmul.f32 %v416_v3, %v717_v44  ;;  %v431_v29 = vmul.f32 %v416_v3, %v722_v47  ;;  %v432_v32 = vmul.f32 %v416_v3, %v727_v50 }
 0x182   : > { %451 = vst.msk [vmem:[%s831_s7 + $0x10] sm:$0xff] %vm257_vm0, %v419_v12  ;;  %v433_v35 = vmul.f32 %v416_v3, %v732_v53  ;;  %v434_v38 = vmul.f32 %v416_v3, %v737_v56  ;;  %v435_v41 = vmul.f32 %v416_v3, %v742_v59  ;;  %v436_v44 = vmul.f32 %v416_v3, %v747_v62 }
 0x183   : > { %452 = vst.msk [vmem:[%s831_s7 + $0x18] sm:$0xff] %vm257_vm0, %v420_v14  ;;  %v437_v47 = vmul.f32 %v416_v3, %v752_v1  ;;  %v438_v50 = vmul.f32 %v416_v3, %v757_v4  ;;  %v439_v53 = vmul.f32 %v416_v3, %v762_v11  ;;  %v440_v56 = vmul.f32 %v416_v3, %v767_v15 }
 0x184   : > { %453 = vst.msk [vmem:[%s831_s7 + $0x20] sm:$0xff] %vm257_vm0, %v421_v16  ;;  %v441_v59 = vmul.f32 %v416_v3, %v772_v19  ;;  %v442_v62 = vmul.f32 %v416_v3, %v777_v23  ;;  %v443_v1 = vmul.f32 %v416_v3, %v782_v27  ;;  %v444_v4 = vmul.f32 %v416_v3, %v787_v31 }
 0x185   : > { %454 = vst.msk [vmem:[%s831_s7 + $0x28] sm:$0xff] %vm257_vm0, %v422_v18  ;;  %v445_v11 = vmul.f32 %v416_v3, %v792_v37  ;;  %v446_v15 = vmul.f32 %v416_v3, %v797_v42  ;;  %v447_v19 = vmul.f32 %v416_v3, %v802_v48  ;;  %v448_v23 = vmul.f32 %v416_v3, %v807_v52 }
 0x186   : > { %455 = vst.msk [vmem:[%s831_s7 + $0x30] sm:$0xff] %vm257_vm0, %v423_v5 }
 0x187   : > { %456 = vst.msk [vmem:[%s831_s7 + $0x38] sm:$0xff] %vm257_vm0, %v424_v6 }
 0x188   : > { %457 = vst.msk [vmem:[%s831_s7 + $0x40] sm:$0xff] %vm257_vm0, %v425_v7 }
 0x189   : > { %458 = vst.msk [vmem:[%s831_s7 + $0x48] sm:$0xff] %vm257_vm0, %v426_v8 }
 0x18a   : > { %459 = vst.msk [vmem:[%s831_s7 + $0x50] sm:$0xff] %vm257_vm0, %v427_v13 }
 0x18b   : > { %460 = vst.msk [vmem:[%s831_s7 + $0x58] sm:$0xff] %vm257_vm0, %v428_v17 }
 0x18c   : > { %461 = vst.msk [vmem:[%s831_s7 + $0x60] sm:$0xff] %vm257_vm0, %v429_v21 }
 0x18d   : > { %462 = vst.msk [vmem:[%s831_s7 + $0x68] sm:$0xff] %vm257_vm0, %v430_v25 }
 0x18e   : > { %463 = vst.msk [vmem:[%s831_s7 + $0x70] sm:$0xff] %vm257_vm0, %v431_v29 }
 0x18f   : > { %464 = vst.msk [vmem:[%s831_s7 + $0x78] sm:$0xff] %vm257_vm0, %v432_v32 }
 0x190   : > { %465 = vst.msk [vmem:[%s831_s7 + $0x80] sm:$0xff] %vm257_vm0, %v433_v35 }
 0x191   : > { %466 = vst.msk [vmem:[%s831_s7 + $0x88] sm:$0xff] %vm257_vm0, %v434_v38 }
 0x192   : > { %467 = vst.msk [vmem:[%s831_s7 + $0x90] sm:$0xff] %vm257_vm0, %v435_v41 }
 0x193   : > { %468 = vst.msk [vmem:[%s831_s7 + $0x98] sm:$0xff] %vm257_vm0, %v436_v44 }
 0x194   : > { %469 = vst.msk [vmem:[%s831_s7 + $0xa0] sm:$0xff] %vm257_vm0, %v437_v47 }
 0x195   : > { %470 = vst.msk [vmem:[%s831_s7 + $0xa8] sm:$0xff] %vm257_vm0, %v438_v50 }
 0x196   : > { %471 = vst.msk [vmem:[%s831_s7 + $0xb0] sm:$0xff] %vm257_vm0, %v439_v53 }
 0x197   : > { %472 = vst.msk [vmem:[%s831_s7 + $0xb8] sm:$0xff] %vm257_vm0, %v440_v56 }
 0x198   : > { %473 = vst.msk [vmem:[%s831_s7 + $0xc0] sm:$0xff] %vm257_vm0, %v441_v59 }
 0x199   : > { %474 = vst.msk [vmem:[%s831_s7 + $0xc8] sm:$0xff] %vm257_vm0, %v442_v62 }
 0x19a   : > { %475 = vst.msk [vmem:[%s831_s7 + $0xd0] sm:$0xff] %vm257_vm0, %v443_v1 }
 0x19b   : > { %476 = vst.msk [vmem:[%s831_s7 + $0xd8] sm:$0xff] %vm257_vm0, %v444_v4 }
 0x19c   : > { %477 = vst.msk [vmem:[%s831_s7 + $0xe0] sm:$0xff] %vm257_vm0, %v445_v11 }
 0x19d   : > { %478 = vst.msk [vmem:[%s831_s7 + $0xe8] sm:$0xff] %vm257_vm0, %v446_v15 }
 0x19e   : > { %479 = vst.msk [vmem:[%s831_s7 + $0xf0] sm:$0xff] %vm257_vm0, %v447_v19 }
 0x19f   : > { %480 = vst.msk [vmem:[%s831_s7 + $0xf8] sm:$0xff] %vm257_vm0, %v448_v23 }
 0x1a0 PF: > { %s15_s18 = sadd.s32 1, %s572_s18  }
 0x1a1   : > { %p12_p4 = scmp.ge.s32.totalorder %s15_s18, 4  }
 0x1a3   :  { %14 = sbr.rel (!%p12_p4) target bundleno = 1 (0x1), region = 70 }

// kernel: ood_calib_net_forward.58
= control target key start
LH: loop header
LB: loop body
LE: loop exit
PB: predicated region body
PF: predicated region fallthrough
CT: control target
= control target key end

     0   :  { %s629_s12 = smov 0   ;;  %s852_s0 = inlined_call_operand.vmem [shape: f32[512,80], index: 0, kind: input, shape index: {}]   ;;  %s853_s1 = inlined_call_operand.vmem [shape: f32[80,64], index: 1, kind: input, shape index: {}]   ;;  %s854_s2 = inlined_call_operand.vmem [shape: f32[1,64], index: 2, kind: input, shape index: {}]   ;;  %s855_s3 = inlined_call_operand.vmem [shape: f32[512,64], index: 3, kind: output, shape index: {}]  }
   0x1 LB: > { %s519_s13 = sadd.s32 4294967295, %s607_s12   ;;  %p523_p0 = scmp.ge.s32.totalorder %s607_s12, 1  ;;  %s607_s12 = sphi %s629_s12, %s13_s12  }
   0x2   : > { %p138_p1 = scmp.lt.s32.totalorder %s607_s12, 3 }
   0x4   : > { %p139_p2 = pnand %p523_p0, %p138_p1 }
   0x5   : > { %s524_s18 = sshll.u32 (!%p139_p2), %s519_s13, 5 }
   0x6   : > { %142 = sbr.rel (%p139_p2) target bundleno = 223 (0xdf), region = 32  ;;  %p163_p3 = scmp.lt.s32.totalorder (!%p139_p2), %s524_s18, 63 }
   0xb   : > { %v215_v0 = vld [vmem:[%s853_s1 + $0x48] sm:$0xff]  ;;  %v214_v1 = vld [vmem:[%s853_s1 + $0x40] sm:$0xff]  ;;  %v213_v2 = vld [vmem:[%s853_s1 + $0x38] sm:$0xff]  ;;  %s857_s18 = smov (!%p163_p3, %s524_s18), 63  ;;  %vm220_vm0 = vcmask 654336   ;;  %vm430_vm1 = vcmask 523264  }
   0xc   : > { %563 = vmatpush.msra.mxu2 %v215_v0  ;;  %564 = vmatpush.msra.mxu3 %v215_v0  ;;  %v212_v3 = vld [vmem:[%s853_s1 + $0x30] sm:$0xff]  ;;  %v211_v4 = vld [vmem:[%s853_s1 + $0x28] sm:$0xff]  ;;  %v210_v5 = vld [vmem:[%s853_s1 + $0x20] sm:$0xff]  ;;  %s525_s29 = sshll.u32 %s857_s18, 3 }
   0xd   : > { %323 = vmatpush.msra.mxu0 %v215_v0  ;;  %562 = vmatpush.msra.mxu1 %v215_v0  ;;  %v209_v6 = vld [vmem:[%s853_s1 + $0x18] sm:$0xff]  ;;  %v208_v7 = vld [vmem:[%s853_s1 + $0x10] sm:$0xff]  ;;  %v207_v8 = vld [vmem:[%s853_s1 + $0x8] sm:$0xff]  ;;  %s672_s9 = scalar_lea.vmem %s852_s0, %s525_s29  ;;  %s751_s17 = scalar_lea.vmem %s855_s3, %s525_s29 }
   0xe   : > { %566 = vmatpush.msra.mxu2 %v214_v1  ;;  %567 = vmatpush.msra.mxu3 %v214_v1  ;;  %v206_v9 = vld [vmem:[%s853_s1] sm:$0xff]  ;;  %v191_v14 = vld [vmem:[%s672_s9 + $0x88] sm:$0xff]  ;;  %v192_v18 = vld [vmem:[%s672_s9 + $0x90] sm:$0xff] }
   0xf   : > { %324 = vmatpush.msra.mxu0 %v214_v1  ;;  %565 = vmatpush.msra.mxu1 %v214_v1  ;;  %v190_v10 = vld [vmem:[%s672_s9 + $0x80] sm:$0xff]  ;;  %v199_v15 = vld [vmem:[%s672_s9 + $0xc8] sm:$0xff]  ;;  %v200_v19 = vld [vmem:[%s672_s9 + $0xd0] sm:$0xff] }
  0x10   : > { %569 = vmatpush.msra.mxu2 %v213_v2  ;;  %570 = vmatpush.msra.mxu3 %v213_v2  ;;  %v198_v11 = vld [vmem:[%s672_s9 + $0xc0] sm:$0xff]  ;;  %v175_v16 = vld [vmem:[%s672_s9 + $0x8] sm:$0xff]  ;;  %v176_v20 = vld [vmem:[%s672_s9 + $0x10] sm:$0xff] }
  0x11   : > { %325 = vmatpush.msra.mxu0 %v213_v2  ;;  %568 = vmatpush.msra.mxu1 %v213_v2  ;;  %v174_v12 = vld [vmem:[%s672_s9] sm:$0xff]  ;;  %v183_v17 = vld [vmem:[%s672_s9 + $0x48] sm:$0xff]  ;;  %v184_v21 = vld [vmem:[%s672_s9 + $0x50] sm:$0xff] }
  0x12   : > { %572 = vmatpush.msra.mxu2 %v212_v3  ;;  %573 = vmatpush.msra.mxu3 %v212_v3  ;;  %v182_v13 = vld [vmem:[%s672_s9 + $0x40] sm:$0xff]  ;;  %v193_v22 = vld [vmem:[%s672_s9 + $0x98] sm:$0xff]  ;;  %v195_v30 = vld [vmem:[%s672_s9 + $0xa8] sm:$0xff] }
  0x13   : > { %326 = vmatpush.msra.mxu0 %v212_v3  ;;  %571 = vmatpush.msra.mxu1 %v212_v3  ;;  %v201_v23 = vld [vmem:[%s672_s9 + $0xd8] sm:$0xff]  ;;  %v194_v26 = vld [vmem:[%s672_s9 + $0xa0] sm:$0xff]  ;;  %v203_v31 = vld [vmem:[%s672_s9 + $0xe8] sm:$0xff] }
  0x14   : > { %575 = vmatpush.msra.mxu2 %v211_v4  ;;  %576 = vmatpush.msra.mxu3 %v211_v4  ;;  %v177_v24 = vld [vmem:[%s672_s9 + $0x18] sm:$0xff]  ;;  %v202_v27 = vld [vmem:[%s672_s9 + $0xe0] sm:$0xff]  ;;  %v179_v32 = vld [vmem:[%s672_s9 + $0x28] sm:$0xff] }
  0x15   : > { %327 = vmatpush.msra.mxu0 %v211_v4  ;;  %574 = vmatpush.msra.mxu1 %v211_v4  ;;  %v185_v25 = vld [vmem:[%s672_s9 + $0x58] sm:$0xff]  ;;  %v178_v28 = vld [vmem:[%s672_s9 + $0x20] sm:$0xff]  ;;  %v187_v33 = vld [vmem:[%s672_s9 + $0x68] sm:$0xff] }
  0x16   : > { %578 = vmatpush.msra.mxu2 %v210_v5  ;;  %579 = vmatpush.msra.mxu3 %v210_v5  ;;  %v186_v29 = vld [vmem:[%s672_s9 + $0x60] sm:$0xff]  ;;  %v196_v34 = vld [vmem:[%s672_s9 + $0xb0] sm:$0xff]  ;;  %v197_v38 = vld [vmem:[%s672_s9 + $0xb8] sm:$0xff] }
  0x17   : > { %328 = vmatpush.msra.mxu0 %v210_v5  ;;  %577 = vmatpush.msra.mxu1 %v210_v5  ;;  %v204_v35 = vld [vmem:[%s672_s9 + $0xf0] sm:$0xff]  ;;  %v205_v39 = vld [vmem:[%s672_s9 + $0xf8] sm:$0xff]  ;;  %v744_v42 = vld [vmem:[%s854_s2] ss:$0 sm:$0xff] }
  0x18   : > { %581 = vmatpush.msra.mxu2 %v209_v6  ;;  %582 = vmatpush.msra.mxu3 %v209_v6  ;;  %v180_v36 = vld [vmem:[%s672_s9 + $0x30] sm:$0xff]  ;;  %v181_v40 = vld [vmem:[%s672_s9 + $0x38] sm:$0xff] }
  0x19   : > { %329 = vmatpush.msra.mxu0 %v209_v6  ;;  %580 = vmatpush.msra.mxu1 %v209_v6  ;;  %v188_v37 = vld [vmem:[%s672_s9 + $0x70] sm:$0xff]  ;;  %v189_v41 = vld [vmem:[%s672_s9 + $0x78] sm:$0xff] }
  0x1a   : > { %584 = vmatpush.msra.mxu2 %v208_v7  ;;  %585 = vmatpush.msra.mxu3 %v208_v7 }
  0x1b   : > { %330 = vmatpush.msra.mxu0 %v208_v7  ;;  %583 = vmatpush.msra.mxu1 %v208_v7 }
  0x1c   : > { %587 = vmatpush.msra.mxu2 %v207_v8  ;;  %588 = vmatpush.msra.mxu3 %v207_v8 }
  0x1d   : > { %331 = vmatpush.msra.mxu0 %v207_v8  ;;  %586 = vmatpush.msra.mxu1 %v207_v8 }
  0x1e   : > { %590 = vmatpush.msra.mxu2 %v206_v9  ;;  %591 = vmatpush.msra.mxu3 %v206_v9 }
  0x1f   : > { %544 = vmatmul.msk.f32.vlgmr.msra.gmra.mxu2 %vm220_vm0, %v190_v10  ;;  %552 = vmatmul.msk.f32.vlgmr.msra.gmra.mxu3 %vm220_vm0, %v198_v11 }
  0x20   : > { %332 = vmatpush.msra.mxu0 %v206_v9  ;;  %589 = vmatpush.msra.mxu1 %v206_v9 }
  0x21   : > { %528 = vmatmul.msk.f32.vlgmr.msra.gmra.mxu0 %vm220_vm0, %v174_v12  ;;  %536 = vmatmul.msk.f32.vlgmr.msra.gmra.mxu1 %vm220_vm0, %v182_v13 }
  0x27   : > { %545 = vmatmul.msk.f32.gmra.mxu2 %vm220_vm0, %v191_v14  ;;  %553 = vmatmul.msk.f32.gmra.mxu3 %vm220_vm0, %v199_v15 }
  0x29   : > { %529 = vmatmul.msk.f32.gmra.mxu0 %vm220_vm0, %v175_v16  ;;  %537 = vmatmul.msk.f32.gmra.mxu1 %vm220_vm0, %v183_v17 }
  0x2f   : > { %546 = vmatmul.msk.f32.gmra.mxu2 %vm220_vm0, %v192_v18  ;;  %554 = vmatmul.msk.f32.gmra.mxu3 %vm220_vm0, %v200_v19 }
  0x31   : > { %530 = vmatmul.msk.f32.gmra.mxu0 %vm220_vm0, %v176_v20  ;;  %538 = vmatmul.msk.f32.gmra.mxu1 %vm220_vm0, %v184_v21 }
  0x37   : > { %547 = vmatmul.msk.f32.gmra.mxu2 %vm220_vm0, %v193_v22  ;;  %555 = vmatmul.msk.f32.gmra.mxu3 %vm220_vm0, %v201_v23 }
  0x39   : > { %531 = vmatmul.msk.f32.gmra.mxu0 %vm220_vm0, %v177_v24  ;;  %539 = vmatmul.msk.f32.gmra.mxu1 %vm220_vm0, %v185_v25 }
  0x3f   : > { %548 = vmatmul.msk.f32.gmra.mxu2 %vm220_vm0, %v194_v26  ;;  %556 = vmatmul.msk.f32.gmra.mxu3 %vm220_vm0, %v202_v27 }
  0x41   : > { %532 = vmatmul.msk.f32.gmra.mxu0 %vm220_vm0, %v178_v28  ;;  %540 = vmatmul.msk.f32.gmra.mxu1 %vm220_vm0, %v186_v29 }
  0x47   : > { %549 = vmatmul.msk.f32.gmra.mxu2 %vm220_vm0, %v195_v30  ;;  %557 = vmatmul.msk.f32.gmra.mxu3 %vm220_vm0, %v203_v31 }
  0x49   : > { %533 = vmatmul.msk.f32.gmra.mxu0 %vm220_vm0, %v179_v32  ;;  %541 = vmatmul.msk.f32.gmra.mxu1 %vm220_vm0, %v187_v33 }
  0x4f   : > { %550 = vmatmul.msk.f32.gmra.mxu2 %vm220_vm0, %v196_v34  ;;  %558 = vmatmul.msk.f32.gmra.mxu3 %vm220_vm0, %v204_v35 }
  0x51   : > { %534 = vmatmul.msk.f32.gmra.mxu0 %vm220_vm0, %v180_v36  ;;  %542 = vmatmul.msk.f32.gmra.mxu1 %vm220_vm0, %v188_v37 }
  0x57   : > { %551 = vmatmul.msk.f32.gmra.mxu2 %vm220_vm0, %v197_v38  ;;  %559 = vmatmul.msk.f32.gmra.mxu3 %vm220_vm0, %v205_v39 }
  0x59   : > { %535 = vmatmul.msk.f32.gmra.mxu0 %vm220_vm0, %v181_v40  ;;  %543 = vmatmul.msk.f32.gmra.mxu1 %vm220_vm0, %v189_v41 }
  0x9e   : > { %v334_v43 = vpop.f32.mrf.mxu0  ;;  %v358_v44 = vpop.f32.mrf.mxu1 }
  0x9f   : > { %v335_v45 = vadd.f32 %v744_v42, %v334_v43  ;;  %v359_v46 = vadd.f32 %v744_v42, %v358_v44 }
  0xa1   : > { %431 = vst.msk [vmem:[%s751_s17] sm:$0xff] %vm430_vm1, %v335_v45 }
  0xa2   : > { %439 = vst.msk [vmem:[%s751_s17 + $0x40] sm:$0xff] %vm430_vm1, %v359_v46  ;;  %v382_v47 = vpop.f32.mrf.mxu2  ;;  %v406_v48 = vpop.f32.mrf.mxu3 }
  0xa3   : > { %v383_v49 = vadd.f32 %v744_v42, %v382_v47  ;;  %v407_v50 = vadd.f32 %v744_v42, %v406_v48 }
  0xa5   : > { %447 = vst.msk [vmem:[%s751_s17 + $0x80] sm:$0xff] %vm430_vm1, %v383_v49 }
  0xa6   : > { %455 = vst.msk [vmem:[%s751_s17 + $0xc0] sm:$0xff] %vm430_vm1, %v407_v50  ;;  %v337_v51 = vpop.f32.mrf.mxu0  ;;  %v361_v52 = vpop.f32.mrf.mxu1 }
  0xa7   : > { %v338_v53 = vadd.f32 %v744_v42, %v337_v51  ;;  %v362_v54 = vadd.f32 %v744_v42, %v361_v52 }
  0xa9   : > { %432 = vst.msk [vmem:[%s751_s17 + $0x8] sm:$0xff] %vm430_vm1, %v338_v53 }
  0xaa   : > { %440 = vst.msk [vmem:[%s751_s17 + $0x48] sm:$0xff] %vm430_vm1, %v362_v54  ;;  %v385_v55 = vpop.f32.mrf.mxu2  ;;  %v409_v56 = vpop.f32.mrf.mxu3 }
  0xab   : > { %v386_v57 = vadd.f32 %v744_v42, %v385_v55  ;;  %v410_v58 = vadd.f32 %v744_v42, %v409_v56 }
  0xad   : > { %448 = vst.msk [vmem:[%s751_s17 + $0x88] sm:$0xff] %vm430_vm1, %v386_v57 }
  0xae   : > { %456 = vst.msk [vmem:[%s751_s17 + $0xc8] sm:$0xff] %vm430_vm1, %v410_v58  ;;  %v340_v59 = vpop.f32.mrf.mxu0  ;;  %v364_v60 = vpop.f32.mrf.mxu1 }
  0xaf   : > { %v341_v61 = vadd.f32 %v744_v42, %v340_v59  ;;  %v365_v62 = vadd.f32 %v744_v42, %v364_v60 }
  0xb1   : > { %433 = vst.msk [vmem:[%s751_s17 + $0x10] sm:$0xff] %vm430_vm1, %v341_v61 }
  0xb2   : > { %441 = vst.msk [vmem:[%s751_s17 + $0x50] sm:$0xff] %vm430_vm1, %v365_v62  ;;  %v388_v63 = vpop.f32.mrf.mxu2  ;;  %v412_v0 = vpop.f32.mrf.mxu3 }
  0xb3   : > { %v389_v1 = vadd.f32 %v744_v42, %v388_v63  ;;  %v413_v2 = vadd.f32 %v744_v42, %v412_v0 }
  0xb5   : > { %449 = vst.msk [vmem:[%s751_s17 + $0x90] sm:$0xff] %vm430_vm1, %v389_v1 }
  0xb6   : > { %457 = vst.msk [vmem:[%s751_s17 + $0xd0] sm:$0xff] %vm430_vm1, %v413_v2  ;;  %v343_v3 = vpop.f32.mrf.mxu0  ;;  %v367_v4 = vpop.f32.mrf.mxu1 }
  0xb7   : > { %v344_v5 = vadd.f32 %v744_v42, %v343_v3  ;;  %v368_v6 = vadd.f32 %v744_v42, %v367_v4 }
  0xb9   : > { %434 = vst.msk [vmem:[%s751_s17 + $0x18] sm:$0xff] %vm430_vm1, %v344_v5 }
  0xba   : > { %442 = vst.msk [vmem:[%s751_s17 + $0x58] sm:$0xff] %vm430_vm1, %v368_v6  ;;  %v391_v7 = vpop.f32.mrf.mxu2  ;;  %v415_v8 = vpop.f32.mrf.mxu3 }
  0xbb   : > { %v392_v9 = vadd.f32 %v744_v42, %v391_v7  ;;  %v416_v10 = vadd.f32 %v744_v42, %v415_v8 }
  0xbd   : > { %450 = vst.msk [vmem:[%s751_s17 + $0x98] sm:$0xff] %vm430_vm1, %v392_v9 }
  0xbe   : > { %458 = vst.msk [vmem:[%s751_s17 + $0xd8] sm:$0xff] %vm430_vm1, %v416_v10  ;;  %v346_v11 = vpop.f32.mrf.mxu0  ;;  %v370_v12 = vpop.f32.mrf.mxu1 }
  0xbf   : > { %v347_v13 = vadd.f32 %v744_v42, %v346_v11  ;;  %v371_v14 = vadd.f32 %v744_v42, %v370_v12 }
  0xc1   : > { %435 = vst.msk [vmem:[%s751_s17 + $0x20] sm:$0xff] %vm430_vm1, %v347_v13 }
  0xc2   : > { %443 = vst.msk [vmem:[%s751_s17 + $0x60] sm:$0xff] %vm430_vm1, %v371_v14  ;;  %v394_v15 = vpop.f32.mrf.mxu2  ;;  %v418_v16 = vpop.f32.mrf.mxu3 }
  0xc3   : > { %v395_v17 = vadd.f32 %v744_v42, %v394_v15  ;;  %v419_v18 = vadd.f32 %v744_v42, %v418_v16 }
  0xc5   : > { %451 = vst.msk [vmem:[%s751_s17 + $0xa0] sm:$0xff] %vm430_vm1, %v395_v17 }
  0xc6   : > { %459 = vst.msk [vmem:[%s751_s17 + $0xe0] sm:$0xff] %vm430_vm1, %v419_v18  ;;  %v349_v19 = vpop.f32.mrf.mxu0  ;;  %v373_v20 = vpop.f32.mrf.mxu1 }
  0xc7   : > { %v350_v21 = vadd.f32 %v744_v42, %v349_v19  ;;  %v374_v22 = vadd.f32 %v744_v42, %v373_v20 }
  0xc9   : > { %436 = vst.msk [vmem:[%s751_s17 + $0x28] sm:$0xff] %vm430_vm1, %v350_v21 }
  0xca   : > { %444 = vst.msk [vmem:[%s751_s17 + $0x68] sm:$0xff] %vm430_vm1, %v374_v22  ;;  %v397_v23 = vpop.f32.mrf.mxu2  ;;  %v421_v24 = vpop.f32.mrf.mxu3 }
  0xcb   : > { %v398_v25 = vadd.f32 %v744_v42, %v397_v23  ;;  %v422_v26 = vadd.f32 %v744_v42, %v421_v24 }
  0xcd   : > { %452 = vst.msk [vmem:[%s751_s17 + $0xa8] sm:$0xff] %vm430_vm1, %v398_v25 }
  0xce   : > { %460 = vst.msk [vmem:[%s751_s17 + $0xe8] sm:$0xff] %vm430_vm1, %v422_v26  ;;  %v352_v27 = vpop.f32.mrf.mxu0  ;;  %v376_v28 = vpop.f32.mrf.mxu1 }
  0xcf   : > { %v353_v29 = vadd.f32 %v744_v42, %v352_v27  ;;  %v377_v30 = vadd.f32 %v744_v42, %v376_v28 }
  0xd1   : > { %437 = vst.msk [vmem:[%s751_s17 + $0x30] sm:$0xff] %vm430_vm1, %v353_v29 }
  0xd2   : > { %445 = vst.msk [vmem:[%s751_s17 + $0x70] sm:$0xff] %vm430_vm1, %v377_v30  ;;  %v400_v31 = vpop.f32.mrf.mxu2  ;;  %v424_v32 = vpop.f32.mrf.mxu3 }
  0xd3   : > { %v401_v33 = vadd.f32 %v744_v42, %v400_v31  ;;  %v425_v34 = vadd.f32 %v744_v42, %v424_v32 }
  0xd5   : > { %453 = vst.msk [vmem:[%s751_s17 + $0xb0] sm:$0xff] %vm430_vm1, %v401_v33 }
  0xd6   : > { %461 = vst.msk [vmem:[%s751_s17 + $0xf0] sm:$0xff] %vm430_vm1, %v425_v34  ;;  %v355_v35 = vpop.f32.mrf.mxu0  ;;  %v379_v36 = vpop.f32.mrf.mxu1 }
  0xd7   : > { %v356_v37 = vadd.f32 %v744_v42, %v355_v35  ;;  %v380_v38 = vadd.f32 %v744_v42, %v379_v36 }
  0xd9   : > { %438 = vst.msk [vmem:[%s751_s17 + $0x38] sm:$0xff] %vm430_vm1, %v356_v37 }
  0xda   : > { %446 = vst.msk [vmem:[%s751_s17 + $0x78] sm:$0xff] %vm430_vm1, %v380_v38  ;;  %v403_v39 = vpop.f32.mrf.mxu2  ;;  %v427_v40 = vpop.f32.mrf.mxu3 }
  0xdb   : > { %v404_v41 = vadd.f32 %v744_v42, %v403_v39  ;;  %v428_v43 = vadd.f32 %v744_v42, %v427_v40 }
  0xdd   : > { %454 = vst.msk [vmem:[%s751_s17 + $0xb8] sm:$0xff] %vm430_vm1, %v404_v41 }
  0xde   : > { %462 = vst.msk [vmem:[%s751_s17 + $0xf8] sm:$0xff] %vm430_vm1, %v428_v43 }
  0xdf PF: > { %s13_s12 = sadd.s32 1, %s607_s12  }
  0xe0   : > { %p10_p4 = scmp.ge.s32.totalorder %s13_s12, 4  }
  0xe2   :  { %12 = sbr.rel (!%p10_p4) target bundleno = 1 (0x1), region = 62 }

// kernel: ood_calib_net_forward.59
= control target key start
LH: loop header
LB: loop body
LE: loop exit
PB: predicated region body
PF: predicated region fallthrough
CT: control target
= control target key end

     0   :  { %s1324_s12 = smov 0   ;;  %s1956_s0 = inlined_call_operand.vmem [shape: f32[512,576], index: 0, kind: input, shape index: {}]   ;;  %s1957_s1 = inlined_call_operand.vmem [shape: f32[576,64], index: 1, kind: input, shape index: {}]   ;;  %s1958_s2 = inlined_call_operand.vmem [shape: f32[1,64], index: 2, kind: input, shape index: {}]   ;;  %s1959_s3 = inlined_call_operand.vmem [shape: f32[512,64], index: 3, kind: output, shape index: {}]  }
   0x1 LB: > { %s1195_s13 = sadd.s32 4294967295, %s1302_s12   ;;  %p1199_p0 = scmp.ge.s32.totalorder %s1302_s12, 1  ;;  %s1302_s12 = sphi %s1324_s12, %s13_s12  }
   0x2   : > { %p139_p1 = scmp.lt.s32.totalorder %s1302_s12, 3 }
   0x4   : > { %p140_p2 = pnand %p1199_p0, %p139_p1 }
   0x5   : > { %s1200_s28 = sshll.u32 (!%p140_p2), %s1195_s13, 5 }
   0x6   : > { %143 = sbr.rel (%p140_p2) target bundleno = 496 (0x1f0), region = 32  ;;  %p165_p3 = scmp.lt.s32.totalorder (!%p140_p2), %s1200_s28, 63 }
   0xb   : > { %v352_v0 = vld [vmem:[%s1957_s1 + $0x78] sm:$0xff]  ;;  %v351_v1 = vld [vmem:[%s1957_s1 + $0x70] sm:$0xff]  ;;  %v350_v2 = vld [vmem:[%s1957_s1 + $0x68] sm:$0xff]  ;;  %s1961_s28 = smov (!%p165_p3, %s1200_s28), 63  ;;  %vm413_vm0 = vcmask 523264  }
   0xc   : > { %1238 = vmatpush.msra.mxu1 %v352_v0  ;;  %1239 = vmatpush.msra.mxu2 %v352_v0  ;;  %v349_v3 = vld [vmem:[%s1957_s1 + $0x60] sm:$0xff]  ;;  %v348_v4 = vld [vmem:[%s1957_s1 + $0x58] sm:$0xff]  ;;  %v347_v5 = vld [vmem:[%s1957_s1 + $0x50] sm:$0xff]  ;;  %s1286_s15 = smul.u32 40, %s1961_s28  ;;  %s1203_s18 = sshll.u32 %s1961_s28, 3 }
   0xd   : > { %1240 = vmatpush.msra.mxu3 %v352_v0  ;;  %510 = vmatpush.msra.mxu0 %v352_v0  ;;  %v346_v6 = vld [vmem:[%s1957_s1 + $0x48] sm:$0xff]  ;;  %v345_v7 = vld [vmem:[%s1957_s1 + $0x40] sm:$0xff]  ;;  %v344_v8 = vld [vmem:[%s1957_s1 + $0x38] sm:$0xff]  ;;  %s1771_s21 = scalar_lea.vmem %s1959_s3, %s1203_s18 }
   0xe   : > { %1241 = vmatpush.msra.mxu1 %v351_v1  ;;  %1242 = vmatpush.msra.mxu2 %v351_v1  ;;  %v343_v9 = vld [vmem:[%s1957_s1 + $0x30] sm:$0xff]  ;;  %v342_v10 = vld [vmem:[%s1957_s1 + $0x28] sm:$0xff]  ;;  %v341_v11 = vld [vmem:[%s1957_s1 + $0x20] sm:$0xff]  ;;  %s1385_s22 = scalar_lea.vmem %s1956_s0, %s1286_s15 }
   0xf   : > { %1243 = vmatpush.msra.mxu3 %v351_v1  ;;  %511 = vmatpush.msra.mxu0 %v351_v1  ;;  %v340_v12 = vld [vmem:[%s1957_s1 + $0x18] sm:$0xff]  ;;  %v339_v13 = vld [vmem:[%s1957_s1 + $0x10] sm:$0xff]  ;;  %v338_v14 = vld [vmem:[%s1957_s1 + $0x8] sm:$0xff] }
  0x10   : > { %1244 = vmatpush.msra.mxu1 %v350_v2  ;;  %1245 = vmatpush.msra.mxu2 %v350_v2  ;;  %v337_v15 = vld [vmem:[%s1957_s1] sm:$0xff]  ;;  %v384_v18 = vld [vmem:[%s1957_s1 + $0x178] sm:$0xff]  ;;  %v383_v22 = vld [vmem:[%s1957_s1 + $0x170] sm:$0xff] }
  0x11   : > { %1246 = vmatpush.msra.mxu3 %v350_v2  ;;  %512 = vmatpush.msra.mxu0 %v350_v2  ;;  %v217_v16 = vld [vmem:[%s1385_s22 + $0x140] sm:$0xff]  ;;  %v368_v20 = vld [vmem:[%s1957_s1 + $0xf8] sm:$0xff]  ;;  %v367_v23 = vld [vmem:[%s1957_s1 + $0xf0] sm:$0xff] }
  0x12   : > { %1247 = vmatpush.msra.mxu1 %v349_v3  ;;  %1248 = vmatpush.msra.mxu2 %v349_v3  ;;  %v257_v17 = vld [vmem:[%s1385_s22 + $0x280] sm:$0xff]  ;;  %v400_v21 = vld [vmem:[%s1957_s1 + $0x1f8] sm:$0xff]  ;;  %v399_v24 = vld [vmem:[%s1957_s1 + $0x1f0] sm:$0xff] }
  0x13   : > { %1249 = vmatpush.msra.mxu3 %v349_v3  ;;  %513 = vmatpush.msra.mxu0 %v349_v3  ;;  %v297_v19 = vld [vmem:[%s1385_s22 + $0x3c0] sm:$0xff]  ;;  %v382_v25 = vld [vmem:[%s1957_s1 + $0x168] sm:$0xff]  ;;  %v408_v29 = vld [vmem:[%s1957_s1 + $0x238] sm:$0xff] }
  0x14   : > { %1250 = vmatpush.msra.mxu1 %v348_v4  ;;  %1251 = vmatpush.msra.mxu2 %v348_v4  ;;  %v177_v26 = vld [vmem:[%s1385_s22] sm:$0xff]  ;;  %v366_v27 = vld [vmem:[%s1957_s1 + $0xe8] sm:$0xff]  ;;  %v380_v36 = vld [vmem:[%s1957_s1 + $0x158] sm:$0xff] }
  0x15   : > { %1252 = vmatpush.msra.mxu3 %v348_v4  ;;  %514 = vmatpush.msra.mxu0 %v348_v4  ;;  %v398_v28 = vld [vmem:[%s1957_s1 + $0x1e8] sm:$0xff]  ;;  %v381_v32 = vld [vmem:[%s1957_s1 + $0x160] sm:$0xff]  ;;  %v396_v37 = vld [vmem:[%s1957_s1 + $0x1d8] sm:$0xff] }
  0x16   : > { %1253 = vmatpush.msra.mxu1 %v347_v5  ;;  %1254 = vmatpush.msra.mxu2 %v347_v5  ;;  %v222_v30 = vld [vmem:[%s1385_s22 + $0x168] sm:$0xff]  ;;  %v397_v33 = vld [vmem:[%s1957_s1 + $0x1e0] sm:$0xff]  ;;  %v407_v38 = vld [vmem:[%s1957_s1 + $0x230] sm:$0xff] }
  0x17   : > { %1255 = vmatpush.msra.mxu3 %v347_v5  ;;  %515 = vmatpush.msra.mxu0 %v347_v5  ;;  %v262_v31 = vld [vmem:[%s1385_s22 + $0x2a8] sm:$0xff]  ;;  %v365_v35 = vld [vmem:[%s1957_s1 + $0xe0] sm:$0xff]  ;;  %v364_v39 = vld [vmem:[%s1957_s1 + $0xd8] sm:$0xff] }
  0x18   : > { %1256 = vmatpush.msra.mxu1 %v346_v6  ;;  %1257 = vmatpush.msra.mxu2 %v346_v6  ;;  %v302_v34 = vld [vmem:[%s1385_s22 + $0x3e8] sm:$0xff]  ;;  %v379_v40 = vld [vmem:[%s1957_s1 + $0x150] sm:$0xff]  ;;  %v377_v51 = vld [vmem:[%s1957_s1 + $0x140] sm:$0xff] }
  0x19   : > { %1258 = vmatpush.msra.mxu3 %v346_v6  ;;  %516 = vmatpush.msra.mxu0 %v346_v6  ;;  %v395_v41 = vld [vmem:[%s1957_s1 + $0x1d0] sm:$0xff]  ;;  %v182_v42 = vld [vmem:[%s1385_s22 + $0x28] sm:$0xff]  ;;  %v393_v52 = vld [vmem:[%s1957_s1 + $0x1c0] sm:$0xff] }
  0x1a   : > { %1259 = vmatpush.msra.mxu1 %v345_v7  ;;  %1260 = vmatpush.msra.mxu2 %v345_v7  ;;  %v363_v43 = vld [vmem:[%s1957_s1 + $0xd0] sm:$0xff]  ;;  %v378_v44 = vld [vmem:[%s1957_s1 + $0x148] sm:$0xff]  ;;  %v361_v53 = vld [vmem:[%s1957_s1 + $0xc0] sm:$0xff] }
  0x1b   : > { %1261 = vmatpush.msra.mxu3 %v345_v7  ;;  %517 = vmatpush.msra.mxu0 %v345_v7  ;;  %v394_v45 = vld [vmem:[%s1957_s1 + $0x1c8] sm:$0xff]  ;;  %v227_v46 = vld [vmem:[%s1385_s22 + $0x190] sm:$0xff]  ;;  %v376_v54 = vld [vmem:[%s1957_s1 + $0x138] sm:$0xff] }
  0x1c   : > { %1262 = vmatpush.msra.mxu1 %v344_v8  ;;  %1263 = vmatpush.msra.mxu2 %v344_v8  ;;  %v267_v47 = vld [vmem:[%s1385_s22 + $0x2d0] sm:$0xff]  ;;  %v406_v48 = vld [vmem:[%s1957_s1 + $0x228] sm:$0xff]  ;;  %v405_v55 = vld [vmem:[%s1957_s1 + $0x220] sm:$0xff] }
  0x1d   : > { %1264 = vmatpush.msra.mxu3 %v344_v8  ;;  %518 = vmatpush.msra.mxu0 %v344_v8  ;;  %v362_v49 = vld [vmem:[%s1957_s1 + $0xc8] sm:$0xff]  ;;  %v307_v50 = vld [vmem:[%s1385_s22 + $0x410] sm:$0xff]  ;;  %v392_v56 = vld [vmem:[%s1957_s1 + $0x1b8] sm:$0xff] }
  0x1e   : > { %1265 = vmatpush.msra.mxu1 %v343_v9  ;;  %1266 = vmatpush.msra.mxu2 %v343_v9  ;;  %v360_v57 = vld [vmem:[%s1957_s1 + $0xb8] sm:$0xff]  ;;  %v187_v58 = vld [vmem:[%s1385_s22 + $0x50] sm:$0xff]  ;;  %v374_v0 = vld [vmem:[%s1957_s1 + $0x128] sm:$0xff] }
  0x1f   : > { %1267 = vmatpush.msra.mxu3 %v343_v9  ;;  %519 = vmatpush.msra.mxu0 %v343_v9  ;;  %v375_v59 = vld [vmem:[%s1957_s1 + $0x130] sm:$0xff]  ;;  %v232_v62 = vld [vmem:[%s1385_s22 + $0x1b8] sm:$0xff]  ;;  %v390_v1 = vld [vmem:[%s1957_s1 + $0x1a8] sm:$0xff] }
  0x20   : > { %1268 = vmatpush.msra.mxu1 %v342_v10  ;;  %1269 = vmatpush.msra.mxu2 %v342_v10  ;;  %v391_v60 = vld [vmem:[%s1957_s1 + $0x1b0] sm:$0xff]  ;;  %v272_v63 = vld [vmem:[%s1385_s22 + $0x2f8] sm:$0xff]  ;;  %v358_v4 = vld [vmem:[%s1957_s1 + $0xa8] sm:$0xff] }
  0x21   : > { %1270 = vmatpush.msra.mxu3 %v342_v10  ;;  %520 = vmatpush.msra.mxu0 %v342_v10  ;;  %v359_v61 = vld [vmem:[%s1957_s1 + $0xb0] sm:$0xff]  ;;  %v312_v2 = vld [vmem:[%s1385_s22 + $0x438] sm:$0xff]  ;;  %v373_v5 = vld [vmem:[%s1957_s1 + $0x120] sm:$0xff] }
  0x22   : > { %1271 = vmatpush.msra.mxu1 %v341_v11  ;;  %1272 = vmatpush.msra.mxu2 %v341_v11  ;;  %v404_v3 = vld [vmem:[%s1957_s1 + $0x218] sm:$0xff]  ;;  %v389_v6 = vld [vmem:[%s1957_s1 + $0x1a0] sm:$0xff]  ;;  %v403_v7 = vld [vmem:[%s1957_s1 + $0x210] sm:$0xff] }
  0x23   : > { %1273 = vmatpush.msra.mxu3 %v341_v11  ;;  %521 = vmatpush.msra.mxu0 %v341_v11  ;;  %v357_v8 = vld [vmem:[%s1957_s1 + $0xa0] sm:$0xff]  ;;  %v372_v9 = vld [vmem:[%s1957_s1 + $0x118] sm:$0xff] }
  0x24   : > { %1274 = vmatpush.msra.mxu1 %v340_v12  ;;  %1275 = vmatpush.msra.mxu2 %v340_v12  ;;  %v192_v10 = vld [vmem:[%s1385_s22 + $0x78] sm:$0xff] }
  0x25   : > { %1276 = vmatpush.msra.mxu3 %v340_v12  ;;  %522 = vmatpush.msra.mxu0 %v340_v12  ;;  %v388_v11 = vld [vmem:[%s1957_s1 + $0x198] sm:$0xff] }
  0x26   : > { %1277 = vmatpush.msra.mxu1 %v339_v13  ;;  %1278 = vmatpush.msra.mxu2 %v339_v13  ;;  %v356_v12 = vld [vmem:[%s1957_s1 + $0x98] sm:$0xff] }
  0x27   : > { %1279 = vmatpush.msra.mxu3 %v339_v13  ;;  %523 = vmatpush.msra.mxu0 %v339_v13  ;;  %v371_v13 = vld [vmem:[%s1957_s1 + $0x110] sm:$0xff] }
  0x28   : > { %1280 = vmatpush.msra.mxu1 %v338_v14  ;;  %1281 = vmatpush.msra.mxu2 %v338_v14 }
  0x29   : > { %1282 = vmatpush.msra.mxu3 %v338_v14  ;;  %524 = vmatpush.msra.mxu0 %v338_v14  ;;  %v237_v14 = vld [vmem:[%s1385_s22 + $0x1e0] sm:$0xff] }
  0x2a   : > { %1283 = vmatpush.msra.mxu1 %v337_v15  ;;  %1284 = vmatpush.msra.mxu2 %v337_v15 }
  0x2b   : > { %550 = vmatmul.f32.vlgmr.msra.gmra.mxu1 %v217_v16  ;;  %574 = vmatmul.f32.vlgmr.msra.gmra.mxu2 %v257_v17  ;;  %v387_v16 = vld [vmem:[%s1957_s1 + $0x190] sm:$0xff] }
  0x2c   : > { %736 = vmatpush.msrb.mxu2 %v384_v18  ;;  %1285 = vmatpush.msra.mxu3 %v337_v15  ;;  %v355_v17 = vld [vmem:[%s1957_s1 + $0x90] sm:$0xff]  ;;  %v317_v18 = vld [vmem:[%s1385_s22 + $0x460] sm:$0xff] }
  0x2d   : > { %598 = vmatmul.f32.vlgmr.msra.gmra.mxu3 %v297_v19  ;;  %623 = vmatpush.msrb.mxu1 %v368_v20  ;;  %v370_v19 = vld [vmem:[%s1957_s1 + $0x108] sm:$0xff] }
  0x2e   : > { %849 = vmatpush.msrb.mxu3 %v400_v21  ;;  %737 = vmatpush.msrb.mxu2 %v383_v22  ;;  %v386_v20 = vld [vmem:[%s1957_s1 + $0x188] sm:$0xff] }
  0x2f   : > { %624 = vmatpush.msrb.mxu1 %v367_v23  ;;  %525 = vmatpush.msra.mxu0 %v337_v15  ;;  %v277_v15 = vld [vmem:[%s1385_s22 + $0x320] sm:$0xff]  ;;  %v402_v21 = vld [vmem:[%s1957_s1 + $0x208] sm:$0xff] }
  0x30   : > { %850 = vmatpush.msrb.mxu3 %v399_v24  ;;  %738 = vmatpush.msrb.mxu2 %v382_v25  ;;  %v354_v22 = vld [vmem:[%s1957_s1 + $0x88] sm:$0xff]  ;;  %v369_v23 = vld [vmem:[%s1957_s1 + $0x100] sm:$0xff] }
  0x31   : > { %526 = vmatmul.f32.vlgmr.msra.gmra.mxu0 %v177_v26  ;;  %625 = vmatpush.msrb.mxu1 %v366_v27  ;;  %v385_v24 = vld [vmem:[%s1957_s1 + $0x180] sm:$0xff] }
  0x32   : > { %851 = vmatpush.msrb.mxu3 %v398_v28  ;;  %970 = vmatpush.msrb.mxu0 %v408_v29  ;;  %v401_v25 = vld [vmem:[%s1957_s1 + $0x200] sm:$0xff]  ;;  %v242_v28 = vld [vmem:[%s1385_s22 + $0x208] sm:$0xff] }
  0x33   : > { %553 = vmatmul.f32.gmra.mxu1 %v222_v30  ;;  %577 = vmatmul.f32.gmra.mxu2 %v262_v31  ;;  %v197_v26 = vld [vmem:[%s1385_s22 + $0xa0] sm:$0xff]  ;;  %v282_v29 = vld [vmem:[%s1385_s22 + $0x348] sm:$0xff] }
  0x34   : > { %739 = vmatpush.msrb.mxu2 %v381_v32  ;;  %852 = vmatpush.msrb.mxu3 %v397_v33  ;;  %v353_v27 = vld [vmem:[%s1957_s1 + $0x80] sm:$0xff]  ;;  %v322_v30 = vld [vmem:[%s1385_s22 + $0x488] sm:$0xff]  ;;  %v247_v32 = vld [vmem:[%s1385_s22 + $0x230] sm:$0xff] }
  0x35   : > { %601 = vmatmul.f32.gmra.mxu3 %v302_v34  ;;  %626 = vmatpush.msrb.mxu1 %v365_v35  ;;  %v202_v31 = vld [vmem:[%s1385_s22 + $0xc8] sm:$0xff]  ;;  %v287_v33 = vld [vmem:[%s1385_s22 + $0x370] sm:$0xff] }
  0x36   : > { %740 = vmatpush.msrb.mxu2 %v380_v36  ;;  %853 = vmatpush.msrb.mxu3 %v396_v37  ;;  %v327_v34 = vld [vmem:[%s1385_s22 + $0x4b0] sm:$0xff]  ;;  %v252_v36 = vld [vmem:[%s1385_s22 + $0x258] sm:$0xff] }
  0x37   : > { %971 = vmatpush.msrb.mxu0 %v407_v38  ;;  %627 = vmatpush.msrb.mxu1 %v364_v39  ;;  %v207_v35 = vld [vmem:[%s1385_s22 + $0xf0] sm:$0xff]  ;;  %v292_v37 = vld [vmem:[%s1385_s22 + $0x398] sm:$0xff] }
  0x38   : > { %741 = vmatpush.msrb.mxu2 %v379_v40  ;;  %854 = vmatpush.msrb.mxu3 %v395_v41  ;;  %v332_v38 = vld [vmem:[%s1385_s22 + $0x4d8] sm:$0xff]  ;;  %v178_v40 = vld [vmem:[%s1385_s22 + $0x8] sm:$0xff]  ;;  %v179_v41 = vld [vmem:[%s1385_s22 + $0x10] sm:$0xff] }
  0x39   : > { %529 = vmatmul.f32.gmra.mxu0 %v182_v42  ;;  %628 = vmatpush.msrb.mxu1 %v363_v43  ;;  %v212_v39 = vld [vmem:[%s1385_s22 + $0x118] sm:$0xff]  ;;  %v181_v43 = vld [vmem:[%s1385_s22 + $0x20] sm:$0xff] }
  0x3a   : > { %742 = vmatpush.msrb.mxu2 %v378_v44  ;;  %855 = vmatpush.msrb.mxu3 %v394_v45  ;;  %v180_v42 = vld [vmem:[%s1385_s22 + $0x18] sm:$0xff]  ;;  %v183_v44 = vld [vmem:[%s1385_s22 + $0x30] sm:$0xff] }
  0x3b   : > { %556 = vmatmul.f32.gmra.mxu1 %v227_v46  ;;  %580 = vmatmul.f32.gmra.mxu2 %v267_v47  ;;  %v184_v45 = vld [vmem:[%s1385_s22 + $0x38] sm:$0xff]  ;;  %v185_v46 = vld [vmem:[%s1385_s22 + $0x40] sm:$0xff]  ;;  %v186_v47 = vld [vmem:[%s1385_s22 + $0x48] sm:$0xff] }
  0x3c   : > { %972 = vmatpush.msrb.mxu0 %v406_v48  ;;  %629 = vmatpush.msrb.mxu1 %v362_v49  ;;  %v188_v48 = vld [vmem:[%s1385_s22 + $0x58] sm:$0xff]  ;;  %v189_v49 = vld [vmem:[%s1385_s22 + $0x60] sm:$0xff] }
  0x3d   : > { %604 = vmatmul.f32.gmra.mxu3 %v307_v50  ;;  %743 = vmatpush.msrb.mxu2 %v377_v51  ;;  %v190_v50 = vld [vmem:[%s1385_s22 + $0x68] sm:$0xff]  ;;  %v191_v51 = vld [vmem:[%s1385_s22 + $0x70] sm:$0xff] }
  0x3e   : > { %856 = vmatpush.msrb.mxu3 %v393_v52  ;;  %630 = vmatpush.msrb.mxu1 %v361_v53  ;;  %v193_v52 = vld [vmem:[%s1385_s22 + $0x80] sm:$0xff]  ;;  %v194_v53 = vld [vmem:[%s1385_s22 + $0x88] sm:$0xff] }
  0x3f   : > { %744 = vmatpush.msrb.mxu2 %v376_v54  ;;  %973 = vmatpush.msrb.mxu0 %v405_v55  ;;  %v195_v54 = vld [vmem:[%s1385_s22 + $0x90] sm:$0xff]  ;;  %v196_v55 = vld [vmem:[%s1385_s22 + $0x98] sm:$0xff] }
  0x40   : > { %857 = vmatpush.msrb.mxu3 %v392_v56  ;;  %631 = vmatpush.msrb.mxu1 %v360_v57  ;;  %v198_v56 = vld [vmem:[%s1385_s22 + $0xa8] sm:$0xff]  ;;  %v199_v57 = vld [vmem:[%s1385_s22 + $0xb0] sm:$0xff] }
  0x41   : > { %532 = vmatmul.f32.gmra.mxu0 %v187_v58  ;;  %745 = vmatpush.msrb.mxu2 %v375_v59  ;;  %v200_v58 = vld [vmem:[%s1385_s22 + $0xb8] sm:$0xff]  ;;  %v201_v59 = vld [vmem:[%s1385_s22 + $0xc0] sm:$0xff] }
  0x42   : > { %858 = vmatpush.msrb.mxu3 %v391_v60  ;;  %632 = vmatpush.msrb.mxu1 %v359_v61  ;;  %v203_v60 = vld [vmem:[%s1385_s22 + $0xd0] sm:$0xff]  ;;  %v204_v61 = vld [vmem:[%s1385_s22 + $0xd8] sm:$0xff] }
  0x43   : > { %559 = vmatmul.f32.gmra.mxu1 %v232_v62  ;;  %583 = vmatmul.f32.gmra.mxu2 %v272_v63  ;;  %v205_v62 = vld [vmem:[%s1385_s22 + $0xe0] sm:$0xff]  ;;  %v206_v63 = vld [vmem:[%s1385_s22 + $0xe8] sm:$0xff] }
  0x44   : > { %746 = vmatpush.msrb.mxu2 %v374_v0  ;;  %859 = vmatpush.msrb.mxu3 %v390_v1  ;;  %v208_v0 = vld [vmem:[%s1385_s22 + $0xf8] sm:$0xff]  ;;  %v209_v1 = vld [vmem:[%s1385_s22 + $0x100] sm:$0xff] }
  0x45   : > { %607 = vmatmul.f32.gmra.mxu3 %v312_v2  ;;  %974 = vmatpush.msrb.mxu0 %v404_v3  ;;  %v210_v2 = vld [vmem:[%s1385_s22 + $0x108] sm:$0xff]  ;;  %v211_v3 = vld [vmem:[%s1385_s22 + $0x110] sm:$0xff] }
  0x46   : > { %633 = vmatpush.msrb.mxu1 %v358_v4  ;;  %747 = vmatpush.msrb.mxu2 %v373_v5  ;;  %v213_v4 = vld [vmem:[%s1385_s22 + $0x120] sm:$0xff]  ;;  %v214_v5 = vld [vmem:[%s1385_s22 + $0x128] sm:$0xff] }
  0x47   : > { %860 = vmatpush.msrb.mxu3 %v389_v6  ;;  %975 = vmatpush.msrb.mxu0 %v403_v7  ;;  %v215_v6 = vld [vmem:[%s1385_s22 + $0x130] sm:$0xff]  ;;  %v216_v7 = vld [vmem:[%s1385_s22 + $0x138] sm:$0xff] }
  0x48   : > { %634 = vmatpush.msrb.mxu1 %v357_v8  ;;  %748 = vmatpush.msrb.mxu2 %v372_v9  ;;  %v218_v9 = vld [vmem:[%s1385_s22 + $0x148] sm:$0xff] }
  0x49   : > { %535 = vmatmul.f32.gmra.mxu0 %v192_v10  ;;  %861 = vmatpush.msrb.mxu3 %v388_v11  ;;  %v219_v10 = vld [vmem:[%s1385_s22 + $0x150] sm:$0xff]  ;;  %v220_v11 = vld [vmem:[%s1385_s22 + $0x158] sm:$0xff] }
  0x4a   : > { %635 = vmatpush.msrb.mxu1 %v356_v12  ;;  %749 = vmatpush.msrb.mxu2 %v371_v13  ;;  %v1638_v12 = vld [vmem:[%s1958_s2] ss:$0 sm:$0xff] }
  0x4b   : > { %562 = vmatmul.f32.gmra.mxu1 %v237_v14  ;;  %586 = vmatmul.f32.gmra.mxu2 %v277_v15  ;;  %v221_v15 = vld [vmem:[%s1385_s22 + $0x160] sm:$0xff] }
  0x4c   : > { %862 = vmatpush.msrb.mxu3 %v387_v16  ;;  %636 = vmatpush.msrb.mxu1 %v355_v17 }
  0x4d   : > { %610 = vmatmul.f32.gmra.mxu3 %v317_v18  ;;  %750 = vmatpush.msrb.mxu2 %v370_v19  ;;  %v223_v19 = vld [vmem:[%s1385_s22 + $0x170] sm:$0xff] }
  0x4e   : > { %863 = vmatpush.msrb.mxu3 %v386_v20  ;;  %976 = vmatpush.msrb.mxu0 %v402_v21  ;;  %v224_v20 = vld [vmem:[%s1385_s22 + $0x178] sm:$0xff] }
  0x4f   : > { %637 = vmatpush.msrb.mxu1 %v354_v22  ;;  %751 = vmatpush.msrb.mxu2 %v369_v23  ;;  %v225_v22 = vld [vmem:[%s1385_s22 + $0x180] sm:$0xff] }
  0x50   : > { %864 = vmatpush.msrb.mxu3 %v385_v24  ;;  %977 = vmatpush.msrb.mxu0 %v401_v25  ;;  %v226_v25 = vld [vmem:[%s1385_s22 + $0x188] sm:$0xff] }
  0x51   : > { %538 = vmatmul.f32.gmra.mxu0 %v197_v26  ;;  %638 = vmatpush.msrb.mxu1 %v353_v27 }
  0x53   : > { %565 = vmatmul.f32.gmra.mxu1 %v242_v28  ;;  %589 = vmatmul.f32.gmra.mxu2 %v282_v29  ;;  %v228_v29 = vld [vmem:[%s1385_s22 + $0x198] sm:$0xff] }
  0x55   : > { %613 = vmatmul.f32.gmra.mxu3 %v322_v30  ;;  %v229_v30 = vld [vmem:[%s1385_s22 + $0x1a0] sm:$0xff] }
  0x59   : > { %541 = vmatmul.f32.gmra.mxu0 %v202_v31 }
  0x5b   : > { %568 = vmatmul.f32.gmra.mxu1 %v247_v32  ;;  %592 = vmatmul.f32.gmra.mxu2 %v287_v33  ;;  %v230_v32 = vld [vmem:[%s1385_s22 + $0x1a8] sm:$0xff] }
  0x5d   : > { %616 = vmatmul.f32.gmra.mxu3 %v327_v34 }
  0x61   : > { %544 = vmatmul.f32.gmra.mxu0 %v207_v35  ;;  %v231_v35 = vld [vmem:[%s1385_s22 + $0x1b0] sm:$0xff] }
  0x63   : > { %571 = vmatmul.f32.gmra.mxu1 %v252_v36  ;;  %595 = vmatmul.f32.gmra.mxu2 %v292_v37 }
  0x65   : > { %619 = vmatmul.f32.gmra.mxu3 %v332_v38 }
  0x69   : > { %547 = vmatmul.f32.gmra.mxu0 %v212_v39  ;;  %v233_v39 = vld [vmem:[%s1385_s22 + $0x1c0] sm:$0xff] }
  0x6b   : > { %639 = vmatmul.f32.vlgmr.msrb.gmra.mxu1 %v178_v40  ;;  %752 = vmatmul.f32.vlgmr.msrb.gmra.mxu2 %v179_v41  ;;  %v234_v40 = vld [vmem:[%s1385_s22 + $0x1c8] sm:$0xff] }
  0x6d   : > { %865 = vmatmul.f32.vlgmr.msrb.gmra.mxu3 %v180_v42  ;;  %v235_v42 = vld [vmem:[%s1385_s22 + $0x1d0] sm:$0xff] }
  0x71   : > { %1204 = vmatmul.msk.f32.vlgmr.msrb.gmra.mxu0 %vm413_vm0, %v181_v43 }
  0x73   : > { %642 = vmatmul.f32.gmra.mxu1 %v183_v44  ;;  %755 = vmatmul.f32.gmra.mxu2 %v184_v45  ;;  %v236_v45 = vld [vmem:[%s1385_s22 + $0x1d8] sm:$0xff] }
  0x75   : > { %868 = vmatmul.f32.gmra.mxu3 %v185_v46 }
  0x79   : > { %1205 = vmatmul.msk.f32.gmra.mxu0 %vm413_vm0, %v186_v47 }
  0x7b   : > { %645 = vmatmul.f32.gmra.mxu1 %v188_v48  ;;  %758 = vmatmul.f32.gmra.mxu2 %v189_v49  ;;  %v238_v49 = vld [vmem:[%s1385_s22 + $0x1e8] sm:$0xff] }
  0x7d   : > { %871 = vmatmul.f32.gmra.mxu3 %v190_v50  ;;  %v239_v50 = vld [vmem:[%s1385_s22 + $0x1f0] sm:$0xff] }
  0x81   : > { %1206 = vmatmul.msk.f32.gmra.mxu0 %vm413_vm0, %v191_v51 }
  0x83   : > { %648 = vmatmul.f32.gmra.mxu1 %v193_v52  ;;  %761 = vmatmul.f32.gmra.mxu2 %v194_v53  ;;  %v240_v52 = vld [vmem:[%s1385_s22 + $0x1f8] sm:$0xff] }
  0x85   : > { %874 = vmatmul.f32.gmra.mxu3 %v195_v54 }
  0x89   : > { %1207 = vmatmul.msk.f32.gmra.mxu0 %vm413_vm0, %v196_v55  ;;  %v241_v55 = vld [vmem:[%s1385_s22 + $0x200] sm:$0xff] }
  0x8b   : > { %651 = vmatmul.f32.gmra.mxu1 %v198_v56  ;;  %764 = vmatmul.f32.gmra.mxu2 %v199_v57 }
  0x8d   : > { %877 = vmatmul.f32.gmra.mxu3 %v200_v58 }
  0x91   : > { %1208 = vmatmul.msk.f32.gmra.mxu0 %vm413_vm0, %v201_v59  ;;  %v243_v59 = vld [vmem:[%s1385_s22 + $0x210] sm:$0xff] }
  0x93   : > { %654 = vmatmul.f32.gmra.mxu1 %v203_v60  ;;  %767 = vmatmul.f32.gmra.mxu2 %v204_v61  ;;  %v244_v60 = vld [vmem:[%s1385_s22 + $0x218] sm:$0xff] }
  0x95   : > { %880 = vmatmul.f32.gmra.mxu3 %v205_v62  ;;  %v245_v62 = vld [vmem:[%s1385_s22 + $0x220] sm:$0xff] }
  0x99   : > { %1209 = vmatmul.msk.f32.gmra.mxu0 %vm413_vm0, %v206_v63 }
  0x9b   : > { %657 = vmatmul.f32.gmra.mxu1 %v208_v0  ;;  %770 = vmatmul.f32.gmra.mxu2 %v209_v1  ;;  %v246_v1 = vld [vmem:[%s1385_s22 + $0x228] sm:$0xff] }
  0x9d   : > { %883 = vmatmul.f32.gmra.mxu3 %v210_v2 }
  0xa1   : > { %1210 = vmatmul.msk.f32.gmra.mxu0 %vm413_vm0, %v211_v3 }
  0xa3   : > { %660 = vmatmul.f32.gmra.mxu1 %v213_v4  ;;  %773 = vmatmul.f32.gmra.mxu2 %v214_v5  ;;  %v248_v5 = vld [vmem:[%s1385_s22 + $0x238] sm:$0xff] }
  0xa5   : > { %886 = vmatmul.f32.gmra.mxu3 %v215_v6  ;;  %v249_v6 = vld [vmem:[%s1385_s22 + $0x240] sm:$0xff] }
  0xa8   : > { %v1629_v8 = vpop.f32.mrf.mxu1 }
  0xa9   : > { %1211 = vmatmul.msk.f32.gmra.mxu0 %vm413_vm0, %v216_v7 }
  0xab   : > { %663 = vmatmul.f32.gmra.mxu1 %v218_v9  ;;  %776 = vmatmul.f32.gmra.mxu2 %v219_v10  ;;  %v250_v9 = vld [vmem:[%s1385_s22 + $0x248] sm:$0xff] }
  0xad   : > { %889 = vmatmul.f32.gmra.mxu3 %v220_v11 }
  0xae   : > { %v575_v13 = vpop.f32.mrf.mxu2  ;;  %v1640_v14 = vpop.f32.mrf.mxu0 }
  0xaf   : > { %v1644_v16 = vadd.f32 %v1638_v12, %v575_v13  ;;  %v251_v13 = vld [vmem:[%s1385_s22 + $0x250] sm:$0xff] }
  0xb0   : > { %v1646_v17 = vpop.f32.mrf.mxu1  ;;  %v599_v18 = vpop.f32.mrf.mxu3 }
  0xb1   : > { %v1651_v21 = vadd.f32 %v1638_v12, %v599_v18  ;;  %1212 = vmatmul.msk.f32.gmra.mxu0 %vm413_vm0, %v221_v15 }
  0xb3   : > { %666 = vmatmul.f32.gmra.mxu1 %v223_v19  ;;  %779 = vmatmul.f32.gmra.mxu2 %v224_v20  ;;  %v253_v20 = vld [vmem:[%s1385_s22 + $0x260] sm:$0xff] }
  0xb5   : > { %892 = vmatmul.f32.gmra.mxu3 %v225_v22  ;;  %v254_v22 = vld [vmem:[%s1385_s22 + $0x268] sm:$0xff] }
  0xb6   : > { %v578_v23 = vpop.f32.mrf.mxu2  ;;  %v1655_v24 = vpop.f32.mrf.mxu0 }
  0xb7   : > { %v1659_v26 = vadd.f32 %v1638_v12, %v578_v23 }
  0xb8   : > { %v1661_v27 = vpop.f32.mrf.mxu1  ;;  %v602_v28 = vpop.f32.mrf.mxu3 }
  0xb9   : > { %v1666_v31 = vadd.f32 %v1638_v12, %v602_v28  ;;  %1213 = vmatmul.msk.f32.gmra.mxu0 %vm413_vm0, %v226_v25  ;;  %v255_v25 = vld [vmem:[%s1385_s22 + $0x270] sm:$0xff] }
  0xbb   : > { %669 = vmatmul.f32.gmra.mxu1 %v228_v29  ;;  %782 = vmatmul.f32.gmra.mxu2 %v229_v30  ;;  %v256_v30 = vld [vmem:[%s1385_s22 + $0x278] sm:$0xff] }
  0xbd   : > { %895 = vmatmul.f32.gmra.mxu3 %v230_v32 }
  0xbe   : > { %v581_v33 = vpop.f32.mrf.mxu2  ;;  %v1670_v34 = vpop.f32.mrf.mxu0 }
  0xbf   : > { %v1674_v36 = vadd.f32 %v1638_v12, %v581_v33 }
  0xc0   : > { %v1676_v37 = vpop.f32.mrf.mxu1  ;;  %v605_v38 = vpop.f32.mrf.mxu3 }
  0xc1   : > { %v1681_v41 = vadd.f32 %v1638_v12, %v605_v38  ;;  %1214 = vmatmul.msk.f32.gmra.mxu0 %vm413_vm0, %v231_v35  ;;  %v258_v38 = vld [vmem:[%s1385_s22 + $0x288] sm:$0xff] }
  0xc3   : > { %672 = vmatmul.f32.gmra.mxu1 %v233_v39  ;;  %785 = vmatmul.f32.gmra.mxu2 %v234_v40  ;;  %v259_v39 = vld [vmem:[%s1385_s22 + $0x290] sm:$0xff] }
  0xc5   : > { %898 = vmatmul.f32.gmra.mxu3 %v235_v42  ;;  %v260_v42 = vld [vmem:[%s1385_s22 + $0x298] sm:$0xff] }
  0xc6   : > { %v584_v43 = vpop.f32.mrf.mxu2  ;;  %v1685_v44 = vpop.f32.mrf.mxu0 }
  0xc7   : > { %v1689_v46 = vadd.f32 %v1638_v12, %v584_v43  ;;  %v528_v43 = vadd.f32 %v1638_v12, %v1640_v14  ;;  %v531_v14 = vadd.f32 %v1638_v12, %v1655_v24 }
  0xc8   : > { %v1691_v47 = vpop.f32.mrf.mxu1  ;;  %v608_v48 = vpop.f32.mrf.mxu3 }
  0xc9   : > { %v1696_v51 = vadd.f32 %v1638_v12, %v608_v48  ;;  %1215 = vmatmul.msk.f32.gmra.mxu0 %vm413_vm0, %v236_v45 }
  0xcb   : > { %675 = vmatmul.f32.gmra.mxu1 %v238_v49  ;;  %788 = vmatmul.f32.gmra.mxu2 %v239_v50  ;;  %v261_v50 = vld [vmem:[%s1385_s22 + $0x2a0] sm:$0xff] }
  0xcd   : > { %901 = vmatmul.f32.gmra.mxu3 %v240_v52 }
  0xce   : > { %v587_v53 = vpop.f32.mrf.mxu2  ;;  %v1700_v54 = vpop.f32.mrf.mxu0 }
  0xcf   : > { %v1704_v56 = vadd.f32 %v1638_v12, %v587_v53 }
  0xd0   : > { %v1706_v57 = vpop.f32.mrf.mxu1  ;;  %v611_v58 = vpop.f32.mrf.mxu3 }
  0xd1   : > { %v1711_v61 = vadd.f32 %v1638_v12, %v611_v58  ;;  %1216 = vmatmul.msk.f32.gmra.mxu0 %vm413_vm0, %v241_v55  ;;  %v263_v58 = vld [vmem:[%s1385_s22 + $0x2b0] sm:$0xff] }
  0xd3   : > { %678 = vmatmul.f32.gmra.mxu1 %v243_v59  ;;  %791 = vmatmul.f32.gmra.mxu2 %v244_v60  ;;  %v264_v59 = vld [vmem:[%s1385_s22 + $0x2b8] sm:$0xff] }
  0xd5   : > { %904 = vmatmul.f32.gmra.mxu3 %v245_v62  ;;  %v265_v62 = vld [vmem:[%s1385_s22 + $0x2c0] sm:$0xff] }
  0xd6   : > { %v590_v63 = vpop.f32.mrf.mxu2  ;;  %v1715_v0 = vpop.f32.mrf.mxu0 }
  0xd7   : > { %v1719_v2 = vadd.f32 %v1638_v12, %v590_v63 }
  0xd8   : > { %v1721_v3 = vpop.f32.mrf.mxu1  ;;  %v614_v4 = vpop.f32.mrf.mxu3 }
  0xd9   : > { %v1726_v7 = vadd.f32 %v1638_v12, %v614_v4  ;;  %1217 = vmatmul.msk.f32.gmra.mxu0 %vm413_vm0, %v246_v1 }
  0xdb   : > { %681 = vmatmul.f32.gmra.mxu1 %v248_v5  ;;  %794 = vmatmul.f32.gmra.mxu2 %v249_v6 }
  0xdd   : > { %907 = vmatmul.f32.gmra.mxu3 %v250_v9  ;;  %v266_v9 = vld [vmem:[%s1385_s22 + $0x2c8] sm:$0xff] }
  0xde   : > { %v593_v10 = vpop.f32.mrf.mxu2  ;;  %v1730_v11 = vpop.f32.mrf.mxu0 }
  0xdf   : > { %v1734_v15 = vadd.f32 %v1638_v12, %v593_v10 }
  0xe0   : > { %v1736_v18 = vpop.f32.mrf.mxu1  ;;  %v617_v19 = vpop.f32.mrf.mxu3 }
  0xe1   : > { %v1741_v23 = vadd.f32 %v1638_v12, %v617_v19  ;;  %1218 = vmatmul.msk.f32.gmra.mxu0 %vm413_vm0, %v251_v13  ;;  %v268_v19 = vld [vmem:[%s1385_s22 + $0x2d8] sm:$0xff] }
  0xe3   : > { %684 = vmatmul.f32.gmra.mxu1 %v253_v20  ;;  %797 = vmatmul.f32.gmra.mxu2 %v254_v22  ;;  %v269_v20 = vld [vmem:[%s1385_s22 + $0x2e0] sm:$0xff] }
  0xe5   : > { %910 = vmatmul.f32.gmra.mxu3 %v255_v25  ;;  %v270_v25 = vld [vmem:[%s1385_s22 + $0x2e8] sm:$0xff] }
  0xe6   : > { %v596_v28 = vpop.f32.mrf.mxu2  ;;  %v1745_v29 = vpop.f32.mrf.mxu0 }
  0xe7   : > { %v1749_v32 = vadd.f32 %v1638_v12, %v596_v28  ;;  %v534_v28 = vadd.f32 %v1638_v12, %v1670_v34 }
  0xe8   : > { %v620_v33 = vpop.f32.mrf.mxu3  ;;  %v640_v35 = vpop.f32.mrf.mxu1 }
  0xe9   : > { %v1754_v40 = vadd.f32 %v1638_v12, %v620_v33  ;;  %1219 = vmatmul.msk.f32.gmra.mxu0 %vm413_vm0, %v256_v30  ;;  %v641_v45 = vadd.f32 %v640_v35, %v528_v43 }
  0xeb   : > { %687 = vmatmul.f32.gmra.mxu1 %v258_v38  ;;  %800 = vmatmul.f32.gmra.mxu2 %v259_v39 }
  0xed   : > { %913 = vmatmul.f32.gmra.mxu3 %v260_v42  ;;  %v271_v42 = vld [vmem:[%s1385_s22 + $0x2f0] sm:$0xff] }
  0xee   : > { %v753_v48 = vpop.f32.mrf.mxu2  ;;  %v979_v49 = vpop.f32.mrf.mxu0 }
  0xef   : > { %v754_v52 = vadd.f32 %v753_v48, %v641_v45 }
  0xf0   : > { %v643_v53 = vpop.f32.mrf.mxu1  ;;  %v866_v55 = vpop.f32.mrf.mxu3 }
  0xf1   : > { %v867_v60 = vadd.f32 %v866_v55, %v754_v52  ;;  %1220 = vmatmul.msk.f32.gmra.mxu0 %vm413_vm0, %v261_v50  ;;  %v644_v1 = vadd.f32 %v643_v53, %v531_v14  ;;  %v274_v50 = vld [vmem:[%s1385_s22 + $0x308] sm:$0xff]  ;;  %v275_v52 = vld [vmem:[%s1385_s22 + $0x310] sm:$0xff]  ;;  %v537_v53 = vadd.f32 %v1638_v12, %v1685_v44  ;;  %v276_v14 = vld [vmem:[%s1385_s22 + $0x318] sm:$0xff] }
  0xf3   : > { %v980_v63 = vadd.f32 %v979_v49, %v867_v60  ;;  %690 = vmatmul.f32.gmra.mxu1 %v263_v58  ;;  %803 = vmatmul.f32.gmra.mxu2 %v264_v59  ;;  %v273_v49 = vld [vmem:[%s1385_s22 + $0x300] sm:$0xff] }
  0xf5   : > { %v1075_v4 = vmax.f32 %v980_v63, 0.0  ;;  %916 = vmatmul.f32.gmra.mxu3 %v265_v62 }
  0xf6   : > { %v756_v5 = vpop.f32.mrf.mxu2  ;;  %v982_v6 = vpop.f32.mrf.mxu0 }
  0xf7   : > { %1107 = vst.msk [vmem:[%s1771_s21] sm:$0xff] %vm413_vm0, %v1075_v4  ;;  %v757_v24 = vadd.f32 %v756_v5, %v644_v1  ;;  %v278_v5 = vld [vmem:[%s1385_s22 + $0x328] sm:$0xff] }
  0xf8   : > { %v646_v10 = vpop.f32.mrf.mxu1  ;;  %v869_v13 = vpop.f32.mrf.mxu3 }
  0xf9   : > { %v870_v22 = vadd.f32 %v869_v13, %v757_v24  ;;  %1221 = vmatmul.msk.f32.gmra.mxu0 %vm413_vm0, %v266_v9  ;;  %v647_v33 = vadd.f32 %v646_v10, %v534_v28  ;;  %v280_v9 = vld [vmem:[%s1385_s22 + $0x338] sm:$0xff]  ;;  %v540_v24 = vadd.f32 %v1638_v12, %v1700_v54 }
  0xfb   : > { %v983_v30 = vadd.f32 %v982_v6, %v870_v22  ;;  %693 = vmatmul.f32.gmra.mxu1 %v268_v19  ;;  %806 = vmatmul.f32.gmra.mxu2 %v269_v20  ;;  %v279_v6 = vld [vmem:[%s1385_s22 + $0x330] sm:$0xff] }
  0xfd   : > { %v1076_v35 = vmax.f32 %v983_v30, 0.0  ;;  %919 = vmatmul.f32.gmra.mxu3 %v270_v25  ;;  %v281_v25 = vld [vmem:[%s1385_s22 + $0x340] sm:$0xff] }
  0xfe   : > { %v759_v38 = vpop.f32.mrf.mxu2  ;;  %v985_v39 = vpop.f32.mrf.mxu0 }
  0xff   : > { %1108 = vst.msk [vmem:[%s1771_s21 + $0x8] sm:$0xff] %vm413_vm0, %v1076_v35  ;;  %v760_v43 = vadd.f32 %v759_v38, %v647_v33  ;;  %v283_v35 = vld [vmem:[%s1385_s22 + $0x350] sm:$0xff]  ;;  %v284_v38 = vld [vmem:[%s1385_s22 + $0x358] sm:$0xff] }
 0x100   : > { %v649_v45 = vpop.f32.mrf.mxu1  ;;  %v872_v48 = vpop.f32.mrf.mxu3 }
 0x101   : > { %v873_v34 = vadd.f32 %v872_v48, %v760_v43  ;;  %1222 = vmatmul.msk.f32.gmra.mxu0 %vm413_vm0, %v271_v42  ;;  %v650_v58 = vadd.f32 %v649_v45, %v537_v53  ;;  %v543_v42 = vadd.f32 %v1638_v12, %v1715_v0 }
 0x103   : > { %v986_v55 = vadd.f32 %v985_v39, %v873_v34  ;;  %696 = vmatmul.f32.gmra.mxu1 %v273_v49  ;;  %809 = vmatmul.f32.gmra.mxu2 %v274_v50  ;;  %v285_v39 = vld [vmem:[%s1385_s22 + $0x360] sm:$0xff]  ;;  %v286_v34 = vld [vmem:[%s1385_s22 + $0x368] sm:$0xff] }
 0x105   : > { %v1077_v59 = vmax.f32 %v986_v55, 0.0  ;;  %922 = vmatmul.f32.gmra.mxu3 %v275_v52 }
 0x106   : > { %v762_v60 = vpop.f32.mrf.mxu2  ;;  %v988_v62 = vpop.f32.mrf.mxu0 }
 0x107   : > { %1109 = vst.msk [vmem:[%s1771_s21 + $0x10] sm:$0xff] %vm413_vm0, %v1077_v59  ;;  %v763_v63 = vadd.f32 %v762_v60, %v650_v58  ;;  %v288_v58 = vld [vmem:[%s1385_s22 + $0x378] sm:$0xff]  ;;  %v289_v59 = vld [vmem:[%s1385_s22 + $0x380] sm:$0xff]  ;;  %v290_v60 = vld [vmem:[%s1385_s22 + $0x388] sm:$0xff] }
 0x108   : > { %v652_v1 = vpop.f32.mrf.mxu1  ;;  %v875_v4 = vpop.f32.mrf.mxu3 }
 0x109   : > { %v876_v44 = vadd.f32 %v875_v4, %v763_v63  ;;  %1223 = vmatmul.msk.f32.gmra.mxu0 %vm413_vm0, %v276_v14  ;;  %v653_v13 = vadd.f32 %v652_v1, %v540_v24 }
 0x10b   : > { %v989_v10 = vadd.f32 %v988_v62, %v876_v44  ;;  %699 = vmatmul.f32.gmra.mxu1 %v278_v5  ;;  %812 = vmatmul.f32.gmra.mxu2 %v279_v6  ;;  %v546_v62 = vadd.f32 %v1638_v12, %v1730_v11  ;;  %v291_v6 = vld [vmem:[%s1385_s22 + $0x390] sm:$0xff] }
 0x10d   : > { %v1078_v19 = vmax.f32 %v989_v10, 0.0  ;;  %925 = vmatmul.f32.gmra.mxu3 %v280_v9  ;;  %v293_v10 = vld [vmem:[%s1385_s22 + $0x3a0] sm:$0xff] }
 0x10e   : > { %v765_v20 = vpop.f32.mrf.mxu2  ;;  %v991_v22 = vpop.f32.mrf.mxu0 }
 0x10f   : > { %1110 = vst.msk [vmem:[%s1771_s21 + $0x18] sm:$0xff] %vm413_vm0, %v1078_v19  ;;  %v766_v28 = vadd.f32 %v765_v20, %v653_v13  ;;  %v294_v13 = vld [vmem:[%s1385_s22 + $0x3a8] sm:$0xff]  ;;  %v295_v19 = vld [vmem:[%s1385_s22 + $0x3b0] sm:$0xff]  ;;  %v549_v20 = vadd.f32 %v1638_v12, %v1745_v29 }
 0x110   : > { %v655_v30 = vpop.f32.mrf.mxu1  ;;  %v878_v33 = vpop.f32.mrf.mxu3 }
 0x111   : > { %v879_v54 = vadd.f32 %v878_v33, %v766_v28  ;;  %1224 = vmatmul.msk.f32.gmra.mxu0 %vm413_vm0, %v281_v25  ;;  %v656_v45 = vadd.f32 %v655_v30, %v543_v42  ;;  %v298_v42 = vld [vmem:[%s1385_s22 + $0x3c8] sm:$0xff] }
 0x113   : > { %v992_v43 = vadd.f32 %v991_v22, %v879_v54  ;;  %702 = vmatmul.f32.gmra.mxu1 %v283_v35  ;;  %815 = vmatmul.f32.gmra.mxu2 %v284_v38  ;;  %v296_v35 = vld [vmem:[%s1385_s22 + $0x3b8] sm:$0xff] }
 0x115   : > { %v1079_v48 = vmax.f32 %v992_v43, 0.0  ;;  %928 = vmatmul.f32.gmra.mxu3 %v285_v39  ;;  %v299_v43 = vld [vmem:[%s1385_s22 + $0x3d0] sm:$0xff] }
 0x116   : > { %v768_v49 = vpop.f32.mrf.mxu2  ;;  %v994_v50 = vpop.f32.mrf.mxu0 }
 0x117   : > { %1111 = vst.msk [vmem:[%s1771_s21 + $0x20] sm:$0xff] %vm413_vm0, %v1079_v48  ;;  %v769_v52 = vadd.f32 %v768_v49, %v656_v45  ;;  %v300_v45 = vld [vmem:[%s1385_s22 + $0x3d8] sm:$0xff]  ;;  %v552_v48 = vadd.f32 %v1638_v12, %v1629_v8 }
 0x118   : > { %v658_v53 = vpop.f32.mrf.mxu1  ;;  %v881_v55 = vpop.f32.mrf.mxu3 }
 0x119   : > { %v882_v0 = vadd.f32 %v881_v55, %v769_v52  ;;  %1225 = vmatmul.msk.f32.gmra.mxu0 %vm413_vm0, %v286_v34  ;;  %v659_v63 = vadd.f32 %v658_v53, %v546_v62  ;;  %v301_v55 = vld [vmem:[%s1385_s22 + $0x3e0] sm:$0xff]  ;;  %v304_v62 = vld [vmem:[%s1385_s22 + $0x3f8] sm:$0xff] }
 0x11b   : > { %v995_v14 = vadd.f32 %v994_v50, %v882_v0  ;;  %705 = vmatmul.f32.gmra.mxu1 %v288_v58  ;;  %818 = vmatmul.f32.gmra.mxu2 %v289_v59 }
 0x11d   : > { %v1080_v1 = vmax.f32 %v995_v14, 0.0  ;;  %931 = vmatmul.f32.gmra.mxu3 %v290_v60  ;;  %v303_v60 = vld [vmem:[%s1385_s22 + $0x3f0] sm:$0xff]  ;;  %v305_v14 = vld [vmem:[%s1385_s22 + $0x400] sm:$0xff] }
 0x11e   : > { %v771_v4 = vpop.f32.mrf.mxu2  ;;  %v997_v5 = vpop.f32.mrf.mxu0 }
 0x11f   : > { %1112 = vst.msk [vmem:[%s1771_s21 + $0x28] sm:$0xff] %vm413_vm0, %v1080_v1  ;;  %v772_v44 = vadd.f32 %v771_v4, %v659_v63  ;;  %v555_v63 = vadd.f32 %v1638_v12, %v1646_v17 }
 0x120   : > { %v661_v9 = vpop.f32.mrf.mxu1  ;;  %v884_v24 = vpop.f32.mrf.mxu3 }
 0x121   : > { %v885_v11 = vadd.f32 %v884_v24, %v772_v44  ;;  %1226 = vmatmul.msk.f32.gmra.mxu0 %vm413_vm0, %v291_v6  ;;  %v662_v25 = vadd.f32 %v661_v9, %v549_v20  ;;  %v306_v9 = vld [vmem:[%s1385_s22 + $0x408] sm:$0xff] }
 0x122   : > { %v310_v20 = vld [vmem:[%s1385_s22 + $0x428] sm:$0xff] }
 0x123   : > { %v998_v22 = vadd.f32 %v997_v5, %v885_v11  ;;  %708 = vmatmul.f32.gmra.mxu1 %v293_v10  ;;  %821 = vmatmul.f32.gmra.mxu2 %v294_v13  ;;  %v308_v11 = vld [vmem:[%s1385_s22 + $0x418] sm:$0xff] }
 0x125   : > { %v1081_v28 = vmax.f32 %v998_v22, 0.0  ;;  %934 = vmatmul.f32.gmra.mxu3 %v295_v19  ;;  %v309_v19 = vld [vmem:[%s1385_s22 + $0x420] sm:$0xff]  ;;  %v558_v22 = vadd.f32 %v1638_v12, %v1661_v27 }
 0x126   : > { %v774_v30 = vpop.f32.mrf.mxu2  ;;  %v1000_v33 = vpop.f32.mrf.mxu0 }
 0x127   : > { %1113 = vst.msk [vmem:[%s1771_s21 + $0x30] sm:$0xff] %vm413_vm0, %v1081_v28  ;;  %v775_v38 = vadd.f32 %v774_v30, %v662_v25 }
 0x128   : > { %v664_v54 = vpop.f32.mrf.mxu1  ;;  %v887_v39 = vpop.f32.mrf.mxu3 }
 0x129   : > { %v888_v29 = vadd.f32 %v887_v39, %v775_v38  ;;  %1227 = vmatmul.msk.f32.gmra.mxu0 %vm413_vm0, %v296_v35  ;;  %v665_v50 = vadd.f32 %v664_v54, %v552_v48  ;;  %v311_v38 = vld [vmem:[%s1385_s22 + $0x430] sm:$0xff]  ;;  %v561_v48 = vadd.f32 %v1638_v12, %v1676_v37 }
 0x12b   : > { %v1001_v49 = vadd.f32 %v1000_v33, %v888_v29  ;;  %711 = vmatmul.f32.gmra.mxu1 %v298_v42  ;;  %824 = vmatmul.f32.gmra.mxu2 %v299_v43  ;;  %v313_v43 = vld [vmem:[%s1385_s22 + $0x440] sm:$0xff]  ;;  %v314_v29 = vld [vmem:[%s1385_s22 + $0x448] sm:$0xff] }
 0x12d   : > { %v1082_v34 = vmax.f32 %v1001_v49, 0.0  ;;  %937 = vmatmul.f32.gmra.mxu3 %v300_v45  ;;  %v315_v45 = vld [vmem:[%s1385_s22 + $0x450] sm:$0xff] }
 0x12e   : > { %v777_v52 = vpop.f32.mrf.mxu2  ;;  %v1003_v53 = vpop.f32.mrf.mxu0 }
 0x12f   : > { %1114 = vst.msk [vmem:[%s1771_s21 + $0x38] sm:$0xff] %vm413_vm0, %v1082_v34  ;;  %v778_v58 = vadd.f32 %v777_v52, %v665_v50 }
 0x130   : > { %v667_v59 = vpop.f32.mrf.mxu1  ;;  %v890_v0 = vpop.f32.mrf.mxu3 }
 0x131   : > { %v891_v8 = vadd.f32 %v890_v0, %v778_v58  ;;  %1228 = vmatmul.msk.f32.gmra.mxu0 %vm413_vm0, %v301_v55  ;;  %v668_v4 = vadd.f32 %v667_v59, %v555_v63  ;;  %v316_v55 = vld [vmem:[%s1385_s22 + $0x458] sm:$0xff] }
 0x133   : > { %v1004_v1 = vadd.f32 %v1003_v53, %v891_v8  ;;  %714 = vmatmul.f32.gmra.mxu1 %v303_v60  ;;  %827 = vmatmul.f32.gmra.mxu2 %v304_v62  ;;  %v318_v60 = vld [vmem:[%s1385_s22 + $0x468] sm:$0xff]  ;;  %v319_v62 = vld [vmem:[%s1385_s22 + $0x470] sm:$0xff]  ;;  %v320_v8 = vld [vmem:[%s1385_s22 + $0x478] sm:$0xff] }
 0x135   : > { %v1083_v5 = vmax.f32 %v1004_v1, 0.0  ;;  %940 = vmatmul.f32.gmra.mxu3 %v305_v14  ;;  %v564_v14 = vadd.f32 %v1638_v12, %v1691_v47 }
 0x136   : > { %v780_v6 = vpop.f32.mrf.mxu2  ;;  %v1006_v44 = vpop.f32.mrf.mxu0 }
 0x137   : > { %1115 = vst.msk [vmem:[%s1771_s21 + $0x40] sm:$0xff] %vm413_vm0, %v1083_v5  ;;  %v781_v24 = vadd.f32 %v780_v6, %v668_v4 }
 0x138   : > { %v670_v10 = vpop.f32.mrf.mxu1  ;;  %v893_v13 = vpop.f32.mrf.mxu3 }
 0x139   : > { %v894_v17 = vadd.f32 %v893_v13, %v781_v24  ;;  %1229 = vmatmul.msk.f32.gmra.mxu0 %vm413_vm0, %v306_v9  ;;  %v671_v28 = vadd.f32 %v670_v10, %v558_v22  ;;  %v323_v13 = vld [vmem:[%s1385_s22 + $0x490] sm:$0xff] }
 0x13b   : > { %v1007_v25 = vadd.f32 %v1006_v44, %v894_v17  ;;  %717 = vmatmul.f32.gmra.mxu1 %v308_v11  ;;  %830 = vmatmul.f32.gmra.mxu2 %v309_v19  ;;  %v321_v44 = vld [vmem:[%s1385_s22 + $0x480] sm:$0xff]  ;;  %v324_v11 = vld [vmem:[%s1385_s22 + $0x498] sm:$0xff]  ;;  %v567_v17 = vadd.f32 %v1638_v12, %v1706_v57 }
 0x13c   : > { %v325_v19 = vld [vmem:[%s1385_s22 + $0x4a0] sm:$0xff] }
 0x13d   : > { %v1084_v30 = vmax.f32 %v1007_v25, 0.0  ;;  %943 = vmatmul.f32.gmra.mxu3 %v310_v20 }
 0x13e   : > { %v783_v33 = vpop.f32.mrf.mxu2  ;;  %v1009_v35 = vpop.f32.mrf.mxu0 }
 0x13f   : > { %1116 = vst.msk [vmem:[%s1771_s21 + $0x48] sm:$0xff] %vm413_vm0, %v1084_v30  ;;  %v784_v54 = vadd.f32 %v783_v33, %v671_v28  ;;  %v326_v33 = vld [vmem:[%s1385_s22 + $0x4a8] sm:$0xff] }
 0x140   : > { %v673_v39 = vpop.f32.mrf.mxu1  ;;  %v896_v42 = vpop.f32.mrf.mxu3 }
 0x141   : > { %v897_v27 = vadd.f32 %v896_v42, %v784_v54  ;;  %1230 = vmatmul.msk.f32.gmra.mxu0 %vm413_vm0, %v311_v38  ;;  %v674_v50 = vadd.f32 %v673_v39, %v561_v48  ;;  %v328_v39 = vld [vmem:[%s1385_s22 + $0x4b8] sm:$0xff]  ;;  %v329_v42 = vld [vmem:[%s1385_s22 + $0x4c0] sm:$0xff] }
 0x143   : > { %v1010_v49 = vadd.f32 %v1009_v35, %v897_v27  ;;  %720 = vmatmul.f32.gmra.mxu1 %v313_v43  ;;  %833 = vmatmul.f32.gmra.mxu2 %v314_v29  ;;  %v330_v43 = vld [vmem:[%s1385_s22 + $0x4c8] sm:$0xff]  ;;  %v570_v29 = vadd.f32 %v1638_v12, %v1721_v3 }
 0x145   : > { %v1085_v34 = vmax.f32 %v1010_v49, 0.0  ;;  %946 = vmatmul.f32.gmra.mxu3 %v315_v45 }
 0x146   : > { %v786_v52 = vpop.f32.mrf.mxu2  ;;  %v1012_v53 = vpop.f32.mrf.mxu0 }
 0x147   : > { %1117 = vst.msk [vmem:[%s1771_s21 + $0x50] sm:$0xff] %vm413_vm0, %v1085_v34  ;;  %v787_v58 = vadd.f32 %v786_v52, %v674_v50  ;;  %v331_v34 = vld [vmem:[%s1385_s22 + $0x4d0] sm:$0xff] }
 0x148   : > { %v676_v59 = vpop.f32.mrf.mxu1  ;;  %v899_v0 = vpop.f32.mrf.mxu3 }
 0x149   : > { %v900_v37 = vadd.f32 %v899_v0, %v787_v58  ;;  %1231 = vmatmul.msk.f32.gmra.mxu0 %vm413_vm0, %v316_v55  ;;  %v677_v1 = vadd.f32 %v676_v59, %v564_v14  ;;  %v333_v58 = vld [vmem:[%s1385_s22 + $0x4e0] sm:$0xff]  ;;  %v334_v59 = vld [vmem:[%s1385_s22 + $0x4e8] sm:$0xff]  ;;  %v335_v0 = vld [vmem:[%s1385_s22 + $0x4f0] sm:$0xff] }
 0x14b   : > { %v1013_v63 = vadd.f32 %v1012_v53, %v900_v37  ;;  %723 = vmatmul.f32.gmra.mxu1 %v318_v60  ;;  %836 = vmatmul.f32.gmra.mxu2 %v319_v62  ;;  %v573_v60 = vadd.f32 %v1638_v12, %v1736_v18 }
 0x14d   : > { %v1086_v4 = vmax.f32 %v1013_v63, 0.0  ;;  %949 = vmatmul.f32.gmra.mxu3 %v320_v8 }
 0x14e   : > { %v789_v5 = vpop.f32.mrf.mxu2  ;;  %v1015_v6 = vpop.f32.mrf.mxu0 }
 0x14f   : > { %1118 = vst.msk [vmem:[%s1771_s21 + $0x58] sm:$0xff] %vm413_vm0, %v1086_v4  ;;  %v790_v9 = vadd.f32 %v789_v5, %v677_v1  ;;  %v336_v1 = vld [vmem:[%s1385_s22 + $0x4f8] sm:$0xff] }
 0x150   : > { %v679_v24 = vpop.f32.mrf.mxu1  ;;  %v902_v10 = vpop.f32.mrf.mxu3 }
 0x151   : > { %v903_v47 = vadd.f32 %v902_v10, %v790_v9  ;;  %1232 = vmatmul.msk.f32.gmra.mxu0 %vm413_vm0, %v321_v44  ;;  %v680_v22 = vadd.f32 %v679_v24, %v567_v17 }
 0x153   : > { %v1016_v20 = vadd.f32 %v1015_v6, %v903_v47  ;;  %726 = vmatmul.f32.gmra.mxu1 %v323_v13  ;;  %839 = vmatmul.f32.gmra.mxu2 %v324_v11 }
 0x155   : > { %v1087_v25 = vmax.f32 %v1016_v20, 0.0  ;;  %952 = vmatmul.f32.gmra.mxu3 %v325_v19 }
 0x156   : > { %v792_v28 = vpop.f32.mrf.mxu2  ;;  %v1018_v30 = vpop.f32.mrf.mxu0 }
 0x157   : > { %1119 = vst.msk [vmem:[%s1771_s21 + $0x60] sm:$0xff] %vm413_vm0, %v1087_v25  ;;  %v793_v35 = vadd.f32 %v792_v28, %v680_v22 }
 0x158   : > { %v682_v38 = vpop.f32.mrf.mxu1  ;;  %v905_v54 = vpop.f32.mrf.mxu3 }
 0x159   : > { %v906_v57 = vadd.f32 %v905_v54, %v793_v35  ;;  %1233 = vmatmul.msk.f32.gmra.mxu0 %vm413_vm0, %v326_v33  ;;  %v683_v45 = vadd.f32 %v682_v38, %v570_v29 }
 0x15b   : > { %v1019_v27 = vadd.f32 %v1018_v30, %v906_v57  ;;  %729 = vmatmul.f32.gmra.mxu1 %v328_v39  ;;  %842 = vmatmul.f32.gmra.mxu2 %v329_v42 }
 0x15d   : > { %v1088_v48 = vmax.f32 %v1019_v27, 0.0  ;;  %955 = vmatmul.f32.gmra.mxu3 %v330_v43 }
 0x15e   : > { %v795_v49 = vpop.f32.mrf.mxu2  ;;  %v1021_v50 = vpop.f32.mrf.mxu0 }
 0x15f   : > { %1120 = vst.msk [vmem:[%s1771_s21 + $0x68] sm:$0xff] %vm413_vm0, %v1088_v48  ;;  %v796_v52 = vadd.f32 %v795_v49, %v683_v45 }
 0x160   : > { %v685_v53 = vpop.f32.mrf.mxu1  ;;  %v908_v55 = vpop.f32.mrf.mxu3 }
 0x161   : > { %v909_v3 = vadd.f32 %v908_v55, %v796_v52  ;;  %1234 = vmatmul.msk.f32.gmra.mxu0 %vm413_vm0, %v331_v34  ;;  %v686_v37 = vadd.f32 %v685_v53, %v573_v60 }
 0x163   : > { %v1022_v62 = vadd.f32 %v1021_v50, %v909_v3  ;;  %732 = vmatmul.f32.gmra.mxu1 %v333_v58  ;;  %845 = vmatmul.f32.gmra.mxu2 %v334_v59 }
 0x165   : > { %v1089_v8 = vmax.f32 %v1022_v62, 0.0  ;;  %958 = vmatmul.f32.gmra.mxu3 %v335_v0 }
 0x166   : > { %v798_v14 = vpop.f32.mrf.mxu2  ;;  %v1024_v63 = vpop.f32.mrf.mxu0 }
 0x167   : > { %1121 = vst.msk [vmem:[%s1771_s21 + $0x70] sm:$0xff] %vm413_vm0, %v1089_v8  ;;  %v799_v4 = vadd.f32 %v798_v14, %v686_v37 }
 0x168   : > { %v688_v5 = vpop.f32.mrf.mxu1  ;;  %v911_v6 = vpop.f32.mrf.mxu3 }
 0x169   : > { %v912_v44 = vadd.f32 %v911_v6, %v799_v4  ;;  %1235 = vmatmul.msk.f32.gmra.mxu0 %vm413_vm0, %v336_v1  ;;  %v689_v18 = vadd.f32 %v688_v5, %v1644_v16 }
 0x16b   : > { %v1025_v12 = vadd.f32 %v1024_v63, %v912_v44 }
 0x16d   : > { %v1090_v9 = vmax.f32 %v1025_v12, 0.0 }
 0x16e   : > { %v801_v24 = vpop.f32.mrf.mxu2  ;;  %v1027_v10 = vpop.f32.mrf.mxu0 }
 0x16f   : > { %1122 = vst.msk [vmem:[%s1771_s21 + $0x78] sm:$0xff] %vm413_vm0, %v1090_v9  ;;  %v802_v13 = vadd.f32 %v801_v24, %v689_v18 }
 0x170   : > { %v691_v11 = vpop.f32.mrf.mxu1  ;;  %v914_v47 = vpop.f32.mrf.mxu3 }
 0x171   : > { %v915_v19 = vadd.f32 %v914_v47, %v802_v13  ;;  %v692_v20 = vadd.f32 %v691_v11, %v1659_v26 }
 0x173   : > { %v1028_v17 = vadd.f32 %v1027_v10, %v915_v19 }
 0x175   : > { %v1091_v22 = vmax.f32 %v1028_v17, 0.0 }
 0x176   : > { %v804_v25 = vpop.f32.mrf.mxu2  ;;  %v1030_v28 = vpop.f32.mrf.mxu0 }
 0x177   : > { %1123 = vst.msk [vmem:[%s1771_s21 + $0x80] sm:$0xff] %vm413_vm0, %v1091_v22  ;;  %v805_v30 = vadd.f32 %v804_v25, %v692_v20 }
 0x178   : > { %v694_v16 = vpop.f32.mrf.mxu1  ;;  %v917_v33 = vpop.f32.mrf.mxu3 }
 0x179   : > { %v918_v35 = vadd.f32 %v917_v33, %v805_v30  ;;  %v695_v54 = vadd.f32 %v694_v16, %v1674_v36 }
 0x17b   : > { %v1031_v38 = vadd.f32 %v1030_v28, %v918_v35 }
 0x17d   : > { %v1092_v39 = vmax.f32 %v1031_v38, 0.0 }
 0x17e   : > { %v807_v42 = vpop.f32.mrf.mxu2  ;;  %v1033_v57 = vpop.f32.mrf.mxu0 }
 0x17f   : > { %1124 = vst.msk [vmem:[%s1771_s21 + $0x88] sm:$0xff] %vm413_vm0, %v1092_v39  ;;  %v808_v43 = vadd.f32 %v807_v42, %v695_v54 }
 0x180   : > { %v697_v26 = vpop.f32.mrf.mxu1  ;;  %v920_v29 = vpop.f32.mrf.mxu3 }
 0x181   : > { %v921_v27 = vadd.f32 %v920_v29, %v808_v43  ;;  %v698_v48 = vadd.f32 %v697_v26, %v1689_v46 }
 0x183   : > { %v1034_v45 = vadd.f32 %v1033_v57, %v921_v27 }
 0x185   : > { %v1093_v49 = vmax.f32 %v1034_v45, 0.0 }
 0x186   : > { %v810_v50 = vpop.f32.mrf.mxu2  ;;  %v1036_v34 = vpop.f32.mrf.mxu0 }
 0x187   : > { %1125 = vst.msk [vmem:[%s1771_s21 + $0x90] sm:$0xff] %vm413_vm0, %v1093_v49  ;;  %v811_v52 = vadd.f32 %v810_v50, %v698_v48 }
 0x188   : > { %v700_v36 = vpop.f32.mrf.mxu1  ;;  %v923_v53 = vpop.f32.mrf.mxu3 }
 0x189   : > { %v924_v55 = vadd.f32 %v923_v53, %v811_v52  ;;  %v701_v59 = vadd.f32 %v700_v36, %v1704_v56 }
 0x18b   : > { %v1037_v58 = vadd.f32 %v1036_v34, %v924_v55 }
 0x18d   : > { %v1094_v3 = vmax.f32 %v1037_v58, 0.0 }
 0x18e   : > { %v813_v0 = vpop.f32.mrf.mxu2  ;;  %v1039_v60 = vpop.f32.mrf.mxu0 }
 0x18f   : > { %1126 = vst.msk [vmem:[%s1771_s21 + $0x98] sm:$0xff] %vm413_vm0, %v1094_v3  ;;  %v814_v62 = vadd.f32 %v813_v0, %v701_v59 }
 0x190   : > { %v703_v46 = vpop.f32.mrf.mxu1  ;;  %v926_v37 = vpop.f32.mrf.mxu3 }
 0x191   : > { %v927_v8 = vadd.f32 %v926_v37, %v814_v62  ;;  %v704_v63 = vadd.f32 %v703_v46, %v1719_v2 }
 0x193   : > { %v1040_v14 = vadd.f32 %v1039_v60, %v927_v8 }
 0x195   : > { %v1095_v1 = vmax.f32 %v1040_v14, 0.0 }
 0x196   : > { %v816_v4 = vpop.f32.mrf.mxu2  ;;  %v1042_v5 = vpop.f32.mrf.mxu0 }
 0x197   : > { %1127 = vst.msk [vmem:[%s1771_s21 + $0xa0] sm:$0xff] %vm413_vm0, %v1095_v1  ;;  %v817_v6 = vadd.f32 %v816_v4, %v704_v63 }
 0x198   : > { %v706_v56 = vpop.f32.mrf.mxu1  ;;  %v929_v44 = vpop.f32.mrf.mxu3 }
 0x199   : > { %v930_v12 = vadd.f32 %v929_v44, %v817_v6  ;;  %v707_v9 = vadd.f32 %v706_v56, %v1734_v15 }
 0x19b   : > { %v1043_v18 = vadd.f32 %v1042_v5, %v930_v12 }
 0x19d   : > { %v1096_v24 = vmax.f32 %v1043_v18, 0.0 }
 0x19e   : > { %v819_v10 = vpop.f32.mrf.mxu2  ;;  %v1045_v13 = vpop.f32.mrf.mxu0 }
 0x19f   : > { %1128 = vst.msk [vmem:[%s1771_s21 + $0xa8] sm:$0xff] %vm413_vm0, %v1096_v24  ;;  %v820_v11 = vadd.f32 %v819_v10, %v707_v9 }
 0x1a0   : > { %v709_v2 = vpop.f32.mrf.mxu1  ;;  %v932_v47 = vpop.f32.mrf.mxu3 }
 0x1a1   : > { %v933_v19 = vadd.f32 %v932_v47, %v820_v11  ;;  %v710_v20 = vadd.f32 %v709_v2, %v1749_v32 }
 0x1a3   : > { %v1046_v17 = vadd.f32 %v1045_v13, %v933_v19 }
 0x1a5   : > { %v1097_v22 = vmax.f32 %v1046_v17, 0.0 }
 0x1a6   : > { %v822_v25 = vpop.f32.mrf.mxu2  ;;  %v1048_v28 = vpop.f32.mrf.mxu0 }
 0x1a7   : > { %1129 = vst.msk [vmem:[%s1771_s21 + $0xb0] sm:$0xff] %vm413_vm0, %v1097_v22  ;;  %v823_v30 = vadd.f32 %v822_v25, %v710_v20 }
 0x1a8   : > { %v712_v15 = vpop.f32.mrf.mxu1  ;;  %v935_v16 = vpop.f32.mrf.mxu3 }
 0x1a9   : > { %v936_v33 = vadd.f32 %v935_v16, %v823_v30  ;;  %v713_v38 = vadd.f32 %v712_v15, %v1651_v21 }
 0x1ab   : > { %v1049_v35 = vadd.f32 %v1048_v28, %v936_v33 }
 0x1ad   : > { %v1098_v54 = vmax.f32 %v1049_v35, 0.0 }
 0x1ae   : > { %v825_v39 = vpop.f32.mrf.mxu2  ;;  %v1051_v42 = vpop.f32.mrf.mxu0 }
 0x1af   : > { %1130 = vst.msk [vmem:[%s1771_s21 + $0xb8] sm:$0xff] %vm413_vm0, %v1098_v54  ;;  %v826_v57 = vadd.f32 %v825_v39, %v713_v38 }
 0x1b0   : > { %v715_v32 = vpop.f32.mrf.mxu1  ;;  %v938_v43 = vpop.f32.mrf.mxu3 }
 0x1b1   : > { %v939_v26 = vadd.f32 %v938_v43, %v826_v57  ;;  %v716_v27 = vadd.f32 %v715_v32, %v1666_v31 }
 0x1b3   : > { %v1052_v29 = vadd.f32 %v1051_v42, %v939_v26 }
 0x1b5   : > { %v1099_v45 = vmax.f32 %v1052_v29, 0.0 }
 0x1b6   : > { %v828_v48 = vpop.f32.mrf.mxu2  ;;  %v1054_v49 = vpop.f32.mrf.mxu0 }
 0x1b7   : > { %1131 = vst.msk [vmem:[%s1771_s21 + $0xc0] sm:$0xff] %vm413_vm0, %v1099_v45  ;;  %v829_v50 = vadd.f32 %v828_v48, %v716_v27 }
 0x1b8   : > { %v718_v21 = vpop.f32.mrf.mxu1  ;;  %v941_v34 = vpop.f32.mrf.mxu3 }
 0x1b9   : > { %v942_v52 = vadd.f32 %v941_v34, %v829_v50  ;;  %v719_v53 = vadd.f32 %v718_v21, %v1681_v41 }
 0x1bb   : > { %v1055_v36 = vadd.f32 %v1054_v49, %v942_v52 }
 0x1bd   : > { %v1100_v55 = vmax.f32 %v1055_v36, 0.0 }
 0x1be   : > { %v831_v58 = vpop.f32.mrf.mxu2  ;;  %v1057_v59 = vpop.f32.mrf.mxu0 }
 0x1bf   : > { %1132 = vst.msk [vmem:[%s1771_s21 + $0xc8] sm:$0xff] %vm413_vm0, %v1100_v55  ;;  %v832_v3 = vadd.f32 %v831_v58, %v719_v53 }
 0x1c0   : > { %v721_v31 = vpop.f32.mrf.mxu1  ;;  %v944_v0 = vpop.f32.mrf.mxu3 }
 0x1c1   : > { %v945_v60 = vadd.f32 %v944_v0, %v832_v3  ;;  %v722_v46 = vadd.f32 %v721_v31, %v1696_v51 }
 0x1c3   : > { %v1058_v62 = vadd.f32 %v1057_v59, %v945_v60 }
 0x1c5   : > { %v1101_v37 = vmax.f32 %v1058_v62, 0.0 }
 0x1c6   : > { %v834_v8 = vpop.f32.mrf.mxu2  ;;  %v1060_v14 = vpop.f32.mrf.mxu0 }
 0x1c7   : > { %1133 = vst.msk [vmem:[%s1771_s21 + $0xd0] sm:$0xff] %vm413_vm0, %v1101_v37  ;;  %v835_v63 = vadd.f32 %v834_v8, %v722_v46 }
 0x1c8   : > { %v724_v41 = vpop.f32.mrf.mxu1  ;;  %v947_v1 = vpop.f32.mrf.mxu3 }
 0x1c9   : > { %v948_v4 = vadd.f32 %v947_v1, %v835_v63  ;;  %v725_v6 = vadd.f32 %v724_v41, %v1711_v61 }
 0x1cb   : > { %v1061_v5 = vadd.f32 %v1060_v14, %v948_v4 }
 0x1cd   : > { %v1102_v56 = vmax.f32 %v1061_v5, 0.0 }
 0x1ce   : > { %v837_v44 = vpop.f32.mrf.mxu2  ;;  %v1063_v12 = vpop.f32.mrf.mxu0 }
 0x1cf   : > { %1134 = vst.msk [vmem:[%s1771_s21 + $0xd8] sm:$0xff] %vm413_vm0, %v1102_v56  ;;  %v838_v18 = vadd.f32 %v837_v44, %v725_v6 }
 0x1d0   : > { %v727_v51 = vpop.f32.mrf.mxu1  ;;  %v950_v9 = vpop.f32.mrf.mxu3 }
 0x1d1   : > { %v951_v24 = vadd.f32 %v950_v9, %v838_v18  ;;  %v728_v13 = vadd.f32 %v727_v51, %v1726_v7 }
 0x1d3   : > { %v1064_v10 = vadd.f32 %v1063_v12, %v951_v24 }
 0x1d5   : > { %v1103_v11 = vmax.f32 %v1064_v10, 0.0 }
 0x1d6   : > { %v840_v2 = vpop.f32.mrf.mxu2  ;;  %v1066_v47 = vpop.f32.mrf.mxu0 }
 0x1d7   : > { %1135 = vst.msk [vmem:[%s1771_s21 + $0xe0] sm:$0xff] %vm413_vm0, %v1103_v11  ;;  %v841_v19 = vadd.f32 %v840_v2, %v728_v13 }
 0x1d8   : > { %v730_v61 = vpop.f32.mrf.mxu1  ;;  %v953_v17 = vpop.f32.mrf.mxu3 }
 0x1d9   : > { %v954_v20 = vadd.f32 %v953_v17, %v841_v19  ;;  %v731_v25 = vadd.f32 %v730_v61, %v1741_v23 }
 0x1db   : > { %v1067_v22 = vadd.f32 %v1066_v47, %v954_v20 }
 0x1dd   : > { %v1104_v28 = vmax.f32 %v1067_v22, 0.0 }
 0x1de   : > { %v843_v30 = vpop.f32.mrf.mxu2  ;;  %v1069_v15 = vpop.f32.mrf.mxu0 }
 0x1df   : > { %1136 = vst.msk [vmem:[%s1771_s21 + $0xe8] sm:$0xff] %vm413_vm0, %v1104_v28  ;;  %v844_v7 = vadd.f32 %v843_v30, %v731_v25 }
 0x1e0   : > { %v956_v16 = vpop.f32.mrf.mxu3  ;;  %v733_v35 = vpop.f32.mrf.mxu1 }
 0x1e1   : > { %v957_v33 = vadd.f32 %v956_v16, %v844_v7  ;;  %v734_v54 = vadd.f32 %v733_v35, %v1754_v40 }
 0x1e3   : > { %v1070_v38 = vadd.f32 %v1069_v15, %v957_v33 }
 0x1e5   : > { %v1105_v39 = vmax.f32 %v1070_v38, 0.0 }
 0x1e6   : > { %v846_v42 = vpop.f32.mrf.mxu2  ;;  %v1072_v23 = vpop.f32.mrf.mxu0 }
 0x1e7   : > { %1137 = vst.msk [vmem:[%s1771_s21 + $0xf0] sm:$0xff] %vm413_vm0, %v1105_v39  ;;  %v847_v57 = vadd.f32 %v846_v42, %v734_v54 }
 0x1e8   : > { %v959_v32 = vpop.f32.mrf.mxu3 }
 0x1e9   : > { %v960_v43 = vadd.f32 %v959_v32, %v847_v57 }
 0x1eb   : > { %v1073_v26 = vadd.f32 %v1072_v23, %v960_v43 }
 0x1ed   : > { %v1106_v29 = vmax.f32 %v1073_v26, 0.0 }
 0x1ef   : > { %1138 = vst.msk [vmem:[%s1771_s21 + $0xf8] sm:$0xff] %vm413_vm0, %v1106_v29 }
 0x1f0 PF: > { %s13_s12 = sadd.s32 1, %s1302_s12  }
 0x1f1   : > { %p10_p4 = scmp.ge.s32.totalorder %s13_s12, 4  }
 0x1f3   :  { %12 = sbr.rel (!%p10_p4) target bundleno = 1 (0x1), region = 62 }

// kernel: ood_calib_net_forward.60
= control target key start
LH: loop header
LB: loop body
LE: loop exit
PB: predicated region body
PF: predicated region fallthrough
CT: control target
= control target key end

     0   :  { %s1424_s15 = smov 0   ;;  %s2093_s0 = inlined_call_operand.vmem [shape: f32[512,576], index: 0, kind: input, shape index: {}]   ;;  %s2094_s1 = inlined_call_operand.vmem [shape: f32[576,64], index: 1, kind: input, shape index: {}]   ;;  %s2095_s2 = inlined_call_operand.vmem [shape: f32[1,64], index: 2, kind: input, shape index: {}]   ;;  %s2096_s3 = inlined_call_operand.vmem [shape: f32[512,64], index: 3, kind: input, shape index: {}]   ;;  %s2097_s4 = inlined_call_operand.vmem [shape: f32[512,64], index: 4, kind: output, shape index: {}]  }
   0x1 LB: > { %s1288_s16 = sadd.s32 4294967295, %s1397_s15   ;;  %p1292_p0 = scmp.ge.s32.totalorder %s1397_s15, 1  ;;  %s1397_s15 = sphi %s1424_s15, %s14_s15  }
   0x2   : > { %p175_p1 = scmp.lt.s32.totalorder %s1397_s15, 3 }
   0x4   : > { %p176_p2 = pnand %p1292_p0, %p175_p1 }
   0x5   : > { %s1293_s5 = sshll.u32 (!%p176_p2), %s1288_s16, 5 }
   0x6   : > { %179 = sbr.rel (%p176_p2) target bundleno = 496 (0x1f0), region = 36  ;;  %p208_p3 = scmp.lt.s32.totalorder (!%p176_p2), %s1293_s5, 63 }
   0xb   : > { %v401_v0 = vld [vmem:[%s2094_s1 + $0x78] sm:$0xff]  ;;  %v400_v1 = vld [vmem:[%s2094_s1 + $0x70] sm:$0xff]  ;;  %v399_v2 = vld [vmem:[%s2094_s1 + $0x68] sm:$0xff]  ;;  %s2099_s5 = smov (!%p208_p3, %s1293_s5), 63  ;;  %vm462_vm0 = vcmask 523264  }
   0xc   : > { %1333 = vmatpush.msra.mxu1 %v401_v0  ;;  %1334 = vmatpush.msra.mxu2 %v401_v0  ;;  %v398_v3 = vld [vmem:[%s2094_s1 + $0x60] sm:$0xff]  ;;  %v397_v4 = vld [vmem:[%s2094_s1 + $0x58] sm:$0xff]  ;;  %v396_v5 = vld [vmem:[%s2094_s1 + $0x50] sm:$0xff]  ;;  %s1381_s19 = smul.u32 40, %s2099_s5  ;;  %s1296_s28 = sshll.u32 %s2099_s5, 3 }
   0xd   : > { %1335 = vmatpush.msra.mxu3 %v401_v0  ;;  %559 = vmatpush.msra.mxu0 %v401_v0  ;;  %v395_v6 = vld [vmem:[%s2094_s1 + $0x48] sm:$0xff]  ;;  %v394_v7 = vld [vmem:[%s2094_s1 + $0x40] sm:$0xff]  ;;  %v393_v8 = vld [vmem:[%s2094_s1 + $0x38] sm:$0xff]  ;;  %s1865_s6 = scalar_lea.vmem %s2096_s3, %s1296_s28  ;;  %s1877_s8 = scalar_lea.vmem %s2097_s4, %s1296_s28 }
   0xe   : > { %1336 = vmatpush.msra.mxu1 %v400_v1  ;;  %1337 = vmatpush.msra.mxu2 %v400_v1  ;;  %v392_v9 = vld [vmem:[%s2094_s1 + $0x30] sm:$0xff]  ;;  %v391_v10 = vld [vmem:[%s2094_s1 + $0x28] sm:$0xff]  ;;  %v390_v11 = vld [vmem:[%s2094_s1 + $0x20] sm:$0xff]  ;;  %s1485_s26 = scalar_lea.vmem %s2093_s0, %s1381_s19 }
   0xf   : > { %1338 = vmatpush.msra.mxu3 %v400_v1  ;;  %560 = vmatpush.msra.mxu0 %v400_v1  ;;  %v389_v12 = vld [vmem:[%s2094_s1 + $0x18] sm:$0xff]  ;;  %v388_v13 = vld [vmem:[%s2094_s1 + $0x10] sm:$0xff]  ;;  %v387_v14 = vld [vmem:[%s2094_s1 + $0x8] sm:$0xff] }
  0x10   : > { %1339 = vmatpush.msra.mxu1 %v399_v2  ;;  %1340 = vmatpush.msra.mxu2 %v399_v2  ;;  %v386_v15 = vld [vmem:[%s2094_s1] sm:$0xff]  ;;  %v433_v18 = vld [vmem:[%s2094_s1 + $0x178] sm:$0xff]  ;;  %v432_v22 = vld [vmem:[%s2094_s1 + $0x170] sm:$0xff] }
  0x11   : > { %1341 = vmatpush.msra.mxu3 %v399_v2  ;;  %561 = vmatpush.msra.mxu0 %v399_v2  ;;  %v266_v16 = vld [vmem:[%s1485_s26 + $0x140] sm:$0xff]  ;;  %v417_v20 = vld [vmem:[%s2094_s1 + $0xf8] sm:$0xff]  ;;  %v416_v23 = vld [vmem:[%s2094_s1 + $0xf0] sm:$0xff] }
  0x12   : > { %1342 = vmatpush.msra.mxu1 %v398_v3  ;;  %1343 = vmatpush.msra.mxu2 %v398_v3  ;;  %v306_v17 = vld [vmem:[%s1485_s26 + $0x280] sm:$0xff]  ;;  %v449_v21 = vld [vmem:[%s2094_s1 + $0x1f8] sm:$0xff]  ;;  %v448_v24 = vld [vmem:[%s2094_s1 + $0x1f0] sm:$0xff] }
  0x13   : > { %1344 = vmatpush.msra.mxu3 %v398_v3  ;;  %562 = vmatpush.msra.mxu0 %v398_v3  ;;  %v346_v19 = vld [vmem:[%s1485_s26 + $0x3c0] sm:$0xff]  ;;  %v431_v25 = vld [vmem:[%s2094_s1 + $0x168] sm:$0xff]  ;;  %v457_v29 = vld [vmem:[%s2094_s1 + $0x238] sm:$0xff] }
  0x14   : > { %1345 = vmatpush.msra.mxu1 %v397_v4  ;;  %1346 = vmatpush.msra.mxu2 %v397_v4  ;;  %v226_v26 = vld [vmem:[%s1485_s26] sm:$0xff]  ;;  %v415_v27 = vld [vmem:[%s2094_s1 + $0xe8] sm:$0xff]  ;;  %v429_v36 = vld [vmem:[%s2094_s1 + $0x158] sm:$0xff] }
  0x15   : > { %1347 = vmatpush.msra.mxu3 %v397_v4  ;;  %563 = vmatpush.msra.mxu0 %v397_v4  ;;  %v447_v28 = vld [vmem:[%s2094_s1 + $0x1e8] sm:$0xff]  ;;  %v430_v32 = vld [vmem:[%s2094_s1 + $0x160] sm:$0xff]  ;;  %v445_v37 = vld [vmem:[%s2094_s1 + $0x1d8] sm:$0xff] }
  0x16   : > { %1348 = vmatpush.msra.mxu1 %v396_v5  ;;  %1349 = vmatpush.msra.mxu2 %v396_v5  ;;  %v271_v30 = vld [vmem:[%s1485_s26 + $0x168] sm:$0xff]  ;;  %v446_v33 = vld [vmem:[%s2094_s1 + $0x1e0] sm:$0xff]  ;;  %v456_v38 = vld [vmem:[%s2094_s1 + $0x230] sm:$0xff] }
  0x17   : > { %1350 = vmatpush.msra.mxu3 %v396_v5  ;;  %564 = vmatpush.msra.mxu0 %v396_v5  ;;  %v311_v31 = vld [vmem:[%s1485_s26 + $0x2a8] sm:$0xff]  ;;  %v414_v35 = vld [vmem:[%s2094_s1 + $0xe0] sm:$0xff]  ;;  %v413_v39 = vld [vmem:[%s2094_s1 + $0xd8] sm:$0xff] }
  0x18   : > { %1351 = vmatpush.msra.mxu1 %v395_v6  ;;  %1352 = vmatpush.msra.mxu2 %v395_v6  ;;  %v351_v34 = vld [vmem:[%s1485_s26 + $0x3e8] sm:$0xff]  ;;  %v428_v40 = vld [vmem:[%s2094_s1 + $0x150] sm:$0xff]  ;;  %v426_v51 = vld [vmem:[%s2094_s1 + $0x140] sm:$0xff] }
  0x19   : > { %1353 = vmatpush.msra.mxu3 %v395_v6  ;;  %565 = vmatpush.msra.mxu0 %v395_v6  ;;  %v444_v41 = vld [vmem:[%s2094_s1 + $0x1d0] sm:$0xff]  ;;  %v231_v42 = vld [vmem:[%s1485_s26 + $0x28] sm:$0xff]  ;;  %v442_v52 = vld [vmem:[%s2094_s1 + $0x1c0] sm:$0xff] }
  0x1a   : > { %1354 = vmatpush.msra.mxu1 %v394_v7  ;;  %1355 = vmatpush.msra.mxu2 %v394_v7  ;;  %v412_v43 = vld [vmem:[%s2094_s1 + $0xd0] sm:$0xff]  ;;  %v427_v44 = vld [vmem:[%s2094_s1 + $0x148] sm:$0xff]  ;;  %v410_v53 = vld [vmem:[%s2094_s1 + $0xc0] sm:$0xff] }
  0x1b   : > { %1356 = vmatpush.msra.mxu3 %v394_v7  ;;  %566 = vmatpush.msra.mxu0 %v394_v7  ;;  %v443_v45 = vld [vmem:[%s2094_s1 + $0x1c8] sm:$0xff]  ;;  %v276_v46 = vld [vmem:[%s1485_s26 + $0x190] sm:$0xff]  ;;  %v425_v54 = vld [vmem:[%s2094_s1 + $0x138] sm:$0xff] }
  0x1c   : > { %1357 = vmatpush.msra.mxu1 %v393_v8  ;;  %1358 = vmatpush.msra.mxu2 %v393_v8  ;;  %v316_v47 = vld [vmem:[%s1485_s26 + $0x2d0] sm:$0xff]  ;;  %v455_v48 = vld [vmem:[%s2094_s1 + $0x228] sm:$0xff]  ;;  %v454_v55 = vld [vmem:[%s2094_s1 + $0x220] sm:$0xff] }
  0x1d   : > { %1359 = vmatpush.msra.mxu3 %v393_v8  ;;  %567 = vmatpush.msra.mxu0 %v393_v8  ;;  %v411_v49 = vld [vmem:[%s2094_s1 + $0xc8] sm:$0xff]  ;;  %v356_v50 = vld [vmem:[%s1485_s26 + $0x410] sm:$0xff]  ;;  %v441_v56 = vld [vmem:[%s2094_s1 + $0x1b8] sm:$0xff] }
  0x1e   : > { %1360 = vmatpush.msra.mxu1 %v392_v9  ;;  %1361 = vmatpush.msra.mxu2 %v392_v9  ;;  %v409_v57 = vld [vmem:[%s2094_s1 + $0xb8] sm:$0xff]  ;;  %v236_v58 = vld [vmem:[%s1485_s26 + $0x50] sm:$0xff]  ;;  %v423_v0 = vld [vmem:[%s2094_s1 + $0x128] sm:$0xff] }
  0x1f   : > { %1362 = vmatpush.msra.mxu3 %v392_v9  ;;  %568 = vmatpush.msra.mxu0 %v392_v9  ;;  %v424_v59 = vld [vmem:[%s2094_s1 + $0x130] sm:$0xff]  ;;  %v281_v62 = vld [vmem:[%s1485_s26 + $0x1b8] sm:$0xff]  ;;  %v439_v1 = vld [vmem:[%s2094_s1 + $0x1a8] sm:$0xff] }
  0x20   : > { %1363 = vmatpush.msra.mxu1 %v391_v10  ;;  %1364 = vmatpush.msra.mxu2 %v391_v10  ;;  %v440_v60 = vld [vmem:[%s2094_s1 + $0x1b0] sm:$0xff]  ;;  %v321_v63 = vld [vmem:[%s1485_s26 + $0x2f8] sm:$0xff]  ;;  %v407_v4 = vld [vmem:[%s2094_s1 + $0xa8] sm:$0xff] }
  0x21   : > { %1365 = vmatpush.msra.mxu3 %v391_v10  ;;  %569 = vmatpush.msra.mxu0 %v391_v10  ;;  %v408_v61 = vld [vmem:[%s2094_s1 + $0xb0] sm:$0xff]  ;;  %v361_v2 = vld [vmem:[%s1485_s26 + $0x438] sm:$0xff]  ;;  %v422_v5 = vld [vmem:[%s2094_s1 + $0x120] sm:$0xff] }
  0x22   : > { %1366 = vmatpush.msra.mxu1 %v390_v11  ;;  %1367 = vmatpush.msra.mxu2 %v390_v11  ;;  %v453_v3 = vld [vmem:[%s2094_s1 + $0x218] sm:$0xff]  ;;  %v438_v6 = vld [vmem:[%s2094_s1 + $0x1a0] sm:$0xff]  ;;  %v452_v7 = vld [vmem:[%s2094_s1 + $0x210] sm:$0xff] }
  0x23   : > { %1368 = vmatpush.msra.mxu3 %v390_v11  ;;  %570 = vmatpush.msra.mxu0 %v390_v11  ;;  %v406_v8 = vld [vmem:[%s2094_s1 + $0xa0] sm:$0xff]  ;;  %v421_v9 = vld [vmem:[%s2094_s1 + $0x118] sm:$0xff] }
  0x24   : > { %1369 = vmatpush.msra.mxu1 %v389_v12  ;;  %1370 = vmatpush.msra.mxu2 %v389_v12  ;;  %v241_v10 = vld [vmem:[%s1485_s26 + $0x78] sm:$0xff] }
  0x25   : > { %1371 = vmatpush.msra.mxu3 %v389_v12  ;;  %571 = vmatpush.msra.mxu0 %v389_v12  ;;  %v437_v11 = vld [vmem:[%s2094_s1 + $0x198] sm:$0xff] }
  0x26   : > { %1372 = vmatpush.msra.mxu1 %v388_v13  ;;  %1373 = vmatpush.msra.mxu2 %v388_v13  ;;  %v405_v12 = vld [vmem:[%s2094_s1 + $0x98] sm:$0xff] }
  0x27   : > { %1374 = vmatpush.msra.mxu3 %v388_v13  ;;  %572 = vmatpush.msra.mxu0 %v388_v13  ;;  %v420_v13 = vld [vmem:[%s2094_s1 + $0x110] sm:$0xff] }
  0x28   : > { %1375 = vmatpush.msra.mxu1 %v387_v14  ;;  %1376 = vmatpush.msra.mxu2 %v387_v14 }
  0x29   : > { %1377 = vmatpush.msra.mxu3 %v387_v14  ;;  %573 = vmatpush.msra.mxu0 %v387_v14  ;;  %v286_v14 = vld [vmem:[%s1485_s26 + $0x1e0] sm:$0xff] }
  0x2a   : > { %1378 = vmatpush.msra.mxu1 %v386_v15  ;;  %1379 = vmatpush.msra.mxu2 %v386_v15 }
  0x2b   : > { %599 = vmatmul.f32.vlgmr.msra.gmra.mxu1 %v266_v16  ;;  %623 = vmatmul.f32.vlgmr.msra.gmra.mxu2 %v306_v17  ;;  %v436_v16 = vld [vmem:[%s2094_s1 + $0x190] sm:$0xff] }
  0x2c   : > { %785 = vmatpush.msrb.mxu2 %v433_v18  ;;  %1380 = vmatpush.msra.mxu3 %v386_v15  ;;  %v404_v17 = vld [vmem:[%s2094_s1 + $0x90] sm:$0xff]  ;;  %v366_v18 = vld [vmem:[%s1485_s26 + $0x460] sm:$0xff] }
  0x2d   : > { %647 = vmatmul.f32.vlgmr.msra.gmra.mxu3 %v346_v19  ;;  %672 = vmatpush.msrb.mxu1 %v417_v20  ;;  %v419_v19 = vld [vmem:[%s2094_s1 + $0x108] sm:$0xff] }
  0x2e   : > { %898 = vmatpush.msrb.mxu3 %v449_v21  ;;  %786 = vmatpush.msrb.mxu2 %v432_v22  ;;  %v435_v20 = vld [vmem:[%s2094_s1 + $0x188] sm:$0xff] }
  0x2f   : > { %673 = vmatpush.msrb.mxu1 %v416_v23  ;;  %574 = vmatpush.msra.mxu0 %v386_v15  ;;  %v326_v15 = vld [vmem:[%s1485_s26 + $0x320] sm:$0xff]  ;;  %v451_v21 = vld [vmem:[%s2094_s1 + $0x208] sm:$0xff] }
  0x30   : > { %899 = vmatpush.msrb.mxu3 %v448_v24  ;;  %787 = vmatpush.msrb.mxu2 %v431_v25  ;;  %v403_v22 = vld [vmem:[%s2094_s1 + $0x88] sm:$0xff]  ;;  %v418_v23 = vld [vmem:[%s2094_s1 + $0x100] sm:$0xff] }
  0x31   : > { %575 = vmatmul.f32.vlgmr.msra.gmra.mxu0 %v226_v26  ;;  %674 = vmatpush.msrb.mxu1 %v415_v27  ;;  %v434_v24 = vld [vmem:[%s2094_s1 + $0x180] sm:$0xff] }
  0x32   : > { %900 = vmatpush.msrb.mxu3 %v447_v28  ;;  %1019 = vmatpush.msrb.mxu0 %v457_v29  ;;  %v450_v25 = vld [vmem:[%s2094_s1 + $0x200] sm:$0xff]  ;;  %v291_v28 = vld [vmem:[%s1485_s26 + $0x208] sm:$0xff] }
  0x33   : > { %602 = vmatmul.f32.gmra.mxu1 %v271_v30  ;;  %626 = vmatmul.f32.gmra.mxu2 %v311_v31  ;;  %v246_v26 = vld [vmem:[%s1485_s26 + $0xa0] sm:$0xff]  ;;  %v331_v29 = vld [vmem:[%s1485_s26 + $0x348] sm:$0xff] }
  0x34   : > { %788 = vmatpush.msrb.mxu2 %v430_v32  ;;  %901 = vmatpush.msrb.mxu3 %v446_v33  ;;  %v402_v27 = vld [vmem:[%s2094_s1 + $0x80] sm:$0xff]  ;;  %v371_v30 = vld [vmem:[%s1485_s26 + $0x488] sm:$0xff]  ;;  %v296_v32 = vld [vmem:[%s1485_s26 + $0x230] sm:$0xff] }
  0x35   : > { %650 = vmatmul.f32.gmra.mxu3 %v351_v34  ;;  %675 = vmatpush.msrb.mxu1 %v414_v35  ;;  %v251_v31 = vld [vmem:[%s1485_s26 + $0xc8] sm:$0xff]  ;;  %v336_v33 = vld [vmem:[%s1485_s26 + $0x370] sm:$0xff] }
  0x36   : > { %789 = vmatpush.msrb.mxu2 %v429_v36  ;;  %902 = vmatpush.msrb.mxu3 %v445_v37  ;;  %v376_v34 = vld [vmem:[%s1485_s26 + $0x4b0] sm:$0xff]  ;;  %v301_v36 = vld [vmem:[%s1485_s26 + $0x258] sm:$0xff] }
  0x37   : > { %1020 = vmatpush.msrb.mxu0 %v456_v38  ;;  %676 = vmatpush.msrb.mxu1 %v413_v39  ;;  %v256_v35 = vld [vmem:[%s1485_s26 + $0xf0] sm:$0xff]  ;;  %v341_v37 = vld [vmem:[%s1485_s26 + $0x398] sm:$0xff] }
  0x38   : > { %790 = vmatpush.msrb.mxu2 %v428_v40  ;;  %903 = vmatpush.msrb.mxu3 %v444_v41  ;;  %v381_v38 = vld [vmem:[%s1485_s26 + $0x4d8] sm:$0xff]  ;;  %v227_v40 = vld [vmem:[%s1485_s26 + $0x8] sm:$0xff]  ;;  %v228_v41 = vld [vmem:[%s1485_s26 + $0x10] sm:$0xff] }
  0x39   : > { %578 = vmatmul.f32.gmra.mxu0 %v231_v42  ;;  %677 = vmatpush.msrb.mxu1 %v412_v43  ;;  %v261_v39 = vld [vmem:[%s1485_s26 + $0x118] sm:$0xff]  ;;  %v230_v43 = vld [vmem:[%s1485_s26 + $0x20] sm:$0xff] }
  0x3a   : > { %791 = vmatpush.msrb.mxu2 %v427_v44  ;;  %904 = vmatpush.msrb.mxu3 %v443_v45  ;;  %v229_v42 = vld [vmem:[%s1485_s26 + $0x18] sm:$0xff]  ;;  %v232_v44 = vld [vmem:[%s1485_s26 + $0x30] sm:$0xff] }
  0x3b   : > { %605 = vmatmul.f32.gmra.mxu1 %v276_v46  ;;  %629 = vmatmul.f32.gmra.mxu2 %v316_v47  ;;  %v233_v45 = vld [vmem:[%s1485_s26 + $0x38] sm:$0xff]  ;;  %v234_v46 = vld [vmem:[%s1485_s26 + $0x40] sm:$0xff]  ;;  %v235_v47 = vld [vmem:[%s1485_s26 + $0x48] sm:$0xff] }
  0x3c   : > { %1021 = vmatpush.msrb.mxu0 %v455_v48  ;;  %678 = vmatpush.msrb.mxu1 %v411_v49  ;;  %v237_v48 = vld [vmem:[%s1485_s26 + $0x58] sm:$0xff]  ;;  %v238_v49 = vld [vmem:[%s1485_s26 + $0x60] sm:$0xff] }
  0x3d   : > { %653 = vmatmul.f32.gmra.mxu3 %v356_v50  ;;  %792 = vmatpush.msrb.mxu2 %v426_v51  ;;  %v239_v50 = vld [vmem:[%s1485_s26 + $0x68] sm:$0xff]  ;;  %v240_v51 = vld [vmem:[%s1485_s26 + $0x70] sm:$0xff] }
  0x3e   : > { %905 = vmatpush.msrb.mxu3 %v442_v52  ;;  %679 = vmatpush.msrb.mxu1 %v410_v53  ;;  %v242_v52 = vld [vmem:[%s1485_s26 + $0x80] sm:$0xff]  ;;  %v243_v53 = vld [vmem:[%s1485_s26 + $0x88] sm:$0xff] }
  0x3f   : > { %793 = vmatpush.msrb.mxu2 %v425_v54  ;;  %1022 = vmatpush.msrb.mxu0 %v454_v55  ;;  %v244_v54 = vld [vmem:[%s1485_s26 + $0x90] sm:$0xff]  ;;  %v245_v55 = vld [vmem:[%s1485_s26 + $0x98] sm:$0xff] }
  0x40   : > { %906 = vmatpush.msrb.mxu3 %v441_v56  ;;  %680 = vmatpush.msrb.mxu1 %v409_v57  ;;  %v247_v56 = vld [vmem:[%s1485_s26 + $0xa8] sm:$0xff]  ;;  %v248_v57 = vld [vmem:[%s1485_s26 + $0xb0] sm:$0xff] }
  0x41   : > { %581 = vmatmul.f32.gmra.mxu0 %v236_v58  ;;  %794 = vmatpush.msrb.mxu2 %v424_v59  ;;  %v249_v58 = vld [vmem:[%s1485_s26 + $0xb8] sm:$0xff]  ;;  %v250_v59 = vld [vmem:[%s1485_s26 + $0xc0] sm:$0xff] }
  0x42   : > { %907 = vmatpush.msrb.mxu3 %v440_v60  ;;  %681 = vmatpush.msrb.mxu1 %v408_v61  ;;  %v252_v60 = vld [vmem:[%s1485_s26 + $0xd0] sm:$0xff]  ;;  %v253_v61 = vld [vmem:[%s1485_s26 + $0xd8] sm:$0xff] }
  0x43   : > { %608 = vmatmul.f32.gmra.mxu1 %v281_v62  ;;  %632 = vmatmul.f32.gmra.mxu2 %v321_v63  ;;  %v254_v62 = vld [vmem:[%s1485_s26 + $0xe0] sm:$0xff]  ;;  %v255_v63 = vld [vmem:[%s1485_s26 + $0xe8] sm:$0xff] }
  0x44   : > { %795 = vmatpush.msrb.mxu2 %v423_v0  ;;  %908 = vmatpush.msrb.mxu3 %v439_v1  ;;  %v257_v0 = vld [vmem:[%s1485_s26 + $0xf8] sm:$0xff]  ;;  %v258_v1 = vld [vmem:[%s1485_s26 + $0x100] sm:$0xff] }
  0x45   : > { %656 = vmatmul.f32.gmra.mxu3 %v361_v2  ;;  %1023 = vmatpush.msrb.mxu0 %v453_v3  ;;  %v259_v2 = vld [vmem:[%s1485_s26 + $0x108] sm:$0xff]  ;;  %v260_v3 = vld [vmem:[%s1485_s26 + $0x110] sm:$0xff] }
  0x46   : > { %682 = vmatpush.msrb.mxu1 %v407_v4  ;;  %796 = vmatpush.msrb.mxu2 %v422_v5  ;;  %v262_v4 = vld [vmem:[%s1485_s26 + $0x120] sm:$0xff]  ;;  %v263_v5 = vld [vmem:[%s1485_s26 + $0x128] sm:$0xff] }
  0x47   : > { %909 = vmatpush.msrb.mxu3 %v438_v6  ;;  %1024 = vmatpush.msrb.mxu0 %v452_v7  ;;  %v264_v6 = vld [vmem:[%s1485_s26 + $0x130] sm:$0xff]  ;;  %v265_v7 = vld [vmem:[%s1485_s26 + $0x138] sm:$0xff] }
  0x48   : > { %683 = vmatpush.msrb.mxu1 %v406_v8  ;;  %797 = vmatpush.msrb.mxu2 %v421_v9  ;;  %v267_v9 = vld [vmem:[%s1485_s26 + $0x148] sm:$0xff] }
  0x49   : > { %584 = vmatmul.f32.gmra.mxu0 %v241_v10  ;;  %910 = vmatpush.msrb.mxu3 %v437_v11  ;;  %v268_v10 = vld [vmem:[%s1485_s26 + $0x150] sm:$0xff]  ;;  %v269_v11 = vld [vmem:[%s1485_s26 + $0x158] sm:$0xff] }
  0x4a   : > { %684 = vmatpush.msrb.mxu1 %v405_v12  ;;  %798 = vmatpush.msrb.mxu2 %v420_v13  ;;  %v1738_v12 = vld [vmem:[%s2095_s2] ss:$0 sm:$0xff] }
  0x4b   : > { %611 = vmatmul.f32.gmra.mxu1 %v286_v14  ;;  %635 = vmatmul.f32.gmra.mxu2 %v326_v15  ;;  %v270_v15 = vld [vmem:[%s1485_s26 + $0x160] sm:$0xff] }
  0x4c   : > { %911 = vmatpush.msrb.mxu3 %v436_v16  ;;  %685 = vmatpush.msrb.mxu1 %v404_v17 }
  0x4d   : > { %659 = vmatmul.f32.gmra.mxu3 %v366_v18  ;;  %799 = vmatpush.msrb.mxu2 %v419_v19  ;;  %v272_v19 = vld [vmem:[%s1485_s26 + $0x170] sm:$0xff] }
  0x4e   : > { %912 = vmatpush.msrb.mxu3 %v435_v20  ;;  %1025 = vmatpush.msrb.mxu0 %v451_v21  ;;  %v273_v20 = vld [vmem:[%s1485_s26 + $0x178] sm:$0xff] }
  0x4f   : > { %686 = vmatpush.msrb.mxu1 %v403_v22  ;;  %800 = vmatpush.msrb.mxu2 %v418_v23  ;;  %v274_v22 = vld [vmem:[%s1485_s26 + $0x180] sm:$0xff] }
  0x50   : > { %913 = vmatpush.msrb.mxu3 %v434_v24  ;;  %1026 = vmatpush.msrb.mxu0 %v450_v25  ;;  %v275_v25 = vld [vmem:[%s1485_s26 + $0x188] sm:$0xff] }
  0x51   : > { %587 = vmatmul.f32.gmra.mxu0 %v246_v26  ;;  %687 = vmatpush.msrb.mxu1 %v402_v27 }
  0x53   : > { %614 = vmatmul.f32.gmra.mxu1 %v291_v28  ;;  %638 = vmatmul.f32.gmra.mxu2 %v331_v29  ;;  %v277_v29 = vld [vmem:[%s1485_s26 + $0x198] sm:$0xff] }
  0x55   : > { %662 = vmatmul.f32.gmra.mxu3 %v371_v30  ;;  %v278_v30 = vld [vmem:[%s1485_s26 + $0x1a0] sm:$0xff] }
  0x59   : > { %590 = vmatmul.f32.gmra.mxu0 %v251_v31 }
  0x5b   : > { %617 = vmatmul.f32.gmra.mxu1 %v296_v32  ;;  %641 = vmatmul.f32.gmra.mxu2 %v336_v33  ;;  %v279_v32 = vld [vmem:[%s1485_s26 + $0x1a8] sm:$0xff] }
  0x5d   : > { %665 = vmatmul.f32.gmra.mxu3 %v376_v34 }
  0x61   : > { %593 = vmatmul.f32.gmra.mxu0 %v256_v35  ;;  %v280_v35 = vld [vmem:[%s1485_s26 + $0x1b0] sm:$0xff] }
  0x63   : > { %620 = vmatmul.f32.gmra.mxu1 %v301_v36  ;;  %644 = vmatmul.f32.gmra.mxu2 %v341_v37 }
  0x65   : > { %668 = vmatmul.f32.gmra.mxu3 %v381_v38 }
  0x69   : > { %596 = vmatmul.f32.gmra.mxu0 %v261_v39  ;;  %v282_v39 = vld [vmem:[%s1485_s26 + $0x1c0] sm:$0xff] }
  0x6b   : > { %688 = vmatmul.f32.vlgmr.msrb.gmra.mxu1 %v227_v40  ;;  %801 = vmatmul.f32.vlgmr.msrb.gmra.mxu2 %v228_v41  ;;  %v283_v40 = vld [vmem:[%s1485_s26 + $0x1c8] sm:$0xff] }
  0x6d   : > { %914 = vmatmul.f32.vlgmr.msrb.gmra.mxu3 %v229_v42  ;;  %v284_v42 = vld [vmem:[%s1485_s26 + $0x1d0] sm:$0xff] }
  0x71   : > { %1299 = vmatmul.msk.f32.vlgmr.msrb.gmra.mxu0 %vm462_vm0, %v230_v43 }
  0x73   : > { %691 = vmatmul.f32.gmra.mxu1 %v232_v44  ;;  %804 = vmatmul.f32.gmra.mxu2 %v233_v45  ;;  %v285_v45 = vld [vmem:[%s1485_s26 + $0x1d8] sm:$0xff] }
  0x75   : > { %917 = vmatmul.f32.gmra.mxu3 %v234_v46 }
  0x79   : > { %1300 = vmatmul.msk.f32.gmra.mxu0 %vm462_vm0, %v235_v47 }
  0x7b   : > { %694 = vmatmul.f32.gmra.mxu1 %v237_v48  ;;  %807 = vmatmul.f32.gmra.mxu2 %v238_v49  ;;  %v287_v49 = vld [vmem:[%s1485_s26 + $0x1e8] sm:$0xff] }
  0x7d   : > { %920 = vmatmul.f32.gmra.mxu3 %v239_v50  ;;  %v288_v50 = vld [vmem:[%s1485_s26 + $0x1f0] sm:$0xff] }
  0x81   : > { %1301 = vmatmul.msk.f32.gmra.mxu0 %vm462_vm0, %v240_v51 }
  0x83   : > { %697 = vmatmul.f32.gmra.mxu1 %v242_v52  ;;  %810 = vmatmul.f32.gmra.mxu2 %v243_v53  ;;  %v289_v52 = vld [vmem:[%s1485_s26 + $0x1f8] sm:$0xff] }
  0x85   : > { %923 = vmatmul.f32.gmra.mxu3 %v244_v54 }
  0x89   : > { %1302 = vmatmul.msk.f32.gmra.mxu0 %vm462_vm0, %v245_v55  ;;  %v290_v55 = vld [vmem:[%s1485_s26 + $0x200] sm:$0xff] }
  0x8b   : > { %700 = vmatmul.f32.gmra.mxu1 %v247_v56  ;;  %813 = vmatmul.f32.gmra.mxu2 %v248_v57 }
  0x8d   : > { %926 = vmatmul.f32.gmra.mxu3 %v249_v58 }
  0x91   : > { %1303 = vmatmul.msk.f32.gmra.mxu0 %vm462_vm0, %v250_v59  ;;  %v292_v59 = vld [vmem:[%s1485_s26 + $0x210] sm:$0xff] }
  0x93   : > { %703 = vmatmul.f32.gmra.mxu1 %v252_v60  ;;  %816 = vmatmul.f32.gmra.mxu2 %v253_v61  ;;  %v293_v60 = vld [vmem:[%s1485_s26 + $0x218] sm:$0xff] }
  0x95   : > { %929 = vmatmul.f32.gmra.mxu3 %v254_v62  ;;  %v294_v62 = vld [vmem:[%s1485_s26 + $0x220] sm:$0xff] }
  0x99   : > { %1304 = vmatmul.msk.f32.gmra.mxu0 %vm462_vm0, %v255_v63 }
  0x9b   : > { %706 = vmatmul.f32.gmra.mxu1 %v257_v0  ;;  %819 = vmatmul.f32.gmra.mxu2 %v258_v1  ;;  %v295_v1 = vld [vmem:[%s1485_s26 + $0x228] sm:$0xff] }
  0x9d   : > { %932 = vmatmul.f32.gmra.mxu3 %v259_v2 }
  0xa1   : > { %1305 = vmatmul.msk.f32.gmra.mxu0 %vm462_vm0, %v260_v3 }
  0xa3   : > { %709 = vmatmul.f32.gmra.mxu1 %v262_v4  ;;  %822 = vmatmul.f32.gmra.mxu2 %v263_v5  ;;  %v297_v5 = vld [vmem:[%s1485_s26 + $0x238] sm:$0xff] }
  0xa5   : > { %935 = vmatmul.f32.gmra.mxu3 %v264_v6  ;;  %v298_v6 = vld [vmem:[%s1485_s26 + $0x240] sm:$0xff] }
  0xa8   : > { %v1729_v8 = vpop.f32.mrf.mxu1 }
  0xa9   : > { %1306 = vmatmul.msk.f32.gmra.mxu0 %vm462_vm0, %v265_v7 }
  0xab   : > { %712 = vmatmul.f32.gmra.mxu1 %v267_v9  ;;  %825 = vmatmul.f32.gmra.mxu2 %v268_v10  ;;  %v299_v9 = vld [vmem:[%s1485_s26 + $0x248] sm:$0xff] }
  0xad   : > { %938 = vmatmul.f32.gmra.mxu3 %v269_v11 }
  0xae   : > { %v624_v13 = vpop.f32.mrf.mxu2  ;;  %v1740_v14 = vpop.f32.mrf.mxu0 }
  0xaf   : > { %v1744_v16 = vadd.f32 %v1738_v12, %v624_v13  ;;  %v300_v13 = vld [vmem:[%s1485_s26 + $0x250] sm:$0xff] }
  0xb0   : > { %v1746_v17 = vpop.f32.mrf.mxu1  ;;  %v648_v18 = vpop.f32.mrf.mxu3 }
  0xb1   : > { %v1751_v21 = vadd.f32 %v1738_v12, %v648_v18  ;;  %1307 = vmatmul.msk.f32.gmra.mxu0 %vm462_vm0, %v270_v15 }
  0xb3   : > { %715 = vmatmul.f32.gmra.mxu1 %v272_v19  ;;  %828 = vmatmul.f32.gmra.mxu2 %v273_v20  ;;  %v302_v20 = vld [vmem:[%s1485_s26 + $0x260] sm:$0xff] }
  0xb5   : > { %941 = vmatmul.f32.gmra.mxu3 %v274_v22  ;;  %v303_v22 = vld [vmem:[%s1485_s26 + $0x268] sm:$0xff] }
  0xb6   : > { %v627_v23 = vpop.f32.mrf.mxu2  ;;  %v1755_v24 = vpop.f32.mrf.mxu0 }
  0xb7   : > { %v1759_v26 = vadd.f32 %v1738_v12, %v627_v23 }
  0xb8   : > { %v1761_v27 = vpop.f32.mrf.mxu1  ;;  %v651_v28 = vpop.f32.mrf.mxu3 }
  0xb9   : > { %v1766_v31 = vadd.f32 %v1738_v12, %v651_v28  ;;  %1308 = vmatmul.msk.f32.gmra.mxu0 %vm462_vm0, %v275_v25  ;;  %v304_v25 = vld [vmem:[%s1485_s26 + $0x270] sm:$0xff] }
  0xbb   : > { %718 = vmatmul.f32.gmra.mxu1 %v277_v29  ;;  %831 = vmatmul.f32.gmra.mxu2 %v278_v30  ;;  %v305_v30 = vld [vmem:[%s1485_s26 + $0x278] sm:$0xff] }
  0xbd   : > { %944 = vmatmul.f32.gmra.mxu3 %v279_v32 }
  0xbe   : > { %v630_v33 = vpop.f32.mrf.mxu2  ;;  %v1770_v34 = vpop.f32.mrf.mxu0 }
  0xbf   : > { %v1774_v36 = vadd.f32 %v1738_v12, %v630_v33 }
  0xc0   : > { %v1776_v37 = vpop.f32.mrf.mxu1  ;;  %v654_v38 = vpop.f32.mrf.mxu3 }
  0xc1   : > { %v1781_v41 = vadd.f32 %v1738_v12, %v654_v38  ;;  %1309 = vmatmul.msk.f32.gmra.mxu0 %vm462_vm0, %v280_v35  ;;  %v307_v38 = vld [vmem:[%s1485_s26 + $0x288] sm:$0xff] }
  0xc3   : > { %721 = vmatmul.f32.gmra.mxu1 %v282_v39  ;;  %834 = vmatmul.f32.gmra.mxu2 %v283_v40  ;;  %v308_v39 = vld [vmem:[%s1485_s26 + $0x290] sm:$0xff] }
  0xc5   : > { %947 = vmatmul.f32.gmra.mxu3 %v284_v42  ;;  %v309_v42 = vld [vmem:[%s1485_s26 + $0x298] sm:$0xff] }
  0xc6   : > { %v633_v43 = vpop.f32.mrf.mxu2  ;;  %v1785_v44 = vpop.f32.mrf.mxu0 }
  0xc7   : > { %v1789_v46 = vadd.f32 %v1738_v12, %v633_v43  ;;  %v577_v43 = vadd.f32 %v1738_v12, %v1740_v14  ;;  %v313_v14 = vld [vmem:[%s1485_s26 + $0x2b8] sm:$0xff] }
  0xc8   : > { %v1791_v47 = vpop.f32.mrf.mxu1  ;;  %v657_v48 = vpop.f32.mrf.mxu3 }
  0xc9   : > { %v1796_v51 = vadd.f32 %v1738_v12, %v657_v48  ;;  %1310 = vmatmul.msk.f32.gmra.mxu0 %vm462_vm0, %v285_v45 }
  0xcb   : > { %724 = vmatmul.f32.gmra.mxu1 %v287_v49  ;;  %837 = vmatmul.f32.gmra.mxu2 %v288_v50  ;;  %v310_v50 = vld [vmem:[%s1485_s26 + $0x2a0] sm:$0xff] }
  0xcd   : > { %950 = vmatmul.f32.gmra.mxu3 %v289_v52 }
  0xce   : > { %v636_v53 = vpop.f32.mrf.mxu2  ;;  %v1800_v54 = vpop.f32.mrf.mxu0 }
  0xcf   : > { %v1804_v56 = vadd.f32 %v1738_v12, %v636_v53 }
  0xd0   : > { %v1806_v57 = vpop.f32.mrf.mxu1  ;;  %v660_v58 = vpop.f32.mrf.mxu3 }
  0xd1   : > { %v1811_v61 = vadd.f32 %v1738_v12, %v660_v58  ;;  %1311 = vmatmul.msk.f32.gmra.mxu0 %vm462_vm0, %v290_v55  ;;  %v312_v58 = vld [vmem:[%s1485_s26 + $0x2b0] sm:$0xff] }
  0xd3   : > { %727 = vmatmul.f32.gmra.mxu1 %v292_v59  ;;  %840 = vmatmul.f32.gmra.mxu2 %v293_v60  ;;  %v1124_v60 = vld [vmem:[%s1865_s6] sm:$0xff] }
  0xd5   : > { %953 = vmatmul.f32.gmra.mxu3 %v294_v62  ;;  %v314_v62 = vld [vmem:[%s1485_s26 + $0x2c0] sm:$0xff] }
  0xd6   : > { %v639_v63 = vpop.f32.mrf.mxu2  ;;  %v1815_v0 = vpop.f32.mrf.mxu0 }
  0xd7   : > { %v1819_v2 = vadd.f32 %v1738_v12, %v639_v63  ;;  %v580_v63 = vadd.f32 %v1738_v12, %v1755_v24 }
  0xd8   : > { %v1821_v3 = vpop.f32.mrf.mxu1  ;;  %v663_v4 = vpop.f32.mrf.mxu3 }
  0xd9   : > { %v1826_v7 = vadd.f32 %v1738_v12, %v663_v4  ;;  %1312 = vmatmul.msk.f32.gmra.mxu0 %vm462_vm0, %v295_v1 }
  0xdb   : > { %730 = vmatmul.f32.gmra.mxu1 %v297_v5  ;;  %843 = vmatmul.f32.gmra.mxu2 %v298_v6 }
  0xdd   : > { %956 = vmatmul.f32.gmra.mxu3 %v299_v9 }
  0xde   : > { %v642_v10 = vpop.f32.mrf.mxu2  ;;  %v1830_v11 = vpop.f32.mrf.mxu0 }
  0xdf   : > { %v1834_v15 = vadd.f32 %v1738_v12, %v642_v10  ;;  %v315_v10 = vld [vmem:[%s1485_s26 + $0x2c8] sm:$0xff] }
  0xe0   : > { %v1836_v18 = vpop.f32.mrf.mxu1  ;;  %v666_v19 = vpop.f32.mrf.mxu3 }
  0xe1   : > { %v1841_v23 = vadd.f32 %v1738_v12, %v666_v19  ;;  %1313 = vmatmul.msk.f32.gmra.mxu0 %vm462_vm0, %v300_v13 }
  0xe3   : > { %733 = vmatmul.f32.gmra.mxu1 %v302_v20  ;;  %846 = vmatmul.f32.gmra.mxu2 %v303_v22  ;;  %v317_v20 = vld [vmem:[%s1485_s26 + $0x2d8] sm:$0xff]  ;;  %v318_v22 = vld [vmem:[%s1485_s26 + $0x2e0] sm:$0xff] }
  0xe5   : > { %959 = vmatmul.f32.gmra.mxu3 %v304_v25 }
  0xe6   : > { %v645_v28 = vpop.f32.mrf.mxu2  ;;  %v1845_v29 = vpop.f32.mrf.mxu0 }
  0xe7   : > { %v1849_v32 = vadd.f32 %v1738_v12, %v645_v28  ;;  %v1125_v28 = vld [vmem:[%s1865_s6 + $0x8] sm:$0xff] }
  0xe8   : > { %v669_v33 = vpop.f32.mrf.mxu3  ;;  %v689_v35 = vpop.f32.mrf.mxu1 }
  0xe9   : > { %v1854_v40 = vadd.f32 %v1738_v12, %v669_v33  ;;  %1314 = vmatmul.msk.f32.gmra.mxu0 %vm462_vm0, %v305_v30  ;;  %v690_v45 = vadd.f32 %v689_v35, %v577_v43  ;;  %v319_v30 = vld [vmem:[%s1485_s26 + $0x2e8] sm:$0xff]  ;;  %v583_v33 = vadd.f32 %v1738_v12, %v1770_v34 }
  0xea   : > { %v323_v34 = vld [vmem:[%s1485_s26 + $0x308] sm:$0xff] }
  0xeb   : > { %736 = vmatmul.f32.gmra.mxu1 %v307_v38  ;;  %849 = vmatmul.f32.gmra.mxu2 %v308_v39 }
  0xed   : > { %962 = vmatmul.f32.gmra.mxu3 %v309_v42 }
  0xee   : > { %v802_v48 = vpop.f32.mrf.mxu2  ;;  %v1028_v49 = vpop.f32.mrf.mxu0 }
  0xef   : > { %v803_v52 = vadd.f32 %v802_v48, %v690_v45  ;;  %v320_v45 = vld [vmem:[%s1485_s26 + $0x2f0] sm:$0xff] }
  0xf0   : > { %v692_v53 = vpop.f32.mrf.mxu1  ;;  %v915_v55 = vpop.f32.mrf.mxu3 }
  0xf1   : > { %v916_v59 = vadd.f32 %v915_v55, %v803_v52  ;;  %1315 = vmatmul.msk.f32.gmra.mxu0 %vm462_vm0, %v310_v50  ;;  %v693_v4 = vadd.f32 %v692_v53, %v580_v63  ;;  %v322_v52 = vld [vmem:[%s1485_s26 + $0x300] sm:$0xff]  ;;  %v1126_v55 = vld [vmem:[%s1865_s6 + $0x10] sm:$0xff] }
  0xf3   : > { %v1029_v1 = vadd.f32 %v1028_v49, %v916_v59  ;;  %739 = vmatmul.f32.gmra.mxu1 %v312_v58  ;;  %852 = vmatmul.f32.gmra.mxu2 %v313_v14  ;;  %v324_v58 = vld [vmem:[%s1485_s26 + $0x310] sm:$0xff]  ;;  %v586_v14 = vadd.f32 %v1738_v12, %v1785_v44 }
  0xf4   : > { %v328_v44 = vld [vmem:[%s1485_s26 + $0x330] sm:$0xff] }
  0xf5   : > { %v1156_v5 = vadd.f32 %v1124_v60, %v1029_v1  ;;  %965 = vmatmul.f32.gmra.mxu3 %v314_v62 }
  0xf6   : > { %v805_v6 = vpop.f32.mrf.mxu2  ;;  %v1031_v9 = vpop.f32.mrf.mxu0 }
  0xf7   : > { %1188 = vst.msk [vmem:[%s1877_s8] sm:$0xff] %vm462_vm0, %v1156_v5  ;;  %v806_v24 = vadd.f32 %v805_v6, %v693_v4  ;;  %v325_v4 = vld [vmem:[%s1485_s26 + $0x318] sm:$0xff] }
  0xf8   : > { %v695_v13 = vpop.f32.mrf.mxu1  ;;  %v918_v19 = vpop.f32.mrf.mxu3 }
  0xf9   : > { %v919_v25 = vadd.f32 %v918_v19, %v806_v24  ;;  %1316 = vmatmul.msk.f32.gmra.mxu0 %vm462_vm0, %v315_v10  ;;  %v696_v38 = vadd.f32 %v695_v13, %v583_v33  ;;  %v327_v10 = vld [vmem:[%s1485_s26 + $0x328] sm:$0xff]  ;;  %v1127_v13 = vld [vmem:[%s1865_s6 + $0x18] sm:$0xff] }
  0xfa   : > { %v329_v19 = vld [vmem:[%s1485_s26 + $0x338] sm:$0xff] }
  0xfb   : > { %v1032_v35 = vadd.f32 %v1031_v9, %v919_v25  ;;  %742 = vmatmul.f32.gmra.mxu1 %v317_v20  ;;  %855 = vmatmul.f32.gmra.mxu2 %v318_v22  ;;  %v589_v20 = vadd.f32 %v1738_v12, %v1800_v54  ;;  %v333_v54 = vld [vmem:[%s1485_s26 + $0x358] sm:$0xff] }
  0xfd   : > { %v1157_v39 = vadd.f32 %v1125_v28, %v1032_v35  ;;  %968 = vmatmul.f32.gmra.mxu3 %v319_v30  ;;  %v330_v35 = vld [vmem:[%s1485_s26 + $0x340] sm:$0xff] }
  0xfe   : > { %v808_v42 = vpop.f32.mrf.mxu2  ;;  %v1034_v43 = vpop.f32.mrf.mxu0 }
  0xff   : > { %1189 = vst.msk [vmem:[%s1877_s8 + $0x8] sm:$0xff] %vm462_vm0, %v1157_v39  ;;  %v809_v48 = vadd.f32 %v808_v42, %v696_v38 }
 0x100   : > { %v698_v49 = vpop.f32.mrf.mxu1  ;;  %v921_v50 = vpop.f32.mrf.mxu3 }
 0x101   : > { %v922_v53 = vadd.f32 %v921_v50, %v809_v48  ;;  %1317 = vmatmul.msk.f32.gmra.mxu0 %vm462_vm0, %v320_v45  ;;  %v699_v60 = vadd.f32 %v698_v49, %v586_v14  ;;  %v1128_v48 = vld [vmem:[%s1865_s6 + $0x20] sm:$0xff]  ;;  %v592_v50 = vadd.f32 %v1738_v12, %v1815_v0  ;;  %v335_v14 = vld [vmem:[%s1485_s26 + $0x368] sm:$0xff] }
 0x102   : > { %v334_v49 = vld [vmem:[%s1485_s26 + $0x360] sm:$0xff] }
 0x103   : > { %v1035_v59 = vadd.f32 %v1034_v43, %v922_v53  ;;  %745 = vmatmul.f32.gmra.mxu1 %v322_v52  ;;  %858 = vmatmul.f32.gmra.mxu2 %v323_v34  ;;  %v332_v43 = vld [vmem:[%s1485_s26 + $0x350] sm:$0xff]  ;;  %v338_v0 = vld [vmem:[%s1485_s26 + $0x380] sm:$0xff] }
 0x105   : > { %v1158_v62 = vadd.f32 %v1126_v55, %v1035_v59  ;;  %971 = vmatmul.f32.gmra.mxu3 %v324_v58 }
 0x106   : > { %v811_v63 = vpop.f32.mrf.mxu2  ;;  %v1037_v1 = vpop.f32.mrf.mxu0 }
 0x107   : > { %1190 = vst.msk [vmem:[%s1877_s8 + $0x10] sm:$0xff] %vm462_vm0, %v1158_v62  ;;  %v812_v5 = vadd.f32 %v811_v63, %v699_v60  ;;  %v337_v63 = vld [vmem:[%s1485_s26 + $0x378] sm:$0xff] }
 0x108   : > { %v701_v6 = vpop.f32.mrf.mxu1  ;;  %v924_v9 = vpop.f32.mrf.mxu3 }
 0x109   : > { %v925_v24 = vadd.f32 %v924_v9, %v812_v5  ;;  %1318 = vmatmul.msk.f32.gmra.mxu0 %vm462_vm0, %v325_v4  ;;  %v702_v25 = vadd.f32 %v701_v6, %v589_v20  ;;  %v1129_v4 = vld [vmem:[%s1865_s6 + $0x28] sm:$0xff]  ;;  %v595_v6 = vadd.f32 %v1738_v12, %v1830_v11 }
 0x10a   : > { %v339_v5 = vld [vmem:[%s1485_s26 + $0x388] sm:$0xff] }
 0x10b   : > { %v1038_v22 = vadd.f32 %v1037_v1, %v925_v24  ;;  %748 = vmatmul.f32.gmra.mxu1 %v327_v10  ;;  %861 = vmatmul.f32.gmra.mxu2 %v328_v44  ;;  %v343_v11 = vld [vmem:[%s1485_s26 + $0x3a8] sm:$0xff] }
 0x10d   : > { %v1159_v28 = vadd.f32 %v1127_v13, %v1038_v22  ;;  %974 = vmatmul.f32.gmra.mxu3 %v329_v19  ;;  %v340_v19 = vld [vmem:[%s1485_s26 + $0x390] sm:$0xff] }
 0x10e   : > { %v814_v30 = vpop.f32.mrf.mxu2  ;;  %v1040_v33 = vpop.f32.mrf.mxu0 }
 0x10f   : > { %1191 = vst.msk [vmem:[%s1877_s8 + $0x18] sm:$0xff] %vm462_vm0, %v1159_v28  ;;  %v815_v38 = vadd.f32 %v814_v30, %v702_v25  ;;  %v342_v28 = vld [vmem:[%s1485_s26 + $0x3a0] sm:$0xff] }
 0x110   : > { %v704_v39 = vpop.f32.mrf.mxu1  ;;  %v927_v42 = vpop.f32.mrf.mxu3 }
 0x111   : > { %v928_v45 = vadd.f32 %v927_v42, %v815_v38  ;;  %1319 = vmatmul.msk.f32.gmra.mxu0 %vm462_vm0, %v330_v35  ;;  %v705_v34 = vadd.f32 %v704_v39, %v592_v50  ;;  %v344_v35 = vld [vmem:[%s1485_s26 + $0x3b0] sm:$0xff]  ;;  %v598_v38 = vadd.f32 %v1738_v12, %v1845_v29 }
 0x112   : > { %v348_v29 = vld [vmem:[%s1485_s26 + $0x3d0] sm:$0xff] }
 0x113   : > { %v1041_v52 = vadd.f32 %v1040_v33, %v928_v45  ;;  %751 = vmatmul.f32.gmra.mxu1 %v332_v43  ;;  %864 = vmatmul.f32.gmra.mxu2 %v333_v54  ;;  %v1130_v33 = vld [vmem:[%s1865_s6 + $0x30] sm:$0xff] }
 0x115   : > { %v1160_v53 = vadd.f32 %v1128_v48, %v1041_v52  ;;  %977 = vmatmul.f32.gmra.mxu3 %v334_v49  ;;  %v345_v48 = vld [vmem:[%s1485_s26 + $0x3b8] sm:$0xff] }
 0x116   : > { %v817_v55 = vpop.f32.mrf.mxu2  ;;  %v1043_v58 = vpop.f32.mrf.mxu0 }
 0x117   : > { %1192 = vst.msk [vmem:[%s1877_s8 + $0x20] sm:$0xff] %vm462_vm0, %v1160_v53  ;;  %v818_v59 = vadd.f32 %v817_v55, %v705_v34  ;;  %v347_v34 = vld [vmem:[%s1485_s26 + $0x3c8] sm:$0xff]  ;;  %v1131_v55 = vld [vmem:[%s1865_s6 + $0x38] sm:$0xff] }
 0x118   : > { %v707_v60 = vpop.f32.mrf.mxu1  ;;  %v930_v62 = vpop.f32.mrf.mxu3 }
 0x119   : > { %v931_v1 = vadd.f32 %v930_v62, %v818_v59  ;;  %1320 = vmatmul.msk.f32.gmra.mxu0 %vm462_vm0, %v335_v14  ;;  %v708_v10 = vadd.f32 %v707_v60, %v595_v6  ;;  %v601_v14 = vadd.f32 %v1738_v12, %v1729_v8  ;;  %v353_v8 = vld [vmem:[%s1485_s26 + $0x3f8] sm:$0xff] }
 0x11b   : > { %v1044_v9 = vadd.f32 %v1043_v58, %v931_v1  ;;  %754 = vmatmul.f32.gmra.mxu1 %v337_v63  ;;  %867 = vmatmul.f32.gmra.mxu2 %v338_v0  ;;  %v349_v58 = vld [vmem:[%s1485_s26 + $0x3d8] sm:$0xff]  ;;  %v350_v1 = vld [vmem:[%s1485_s26 + $0x3e0] sm:$0xff] }
 0x11d   : > { %v1161_v44 = vadd.f32 %v1129_v4, %v1044_v9  ;;  %980 = vmatmul.f32.gmra.mxu3 %v339_v5  ;;  %v352_v9 = vld [vmem:[%s1485_s26 + $0x3f0] sm:$0xff] }
 0x11e   : > { %v820_v24 = vpop.f32.mrf.mxu2  ;;  %v1046_v13 = vpop.f32.mrf.mxu0 }
 0x11f   : > { %1193 = vst.msk [vmem:[%s1877_s8 + $0x28] sm:$0xff] %vm462_vm0, %v1161_v44  ;;  %v821_v20 = vadd.f32 %v820_v24, %v708_v10  ;;  %v1132_v44 = vld [vmem:[%s1865_s6 + $0x40] sm:$0xff] }
 0x120   : > { %v710_v22 = vpop.f32.mrf.mxu1  ;;  %v933_v25 = vpop.f32.mrf.mxu3  ;;  %v354_v24 = vld [vmem:[%s1485_s26 + $0x400] sm:$0xff] }
 0x121   : > { %v934_v30 = vadd.f32 %v933_v25, %v821_v20  ;;  %1321 = vmatmul.msk.f32.gmra.mxu0 %vm462_vm0, %v340_v19  ;;  %v711_v42 = vadd.f32 %v710_v22, %v598_v38  ;;  %v357_v38 = vld [vmem:[%s1485_s26 + $0x418] sm:$0xff] }
 0x123   : > { %v1047_v39 = vadd.f32 %v1046_v13, %v934_v30  ;;  %757 = vmatmul.f32.gmra.mxu1 %v342_v28  ;;  %870 = vmatmul.f32.gmra.mxu2 %v343_v11  ;;  %v604_v13 = vadd.f32 %v1738_v12, %v1746_v17  ;;  %v355_v11 = vld [vmem:[%s1485_s26 + $0x408] sm:$0xff]  ;;  %v358_v17 = vld [vmem:[%s1485_s26 + $0x420] sm:$0xff] }
 0x125   : > { %v1162_v43 = vadd.f32 %v1130_v33, %v1047_v39  ;;  %983 = vmatmul.f32.gmra.mxu3 %v344_v35 }
 0x126   : > { %v823_v54 = vpop.f32.mrf.mxu2  ;;  %v1049_v45 = vpop.f32.mrf.mxu0 }
 0x127   : > { %1194 = vst.msk [vmem:[%s1877_s8 + $0x30] sm:$0xff] %vm462_vm0, %v1162_v43  ;;  %v824_v49 = vadd.f32 %v823_v54, %v711_v42  ;;  %v1133_v42 = vld [vmem:[%s1865_s6 + $0x48] sm:$0xff]  ;;  %v607_v54 = vadd.f32 %v1738_v12, %v1761_v27 }
 0x128   : > { %v713_v50 = vpop.f32.mrf.mxu1  ;;  %v936_v52 = vpop.f32.mrf.mxu3  ;;  %v359_v43 = vld [vmem:[%s1485_s26 + $0x428] sm:$0xff] }
 0x129   : > { %v937_v53 = vadd.f32 %v936_v52, %v824_v49  ;;  %1322 = vmatmul.msk.f32.gmra.mxu0 %vm462_vm0, %v345_v48  ;;  %v714_v60 = vadd.f32 %v713_v50, %v601_v14  ;;  %v363_v27 = vld [vmem:[%s1485_s26 + $0x448] sm:$0xff] }
 0x12b   : > { %v1050_v59 = vadd.f32 %v1049_v45, %v937_v53  ;;  %760 = vmatmul.f32.gmra.mxu1 %v347_v34  ;;  %873 = vmatmul.f32.gmra.mxu2 %v348_v29  ;;  %v360_v34 = vld [vmem:[%s1485_s26 + $0x430] sm:$0xff] }
 0x12d   : > { %v1163_v62 = vadd.f32 %v1131_v55, %v1050_v59  ;;  %986 = vmatmul.f32.gmra.mxu3 %v349_v58  ;;  %v362_v58 = vld [vmem:[%s1485_s26 + $0x440] sm:$0xff]  ;;  %v1134_v59 = vld [vmem:[%s1865_s6 + $0x50] sm:$0xff] }
 0x12e   : > { %v826_v63 = vpop.f32.mrf.mxu2  ;;  %v1052_v0 = vpop.f32.mrf.mxu0 }
 0x12f   : > { %1195 = vst.msk [vmem:[%s1877_s8 + $0x38] sm:$0xff] %vm462_vm0, %v1163_v62  ;;  %v827_v4 = vadd.f32 %v826_v63, %v714_v60  ;;  %v364_v60 = vld [vmem:[%s1485_s26 + $0x450] sm:$0xff]  ;;  %v610_v62 = vadd.f32 %v1738_v12, %v1776_v37 }
 0x130   : > { %v716_v5 = vpop.f32.mrf.mxu1  ;;  %v939_v6 = vpop.f32.mrf.mxu3  ;;  %v368_v37 = vld [vmem:[%s1485_s26 + $0x470] sm:$0xff] }
 0x131   : > { %v940_v10 = vadd.f32 %v939_v6, %v827_v4  ;;  %1323 = vmatmul.msk.f32.gmra.mxu0 %vm462_vm0, %v350_v1  ;;  %v717_v20 = vadd.f32 %v716_v5, %v604_v13  ;;  %v365_v6 = vld [vmem:[%s1485_s26 + $0x458] sm:$0xff] }
 0x132   : > { %v1135_v13 = vld [vmem:[%s1865_s6 + $0x58] sm:$0xff] }
 0x133   : > { %v1053_v19 = vadd.f32 %v1052_v0, %v940_v10  ;;  %763 = vmatmul.f32.gmra.mxu1 %v352_v9  ;;  %876 = vmatmul.f32.gmra.mxu2 %v353_v8 }
 0x135   : > { %v1164_v22 = vadd.f32 %v1132_v44, %v1053_v19  ;;  %989 = vmatmul.f32.gmra.mxu3 %v354_v24  ;;  %v367_v44 = vld [vmem:[%s1485_s26 + $0x468] sm:$0xff]  ;;  %v369_v19 = vld [vmem:[%s1485_s26 + $0x478] sm:$0xff] }
 0x136   : > { %v829_v25 = vpop.f32.mrf.mxu2  ;;  %v1055_v28 = vpop.f32.mrf.mxu0 }
 0x137   : > { %1196 = vst.msk [vmem:[%s1877_s8 + $0x40] sm:$0xff] %vm462_vm0, %v1164_v22  ;;  %v830_v30 = vadd.f32 %v829_v25, %v717_v20  ;;  %v613_v20 = vadd.f32 %v1738_v12, %v1791_v47  ;;  %v373_v47 = vld [vmem:[%s1485_s26 + $0x498] sm:$0xff] }
 0x138   : > { %v719_v33 = vpop.f32.mrf.mxu1  ;;  %v942_v35 = vpop.f32.mrf.mxu3 }
 0x139   : > { %v943_v39 = vadd.f32 %v942_v35, %v830_v30  ;;  %1324 = vmatmul.msk.f32.gmra.mxu0 %vm462_vm0, %v355_v11  ;;  %v720_v48 = vadd.f32 %v719_v33, %v607_v54  ;;  %v370_v33 = vld [vmem:[%s1485_s26 + $0x480] sm:$0xff] }
 0x13a   : > { %v374_v54 = vld [vmem:[%s1485_s26 + $0x4a0] sm:$0xff] }
 0x13b   : > { %v1056_v45 = vadd.f32 %v1055_v28, %v943_v39  ;;  %766 = vmatmul.f32.gmra.mxu1 %v357_v38  ;;  %879 = vmatmul.f32.gmra.mxu2 %v358_v17  ;;  %v372_v39 = vld [vmem:[%s1485_s26 + $0x490] sm:$0xff] }
 0x13d   : > { %v1165_v49 = vadd.f32 %v1133_v42, %v1056_v45  ;;  %992 = vmatmul.f32.gmra.mxu3 %v359_v43  ;;  %v1136_v43 = vld [vmem:[%s1865_s6 + $0x60] sm:$0xff]  ;;  %v616_v45 = vadd.f32 %v1738_v12, %v1806_v57 }
 0x13e   : > { %v832_v50 = vpop.f32.mrf.mxu2  ;;  %v1058_v52 = vpop.f32.mrf.mxu0  ;;  %v378_v57 = vld [vmem:[%s1485_s26 + $0x4c0] sm:$0xff] }
 0x13f   : > { %1197 = vst.msk [vmem:[%s1877_s8 + $0x48] sm:$0xff] %vm462_vm0, %v1165_v49  ;;  %v833_v29 = vadd.f32 %v832_v50, %v720_v48 }
 0x140   : > { %v722_v53 = vpop.f32.mrf.mxu1  ;;  %v945_v55 = vpop.f32.mrf.mxu3 }
 0x141   : > { %v946_v14 = vadd.f32 %v945_v55, %v833_v29  ;;  %1325 = vmatmul.msk.f32.gmra.mxu0 %vm462_vm0, %v360_v34  ;;  %v723_v0 = vadd.f32 %v722_v53, %v610_v62  ;;  %v375_v29 = vld [vmem:[%s1485_s26 + $0x4a8] sm:$0xff]  ;;  %v619_v62 = vadd.f32 %v1738_v12, %v1821_v3 }
 0x142   : > { %v383_v3 = vld [vmem:[%s1485_s26 + $0x4e8] sm:$0xff] }
 0x143   : > { %v1059_v63 = vadd.f32 %v1058_v52, %v946_v14  ;;  %769 = vmatmul.f32.gmra.mxu1 %v362_v58  ;;  %882 = vmatmul.f32.gmra.mxu2 %v363_v27  ;;  %v377_v27 = vld [vmem:[%s1485_s26 + $0x4b8] sm:$0xff] }
 0x145   : > { %v1166_v1 = vadd.f32 %v1134_v59, %v1059_v63  ;;  %995 = vmatmul.f32.gmra.mxu3 %v364_v60  ;;  %v1137_v59 = vld [vmem:[%s1865_s6 + $0x68] sm:$0xff] }
 0x146   : > { %v835_v4 = vpop.f32.mrf.mxu2  ;;  %v1061_v5 = vpop.f32.mrf.mxu0  ;;  %v379_v60 = vld [vmem:[%s1485_s26 + $0x4c8] sm:$0xff] }
 0x147   : > { %1198 = vst.msk [vmem:[%s1877_s8 + $0x50] sm:$0xff] %vm462_vm0, %v1166_v1  ;;  %v836_v9 = vadd.f32 %v835_v4, %v723_v0 }
 0x148   : > { %v725_v8 = vpop.f32.mrf.mxu1  ;;  %v948_v10 = vpop.f32.mrf.mxu3 }
 0x149   : > { %v949_v24 = vadd.f32 %v948_v10, %v836_v9  ;;  %1326 = vmatmul.msk.f32.gmra.mxu0 %vm462_vm0, %v365_v6  ;;  %v726_v25 = vadd.f32 %v725_v8, %v613_v20  ;;  %v380_v6 = vld [vmem:[%s1485_s26 + $0x4d0] sm:$0xff] }
 0x14b   : > { %v1062_v22 = vadd.f32 %v1061_v5, %v949_v24  ;;  %772 = vmatmul.f32.gmra.mxu1 %v367_v44  ;;  %885 = vmatmul.f32.gmra.mxu2 %v368_v37  ;;  %v382_v44 = vld [vmem:[%s1485_s26 + $0x4e0] sm:$0xff]  ;;  %v1138_v24 = vld [vmem:[%s1865_s6 + $0x70] sm:$0xff] }
 0x14d   : > { %v1167_v28 = vadd.f32 %v1135_v13, %v1062_v22  ;;  %998 = vmatmul.f32.gmra.mxu3 %v369_v19  ;;  %v384_v13 = vld [vmem:[%s1485_s26 + $0x4f0] sm:$0xff]  ;;  %v622_v19 = vadd.f32 %v1738_v12, %v1836_v18  ;;  %v1139_v12 = vld [vmem:[%s1865_s6 + $0x78] sm:$0xff] }
 0x14e   : > { %v838_v11 = vpop.f32.mrf.mxu2  ;;  %v1064_v30 = vpop.f32.mrf.mxu0 }
 0x14f   : > { %1199 = vst.msk [vmem:[%s1877_s8 + $0x58] sm:$0xff] %vm462_vm0, %v1167_v28  ;;  %v839_v35 = vadd.f32 %v838_v11, %v726_v25 }
 0x150   : > { %v728_v38 = vpop.f32.mrf.mxu1  ;;  %v951_v17 = vpop.f32.mrf.mxu3 }
 0x151   : > { %v952_v42 = vadd.f32 %v951_v17, %v839_v35  ;;  %1327 = vmatmul.msk.f32.gmra.mxu0 %vm462_vm0, %v370_v33  ;;  %v729_v49 = vadd.f32 %v728_v38, %v616_v45 }
 0x153   : > { %v1065_v48 = vadd.f32 %v1064_v30, %v952_v42  ;;  %775 = vmatmul.f32.gmra.mxu1 %v372_v39  ;;  %888 = vmatmul.f32.gmra.mxu2 %v373_v47  ;;  %v385_v30 = vld [vmem:[%s1485_s26 + $0x4f8] sm:$0xff] }
 0x155   : > { %v1168_v50 = vadd.f32 %v1136_v43, %v1065_v48  ;;  %1001 = vmatmul.f32.gmra.mxu3 %v374_v54 }
 0x156   : > { %v841_v52 = vpop.f32.mrf.mxu2  ;;  %v1067_v34 = vpop.f32.mrf.mxu0 }
 0x157   : > { %1200 = vst.msk [vmem:[%s1877_s8 + $0x60] sm:$0xff] %vm462_vm0, %v1168_v50  ;;  %v842_v53 = vadd.f32 %v841_v52, %v729_v49  ;;  %v1140_v50 = vld [vmem:[%s1865_s6 + $0x80] sm:$0xff] }
 0x158   : > { %v731_v55 = vpop.f32.mrf.mxu1  ;;  %v954_v58 = vpop.f32.mrf.mxu3 }
 0x159   : > { %v955_v14 = vadd.f32 %v954_v58, %v842_v53  ;;  %1328 = vmatmul.msk.f32.gmra.mxu0 %vm462_vm0, %v375_v29  ;;  %v732_v0 = vadd.f32 %v731_v55, %v619_v62 }
 0x15b   : > { %v1068_v63 = vadd.f32 %v1067_v34, %v955_v14  ;;  %778 = vmatmul.f32.gmra.mxu1 %v377_v27  ;;  %891 = vmatmul.f32.gmra.mxu2 %v378_v57  ;;  %v1141_v14 = vld [vmem:[%s1865_s6 + $0x88] sm:$0xff] }
 0x15d   : > { %v1169_v1 = vadd.f32 %v1137_v59, %v1068_v63  ;;  %1004 = vmatmul.f32.gmra.mxu3 %v379_v60 }
 0x15e   : > { %v844_v4 = vpop.f32.mrf.mxu2  ;;  %v1070_v5 = vpop.f32.mrf.mxu0 }
 0x15f   : > { %1201 = vst.msk [vmem:[%s1877_s8 + $0x68] sm:$0xff] %vm462_vm0, %v1169_v1  ;;  %v845_v9 = vadd.f32 %v844_v4, %v732_v0 }
 0x160   : > { %v734_v8 = vpop.f32.mrf.mxu1  ;;  %v957_v10 = vpop.f32.mrf.mxu3 }
 0x161   : > { %v958_v37 = vadd.f32 %v957_v10, %v845_v9  ;;  %1329 = vmatmul.msk.f32.gmra.mxu0 %vm462_vm0, %v380_v6  ;;  %v735_v22 = vadd.f32 %v734_v8, %v622_v19  ;;  %v1142_v6 = vld [vmem:[%s1865_s6 + $0x90] sm:$0xff]  ;;  %v1143_v19 = vld [vmem:[%s1865_s6 + $0x98] sm:$0xff] }
 0x163   : > { %v1071_v20 = vadd.f32 %v1070_v5, %v958_v37  ;;  %781 = vmatmul.f32.gmra.mxu1 %v382_v44  ;;  %894 = vmatmul.f32.gmra.mxu2 %v383_v3 }
 0x165   : > { %v1170_v25 = vadd.f32 %v1138_v24, %v1071_v20  ;;  %1007 = vmatmul.f32.gmra.mxu3 %v384_v13 }
 0x166   : > { %v847_v28 = vpop.f32.mrf.mxu2  ;;  %v1073_v11 = vpop.f32.mrf.mxu0 }
 0x167   : > { %1202 = vst.msk [vmem:[%s1877_s8 + $0x70] sm:$0xff] %vm462_vm0, %v1170_v25  ;;  %v848_v33 = vadd.f32 %v847_v28, %v735_v22 }
 0x168   : > { %v737_v35 = vpop.f32.mrf.mxu1  ;;  %v960_v38 = vpop.f32.mrf.mxu3 }
 0x169   : > { %v961_v17 = vadd.f32 %v960_v38, %v848_v33  ;;  %1330 = vmatmul.msk.f32.gmra.mxu0 %vm462_vm0, %v385_v30  ;;  %v738_v39 = vadd.f32 %v737_v35, %v1744_v16  ;;  %v1144_v38 = vld [vmem:[%s1865_s6 + $0xa0] sm:$0xff] }
 0x16b   : > { %v1074_v18 = vadd.f32 %v1073_v11, %v961_v17 }
 0x16d   : > { %v1171_v47 = vadd.f32 %v1139_v12, %v1074_v18 }
 0x16e   : > { %v850_v42 = vpop.f32.mrf.mxu2  ;;  %v1076_v43 = vpop.f32.mrf.mxu0 }
 0x16f   : > { %1203 = vst.msk [vmem:[%s1877_s8 + $0x78] sm:$0xff] %vm462_vm0, %v1171_v47  ;;  %v851_v54 = vadd.f32 %v850_v42, %v738_v39 }
 0x170   : > { %v740_v45 = vpop.f32.mrf.mxu1  ;;  %v963_v48 = vpop.f32.mrf.mxu3 }
 0x171   : > { %v964_v49 = vadd.f32 %v963_v48, %v851_v54  ;;  %v741_v34 = vadd.f32 %v740_v45, %v1759_v26  ;;  %v1145_v45 = vld [vmem:[%s1865_s6 + $0xa8] sm:$0xff] }
 0x173   : > { %v1077_v52 = vadd.f32 %v1076_v43, %v964_v49 }
 0x175   : > { %v1172_v29 = vadd.f32 %v1140_v50, %v1077_v52 }
 0x176   : > { %v853_v53 = vpop.f32.mrf.mxu2  ;;  %v1079_v55 = vpop.f32.mrf.mxu0 }
 0x177   : > { %1204 = vst.msk [vmem:[%s1877_s8 + $0x80] sm:$0xff] %vm462_vm0, %v1172_v29  ;;  %v854_v16 = vadd.f32 %v853_v53, %v741_v34 }
 0x178   : > { %v743_v58 = vpop.f32.mrf.mxu1  ;;  %v966_v27 = vpop.f32.mrf.mxu3 }
 0x179   : > { %v967_v57 = vadd.f32 %v966_v27, %v854_v16  ;;  %v744_v60 = vadd.f32 %v743_v58, %v1774_v36  ;;  %v1146_v16 = vld [vmem:[%s1865_s6 + $0xb0] sm:$0xff] }
 0x17b   : > { %v1080_v59 = vadd.f32 %v1079_v55, %v967_v57 }
 0x17d   : > { %v1173_v62 = vadd.f32 %v1141_v14, %v1080_v59 }
 0x17e   : > { %v856_v63 = vpop.f32.mrf.mxu2  ;;  %v1082_v0 = vpop.f32.mrf.mxu0 }
 0x17f   : > { %1205 = vst.msk [vmem:[%s1877_s8 + $0x88] sm:$0xff] %vm462_vm0, %v1173_v62  ;;  %v857_v26 = vadd.f32 %v856_v63, %v744_v60 }
 0x180   : > { %v746_v1 = vpop.f32.mrf.mxu1  ;;  %v969_v4 = vpop.f32.mrf.mxu3 }
 0x181   : > { %v970_v5 = vadd.f32 %v969_v4, %v857_v26  ;;  %v747_v8 = vadd.f32 %v746_v1, %v1789_v46 }
 0x183   : > { %v1083_v9 = vadd.f32 %v1082_v0, %v970_v5  ;;  %v1147_v0 = vld [vmem:[%s1865_s6 + $0xb8] sm:$0xff] }
 0x185   : > { %v1174_v10 = vadd.f32 %v1142_v6, %v1083_v9 }
 0x186   : > { %v859_v44 = vpop.f32.mrf.mxu2  ;;  %v1085_v3 = vpop.f32.mrf.mxu0 }
 0x187   : > { %1206 = vst.msk [vmem:[%s1877_s8 + $0x90] sm:$0xff] %vm462_vm0, %v1174_v10  ;;  %v860_v36 = vadd.f32 %v859_v44, %v747_v8  ;;  %v1148_v44 = vld [vmem:[%s1865_s6 + $0xc0] sm:$0xff] }
 0x188   : > { %v749_v37 = vpop.f32.mrf.mxu1  ;;  %v972_v24 = vpop.f32.mrf.mxu3 }
 0x189   : > { %v973_v13 = vadd.f32 %v972_v24, %v860_v36  ;;  %v750_v22 = vadd.f32 %v749_v37, %v1804_v56 }
 0x18b   : > { %v1086_v20 = vadd.f32 %v1085_v3, %v973_v13 }
 0x18d   : > { %v1175_v25 = vadd.f32 %v1143_v19, %v1086_v20 }
 0x18e   : > { %v862_v28 = vpop.f32.mrf.mxu2  ;;  %v1088_v11 = vpop.f32.mrf.mxu0 }
 0x18f   : > { %1207 = vst.msk [vmem:[%s1877_s8 + $0x98] sm:$0xff] %vm462_vm0, %v1175_v25  ;;  %v863_v46 = vadd.f32 %v862_v28, %v750_v22  ;;  %v1149_v25 = vld [vmem:[%s1865_s6 + $0xc8] sm:$0xff] }
 0x190   : > { %v752_v30 = vpop.f32.mrf.mxu1  ;;  %v975_v33 = vpop.f32.mrf.mxu3 }
 0x191   : > { %v976_v35 = vadd.f32 %v975_v33, %v863_v46  ;;  %v753_v12 = vadd.f32 %v752_v30, %v1819_v2 }
 0x193   : > { %v1089_v17 = vadd.f32 %v1088_v11, %v976_v35 }
 0x195   : > { %v1176_v18 = vadd.f32 %v1144_v38, %v1089_v17 }
 0x196   : > { %v865_v39 = vpop.f32.mrf.mxu2  ;;  %v1091_v47 = vpop.f32.mrf.mxu0 }
 0x197   : > { %1208 = vst.msk [vmem:[%s1877_s8 + $0xa0] sm:$0xff] %vm462_vm0, %v1176_v18  ;;  %v866_v56 = vadd.f32 %v865_v39, %v753_v12  ;;  %v1150_v12 = vld [vmem:[%s1865_s6 + $0xd0] sm:$0xff] }
 0x198   : > { %v755_v42 = vpop.f32.mrf.mxu1  ;;  %v978_v43 = vpop.f32.mrf.mxu3 }
 0x199   : > { %v979_v54 = vadd.f32 %v978_v43, %v866_v56  ;;  %v756_v49 = vadd.f32 %v755_v42, %v1834_v15 }
 0x19b   : > { %v1092_v48 = vadd.f32 %v1091_v47, %v979_v54 }
 0x19d   : > { %v1177_v50 = vadd.f32 %v1145_v45, %v1092_v48  ;;  %v1151_v48 = vld [vmem:[%s1865_s6 + $0xd8] sm:$0xff] }
 0x19e   : > { %v868_v52 = vpop.f32.mrf.mxu2  ;;  %v1094_v34 = vpop.f32.mrf.mxu0 }
 0x19f   : > { %1209 = vst.msk [vmem:[%s1877_s8 + $0xa8] sm:$0xff] %vm462_vm0, %v1177_v50  ;;  %v869_v2 = vadd.f32 %v868_v52, %v756_v49 }
 0x1a0   : > { %v758_v29 = vpop.f32.mrf.mxu1  ;;  %v981_v53 = vpop.f32.mrf.mxu3 }
 0x1a1   : > { %v982_v55 = vadd.f32 %v981_v53, %v869_v2  ;;  %v759_v27 = vadd.f32 %v758_v29, %v1849_v32 }
 0x1a3   : > { %v1095_v58 = vadd.f32 %v1094_v34, %v982_v55 }
 0x1a5   : > { %v1178_v57 = vadd.f32 %v1146_v16, %v1095_v58  ;;  %v1152_v16 = vld [vmem:[%s1865_s6 + $0xe0] sm:$0xff] }
 0x1a6   : > { %v871_v14 = vpop.f32.mrf.mxu2  ;;  %v1097_v59 = vpop.f32.mrf.mxu0 }
 0x1a7   : > { %1210 = vst.msk [vmem:[%s1877_s8 + $0xb0] sm:$0xff] %vm462_vm0, %v1178_v57  ;;  %v872_v15 = vadd.f32 %v871_v14, %v759_v27 }
 0x1a8   : > { %v761_v60 = vpop.f32.mrf.mxu1  ;;  %v984_v62 = vpop.f32.mrf.mxu3 }
 0x1a9   : > { %v985_v63 = vadd.f32 %v984_v62, %v872_v15  ;;  %v762_v1 = vadd.f32 %v761_v60, %v1751_v21 }
 0x1ab   : > { %v1098_v26 = vadd.f32 %v1097_v59, %v985_v63  ;;  %v1153_v63 = vld [vmem:[%s1865_s6 + $0xe8] sm:$0xff] }
 0x1ad   : > { %v1179_v4 = vadd.f32 %v1147_v0, %v1098_v26 }
 0x1ae   : > { %v874_v5 = vpop.f32.mrf.mxu2  ;;  %v1100_v6 = vpop.f32.mrf.mxu0 }
 0x1af   : > { %1211 = vst.msk [vmem:[%s1877_s8 + $0xb8] sm:$0xff] %vm462_vm0, %v1179_v4  ;;  %v875_v32 = vadd.f32 %v874_v5, %v762_v1 }
 0x1b0   : > { %v764_v9 = vpop.f32.mrf.mxu1  ;;  %v987_v8 = vpop.f32.mrf.mxu3 }
 0x1b1   : > { %v988_v10 = vadd.f32 %v987_v8, %v875_v32  ;;  %v765_v36 = vadd.f32 %v764_v9, %v1766_v31  ;;  %v1154_v8 = vld [vmem:[%s1865_s6 + $0xf0] sm:$0xff] }
 0x1b3   : > { %v1101_v3 = vadd.f32 %v1100_v6, %v988_v10 }
 0x1b5   : > { %v1180_v37 = vadd.f32 %v1148_v44, %v1101_v3 }
 0x1b6   : > { %v877_v24 = vpop.f32.mrf.mxu2  ;;  %v1103_v13 = vpop.f32.mrf.mxu0 }
 0x1b7   : > { %1212 = vst.msk [vmem:[%s1877_s8 + $0xc0] sm:$0xff] %vm462_vm0, %v1180_v37  ;;  %v878_v21 = vadd.f32 %v877_v24, %v765_v36 }
 0x1b8   : > { %v767_v19 = vpop.f32.mrf.mxu1  ;;  %v990_v20 = vpop.f32.mrf.mxu3 }
 0x1b9   : > { %v991_v22 = vadd.f32 %v990_v20, %v878_v21  ;;  %v768_v11 = vadd.f32 %v767_v19, %v1781_v41  ;;  %v1155_v21 = vld [vmem:[%s1865_s6 + $0xf8] sm:$0xff] }
 0x1bb   : > { %v1104_v28 = vadd.f32 %v1103_v13, %v991_v22 }
 0x1bd   : > { %v1181_v46 = vadd.f32 %v1149_v25, %v1104_v28 }
 0x1be   : > { %v880_v30 = vpop.f32.mrf.mxu2  ;;  %v1106_v33 = vpop.f32.mrf.mxu0 }
 0x1bf   : > { %1213 = vst.msk [vmem:[%s1877_s8 + $0xc8] sm:$0xff] %vm462_vm0, %v1181_v46  ;;  %v881_v31 = vadd.f32 %v880_v30, %v768_v11 }
 0x1c0   : > { %v770_v35 = vpop.f32.mrf.mxu1  ;;  %v993_v38 = vpop.f32.mrf.mxu3 }
 0x1c1   : > { %v994_v17 = vadd.f32 %v993_v38, %v881_v31  ;;  %v771_v39 = vadd.f32 %v770_v35, %v1796_v51 }
 0x1c3   : > { %v1107_v18 = vadd.f32 %v1106_v33, %v994_v17 }
 0x1c5   : > { %v1182_v47 = vadd.f32 %v1150_v12, %v1107_v18 }
 0x1c6   : > { %v883_v56 = vpop.f32.mrf.mxu2  ;;  %v1109_v42 = vpop.f32.mrf.mxu0 }
 0x1c7   : > { %1214 = vst.msk [vmem:[%s1877_s8 + $0xd0] sm:$0xff] %vm462_vm0, %v1182_v47  ;;  %v884_v41 = vadd.f32 %v883_v56, %v771_v39 }
 0x1c8   : > { %v773_v43 = vpop.f32.mrf.mxu1  ;;  %v996_v54 = vpop.f32.mrf.mxu3 }
 0x1c9   : > { %v997_v45 = vadd.f32 %v996_v54, %v884_v41  ;;  %v774_v50 = vadd.f32 %v773_v43, %v1811_v61 }
 0x1cb   : > { %v1110_v49 = vadd.f32 %v1109_v42, %v997_v45 }
 0x1cd   : > { %v1183_v52 = vadd.f32 %v1151_v48, %v1110_v49 }
 0x1ce   : > { %v886_v34 = vpop.f32.mrf.mxu2  ;;  %v1112_v2 = vpop.f32.mrf.mxu0 }
 0x1cf   : > { %1215 = vst.msk [vmem:[%s1877_s8 + $0xd8] sm:$0xff] %vm462_vm0, %v1183_v52  ;;  %v887_v51 = vadd.f32 %v886_v34, %v774_v50 }
 0x1d0   : > { %v776_v29 = vpop.f32.mrf.mxu1  ;;  %v999_v53 = vpop.f32.mrf.mxu3 }
 0x1d1   : > { %v1000_v55 = vadd.f32 %v999_v53, %v887_v51  ;;  %v777_v27 = vadd.f32 %v776_v29, %v1826_v7 }
 0x1d3   : > { %v1113_v58 = vadd.f32 %v1112_v2, %v1000_v55 }
 0x1d5   : > { %v1184_v57 = vadd.f32 %v1152_v16, %v1113_v58 }
 0x1d6   : > { %v889_v14 = vpop.f32.mrf.mxu2  ;;  %v1115_v59 = vpop.f32.mrf.mxu0 }
 0x1d7   : > { %1216 = vst.msk [vmem:[%s1877_s8 + $0xe0] sm:$0xff] %vm462_vm0, %v1184_v57  ;;  %v890_v61 = vadd.f32 %v889_v14, %v777_v27 }
 0x1d8   : > { %v779_v15 = vpop.f32.mrf.mxu1  ;;  %v1002_v60 = vpop.f32.mrf.mxu3 }
 0x1d9   : > { %v1003_v62 = vadd.f32 %v1002_v60, %v890_v61  ;;  %v780_v26 = vadd.f32 %v779_v15, %v1841_v23 }
 0x1db   : > { %v1116_v0 = vadd.f32 %v1115_v59, %v1003_v62 }
 0x1dd   : > { %v1185_v1 = vadd.f32 %v1153_v63, %v1116_v0 }
 0x1de   : > { %v892_v4 = vpop.f32.mrf.mxu2  ;;  %v1118_v5 = vpop.f32.mrf.mxu0 }
 0x1df   : > { %1217 = vst.msk [vmem:[%s1877_s8 + $0xe8] sm:$0xff] %vm462_vm0, %v1185_v1  ;;  %v893_v7 = vadd.f32 %v892_v4, %v780_v26 }
 0x1e0   : > { %v1005_v6 = vpop.f32.mrf.mxu3  ;;  %v782_v9 = vpop.f32.mrf.mxu1 }
 0x1e1   : > { %v1006_v32 = vadd.f32 %v1005_v6, %v893_v7  ;;  %v783_v44 = vadd.f32 %v782_v9, %v1854_v40 }
 0x1e3   : > { %v1119_v10 = vadd.f32 %v1118_v5, %v1006_v32 }
 0x1e5   : > { %v1186_v3 = vadd.f32 %v1154_v8, %v1119_v10 }
 0x1e6   : > { %v895_v36 = vpop.f32.mrf.mxu2  ;;  %v1121_v24 = vpop.f32.mrf.mxu0 }
 0x1e7   : > { %1218 = vst.msk [vmem:[%s1877_s8 + $0xf0] sm:$0xff] %vm462_vm0, %v1186_v3  ;;  %v896_v23 = vadd.f32 %v895_v36, %v783_v44 }
 0x1e8   : > { %v1008_v37 = vpop.f32.mrf.mxu3 }
 0x1e9   : > { %v1009_v13 = vadd.f32 %v1008_v37, %v896_v23 }
 0x1eb   : > { %v1122_v19 = vadd.f32 %v1121_v24, %v1009_v13 }
 0x1ed   : > { %v1187_v20 = vadd.f32 %v1155_v21, %v1122_v19 }
 0x1ef   : > { %1219 = vst.msk [vmem:[%s1877_s8 + $0xf8] sm:$0xff] %vm462_vm0, %v1187_v20 }
 0x1f0 PF: > { %s14_s15 = sadd.s32 1, %s1397_s15  }
 0x1f1   : > { %p11_p4 = scmp.ge.s32.totalorder %s14_s15, 4  }
 0x1f3   :  { %13 = sbr.rel (!%p11_p4) target bundleno = 1 (0x1), region = 69 }

// kernel: ood_calib_net_forward.63
= control target key start
LH: loop header
LB: loop body
LE: loop exit
PB: predicated region body
PF: predicated region fallthrough
CT: control target
= control target key end

     0   :  { %s2677_s12 = smov 0   ;;  %s4141_s0 = inlined_call_operand.vmem [shape: f32[512,1600], index: 0, kind: input, shape index: {}]   ;;  %s4142_s1 = inlined_call_operand.vmem [shape: f32[1600,4], index: 1, kind: input, shape index: {}]   ;;  %s4143_s2 = inlined_call_operand.vmem [shape: f32[1,4], index: 2, kind: input, shape index: {}]   ;;  %s4144_s3 = inlined_call_operand.vmem [shape: f32[512,4], index: 3, kind: output, shape index: {}]  }
   0x1 LB: > { %s2548_s13 = sadd.s32 4294967295, %s2655_s12   ;;  %p2552_p0 = scmp.ge.s32.totalorder %s2655_s12, 1  ;;  %s2655_s12 = sphi %s2677_s12, %s13_s12  }
   0x2   : > { %p139_p1 = scmp.lt.s32.totalorder %s2655_s12, 3 }
   0x4   : > { %p140_p2 = pnand %p2552_p0, %p139_p1 }
   0x5   : > { %s2553_s28 = sshll.u32 (!%p140_p2), %s2548_s13, 5 }
   0x6   : > { %143 = sbr.rel (%p140_p2) target bundleno = 1012 (0x3f4), region = 32  ;;  %p165_p3 = scmp.lt.s32.totalorder (!%p140_p2), %s2553_s28, 63 }
   0xb   : > { %v608_v0 = vld [vmem:[%s4142_s1 + $0x78] sm:$0xff]  ;;  %v607_v1 = vld [vmem:[%s4142_s1 + $0x70] sm:$0xff]  ;;  %v606_v2 = vld [vmem:[%s4142_s1 + $0x68] sm:$0xff]  ;;  %s4146_s28 = smov (!%p165_p3, %s2553_s28), 63  ;;  %vm797_vm0 = vcmask 523264   ;;  %vm2459_vm1 = vcmask 31744  }
   0xc   : > { %2591 = vmatpush.msra.mxu1 %v608_v0  ;;  %2592 = vmatpush.msra.mxu2 %v608_v0  ;;  %v605_v3 = vld [vmem:[%s4142_s1 + $0x60] sm:$0xff]  ;;  %v604_v4 = vld [vmem:[%s4142_s1 + $0x58] sm:$0xff]  ;;  %v603_v5 = vld [vmem:[%s4142_s1 + $0x50] sm:$0xff]  ;;  %s2639_s15 = smul.u32 104, %s4146_s28  ;;  %s2556_s9 = sshll.u32 %s4146_s28, 3 }
   0xd   : > { %2593 = vmatpush.msra.mxu3 %v608_v0  ;;  %894 = vmatpush.msra.mxu0 %v608_v0  ;;  %v602_v6 = vld [vmem:[%s4142_s1 + $0x48] sm:$0xff]  ;;  %v601_v7 = vld [vmem:[%s4142_s1 + $0x40] sm:$0xff]  ;;  %v600_v8 = vld [vmem:[%s4142_s1 + $0x38] sm:$0xff]  ;;  %s3971_s13 = scalar_lea.vmem %s4144_s3, %s2556_s9 }
   0xe   : > { %2594 = vmatpush.msra.mxu1 %v607_v1  ;;  %2595 = vmatpush.msra.mxu2 %v607_v1  ;;  %v599_v9 = vld [vmem:[%s4142_s1 + $0x30] sm:$0xff]  ;;  %v598_v10 = vld [vmem:[%s4142_s1 + $0x28] sm:$0xff]  ;;  %v597_v11 = vld [vmem:[%s4142_s1 + $0x20] sm:$0xff]  ;;  %s2738_s22 = scalar_lea.vmem %s4141_s0, %s2639_s15 }
   0xf   : > { %2596 = vmatpush.msra.mxu3 %v607_v1  ;;  %895 = vmatpush.msra.mxu0 %v607_v1  ;;  %v596_v12 = vld [vmem:[%s4142_s1 + $0x18] sm:$0xff]  ;;  %v595_v13 = vld [vmem:[%s4142_s1 + $0x10] sm:$0xff]  ;;  %v594_v14 = vld [vmem:[%s4142_s1 + $0x8] sm:$0xff] }
  0x10   : > { %2597 = vmatpush.msra.mxu1 %v606_v2  ;;  %2598 = vmatpush.msra.mxu2 %v606_v2  ;;  %v593_v15 = vld [vmem:[%s4142_s1] sm:$0xff]  ;;  %v640_v18 = vld [vmem:[%s4142_s1 + $0x178] sm:$0xff]  ;;  %v639_v22 = vld [vmem:[%s4142_s1 + $0x170] sm:$0xff] }
  0x11   : > { %2599 = vmatpush.msra.mxu3 %v606_v2  ;;  %896 = vmatpush.msra.mxu0 %v606_v2  ;;  %v281_v16 = vld [vmem:[%s2738_s22 + $0x340] sm:$0xff]  ;;  %v624_v20 = vld [vmem:[%s4142_s1 + $0xf8] sm:$0xff]  ;;  %v623_v23 = vld [vmem:[%s4142_s1 + $0xf0] sm:$0xff] }
  0x12   : > { %2600 = vmatpush.msra.mxu1 %v605_v3  ;;  %2601 = vmatpush.msra.mxu2 %v605_v3  ;;  %v385_v17 = vld [vmem:[%s2738_s22 + $0x680] sm:$0xff]  ;;  %v656_v21 = vld [vmem:[%s4142_s1 + $0x1f8] sm:$0xff]  ;;  %v655_v24 = vld [vmem:[%s4142_s1 + $0x1f0] sm:$0xff] }
  0x13   : > { %2602 = vmatpush.msra.mxu3 %v605_v3  ;;  %897 = vmatpush.msra.mxu0 %v605_v3  ;;  %v489_v19 = vld [vmem:[%s2738_s22 + $0x9c0] sm:$0xff]  ;;  %v638_v25 = vld [vmem:[%s4142_s1 + $0x168] sm:$0xff]  ;;  %v672_v29 = vld [vmem:[%s4142_s1 + $0x278] sm:$0xff] }
  0x14   : > { %2603 = vmatpush.msra.mxu1 %v604_v4  ;;  %2604 = vmatpush.msra.mxu2 %v604_v4  ;;  %v177_v26 = vld [vmem:[%s2738_s22] sm:$0xff]  ;;  %v622_v27 = vld [vmem:[%s4142_s1 + $0xe8] sm:$0xff]  ;;  %v671_v35 = vld [vmem:[%s4142_s1 + $0x270] sm:$0xff] }
  0x15   : > { %2605 = vmatpush.msra.mxu3 %v604_v4  ;;  %898 = vmatpush.msra.mxu0 %v604_v4  ;;  %v654_v28 = vld [vmem:[%s4142_s1 + $0x1e8] sm:$0xff]  ;;  %v637_v32 = vld [vmem:[%s4142_s1 + $0x160] sm:$0xff]  ;;  %v636_v37 = vld [vmem:[%s4142_s1 + $0x158] sm:$0xff] }
  0x16   : > { %2606 = vmatpush.msra.mxu1 %v603_v5  ;;  %2607 = vmatpush.msra.mxu2 %v603_v5  ;;  %v294_v30 = vld [vmem:[%s2738_s22 + $0x3a8] sm:$0xff]  ;;  %v653_v33 = vld [vmem:[%s4142_s1 + $0x1e0] sm:$0xff]  ;;  %v652_v38 = vld [vmem:[%s4142_s1 + $0x1d8] sm:$0xff] }
  0x17   : > { %2608 = vmatpush.msra.mxu3 %v603_v5  ;;  %899 = vmatpush.msra.mxu0 %v603_v5  ;;  %v398_v31 = vld [vmem:[%s2738_s22 + $0x6e8] sm:$0xff]  ;;  %v621_v36 = vld [vmem:[%s4142_s1 + $0xe0] sm:$0xff]  ;;  %v620_v40 = vld [vmem:[%s4142_s1 + $0xd8] sm:$0xff] }
  0x18   : > { %2609 = vmatpush.msra.mxu1 %v602_v6  ;;  %2610 = vmatpush.msra.mxu2 %v602_v6  ;;  %v502_v34 = vld [vmem:[%s2738_s22 + $0xa28] sm:$0xff]  ;;  %v635_v41 = vld [vmem:[%s4142_s1 + $0x150] sm:$0xff]  ;;  %v669_v44 = vld [vmem:[%s4142_s1 + $0x260] sm:$0xff] }
  0x19   : > { %2611 = vmatpush.msra.mxu3 %v602_v6  ;;  %900 = vmatpush.msra.mxu0 %v602_v6  ;;  %v670_v39 = vld [vmem:[%s4142_s1 + $0x268] sm:$0xff]  ;;  %v651_v43 = vld [vmem:[%s4142_s1 + $0x1d0] sm:$0xff]  ;;  %v668_v51 = vld [vmem:[%s4142_s1 + $0x258] sm:$0xff] }
  0x1a   : > { %2612 = vmatpush.msra.mxu1 %v601_v7  ;;  %2613 = vmatpush.msra.mxu2 %v601_v7  ;;  %v190_v42 = vld [vmem:[%s2738_s22 + $0x68] sm:$0xff]  ;;  %v619_v45 = vld [vmem:[%s4142_s1 + $0xd0] sm:$0xff]  ;;  %v633_v53 = vld [vmem:[%s4142_s1 + $0x140] sm:$0xff] }
  0x1b   : > { %2614 = vmatpush.msra.mxu3 %v601_v7  ;;  %901 = vmatpush.msra.mxu0 %v601_v7  ;;  %v307_v46 = vld [vmem:[%s2738_s22 + $0x410] sm:$0xff]  ;;  %v634_v48 = vld [vmem:[%s4142_s1 + $0x148] sm:$0xff]  ;;  %v649_v54 = vld [vmem:[%s4142_s1 + $0x1c0] sm:$0xff] }
  0x1c   : > { %2615 = vmatpush.msra.mxu1 %v600_v8  ;;  %2616 = vmatpush.msra.mxu2 %v600_v8  ;;  %v411_v47 = vld [vmem:[%s2738_s22 + $0x750] sm:$0xff]  ;;  %v650_v49 = vld [vmem:[%s4142_s1 + $0x1c8] sm:$0xff]  ;;  %v617_v56 = vld [vmem:[%s4142_s1 + $0xc0] sm:$0xff] }
  0x1d   : > { %2617 = vmatpush.msra.mxu3 %v600_v8  ;;  %902 = vmatpush.msra.mxu0 %v600_v8  ;;  %v515_v50 = vld [vmem:[%s2738_s22 + $0xa90] sm:$0xff]  ;;  %v618_v52 = vld [vmem:[%s4142_s1 + $0xc8] sm:$0xff]  ;;  %v632_v57 = vld [vmem:[%s4142_s1 + $0x138] sm:$0xff] }
  0x1e   : > { %2618 = vmatpush.msra.mxu1 %v599_v9  ;;  %2619 = vmatpush.msra.mxu2 %v599_v9  ;;  %v667_v55 = vld [vmem:[%s4142_s1 + $0x250] sm:$0xff]  ;;  %v648_v59 = vld [vmem:[%s4142_s1 + $0x1b8] sm:$0xff]  ;;  %v666_v60 = vld [vmem:[%s4142_s1 + $0x248] sm:$0xff] }
  0x1f   : > { %2620 = vmatpush.msra.mxu3 %v599_v9  ;;  %903 = vmatpush.msra.mxu0 %v599_v9  ;;  %v203_v58 = vld [vmem:[%s2738_s22 + $0xd0] sm:$0xff]  ;;  %v616_v61 = vld [vmem:[%s4142_s1 + $0xb8] sm:$0xff]  ;;  %v665_v3 = vld [vmem:[%s4142_s1 + $0x240] sm:$0xff] }
  0x20   : > { %2621 = vmatpush.msra.mxu1 %v598_v10  ;;  %2622 = vmatpush.msra.mxu2 %v598_v10  ;;  %v320_v62 = vld [vmem:[%s2738_s22 + $0x478] sm:$0xff]  ;;  %v631_v0 = vld [vmem:[%s4142_s1 + $0x130] sm:$0xff]  ;;  %v630_v5 = vld [vmem:[%s4142_s1 + $0x128] sm:$0xff] }
  0x21   : > { %2623 = vmatpush.msra.mxu3 %v598_v10  ;;  %904 = vmatpush.msra.mxu0 %v598_v10  ;;  %v424_v63 = vld [vmem:[%s2738_s22 + $0x7b8] sm:$0xff]  ;;  %v647_v1 = vld [vmem:[%s4142_s1 + $0x1b0] sm:$0xff]  ;;  %v646_v6 = vld [vmem:[%s4142_s1 + $0x1a8] sm:$0xff] }
  0x22   : > { %2624 = vmatpush.msra.mxu1 %v597_v11  ;;  %2625 = vmatpush.msra.mxu2 %v597_v11  ;;  %v528_v2 = vld [vmem:[%s2738_s22 + $0xaf8] sm:$0xff]  ;;  %v615_v4 = vld [vmem:[%s4142_s1 + $0xb0] sm:$0xff]  ;;  %v614_v8 = vld [vmem:[%s4142_s1 + $0xa8] sm:$0xff] }
  0x23   : > { %2626 = vmatpush.msra.mxu3 %v597_v11  ;;  %905 = vmatpush.msra.mxu0 %v597_v11  ;;  %v664_v7 = vld [vmem:[%s4142_s1 + $0x238] sm:$0xff]  ;;  %v629_v9 = vld [vmem:[%s4142_s1 + $0x120] sm:$0xff] }
  0x24   : > { %2627 = vmatpush.msra.mxu1 %v596_v12  ;;  %2628 = vmatpush.msra.mxu2 %v596_v12  ;;  %v216_v10 = vld [vmem:[%s2738_s22 + $0x138] sm:$0xff]  ;;  %v645_v11 = vld [vmem:[%s4142_s1 + $0x1a0] sm:$0xff] }
  0x25   : > { %2629 = vmatpush.msra.mxu3 %v596_v12  ;;  %906 = vmatpush.msra.mxu0 %v596_v12  ;;  %v663_v12 = vld [vmem:[%s4142_s1 + $0x230] sm:$0xff] }
  0x26   : > { %2630 = vmatpush.msra.mxu1 %v595_v13  ;;  %2631 = vmatpush.msra.mxu2 %v595_v13 }
  0x27   : > { %2632 = vmatpush.msra.mxu3 %v595_v13  ;;  %907 = vmatpush.msra.mxu0 %v595_v13  ;;  %v613_v13 = vld [vmem:[%s4142_s1 + $0xa0] sm:$0xff] }
  0x28   : > { %2633 = vmatpush.msra.mxu1 %v594_v14  ;;  %2634 = vmatpush.msra.mxu2 %v594_v14 }
  0x29   : > { %2635 = vmatpush.msra.mxu3 %v594_v14  ;;  %908 = vmatpush.msra.mxu0 %v594_v14  ;;  %v333_v14 = vld [vmem:[%s2738_s22 + $0x4e0] sm:$0xff] }
  0x2a   : > { %2636 = vmatpush.msra.mxu1 %v593_v15  ;;  %2637 = vmatpush.msra.mxu2 %v593_v15 }
  0x2b   : > { %934 = vmatmul.f32.vlgmr.msra.gmra.mxu1 %v281_v16  ;;  %958 = vmatmul.f32.vlgmr.msra.gmra.mxu2 %v385_v17  ;;  %v628_v16 = vld [vmem:[%s4142_s1 + $0x118] sm:$0xff] }
  0x2c   : > { %1120 = vmatpush.msrb.mxu2 %v640_v18  ;;  %2638 = vmatpush.msra.mxu3 %v593_v15  ;;  %v644_v17 = vld [vmem:[%s4142_s1 + $0x198] sm:$0xff]  ;;  %v541_v18 = vld [vmem:[%s2738_s22 + $0xb60] sm:$0xff] }
  0x2d   : > { %982 = vmatmul.f32.vlgmr.msra.gmra.mxu3 %v489_v19  ;;  %1007 = vmatpush.msrb.mxu1 %v624_v20  ;;  %v662_v19 = vld [vmem:[%s4142_s1 + $0x228] sm:$0xff]  ;;  %v612_v20 = vld [vmem:[%s4142_s1 + $0x98] sm:$0xff] }
  0x2e   : > { %1233 = vmatpush.msrb.mxu3 %v656_v21  ;;  %1121 = vmatpush.msrb.mxu2 %v639_v22  ;;  %v627_v21 = vld [vmem:[%s4142_s1 + $0x110] sm:$0xff] }
  0x2f   : > { %1008 = vmatpush.msrb.mxu1 %v623_v23  ;;  %909 = vmatpush.msra.mxu0 %v593_v15  ;;  %v437_v15 = vld [vmem:[%s2738_s22 + $0x820] sm:$0xff]  ;;  %v643_v22 = vld [vmem:[%s4142_s1 + $0x190] sm:$0xff] }
  0x30   : > { %1234 = vmatpush.msrb.mxu3 %v655_v24  ;;  %1122 = vmatpush.msrb.mxu2 %v638_v25  ;;  %v661_v23 = vld [vmem:[%s4142_s1 + $0x220] sm:$0xff]  ;;  %v611_v24 = vld [vmem:[%s4142_s1 + $0x90] sm:$0xff]  ;;  %v626_v25 = vld [vmem:[%s4142_s1 + $0x108] sm:$0xff] }
  0x31   : > { %910 = vmatmul.f32.vlgmr.msra.gmra.mxu0 %v177_v26  ;;  %1009 = vmatpush.msrb.mxu1 %v622_v27  ;;  %v229_v26 = vld [vmem:[%s2738_s22 + $0x1a0] sm:$0xff]  ;;  %v642_v27 = vld [vmem:[%s4142_s1 + $0x188] sm:$0xff] }
  0x32   : > { %1235 = vmatpush.msrb.mxu3 %v654_v28  ;;  %1346 = vmatpush.msrb.mxu0 %v672_v29  ;;  %v660_v28 = vld [vmem:[%s4142_s1 + $0x218] sm:$0xff]  ;;  %v610_v29 = vld [vmem:[%s4142_s1 + $0x88] sm:$0xff] }
  0x33   : > { %937 = vmatmul.f32.gmra.mxu1 %v294_v30  ;;  %961 = vmatmul.f32.gmra.mxu2 %v398_v31  ;;  %v346_v30 = vld [vmem:[%s2738_s22 + $0x548] sm:$0xff] }
  0x34   : > { %1123 = vmatpush.msrb.mxu2 %v637_v32  ;;  %1236 = vmatpush.msrb.mxu3 %v653_v33  ;;  %v450_v31 = vld [vmem:[%s2738_s22 + $0x888] sm:$0xff]  ;;  %v625_v32 = vld [vmem:[%s4142_s1 + $0x100] sm:$0xff] }
  0x35   : > { %985 = vmatmul.f32.gmra.mxu3 %v502_v34  ;;  %1347 = vmatpush.msrb.mxu0 %v671_v35  ;;  %v641_v33 = vld [vmem:[%s4142_s1 + $0x180] sm:$0xff]  ;;  %v554_v34 = vld [vmem:[%s2738_s22 + $0xbc8] sm:$0xff]  ;;  %v659_v35 = vld [vmem:[%s4142_s1 + $0x210] sm:$0xff] }
  0x36   : > { %1010 = vmatpush.msrb.mxu1 %v621_v36  ;;  %1124 = vmatpush.msrb.mxu2 %v636_v37  ;;  %v609_v36 = vld [vmem:[%s4142_s1 + $0x80] sm:$0xff]  ;;  %v704_v37 = vld [vmem:[%s4142_s1 + $0x378] sm:$0xff] }
  0x37   : > { %1237 = vmatpush.msrb.mxu3 %v652_v38  ;;  %1348 = vmatpush.msrb.mxu0 %v670_v39  ;;  %v658_v38 = vld [vmem:[%s4142_s1 + $0x208] sm:$0xff]  ;;  %v720_v39 = vld [vmem:[%s4142_s1 + $0x3f8] sm:$0xff] }
  0x38   : > { %1011 = vmatpush.msrb.mxu1 %v620_v40  ;;  %1125 = vmatpush.msrb.mxu2 %v635_v41  ;;  %v688_v40 = vld [vmem:[%s4142_s1 + $0x2f8] sm:$0xff]  ;;  %v242_v41 = vld [vmem:[%s2738_s22 + $0x208] sm:$0xff] }
  0x39   : > { %913 = vmatmul.f32.gmra.mxu0 %v190_v42  ;;  %1238 = vmatpush.msrb.mxu3 %v651_v43  ;;  %v657_v42 = vld [vmem:[%s4142_s1 + $0x200] sm:$0xff]  ;;  %v359_v43 = vld [vmem:[%s2738_s22 + $0x5b0] sm:$0xff] }
  0x3a   : > { %1349 = vmatpush.msrb.mxu0 %v669_v44  ;;  %1012 = vmatpush.msrb.mxu1 %v619_v45  ;;  %v463_v44 = vld [vmem:[%s2738_s22 + $0x8f0] sm:$0xff]  ;;  %v736_v45 = vld [vmem:[%s4142_s1 + $0x478] sm:$0xff] }
  0x3b   : > { %940 = vmatmul.f32.gmra.mxu1 %v307_v46  ;;  %964 = vmatmul.f32.gmra.mxu2 %v411_v47  ;;  %v567_v46 = vld [vmem:[%s2738_s22 + $0xc30] sm:$0xff] }
  0x3c   : > { %1126 = vmatpush.msrb.mxu2 %v634_v48  ;;  %1239 = vmatpush.msrb.mxu3 %v650_v49  ;;  %v703_v47 = vld [vmem:[%s4142_s1 + $0x370] sm:$0xff] }
  0x3d   : > { %988 = vmatmul.f32.gmra.mxu3 %v515_v50  ;;  %1350 = vmatpush.msrb.mxu0 %v668_v51  ;;  %v719_v48 = vld [vmem:[%s4142_s1 + $0x3f0] sm:$0xff]  ;;  %v372_v51 = vld [vmem:[%s2738_s22 + $0x618] sm:$0xff] }
  0x3e   : > { %1013 = vmatpush.msrb.mxu1 %v618_v52  ;;  %1127 = vmatpush.msrb.mxu2 %v633_v53  ;;  %v687_v49 = vld [vmem:[%s4142_s1 + $0x2f0] sm:$0xff]  ;;  %v476_v52 = vld [vmem:[%s2738_s22 + $0x958] sm:$0xff] }
  0x3f   : > { %1240 = vmatpush.msrb.mxu3 %v649_v54  ;;  %1351 = vmatpush.msrb.mxu0 %v667_v55  ;;  %v255_v50 = vld [vmem:[%s2738_s22 + $0x270] sm:$0xff]  ;;  %v580_v53 = vld [vmem:[%s2738_s22 + $0xc98] sm:$0xff] }
  0x40   : > { %1014 = vmatpush.msrb.mxu1 %v617_v56  ;;  %1128 = vmatpush.msrb.mxu2 %v632_v57  ;;  %v735_v54 = vld [vmem:[%s4142_s1 + $0x470] sm:$0xff]  ;;  %v268_v55 = vld [vmem:[%s2738_s22 + $0x2d8] sm:$0xff]  ;;  %v178_v56 = vld [vmem:[%s2738_s22 + $0x8] sm:$0xff] }
  0x41   : > { %916 = vmatmul.f32.gmra.mxu0 %v203_v58  ;;  %1241 = vmatpush.msrb.mxu3 %v648_v59  ;;  %v179_v57 = vld [vmem:[%s2738_s22 + $0x10] sm:$0xff]  ;;  %v180_v58 = vld [vmem:[%s2738_s22 + $0x18] sm:$0xff]  ;;  %v702_v59 = vld [vmem:[%s4142_s1 + $0x368] sm:$0xff] }
  0x42   : > { %1352 = vmatpush.msrb.mxu0 %v666_v60  ;;  %1015 = vmatpush.msrb.mxu1 %v616_v61  ;;  %v718_v60 = vld [vmem:[%s4142_s1 + $0x3e8] sm:$0xff] }
  0x43   : > { %943 = vmatmul.f32.gmra.mxu1 %v320_v62  ;;  %967 = vmatmul.f32.gmra.mxu2 %v424_v63  ;;  %v686_v61 = vld [vmem:[%s4142_s1 + $0x2e8] sm:$0xff]  ;;  %v181_v62 = vld [vmem:[%s2738_s22 + $0x20] sm:$0xff]  ;;  %v191_v63 = vld [vmem:[%s2738_s22 + $0x70] sm:$0xff] }
  0x44   : > { %1129 = vmatpush.msrb.mxu2 %v631_v0  ;;  %1242 = vmatpush.msrb.mxu3 %v647_v1  ;;  %v192_v0 = vld [vmem:[%s2738_s22 + $0x78] sm:$0xff]  ;;  %v193_v1 = vld [vmem:[%s2738_s22 + $0x80] sm:$0xff] }
  0x45   : > { %991 = vmatmul.f32.gmra.mxu3 %v528_v2  ;;  %1353 = vmatpush.msrb.mxu0 %v665_v3  ;;  %v734_v2 = vld [vmem:[%s4142_s1 + $0x468] sm:$0xff] }
  0x46   : > { %1016 = vmatpush.msrb.mxu1 %v615_v4  ;;  %1130 = vmatpush.msrb.mxu2 %v630_v5  ;;  %v194_v3 = vld [vmem:[%s2738_s22 + $0x88] sm:$0xff]  ;;  %v204_v4 = vld [vmem:[%s2738_s22 + $0xd8] sm:$0xff]  ;;  %v205_v5 = vld [vmem:[%s2738_s22 + $0xe0] sm:$0xff] }
  0x47   : > { %1243 = vmatpush.msrb.mxu3 %v646_v6  ;;  %1354 = vmatpush.msrb.mxu0 %v664_v7  ;;  %v206_v6 = vld [vmem:[%s2738_s22 + $0xe8] sm:$0xff]  ;;  %v701_v7 = vld [vmem:[%s4142_s1 + $0x360] sm:$0xff] }
  0x48   : > { %1017 = vmatpush.msrb.mxu1 %v614_v8  ;;  %1131 = vmatpush.msrb.mxu2 %v629_v9  ;;  %v717_v8 = vld [vmem:[%s4142_s1 + $0x3e0] sm:$0xff] }
  0x49   : > { %919 = vmatmul.f32.gmra.mxu0 %v216_v10  ;;  %1244 = vmatpush.msrb.mxu3 %v645_v11  ;;  %v685_v9 = vld [vmem:[%s4142_s1 + $0x2e0] sm:$0xff]  ;;  %v207_v10 = vld [vmem:[%s2738_s22 + $0xf0] sm:$0xff] }
  0x4a   : > { %1355 = vmatpush.msrb.mxu0 %v663_v12  ;;  %1018 = vmatpush.msrb.mxu1 %v613_v13  ;;  %v217_v11 = vld [vmem:[%s2738_s22 + $0x140] sm:$0xff]  ;;  %v218_v12 = vld [vmem:[%s2738_s22 + $0x148] sm:$0xff]  ;;  %v219_v13 = vld [vmem:[%s2738_s22 + $0x150] sm:$0xff] }
  0x4b   : > { %946 = vmatmul.f32.gmra.mxu1 %v333_v14  ;;  %970 = vmatmul.f32.gmra.mxu2 %v437_v15  ;;  %v733_v14 = vld [vmem:[%s4142_s1 + $0x460] sm:$0xff]  ;;  %v220_v15 = vld [vmem:[%s2738_s22 + $0x158] sm:$0xff] }
  0x4c   : > { %1132 = vmatpush.msrb.mxu2 %v628_v16  ;;  %1245 = vmatpush.msrb.mxu3 %v644_v17  ;;  %v230_v16 = vld [vmem:[%s2738_s22 + $0x1a8] sm:$0xff]  ;;  %v231_v17 = vld [vmem:[%s2738_s22 + $0x1b0] sm:$0xff] }
  0x4d   : > { %994 = vmatmul.f32.gmra.mxu3 %v541_v18  ;;  %1356 = vmatpush.msrb.mxu0 %v662_v19  ;;  %v232_v18 = vld [vmem:[%s2738_s22 + $0x1b8] sm:$0xff] }
  0x4e   : > { %1019 = vmatpush.msrb.mxu1 %v612_v20  ;;  %1133 = vmatpush.msrb.mxu2 %v627_v21  ;;  %v700_v19 = vld [vmem:[%s4142_s1 + $0x358] sm:$0xff]  ;;  %v233_v21 = vld [vmem:[%s2738_s22 + $0x1c0] sm:$0xff] }
  0x4f   : > { %1246 = vmatpush.msrb.mxu3 %v643_v22  ;;  %1357 = vmatpush.msrb.mxu0 %v661_v23  ;;  %v716_v20 = vld [vmem:[%s4142_s1 + $0x3d8] sm:$0xff]  ;;  %v243_v23 = vld [vmem:[%s2738_s22 + $0x210] sm:$0xff] }
  0x50   : > { %1020 = vmatpush.msrb.mxu1 %v611_v24  ;;  %1134 = vmatpush.msrb.mxu2 %v626_v25  ;;  %v684_v22 = vld [vmem:[%s4142_s1 + $0x2d8] sm:$0xff]  ;;  %v245_v25 = vld [vmem:[%s2738_s22 + $0x220] sm:$0xff] }
  0x51   : > { %922 = vmatmul.f32.gmra.mxu0 %v229_v26  ;;  %1247 = vmatpush.msrb.mxu3 %v642_v27  ;;  %v244_v24 = vld [vmem:[%s2738_s22 + $0x218] sm:$0xff]  ;;  %v246_v27 = vld [vmem:[%s2738_s22 + $0x228] sm:$0xff] }
  0x52   : > { %1358 = vmatpush.msrb.mxu0 %v660_v28  ;;  %1021 = vmatpush.msrb.mxu1 %v610_v29  ;;  %v732_v26 = vld [vmem:[%s4142_s1 + $0x458] sm:$0xff]  ;;  %v257_v29 = vld [vmem:[%s2738_s22 + $0x280] sm:$0xff] }
  0x53   : > { %949 = vmatmul.f32.gmra.mxu1 %v346_v30  ;;  %973 = vmatmul.f32.gmra.mxu2 %v450_v31  ;;  %v256_v28 = vld [vmem:[%s2738_s22 + $0x278] sm:$0xff]  ;;  %v258_v30 = vld [vmem:[%s2738_s22 + $0x288] sm:$0xff]  ;;  %v699_v31 = vld [vmem:[%s4142_s1 + $0x350] sm:$0xff] }
  0x54   : > { %1135 = vmatpush.msrb.mxu2 %v625_v32  ;;  %1248 = vmatpush.msrb.mxu3 %v641_v33  ;;  %v715_v32 = vld [vmem:[%s4142_s1 + $0x3d0] sm:$0xff] }
  0x55   : > { %997 = vmatmul.f32.gmra.mxu3 %v554_v34  ;;  %1359 = vmatpush.msrb.mxu0 %v659_v35  ;;  %v259_v33 = vld [vmem:[%s2738_s22 + $0x290] sm:$0xff]  ;;  %v269_v35 = vld [vmem:[%s2738_s22 + $0x2e0] sm:$0xff] }
  0x56   : > { %1022 = vmatpush.msrb.mxu1 %v609_v36  ;;  %1572 = vmatpush.msra.mxu2 %v704_v37  ;;  %v683_v34 = vld [vmem:[%s4142_s1 + $0x2d0] sm:$0xff]  ;;  %v270_v36 = vld [vmem:[%s2738_s22 + $0x2e8] sm:$0xff] }
  0x57   : > { %1360 = vmatpush.msrb.mxu0 %v658_v38  ;;  %1685 = vmatpush.msra.mxu3 %v720_v39  ;;  %v271_v37 = vld [vmem:[%s2738_s22 + $0x2f0] sm:$0xff]  ;;  %v272_v39 = vld [vmem:[%s2738_s22 + $0x2f8] sm:$0xff] }
  0x58   : > { %1459 = vmatpush.msra.mxu1 %v688_v40  ;;  %1573 = vmatpush.msra.mxu2 %v703_v47  ;;  %v731_v38 = vld [vmem:[%s4142_s1 + $0x450] sm:$0xff] }
  0x59   : > { %925 = vmatmul.f32.gmra.mxu0 %v242_v41  ;;  %1686 = vmatpush.msra.mxu3 %v719_v48  ;;  %v282_v41 = vld [vmem:[%s2738_s22 + $0x348] sm:$0xff] }
  0x5a   : > { %1361 = vmatpush.msrb.mxu0 %v657_v42  ;;  %1460 = vmatpush.msra.mxu1 %v687_v49  ;;  %v283_v42 = vld [vmem:[%s2738_s22 + $0x350] sm:$0xff]  ;;  %v285_v49 = vld [vmem:[%s2738_s22 + $0x360] sm:$0xff] }
  0x5b   : > { %952 = vmatmul.f32.gmra.mxu1 %v359_v43  ;;  %976 = vmatmul.f32.gmra.mxu2 %v463_v44  ;;  %v284_v43 = vld [vmem:[%s2738_s22 + $0x358] sm:$0xff]  ;;  %v698_v44 = vld [vmem:[%s4142_s1 + $0x348] sm:$0xff] }
  0x5c   : > { %1798 = vmatpush.msra.mxu0 %v736_v45  ;;  %1574 = vmatpush.msra.mxu2 %v702_v59  ;;  %v3082_v45 = vld [vmem:[%s4143_s2] ss:$0 sm:$0xff] }
  0x5d   : > { %1000 = vmatmul.f32.gmra.mxu3 %v567_v46  ;;  %1461 = vmatpush.msra.mxu1 %v686_v61  ;;  %v714_v46 = vld [vmem:[%s4142_s1 + $0x3c8] sm:$0xff] }
  0x5e   : > { %1799 = vmatpush.msra.mxu0 %v735_v54  ;;  %1687 = vmatpush.msra.mxu3 %v718_v60  ;;  %v295_v54 = vld [vmem:[%s2738_s22 + $0x3b0] sm:$0xff]  ;;  %v298_v61 = vld [vmem:[%s2738_s22 + $0x3c8] sm:$0xff] }
  0x5f   : > { %1575 = vmatpush.msra.mxu2 %v701_v7  ;;  %1462 = vmatpush.msra.mxu1 %v685_v9  ;;  %v311_v9 = vld [vmem:[%s2738_s22 + $0x430] sm:$0xff] }
  0x60   : > { %1800 = vmatpush.msra.mxu0 %v734_v2  ;;  %1688 = vmatpush.msra.mxu3 %v717_v8  ;;  %v309_v2 = vld [vmem:[%s2738_s22 + $0x420] sm:$0xff] }
  0x61   : > { %928 = vmatmul.f32.gmra.mxu0 %v255_v50  ;;  %1576 = vmatpush.msra.mxu2 %v700_v19 }
  0x62   : > { %1801 = vmatpush.msra.mxu0 %v733_v14  ;;  %1689 = vmatpush.msra.mxu3 %v716_v20  ;;  %v321_v14 = vld [vmem:[%s2738_s22 + $0x480] sm:$0xff] }
  0x63   : > { %955 = vmatmul.f32.gmra.mxu1 %v372_v51  ;;  %979 = vmatmul.f32.gmra.mxu2 %v476_v52  ;;  %v682_v51 = vld [vmem:[%s4142_s1 + $0x2c8] sm:$0xff] }
  0x64   : > { %1463 = vmatpush.msra.mxu1 %v684_v22  ;;  %1802 = vmatpush.msra.mxu0 %v732_v26  ;;  %v335_v26 = vld [vmem:[%s2738_s22 + $0x4f0] sm:$0xff] }
  0x65   : > { %1003 = vmatmul.f32.gmra.mxu3 %v580_v53  ;;  %1577 = vmatpush.msra.mxu2 %v699_v31 }
  0x66   : > { %1690 = vmatpush.msra.mxu3 %v715_v32  ;;  %1464 = vmatpush.msra.mxu1 %v683_v34 }
  0x67   : > { %1803 = vmatpush.msra.mxu0 %v731_v38  ;;  %1578 = vmatpush.msra.mxu2 %v698_v44  ;;  %v347_v38 = vld [vmem:[%s2738_s22 + $0x550] sm:$0xff] }
  0x68   : > { %1691 = vmatpush.msra.mxu3 %v714_v46  ;;  %1465 = vmatpush.msra.mxu1 %v682_v51 }
  0x69   : > { %931 = vmatmul.f32.gmra.mxu0 %v268_v55  ;;  %v296_v55 = vld [vmem:[%s2738_s22 + $0x3b8] sm:$0xff] }
  0x6b   : > { %1023 = vmatmul.f32.vlgmr.msrb.gmra.mxu1 %v178_v56  ;;  %1136 = vmatmul.f32.vlgmr.msrb.gmra.mxu2 %v179_v57  ;;  %v297_v57 = vld [vmem:[%s2738_s22 + $0x3c0] sm:$0xff] }
  0x6d   : > { %1249 = vmatmul.f32.vlgmr.msrb.gmra.mxu3 %v180_v58  ;;  %v730_v58 = vld [vmem:[%s4142_s1 + $0x448] sm:$0xff] }
  0x6e   : > { %1804 = vmatpush.msra.mxu0 %v730_v58  ;;  %v362_v58 = vld [vmem:[%s2738_s22 + $0x5c8] sm:$0xff] }
  0x71   : > { %1362 = vmatmul.f32.vlgmr.msrb.gmra.mxu0 %v181_v62 }
  0x73   : > { %1026 = vmatmul.f32.gmra.mxu1 %v191_v63  ;;  %1139 = vmatmul.f32.gmra.mxu2 %v192_v0 }
  0x75   : > { %1252 = vmatmul.f32.gmra.mxu3 %v193_v1  ;;  %v308_v1 = vld [vmem:[%s2738_s22 + $0x418] sm:$0xff] }
  0x79   : > { %1365 = vmatmul.f32.gmra.mxu0 %v194_v3 }
  0x7b   : > { %1029 = vmatmul.f32.gmra.mxu1 %v204_v4  ;;  %1142 = vmatmul.f32.gmra.mxu2 %v205_v5  ;;  %v310_v4 = vld [vmem:[%s2738_s22 + $0x428] sm:$0xff]  ;;  %v697_v5 = vld [vmem:[%s4142_s1 + $0x340] sm:$0xff] }
  0x7c   : > { %1579 = vmatpush.msra.mxu2 %v697_v5  ;;  %v679_v5 = vld [vmem:[%s4142_s1 + $0x2b0] sm:$0xff] }
  0x7d   : > { %1255 = vmatmul.f32.gmra.mxu3 %v206_v6  ;;  %v713_v6 = vld [vmem:[%s4142_s1 + $0x3c0] sm:$0xff] }
  0x7e   : > { %1692 = vmatpush.msra.mxu3 %v713_v6 }
  0x81   : > { %1368 = vmatmul.f32.gmra.mxu0 %v207_v10 }
  0x83   : > { %1032 = vmatmul.f32.gmra.mxu1 %v217_v11  ;;  %1145 = vmatmul.f32.gmra.mxu2 %v218_v12  ;;  %v681_v11 = vld [vmem:[%s4142_s1 + $0x2c0] sm:$0xff] }
  0x84   : > { %1466 = vmatpush.msra.mxu1 %v681_v11  ;;  %v374_v11 = vld [vmem:[%s2738_s22 + $0x628] sm:$0xff] }
  0x85   : > { %1258 = vmatmul.f32.gmra.mxu3 %v219_v13 }
  0x89   : > { %1371 = vmatmul.f32.gmra.mxu0 %v220_v15  ;;  %v322_v15 = vld [vmem:[%s2738_s22 + $0x488] sm:$0xff] }
  0x8b   : > { %1035 = vmatmul.f32.gmra.mxu1 %v230_v16  ;;  %1148 = vmatmul.f32.gmra.mxu2 %v231_v17  ;;  %v323_v17 = vld [vmem:[%s2738_s22 + $0x490] sm:$0xff] }
  0x8d   : > { %1261 = vmatmul.f32.gmra.mxu3 %v232_v18  ;;  %v729_v18 = vld [vmem:[%s4142_s1 + $0x440] sm:$0xff] }
  0x8e   : > { %1805 = vmatpush.msra.mxu0 %v729_v18 }
  0x91   : > { %1374 = vmatmul.f32.gmra.mxu0 %v233_v21  ;;  %v324_v21 = vld [vmem:[%s2738_s22 + $0x498] sm:$0xff] }
  0x93   : > { %1038 = vmatmul.f32.gmra.mxu1 %v243_v23  ;;  %1151 = vmatmul.f32.gmra.mxu2 %v244_v24 }
  0x95   : > { %1264 = vmatmul.f32.gmra.mxu3 %v245_v25  ;;  %v334_v25 = vld [vmem:[%s2738_s22 + $0x4e8] sm:$0xff] }
  0x99   : > { %1377 = vmatmul.f32.gmra.mxu0 %v246_v27 }
  0x9b   : > { %1041 = vmatmul.f32.gmra.mxu1 %v256_v28  ;;  %1154 = vmatmul.f32.gmra.mxu2 %v257_v29  ;;  %v336_v28 = vld [vmem:[%s2738_s22 + $0x4f8] sm:$0xff] }
  0x9c   : > { %v696_v29 = vld [vmem:[%s4142_s1 + $0x338] sm:$0xff] }
  0x9d   : > { %1267 = vmatmul.f32.gmra.mxu3 %v258_v30  ;;  %1580 = vmatpush.msra.mxu2 %v696_v29  ;;  %v712_v30 = vld [vmem:[%s4142_s1 + $0x3b8] sm:$0xff] }
  0x9e   : > { %1693 = vmatpush.msra.mxu3 %v712_v30  ;;  %v388_v30 = vld [vmem:[%s2738_s22 + $0x698] sm:$0xff] }
  0xa1   : > { %1380 = vmatmul.f32.gmra.mxu0 %v259_v33  ;;  %v337_v33 = vld [vmem:[%s2738_s22 + $0x500] sm:$0xff] }
  0xa3   : > { %1044 = vmatmul.f32.gmra.mxu1 %v269_v35  ;;  %1157 = vmatmul.f32.gmra.mxu2 %v270_v36  ;;  %v680_v35 = vld [vmem:[%s4142_s1 + $0x2b8] sm:$0xff] }
  0xa4   : > { %1467 = vmatpush.msra.mxu1 %v680_v35 }
  0xa5   : > { %1270 = vmatmul.f32.gmra.mxu3 %v271_v37 }
  0xa6   : > { %1468 = vmatpush.msra.mxu1 %v679_v5 }
  0xa8   : > { %v3071_v40 = vpop.f32.mrf.mxu1 }
  0xa9   : > { %1383 = vmatmul.f32.gmra.mxu0 %v272_v39  ;;  %v348_v39 = vld [vmem:[%s2738_s22 + $0x558] sm:$0xff] }
  0xab   : > { %1047 = vmatmul.f32.gmra.mxu1 %v282_v41  ;;  %1160 = vmatmul.f32.gmra.mxu2 %v283_v42  ;;  %v349_v42 = vld [vmem:[%s2738_s22 + $0x560] sm:$0xff] }
  0xad   : > { %1273 = vmatmul.f32.gmra.mxu3 %v284_v43  ;;  %v728_v43 = vld [vmem:[%s4142_s1 + $0x438] sm:$0xff] }
  0xae   : > { %v959_v47 = vpop.f32.mrf.mxu2  ;;  %v3087_v48 = vpop.f32.mrf.mxu0  ;;  %1806 = vmatpush.msra.mxu0 %v728_v43  ;;  %v678_v43 = vld [vmem:[%s4142_s1 + $0x2a8] sm:$0xff] }
  0xaf   : > { %v3091_v50 = vadd.f32 %v3082_v45, %v959_v47  ;;  %v350_v47 = vld [vmem:[%s2738_s22 + $0x568] sm:$0xff]  ;;  %1469 = vmatpush.msra.mxu1 %v678_v43 }
  0xb0   : > { %v3096_v52 = vpop.f32.mrf.mxu1  ;;  %v983_v53 = vpop.f32.mrf.mxu3  ;;  %v426_v43 = vld [vmem:[%s2738_s22 + $0x7c8] sm:$0xff] }
  0xb1   : > { %v3101_v56 = vadd.f32 %v3082_v45, %v983_v53  ;;  %1386 = vmatmul.f32.gmra.mxu0 %v285_v49 }
  0xb3   : > { %1050 = vmatmul.f32.gmra.mxu1 %v295_v54  ;;  %1163 = vmatmul.f32.gmra.mxu2 %v296_v55  ;;  %v360_v54 = vld [vmem:[%s2738_s22 + $0x5b8] sm:$0xff]  ;;  %v361_v55 = vld [vmem:[%s2738_s22 + $0x5c0] sm:$0xff] }
  0xb5   : > { %1276 = vmatmul.f32.gmra.mxu3 %v297_v57 }
  0xb6   : > { %v962_v59 = vpop.f32.mrf.mxu2  ;;  %v3107_v60 = vpop.f32.mrf.mxu0 }
  0xb7   : > { %v3111_v62 = vadd.f32 %v3082_v45, %v962_v59  ;;  %v695_v59 = vld [vmem:[%s4142_s1 + $0x330] sm:$0xff] }
  0xb8   : > { %v3113_v63 = vpop.f32.mrf.mxu1  ;;  %v986_v0 = vpop.f32.mrf.mxu3  ;;  %1581 = vmatpush.msra.mxu2 %v695_v59  ;;  %v915_v59 = vadd.f32 %v3082_v45, %v3107_v60  ;;  %v413_v60 = vld [vmem:[%s2738_s22 + $0x760] sm:$0xff] }
  0xb9   : > { %v3118_v3 = vadd.f32 %v3082_v45, %v986_v0  ;;  %1389 = vmatmul.f32.gmra.mxu0 %v298_v61  ;;  %v711_v61 = vld [vmem:[%s4142_s1 + $0x3b0] sm:$0xff] }
  0xba   : > { %1694 = vmatpush.msra.mxu3 %v711_v61 }
  0xbb   : > { %1053 = vmatmul.f32.gmra.mxu1 %v308_v1  ;;  %1166 = vmatmul.f32.gmra.mxu2 %v309_v2  ;;  %v363_v2 = vld [vmem:[%s2738_s22 + $0x5d0] sm:$0xff] }
  0xbd   : > { %1279 = vmatmul.f32.gmra.mxu3 %v310_v4 }
  0xbe   : > { %v965_v7 = vpop.f32.mrf.mxu2  ;;  %v3127_v8 = vpop.f32.mrf.mxu0 }
  0xbf   : > { %v3131_v10 = vadd.f32 %v3082_v45, %v965_v7 }
  0xc0   : > { %v3136_v12 = vpop.f32.mrf.mxu1  ;;  %v989_v13 = vpop.f32.mrf.mxu3 }
  0xc1   : > { %v3141_v16 = vadd.f32 %v3082_v45, %v989_v13  ;;  %1392 = vmatmul.f32.gmra.mxu0 %v311_v9  ;;  %v373_v9 = vld [vmem:[%s2738_s22 + $0x620] sm:$0xff] }
  0xc3   : > { %1056 = vmatmul.f32.gmra.mxu1 %v321_v14  ;;  %1169 = vmatmul.f32.gmra.mxu2 %v322_v15  ;;  %v375_v14 = vld [vmem:[%s2738_s22 + $0x630] sm:$0xff] }
  0xc4   : > { %v727_v15 = vld [vmem:[%s4142_s1 + $0x430] sm:$0xff] }
  0xc5   : > { %1282 = vmatmul.f32.gmra.mxu3 %v323_v17  ;;  %1807 = vmatpush.msra.mxu0 %v727_v15 }
  0xc6   : > { %v968_v19 = vpop.f32.mrf.mxu2  ;;  %v3147_v20 = vpop.f32.mrf.mxu0 }
  0xc7   : > { %v3151_v22 = vadd.f32 %v3082_v45, %v968_v19  ;;  %v376_v19 = vld [vmem:[%s2738_s22 + $0x638] sm:$0xff] }
  0xc8   : > { %v3153_v23 = vpop.f32.mrf.mxu1  ;;  %v992_v24 = vpop.f32.mrf.mxu3 }
  0xc9   : > { %v3158_v27 = vadd.f32 %v3082_v45, %v992_v24  ;;  %1395 = vmatmul.f32.gmra.mxu0 %v324_v21 }
  0xcb   : > { %1059 = vmatmul.f32.gmra.mxu1 %v334_v25  ;;  %1172 = vmatmul.f32.gmra.mxu2 %v335_v26  ;;  %v386_v26 = vld [vmem:[%s2738_s22 + $0x688] sm:$0xff] }
  0xcd   : > { %1285 = vmatmul.f32.gmra.mxu3 %v336_v28  ;;  %v387_v28 = vld [vmem:[%s2738_s22 + $0x690] sm:$0xff] }
  0xce   : > { %v971_v31 = vpop.f32.mrf.mxu2  ;;  %v3167_v32 = vpop.f32.mrf.mxu0 }
  0xcf   : > { %v3171_v34 = vadd.f32 %v3082_v45, %v971_v31  ;;  %v912_v31 = vadd.f32 %v3082_v45, %v3087_v48 }
  0xd0   : > { %v3176_v36 = vpop.f32.mrf.mxu1  ;;  %v995_v37 = vpop.f32.mrf.mxu3 }
  0xd1   : > { %v3181_v41 = vadd.f32 %v3082_v45, %v995_v37  ;;  %1398 = vmatmul.f32.gmra.mxu0 %v337_v33  ;;  %v694_v33 = vld [vmem:[%s4142_s1 + $0x328] sm:$0xff] }
  0xd2   : > { %1582 = vmatpush.msra.mxu2 %v694_v33  ;;  %v710_v37 = vld [vmem:[%s4142_s1 + $0x3a8] sm:$0xff] }
  0xd3   : > { %1062 = vmatmul.f32.gmra.mxu1 %v347_v38  ;;  %1175 = vmatmul.f32.gmra.mxu2 %v348_v39 }
  0xd4   : > { %1695 = vmatpush.msra.mxu3 %v710_v37 }
  0xd5   : > { %1288 = vmatmul.f32.gmra.mxu3 %v349_v42  ;;  %v389_v42 = vld [vmem:[%s2738_s22 + $0x6a0] sm:$0xff] }
  0xd6   : > { %v974_v44 = vpop.f32.mrf.mxu2  ;;  %v3187_v46 = vpop.f32.mrf.mxu0 }
  0xd7   : > { %v3191_v49 = vadd.f32 %v3082_v45, %v974_v44 }
  0xd8   : > { %v3193_v51 = vpop.f32.mrf.mxu1  ;;  %v998_v53 = vpop.f32.mrf.mxu3 }
  0xd9   : > { %v3198_v57 = vadd.f32 %v3082_v45, %v998_v53  ;;  %1401 = vmatmul.f32.gmra.mxu0 %v350_v47  ;;  %v399_v53 = vld [vmem:[%s2738_s22 + $0x6f0] sm:$0xff] }
  0xdb   : > { %1065 = vmatmul.f32.gmra.mxu1 %v360_v54  ;;  %1178 = vmatmul.f32.gmra.mxu2 %v361_v55  ;;  %v400_v54 = vld [vmem:[%s2738_s22 + $0x6f8] sm:$0xff] }
  0xdd   : > { %1291 = vmatmul.f32.gmra.mxu3 %v362_v58  ;;  %v401_v58 = vld [vmem:[%s2738_s22 + $0x700] sm:$0xff] }
  0xde   : > { %v977_v0 = vpop.f32.mrf.mxu2  ;;  %v3207_v1 = vpop.f32.mrf.mxu0 }
  0xdf   : > { %v3211_v4 = vadd.f32 %v3082_v45, %v977_v0 }
  0xe0   : > { %v3216_v6 = vpop.f32.mrf.mxu1  ;;  %v1001_v7 = vpop.f32.mrf.mxu3 }
  0xe1   : > { %v3221_v13 = vadd.f32 %v3082_v45, %v1001_v7  ;;  %1404 = vmatmul.f32.gmra.mxu0 %v363_v2  ;;  %v726_v2 = vld [vmem:[%s4142_s1 + $0x428] sm:$0xff] }
  0xe2   : > { %1808 = vmatpush.msra.mxu0 %v726_v2  ;;  %v428_v2 = vld [vmem:[%s2738_s22 + $0x7d8] sm:$0xff] }
  0xe3   : > { %1068 = vmatmul.f32.gmra.mxu1 %v373_v9  ;;  %1181 = vmatmul.f32.gmra.mxu2 %v374_v11  ;;  %v402_v9 = vld [vmem:[%s2738_s22 + $0x708] sm:$0xff] }
  0xe5   : > { %1294 = vmatmul.f32.gmra.mxu3 %v375_v14 }
  0xe6   : > { %v980_v17 = vpop.f32.mrf.mxu2  ;;  %v3227_v18 = vpop.f32.mrf.mxu0 }
  0xe7   : > { %v3231_v21 = vadd.f32 %v3082_v45, %v980_v17  ;;  %v412_v17 = vld [vmem:[%s2738_s22 + $0x758] sm:$0xff] }
  0xe8   : > { %v1004_v24 = vpop.f32.mrf.mxu3  ;;  %v1024_v25 = vpop.f32.mrf.mxu1 }
  0xe9   : > { %v3236_v29 = vadd.f32 %v3082_v45, %v1004_v24  ;;  %1407 = vmatmul.f32.gmra.mxu0 %v376_v19  ;;  %v1025_v35 = vadd.f32 %v1024_v25, %v912_v31  ;;  %v414_v24 = vld [vmem:[%s2738_s22 + $0x768] sm:$0xff]  ;;  %v918_v25 = vadd.f32 %v3082_v45, %v3127_v8  ;;  %v709_v31 = vld [vmem:[%s4142_s1 + $0x3a0] sm:$0xff] }
  0xea   : > { %1696 = vmatpush.msra.mxu3 %v709_v31 }
  0xeb   : > { %1071 = vmatmul.f32.gmra.mxu1 %v386_v26  ;;  %1184 = vmatmul.f32.gmra.mxu2 %v387_v28  ;;  %v693_v28 = vld [vmem:[%s4142_s1 + $0x320] sm:$0xff] }
  0xec   : > { %1583 = vmatpush.msra.mxu2 %v693_v28 }
  0xed   : > { %1297 = vmatmul.f32.gmra.mxu3 %v388_v30 }
  0xee   : > { %v1137_v38 = vpop.f32.mrf.mxu2  ;;  %v1363_v39 = vpop.f32.mrf.mxu0 }
  0xef   : > { %v1138_v48 = vadd.f32 %v1137_v38, %v1025_v35  ;;  %v415_v35 = vld [vmem:[%s2738_s22 + $0x770] sm:$0xff]  ;;  %v677_v38 = vld [vmem:[%s4142_s1 + $0x2a0] sm:$0xff] }
  0xf0   : > { %v1027_v44 = vpop.f32.mrf.mxu1  ;;  %v1250_v47 = vpop.f32.mrf.mxu3  ;;  %1470 = vmatpush.msra.mxu1 %v677_v38  ;;  %v452_v38 = vld [vmem:[%s2738_s22 + $0x898] sm:$0xff] }
  0xf1   : > { %v1251_v55 = vadd.f32 %v1250_v47, %v1138_v48  ;;  %1410 = vmatmul.f32.gmra.mxu0 %v389_v42  ;;  %v1028_v0 = vadd.f32 %v1027_v44, %v915_v59  ;;  %v425_v48 = vld [vmem:[%s2738_s22 + $0x7c0] sm:$0xff]  ;;  %v427_v47 = vld [vmem:[%s2738_s22 + $0x7d0] sm:$0xff] }
  0xf3   : > { %v3256_v61 = vadd.f32 %v1363_v39, %v1251_v55  ;;  %1074 = vmatmul.f32.gmra.mxu1 %v399_v53  ;;  %1187 = vmatmul.f32.gmra.mxu2 %v400_v54  ;;  %v921_v53 = vadd.f32 %v3082_v45, %v3147_v20  ;;  %v439_v20 = vld [vmem:[%s2738_s22 + $0x830] sm:$0xff] }
  0xf5   : > { %1300 = vmatmul.f32.gmra.mxu3 %v401_v58  ;;  %v725_v58 = vld [vmem:[%s4142_s1 + $0x420] sm:$0xff] }
  0xf6   : > { %v1140_v5 = vpop.f32.mrf.mxu2  ;;  %v1366_v7 = vpop.f32.mrf.mxu0  ;;  %1809 = vmatpush.msra.mxu0 %v725_v58  ;;  %v454_v58 = vld [vmem:[%s2738_s22 + $0x8a8] sm:$0xff] }
  0xf7   : > { %v1141_v11 = vadd.f32 %v1140_v5, %v1028_v0 }
  0xf8   : > { %v1030_v14 = vpop.f32.mrf.mxu1  ;;  %v1253_v15 = vpop.f32.mrf.mxu3 }
  0xf9   : > { %v1254_v19 = vadd.f32 %v1253_v15, %v1141_v11  ;;  %1413 = vmatmul.f32.gmra.mxu0 %v402_v9  ;;  %v1031_v30 = vadd.f32 %v1030_v14, %v918_v25  ;;  %v438_v11 = vld [vmem:[%s2738_s22 + $0x828] sm:$0xff]  ;;  %v440_v15 = vld [vmem:[%s2738_s22 + $0x838] sm:$0xff] }
  0xfa   : > { %v708_v25 = vld [vmem:[%s4142_s1 + $0x398] sm:$0xff] }
  0xfb   : > { %v3267_v26 = vadd.f32 %v1366_v7, %v1254_v19  ;;  %1077 = vmatmul.f32.gmra.mxu1 %v412_v17  ;;  %1190 = vmatmul.f32.gmra.mxu2 %v413_v60  ;;  %v924_v17 = vadd.f32 %v3082_v45, %v3167_v32  ;;  %v692_v19 = vld [vmem:[%s4142_s1 + $0x318] sm:$0xff] }
  0xfc   : > { %1584 = vmatpush.msra.mxu2 %v692_v19  ;;  %1697 = vmatpush.msra.mxu3 %v708_v25 }
  0xfd   : > { %1303 = vmatmul.f32.gmra.mxu3 %v414_v24 }
  0xfe   : > { %v1143_v33 = vpop.f32.mrf.mxu2  ;;  %v1369_v8 = vpop.f32.mrf.mxu0 }
  0xff   : > { %v1144_v37 = vadd.f32 %v1143_v33, %v1031_v30  ;;  %v441_v30 = vld [vmem:[%s2738_s22 + $0x840] sm:$0xff]  ;;  %v676_v33 = vld [vmem:[%s4142_s1 + $0x298] sm:$0xff] }
 0x100   : > { %v1033_v39 = vpop.f32.mrf.mxu1  ;;  %v1256_v42 = vpop.f32.mrf.mxu3  ;;  %1471 = vmatpush.msra.mxu1 %v676_v33  ;;  %v478_v33 = vld [vmem:[%s2738_s22 + $0x968] sm:$0xff] }
 0x101   : > { %v1257_v44 = vadd.f32 %v1256_v42, %v1144_v37  ;;  %1416 = vmatmul.f32.gmra.mxu0 %v415_v35  ;;  %v1034_v55 = vadd.f32 %v1033_v39, %v921_v53  ;;  %v451_v37 = vld [vmem:[%s2738_s22 + $0x890] sm:$0xff]  ;;  %v453_v42 = vld [vmem:[%s2738_s22 + $0x8a0] sm:$0xff] }
 0x103   : > { %v3284_v54 = vadd.f32 %v1369_v8, %v1257_v44  ;;  %1080 = vmatmul.f32.gmra.mxu1 %v425_v48  ;;  %1193 = vmatmul.f32.gmra.mxu2 %v426_v43  ;;  %v927_v48 = vadd.f32 %v3082_v45, %v3187_v46  ;;  %v465_v46 = vld [vmem:[%s2738_s22 + $0x900] sm:$0xff] }
 0x105   : > { %1306 = vmatmul.f32.gmra.mxu3 %v427_v47  ;;  %v724_v47 = vld [vmem:[%s4142_s1 + $0x418] sm:$0xff] }
 0x106   : > { %v1146_v59 = vpop.f32.mrf.mxu2  ;;  %v1372_v0 = vpop.f32.mrf.mxu0  ;;  %1810 = vmatpush.msra.mxu0 %v724_v47  ;;  %v480_v47 = vld [vmem:[%s2738_s22 + $0x978] sm:$0xff] }
 0x107   : > { %v1147_v5 = vadd.f32 %v1146_v59, %v1034_v55 }
 0x108   : > { %v1036_v7 = vpop.f32.mrf.mxu1  ;;  %v1259_v9 = vpop.f32.mrf.mxu3 }
 0x109   : > { %v1260_v14 = vadd.f32 %v1259_v9, %v1147_v5  ;;  %1419 = vmatmul.f32.gmra.mxu0 %v428_v2  ;;  %v1037_v24 = vadd.f32 %v1036_v7, %v924_v17  ;;  %v464_v5 = vld [vmem:[%s2738_s22 + $0x8f8] sm:$0xff]  ;;  %v466_v9 = vld [vmem:[%s2738_s22 + $0x908] sm:$0xff]  ;;  %v707_v17 = vld [vmem:[%s4142_s1 + $0x390] sm:$0xff] }
 0x10a   : > { %1698 = vmatpush.msra.mxu3 %v707_v17 }
 0x10b   : > { %v3295_v60 = vadd.f32 %v1372_v0, %v1260_v14  ;;  %1083 = vmatmul.f32.gmra.mxu1 %v438_v11  ;;  %1196 = vmatmul.f32.gmra.mxu2 %v439_v20  ;;  %v930_v11 = vadd.f32 %v3082_v45, %v3207_v1  ;;  %v691_v14 = vld [vmem:[%s4142_s1 + $0x310] sm:$0xff] }
 0x10c   : > { %1585 = vmatpush.msra.mxu2 %v691_v14 }
 0x10d   : > { %1309 = vmatmul.f32.gmra.mxu3 %v440_v15 }
 0x10e   : > { %v1149_v28 = vpop.f32.mrf.mxu2  ;;  %v1375_v32 = vpop.f32.mrf.mxu0 }
 0x10f   : > { %v1150_v31 = vadd.f32 %v1149_v28, %v1037_v24  ;;  %v467_v24 = vld [vmem:[%s2738_s22 + $0x910] sm:$0xff] }
 0x110   : > { %v1039_v8 = vpop.f32.mrf.mxu1  ;;  %v1262_v35 = vpop.f32.mrf.mxu3  ;;  %v675_v28 = vld [vmem:[%s4142_s1 + $0x290] sm:$0xff] }
 0x111   : > { %v1263_v39 = vadd.f32 %v1262_v35, %v1150_v31  ;;  %1422 = vmatmul.f32.gmra.mxu0 %v441_v30  ;;  %v1040_v44 = vadd.f32 %v1039_v8, %v927_v48  ;;  %v477_v31 = vld [vmem:[%s2738_s22 + $0x960] sm:$0xff]  ;;  %1472 = vmatpush.msra.mxu1 %v675_v28  ;;  %v479_v35 = vld [vmem:[%s2738_s22 + $0x970] sm:$0xff]  ;;  %v504_v28 = vld [vmem:[%s2738_s22 + $0xa38] sm:$0xff] }
 0x113   : > { %v3312_v43 = vadd.f32 %v1375_v32, %v1263_v39  ;;  %1086 = vmatmul.f32.gmra.mxu1 %v451_v37  ;;  %1199 = vmatmul.f32.gmra.mxu2 %v452_v38  ;;  %v933_v37 = vadd.f32 %v3082_v45, %v3227_v18  ;;  %v491_v18 = vld [vmem:[%s2738_s22 + $0x9d0] sm:$0xff] }
 0x115   : > { %1312 = vmatmul.f32.gmra.mxu3 %v453_v42  ;;  %v723_v42 = vld [vmem:[%s4142_s1 + $0x410] sm:$0xff] }
 0x116   : > { %v1152_v53 = vpop.f32.mrf.mxu2  ;;  %v1378_v55 = vpop.f32.mrf.mxu0  ;;  %1811 = vmatpush.msra.mxu0 %v723_v42  ;;  %v506_v42 = vld [vmem:[%s2738_s22 + $0xa48] sm:$0xff] }
 0x117   : > { %v1153_v59 = vadd.f32 %v1152_v53, %v1040_v44 }
 0x118   : > { %v1042_v0 = vpop.f32.mrf.mxu1  ;;  %v1265_v2 = vpop.f32.mrf.mxu3 }
 0x119   : > { %v1266_v7 = vadd.f32 %v1265_v2, %v1153_v59  ;;  %1425 = vmatmul.f32.gmra.mxu0 %v454_v58  ;;  %v1043_v15 = vadd.f32 %v1042_v0, %v930_v11  ;;  %v490_v59 = vld [vmem:[%s2738_s22 + $0x9c8] sm:$0xff]  ;;  %v492_v2 = vld [vmem:[%s2738_s22 + $0x9d8] sm:$0xff] }
 0x11a   : > { %v706_v11 = vld [vmem:[%s4142_s1 + $0x388] sm:$0xff] }
 0x11b   : > { %v3323_v20 = vadd.f32 %v1378_v55, %v1266_v7  ;;  %1089 = vmatmul.f32.gmra.mxu1 %v464_v5  ;;  %1202 = vmatmul.f32.gmra.mxu2 %v465_v46  ;;  %v936_v5 = vadd.f32 %v3082_v45, %v3071_v40  ;;  %v690_v7 = vld [vmem:[%s4142_s1 + $0x308] sm:$0xff] }
 0x11c   : > { %1586 = vmatpush.msra.mxu2 %v690_v7  ;;  %1699 = vmatpush.msra.mxu3 %v706_v11 }
 0x11d   : > { %1315 = vmatmul.f32.gmra.mxu3 %v466_v9 }
 0x11e   : > { %v1155_v19 = vpop.f32.mrf.mxu2  ;;  %v1381_v1 = vpop.f32.mrf.mxu0 }
 0x11f   : > { %v1156_v25 = vadd.f32 %v1155_v19, %v1043_v15  ;;  %v493_v15 = vld [vmem:[%s2738_s22 + $0x9e0] sm:$0xff]  ;;  %v674_v19 = vld [vmem:[%s4142_s1 + $0x288] sm:$0xff] }
 0x120   : > { %v1045_v32 = vpop.f32.mrf.mxu1  ;;  %v1268_v30 = vpop.f32.mrf.mxu3  ;;  %1473 = vmatpush.msra.mxu1 %v674_v19  ;;  %v530_v19 = vld [vmem:[%s2738_s22 + $0xb08] sm:$0xff] }
 0x121   : > { %v1269_v8 = vadd.f32 %v1268_v30, %v1156_v25  ;;  %1428 = vmatmul.f32.gmra.mxu0 %v467_v24  ;;  %v1046_v39 = vadd.f32 %v1045_v32, %v933_v37  ;;  %v503_v25 = vld [vmem:[%s2738_s22 + $0xa30] sm:$0xff]  ;;  %v505_v30 = vld [vmem:[%s2738_s22 + $0xa40] sm:$0xff] }
 0x123   : > { %v3340_v38 = vadd.f32 %v1381_v1, %v1269_v8  ;;  %1092 = vmatmul.f32.gmra.mxu1 %v477_v31  ;;  %1205 = vmatmul.f32.gmra.mxu2 %v478_v33  ;;  %v939_v31 = vadd.f32 %v3082_v45, %v3096_v52  ;;  %v517_v52 = vld [vmem:[%s2738_s22 + $0xaa0] sm:$0xff] }
 0x125   : > { %1318 = vmatmul.f32.gmra.mxu3 %v479_v35  ;;  %v722_v35 = vld [vmem:[%s4142_s1 + $0x408] sm:$0xff] }
 0x126   : > { %v1158_v48 = vpop.f32.mrf.mxu2  ;;  %v1384_v44 = vpop.f32.mrf.mxu0  ;;  %1812 = vmatpush.msra.mxu0 %v722_v35  ;;  %v532_v35 = vld [vmem:[%s2738_s22 + $0xb18] sm:$0xff] }
 0x127   : > { %v1159_v53 = vadd.f32 %v1158_v48, %v1046_v39 }
 0x128   : > { %v1048_v55 = vpop.f32.mrf.mxu1  ;;  %v1271_v58 = vpop.f32.mrf.mxu3 }
 0x129   : > { %v1272_v0 = vadd.f32 %v1271_v58, %v1159_v53  ;;  %1431 = vmatmul.f32.gmra.mxu0 %v480_v47  ;;  %v1049_v9 = vadd.f32 %v1048_v55, %v936_v5  ;;  %v516_v53 = vld [vmem:[%s2738_s22 + $0xa98] sm:$0xff]  ;;  %v518_v58 = vld [vmem:[%s2738_s22 + $0xaa8] sm:$0xff]  ;;  %v705_v5 = vld [vmem:[%s4142_s1 + $0x380] sm:$0xff] }
 0x12a   : > { %1700 = vmatpush.msra.mxu3 %v705_v5 }
 0x12b   : > { %v3351_v46 = vadd.f32 %v1384_v44, %v1272_v0  ;;  %1095 = vmatmul.f32.gmra.mxu1 %v490_v59  ;;  %1208 = vmatmul.f32.gmra.mxu2 %v491_v18  ;;  %v942_v59 = vadd.f32 %v3082_v45, %v3113_v63  ;;  %v689_v0 = vld [vmem:[%s4142_s1 + $0x300] sm:$0xff] }
 0x12c   : > { %1587 = vmatpush.msra.mxu2 %v689_v0 }
 0x12d   : > { %1321 = vmatmul.f32.gmra.mxu3 %v492_v2 }
 0x12e   : > { %v1161_v14 = vpop.f32.mrf.mxu2  ;;  %v1387_v40 = vpop.f32.mrf.mxu0 }
 0x12f   : > { %v1162_v17 = vadd.f32 %v1161_v14, %v1049_v9  ;;  %v519_v9 = vld [vmem:[%s2738_s22 + $0xab0] sm:$0xff]  ;;  %v673_v14 = vld [vmem:[%s4142_s1 + $0x280] sm:$0xff] }
 0x130   : > { %v1051_v1 = vpop.f32.mrf.mxu1  ;;  %v1274_v24 = vpop.f32.mrf.mxu3  ;;  %1474 = vmatpush.msra.mxu1 %v673_v14  ;;  %v556_v14 = vld [vmem:[%s2738_s22 + $0xbd8] sm:$0xff] }
 0x131   : > { %v1275_v32 = vadd.f32 %v1274_v24, %v1162_v17  ;;  %1434 = vmatmul.f32.gmra.mxu0 %v493_v15  ;;  %v1052_v8 = vadd.f32 %v1051_v1, %v939_v31  ;;  %v529_v17 = vld [vmem:[%s2738_s22 + $0xb00] sm:$0xff]  ;;  %v531_v24 = vld [vmem:[%s2738_s22 + $0xb10] sm:$0xff] }
 0x133   : > { %v3368_v33 = vadd.f32 %v1387_v40, %v1275_v32  ;;  %1098 = vmatmul.f32.gmra.mxu1 %v503_v25  ;;  %1211 = vmatmul.f32.gmra.mxu2 %v504_v28  ;;  %v945_v25 = vadd.f32 %v3082_v45, %v3136_v12  ;;  %v543_v12 = vld [vmem:[%s2738_s22 + $0xb70] sm:$0xff] }
 0x135   : > { %1324 = vmatmul.f32.gmra.mxu3 %v505_v30  ;;  %v721_v30 = vld [vmem:[%s4142_s1 + $0x400] sm:$0xff] }
 0x136   : > { %v1164_v37 = vpop.f32.mrf.mxu2  ;;  %v1390_v39 = vpop.f32.mrf.mxu0  ;;  %1813 = vmatpush.msra.mxu0 %v721_v30  ;;  %v558_v30 = vld [vmem:[%s2738_s22 + $0xbe8] sm:$0xff] }
 0x137   : > { %v1165_v48 = vadd.f32 %v1164_v37, %v1052_v8 }
 0x138   : > { %v1054_v44 = vpop.f32.mrf.mxu1  ;;  %v1277_v47 = vpop.f32.mrf.mxu3 }
 0x139   : > { %v1278_v55 = vadd.f32 %v1277_v47, %v1165_v48  ;;  %1437 = vmatmul.f32.gmra.mxu0 %v506_v42  ;;  %v1055_v2 = vadd.f32 %v1054_v44, %v942_v59  ;;  %v542_v48 = vld [vmem:[%s2738_s22 + $0xb68] sm:$0xff]  ;;  %v544_v47 = vld [vmem:[%s2738_s22 + $0xb78] sm:$0xff] }
 0x13a   : > { %v784_v59 = vld [vmem:[%s4142_s1 + $0x5f8] sm:$0xff] }
 0x13b   : > { %v3379_v18 = vadd.f32 %v1390_v39, %v1278_v55  ;;  %1101 = vmatmul.f32.gmra.mxu1 %v516_v53  ;;  %1214 = vmatmul.f32.gmra.mxu2 %v517_v52  ;;  %v948_v53 = vadd.f32 %v3082_v45, %v3153_v23  ;;  %v768_v55 = vld [vmem:[%s4142_s1 + $0x578] sm:$0xff] }
 0x13c   : > { %2024 = vmatpush.msrb.mxu2 %v768_v55  ;;  %2137 = vmatpush.msrb.mxu3 %v784_v59 }
 0x13d   : > { %1327 = vmatmul.f32.gmra.mxu3 %v518_v58 }
 0x13e   : > { %v1167_v7 = vpop.f32.mrf.mxu2  ;;  %v1393_v63 = vpop.f32.mrf.mxu0 }
 0x13f   : > { %v1168_v11 = vadd.f32 %v1167_v7, %v1055_v2  ;;  %v545_v2 = vld [vmem:[%s2738_s22 + $0xb80] sm:$0xff]  ;;  %v752_v7 = vld [vmem:[%s4142_s1 + $0x4f8] sm:$0xff] }
 0x140   : > { %v1057_v40 = vpop.f32.mrf.mxu1  ;;  %v1280_v15 = vpop.f32.mrf.mxu3  ;;  %1911 = vmatpush.msrb.mxu1 %v752_v7  ;;  %v582_v7 = vld [vmem:[%s2738_s22 + $0xca8] sm:$0xff] }
 0x141   : > { %v1281_v1 = vadd.f32 %v1280_v15, %v1168_v11  ;;  %1440 = vmatmul.f32.gmra.mxu0 %v519_v9  ;;  %v1058_v32 = vadd.f32 %v1057_v40, %v945_v25  ;;  %v555_v11 = vld [vmem:[%s2738_s22 + $0xbd0] sm:$0xff]  ;;  %v557_v15 = vld [vmem:[%s2738_s22 + $0xbe0] sm:$0xff] }
 0x143   : > { %v3396_v28 = vadd.f32 %v1393_v63, %v1281_v1  ;;  %1104 = vmatmul.f32.gmra.mxu1 %v529_v17  ;;  %1217 = vmatmul.f32.gmra.mxu2 %v530_v19  ;;  %v951_v17 = vadd.f32 %v3082_v45, %v3176_v36  ;;  %v569_v36 = vld [vmem:[%s2738_s22 + $0xc40] sm:$0xff] }
 0x145   : > { %1330 = vmatmul.f32.gmra.mxu3 %v531_v24  ;;  %v792_v24 = vld [vmem:[%s4142_s1 + $0x638] sm:$0xff] }
 0x146   : > { %v1170_v31 = vpop.f32.mrf.mxu2  ;;  %v1396_v8 = vpop.f32.mrf.mxu0  ;;  %2258 = vmatpush.msrb.mxu0 %v792_v24 }
 0x147   : > { %v1171_v37 = vadd.f32 %v1170_v31, %v1058_v32 }
 0x148   : > { %v1060_v39 = vpop.f32.mrf.mxu1  ;;  %v1283_v42 = vpop.f32.mrf.mxu3 }
 0x149   : > { %v1284_v44 = vadd.f32 %v1283_v42, %v1171_v37  ;;  %1443 = vmatmul.f32.gmra.mxu0 %v532_v35  ;;  %v1061_v58 = vadd.f32 %v1060_v39, %v948_v53  ;;  %v568_v37 = vld [vmem:[%s2738_s22 + $0xc38] sm:$0xff]  ;;  %v570_v42 = vld [vmem:[%s2738_s22 + $0xc48] sm:$0xff]  ;;  %v783_v53 = vld [vmem:[%s4142_s1 + $0x5f0] sm:$0xff] }
 0x14a   : > { %2138 = vmatpush.msrb.mxu3 %v783_v53 }
 0x14b   : > { %v3407_v52 = vadd.f32 %v1396_v8, %v1284_v44  ;;  %1107 = vmatmul.f32.gmra.mxu1 %v542_v48  ;;  %1220 = vmatmul.f32.gmra.mxu2 %v543_v12  ;;  %v954_v48 = vadd.f32 %v3082_v45, %v3193_v51  ;;  %v767_v44 = vld [vmem:[%s4142_s1 + $0x570] sm:$0xff] }
 0x14c   : > { %2025 = vmatpush.msrb.mxu2 %v767_v44 }
 0x14d   : > { %1333 = vmatmul.f32.gmra.mxu3 %v544_v47 }
 0x14e   : > { %v1173_v0 = vpop.f32.mrf.mxu2  ;;  %v1399_v23 = vpop.f32.mrf.mxu0 }
 0x14f   : > { %v1174_v5 = vadd.f32 %v1173_v0, %v1061_v58  ;;  %v571_v58 = vld [vmem:[%s2738_s22 + $0xc50] sm:$0xff] }
 0x150   : > { %v1063_v63 = vpop.f32.mrf.mxu1  ;;  %v1286_v9 = vpop.f32.mrf.mxu3  ;;  %v751_v0 = vld [vmem:[%s4142_s1 + $0x4f0] sm:$0xff] }
 0x151   : > { %v1287_v40 = vadd.f32 %v1286_v9, %v1174_v5  ;;  %1446 = vmatmul.f32.gmra.mxu0 %v545_v2  ;;  %v1064_v1 = vadd.f32 %v1063_v63, %v951_v17  ;;  %v581_v5 = vld [vmem:[%s2738_s22 + $0xca0] sm:$0xff]  ;;  %1912 = vmatpush.msrb.mxu1 %v751_v0  ;;  %v583_v9 = vld [vmem:[%s2738_s22 + $0xcb0] sm:$0xff] }
 0x153   : > { %v3424_v19 = vadd.f32 %v1399_v23, %v1287_v40  ;;  %1110 = vmatmul.f32.gmra.mxu1 %v555_v11  ;;  %1223 = vmatmul.f32.gmra.mxu2 %v556_v14  ;;  %v957_v11 = vadd.f32 %v3082_v45, %v3216_v6  ;;  %v766_v6 = vld [vmem:[%s4142_s1 + $0x568] sm:$0xff] }
 0x154   : > { %2026 = vmatpush.msrb.mxu2 %v766_v6 }
 0x155   : > { %1336 = vmatmul.f32.gmra.mxu3 %v557_v15 }
 0x156   : > { %v1176_v25 = vpop.f32.mrf.mxu2  ;;  %v1402_v32 = vpop.f32.mrf.mxu0 }
 0x157   : > { %v1177_v31 = vadd.f32 %v1176_v25, %v1064_v1  ;;  %v584_v1 = vld [vmem:[%s2738_s22 + $0xcb8] sm:$0xff] }
 0x158   : > { %v1066_v8 = vpop.f32.mrf.mxu1  ;;  %v1289_v35 = vpop.f32.mrf.mxu3 }
 0x159   : > { %v1290_v39 = vadd.f32 %v1289_v35, %v1177_v31  ;;  %1449 = vmatmul.f32.gmra.mxu0 %v558_v30  ;;  %v1067_v47 = vadd.f32 %v1066_v8, %v954_v48  ;;  %v182_v30 = vld [vmem:[%s2738_s22 + $0x28] sm:$0xff]  ;;  %v183_v31 = vld [vmem:[%s2738_s22 + $0x30] sm:$0xff]  ;;  %v184_v35 = vld [vmem:[%s2738_s22 + $0x38] sm:$0xff] }
 0x15a   : > { %v185_v48 = vld [vmem:[%s2738_s22 + $0x40] sm:$0xff] }
 0x15b   : > { %v3435_v12 = vadd.f32 %v1402_v32, %v1290_v39  ;;  %1113 = vmatmul.f32.gmra.mxu1 %v568_v37  ;;  %1226 = vmatmul.f32.gmra.mxu2 %v569_v36  ;;  %v782_v36 = vld [vmem:[%s4142_s1 + $0x5e8] sm:$0xff] }
 0x15c   : > { %2139 = vmatpush.msrb.mxu3 %v782_v36 }
 0x15d   : > { %1339 = vmatmul.f32.gmra.mxu3 %v570_v42 }
 0x15e   : > { %v1179_v55 = vpop.f32.mrf.mxu2  ;;  %v1405_v51 = vpop.f32.mrf.mxu0 }
 0x15f   : > { %v1180_v59 = vadd.f32 %v1179_v55, %v1067_v47  ;;  %v750_v47 = vld [vmem:[%s4142_s1 + $0x4e8] sm:$0xff] }
 0x160   : > { %v1069_v23 = vpop.f32.mrf.mxu1  ;;  %v1292_v2 = vpop.f32.mrf.mxu3  ;;  %1913 = vmatpush.msrb.mxu1 %v750_v47 }
 0x161   : > { %v1293_v63 = vadd.f32 %v1292_v2, %v1180_v59  ;;  %1452 = vmatmul.f32.gmra.mxu0 %v571_v58  ;;  %v1070_v40 = vadd.f32 %v1069_v23, %v957_v11  ;;  %v197_v59 = vld [vmem:[%s2738_s22 + $0xa0] sm:$0xff]  ;;  %v791_v2 = vld [vmem:[%s4142_s1 + $0x630] sm:$0xff] }
 0x162   : > { %2259 = vmatpush.msrb.mxu0 %v791_v2  ;;  %v234_v2 = vld [vmem:[%s2738_s22 + $0x1c8] sm:$0xff] }
 0x163   : > { %v3452_v14 = vadd.f32 %v1405_v51, %v1293_v63  ;;  %1116 = vmatmul.f32.gmra.mxu1 %v581_v5  ;;  %1229 = vmatmul.f32.gmra.mxu2 %v582_v7  ;;  %v195_v51 = vld [vmem:[%s2738_s22 + $0x90] sm:$0xff]  ;;  %v198_v63 = vld [vmem:[%s2738_s22 + $0xa8] sm:$0xff] }
 0x165   : > { %1342 = vmatmul.f32.gmra.mxu3 %v583_v9 }
 0x166   : > { %v1182_v15 = vpop.f32.mrf.mxu2  ;;  %v1408_v17 = vpop.f32.mrf.mxu0 }
 0x167   : > { %v1183_v24 = vadd.f32 %v1182_v15, %v1070_v40  ;;  %v208_v15 = vld [vmem:[%s2738_s22 + $0xf8] sm:$0xff] }
 0x168   : > { %v1072_v25 = vpop.f32.mrf.mxu1  ;;  %v1295_v32 = vpop.f32.mrf.mxu3 }
 0x169   : > { %v1296_v8 = vadd.f32 %v1295_v32, %v1183_v24  ;;  %1455 = vmatmul.f32.gmra.mxu0 %v584_v1  ;;  %v1073_v37 = vadd.f32 %v1072_v25, %v3091_v50  ;;  %v196_v50 = vld [vmem:[%s2738_s22 + $0x98] sm:$0xff]  ;;  %v210_v24 = vld [vmem:[%s2738_s22 + $0x108] sm:$0xff] }
 0x16b   : > { %v3458_v45 = vadd.f32 %v1408_v17, %v1296_v8  ;;  %1475 = vmatmul.f32.vlgmr.msra.gmra.mxu1 %v182_v30  ;;  %1588 = vmatmul.f32.vlgmr.msra.gmra.mxu2 %v183_v31  ;;  %v209_v17 = vld [vmem:[%s2738_s22 + $0x100] sm:$0xff] }
 0x16c   : > { %v781_v30 = vld [vmem:[%s4142_s1 + $0x5e0] sm:$0xff] }
 0x16d   : > { %1701 = vmatmul.f32.vlgmr.msra.gmra.mxu3 %v184_v35  ;;  %v211_v35 = vld [vmem:[%s2738_s22 + $0x110] sm:$0xff] }
 0x16e   : > { %v1185_v39 = vpop.f32.mrf.mxu2  ;;  %v1411_v42 = vpop.f32.mrf.mxu0  ;;  %2140 = vmatpush.msrb.mxu3 %v781_v30 }
 0x16f   : > { %v1186_v44 = vadd.f32 %v1185_v39, %v1073_v37  ;;  %v749_v37 = vld [vmem:[%s4142_s1 + $0x4e0] sm:$0xff] }
 0x170   : > { %v1075_v53 = vpop.f32.mrf.mxu1  ;;  %v1298_v55 = vpop.f32.mrf.mxu3  ;;  %1914 = vmatpush.msrb.mxu1 %v749_v37 }
 0x171   : > { %v1299_v58 = vadd.f32 %v1298_v55, %v1186_v44  ;;  %1814 = vmatmul.f32.vlgmr.msra.gmra.mxu0 %v185_v48  ;;  %v1076_v23 = vadd.f32 %v1075_v53, %v3111_v62  ;;  %v765_v62 = vld [vmem:[%s4142_s1 + $0x560] sm:$0xff]  ;;  %v223_v44 = vld [vmem:[%s2738_s22 + $0x170] sm:$0xff] }
 0x172   : > { %2027 = vmatpush.msrb.mxu2 %v765_v62  ;;  %v748_v62 = vld [vmem:[%s4142_s1 + $0x4d8] sm:$0xff] }
 0x173   : > { %v3474_v0 = vadd.f32 %v1411_v42, %v1299_v58  ;;  %1478 = vmatmul.f32.gmra.mxu1 %v195_v51  ;;  %1591 = vmatmul.f32.gmra.mxu2 %v196_v50  ;;  %v221_v42 = vld [vmem:[%s2738_s22 + $0x160] sm:$0xff]  ;;  %v224_v50 = vld [vmem:[%s2738_s22 + $0x178] sm:$0xff] }
 0x174   : > { %1915 = vmatpush.msrb.mxu1 %v748_v62 }
 0x175   : > { %1704 = vmatmul.f32.gmra.mxu3 %v197_v59 }
 0x176   : > { %v1188_v5 = vpop.f32.mrf.mxu2  ;;  %v1414_v7 = vpop.f32.mrf.mxu0 }
 0x177   : > { %v1189_v9 = vadd.f32 %v1188_v5, %v1076_v23  ;;  %v235_v5 = vld [vmem:[%s2738_s22 + $0x1d0] sm:$0xff] }
 0x178   : > { %v1078_v11 = vpop.f32.mrf.mxu1  ;;  %v1301_v40 = vpop.f32.mrf.mxu3 }
 0x179   : > { %v1302_v1 = vadd.f32 %v1301_v40, %v1189_v9  ;;  %1817 = vmatmul.f32.gmra.mxu0 %v198_v63  ;;  %v1079_v32 = vadd.f32 %v1078_v11, %v3131_v10  ;;  %v222_v10 = vld [vmem:[%s2738_s22 + $0x168] sm:$0xff]  ;;  %v236_v63 = vld [vmem:[%s2738_s22 + $0x1d8] sm:$0xff] }
 0x17a   : > { %v780_v40 = vld [vmem:[%s4142_s1 + $0x5d8] sm:$0xff] }
 0x17b   : > { %v3484_v25 = vadd.f32 %v1414_v7, %v1302_v1  ;;  %1481 = vmatmul.f32.gmra.mxu1 %v208_v15  ;;  %1594 = vmatmul.f32.gmra.mxu2 %v209_v17  ;;  %v237_v1 = vld [vmem:[%s2738_s22 + $0x1e0] sm:$0xff] }
 0x17c   : > { %2141 = vmatpush.msrb.mxu3 %v780_v40 }
 0x17d   : > { %1707 = vmatmul.f32.gmra.mxu3 %v210_v24 }
 0x17e   : > { %v1191_v31 = vpop.f32.mrf.mxu2  ;;  %v1417_v8 = vpop.f32.mrf.mxu0 }
 0x17f   : > { %v1192_v6 = vadd.f32 %v1191_v31, %v1079_v32  ;;  %v247_v31 = vld [vmem:[%s2738_s22 + $0x230] sm:$0xff] }
 0x180   : > { %v1081_v36 = vpop.f32.mrf.mxu1  ;;  %v1304_v39 = vpop.f32.mrf.mxu3 }
 0x181   : > { %v1305_v48 = vadd.f32 %v1304_v39, %v1192_v6  ;;  %1820 = vmatmul.f32.gmra.mxu0 %v211_v35  ;;  %v1082_v53 = vadd.f32 %v1081_v36, %v3151_v22  ;;  %v764_v22 = vld [vmem:[%s4142_s1 + $0x558] sm:$0xff]  ;;  %v249_v35 = vld [vmem:[%s2738_s22 + $0x240] sm:$0xff]  ;;  %v790_v36 = vld [vmem:[%s4142_s1 + $0x628] sm:$0xff] }
 0x182   : > { %2028 = vmatpush.msrb.mxu2 %v764_v22  ;;  %2260 = vmatpush.msrb.mxu0 %v790_v36  ;;  %v286_v36 = vld [vmem:[%s2738_s22 + $0x368] sm:$0xff] }
 0x183   : > { %v3500_v47 = vadd.f32 %v1417_v8, %v1305_v48  ;;  %1484 = vmatmul.f32.gmra.mxu1 %v221_v42  ;;  %1597 = vmatmul.f32.gmra.mxu2 %v222_v10  ;;  %v250_v10 = vld [vmem:[%s2738_s22 + $0x248] sm:$0xff] }
 0x185   : > { %1710 = vmatmul.f32.gmra.mxu3 %v223_v44 }
 0x186   : > { %v1194_v55 = vpop.f32.mrf.mxu2  ;;  %v1420_v51 = vpop.f32.mrf.mxu0 }
 0x187   : > { %v1195_v58 = vadd.f32 %v1194_v55, %v1082_v53  ;;  %v260_v55 = vld [vmem:[%s2738_s22 + $0x298] sm:$0xff] }
 0x188   : > { %v1084_v59 = vpop.f32.mrf.mxu1  ;;  %v1307_v23 = vpop.f32.mrf.mxu3 }
 0x189   : > { %v1308_v7 = vadd.f32 %v1307_v23, %v1195_v58  ;;  %1823 = vmatmul.f32.gmra.mxu0 %v224_v50  ;;  %v1085_v11 = vadd.f32 %v1084_v59, %v3171_v34  ;;  %v248_v34 = vld [vmem:[%s2738_s22 + $0x238] sm:$0xff]  ;;  %v262_v58 = vld [vmem:[%s2738_s22 + $0x2a8] sm:$0xff] }
 0x18b   : > { %v3507_v9 = vadd.f32 %v1420_v51, %v1308_v7  ;;  %1487 = vmatmul.f32.gmra.mxu1 %v234_v2  ;;  %1600 = vmatmul.f32.gmra.mxu2 %v235_v5  ;;  %v261_v51 = vld [vmem:[%s2738_s22 + $0x2a0] sm:$0xff]  ;;  %v779_v2 = vld [vmem:[%s4142_s1 + $0x5d0] sm:$0xff] }
 0x18c   : > { %2142 = vmatpush.msrb.mxu3 %v779_v2 }
 0x18d   : > { %1713 = vmatmul.f32.gmra.mxu3 %v236_v63  ;;  %v263_v63 = vld [vmem:[%s2738_s22 + $0x2b0] sm:$0xff] }
 0x18e   : > { %v1197_v15 = vpop.f32.mrf.mxu2  ;;  %v1423_v17 = vpop.f32.mrf.mxu0 }
 0x18f   : > { %v1198_v24 = vadd.f32 %v1197_v15, %v1085_v11  ;;  %v747_v11 = vld [vmem:[%s4142_s1 + $0x4d0] sm:$0xff] }
 0x190   : > { %v1087_v32 = vpop.f32.mrf.mxu1  ;;  %v1310_v30 = vpop.f32.mrf.mxu3  ;;  %1916 = vmatpush.msrb.mxu1 %v747_v11 }
 0x191   : > { %v1311_v8 = vadd.f32 %v1310_v30, %v1198_v24  ;;  %1826 = vmatmul.f32.gmra.mxu0 %v237_v1  ;;  %v1088_v37 = vadd.f32 %v1087_v32, %v3191_v49  ;;  %v763_v49 = vld [vmem:[%s4142_s1 + $0x550] sm:$0xff] }
 0x192   : > { %2029 = vmatpush.msrb.mxu2 %v763_v49  ;;  %v275_v24 = vld [vmem:[%s2738_s22 + $0x310] sm:$0xff]  ;;  %v746_v49 = vld [vmem:[%s4142_s1 + $0x4c8] sm:$0xff] }
 0x193   : > { %v3523_v6 = vadd.f32 %v1423_v17, %v1311_v8  ;;  %1490 = vmatmul.f32.gmra.mxu1 %v247_v31  ;;  %1603 = vmatmul.f32.gmra.mxu2 %v248_v34  ;;  %v273_v17 = vld [vmem:[%s2738_s22 + $0x300] sm:$0xff]  ;;  %v276_v34 = vld [vmem:[%s2738_s22 + $0x318] sm:$0xff] }
 0x194   : > { %1917 = vmatpush.msrb.mxu1 %v746_v49 }
 0x195   : > { %1716 = vmatmul.f32.gmra.mxu3 %v249_v35 }
 0x196   : > { %v1200_v39 = vpop.f32.mrf.mxu2  ;;  %v1426_v42 = vpop.f32.mrf.mxu0 }
 0x197   : > { %v1201_v48 = vadd.f32 %v1200_v39, %v1088_v37  ;;  %v287_v39 = vld [vmem:[%s2738_s22 + $0x370] sm:$0xff] }
 0x198   : > { %v1090_v44 = vpop.f32.mrf.mxu1  ;;  %v1313_v53 = vpop.f32.mrf.mxu3 }
 0x199   : > { %v1314_v50 = vadd.f32 %v1313_v53, %v1201_v48  ;;  %1829 = vmatmul.f32.gmra.mxu0 %v250_v10  ;;  %v1091_v23 = vadd.f32 %v1090_v44, %v3211_v4  ;;  %v274_v4 = vld [vmem:[%s2738_s22 + $0x308] sm:$0xff]  ;;  %v288_v10 = vld [vmem:[%s2738_s22 + $0x378] sm:$0xff] }
 0x19a   : > { %v778_v53 = vld [vmem:[%s4142_s1 + $0x5c8] sm:$0xff] }
 0x19b   : > { %v3533_v59 = vadd.f32 %v1426_v42, %v1314_v50  ;;  %1493 = vmatmul.f32.gmra.mxu1 %v260_v55  ;;  %1606 = vmatmul.f32.gmra.mxu2 %v261_v51  ;;  %v289_v50 = vld [vmem:[%s2738_s22 + $0x380] sm:$0xff] }
 0x19c   : > { %2143 = vmatpush.msrb.mxu3 %v778_v53 }
 0x19d   : > { %1719 = vmatmul.f32.gmra.mxu3 %v262_v58 }
 0x19e   : > { %v1203_v5 = vpop.f32.mrf.mxu2  ;;  %v1429_v7 = vpop.f32.mrf.mxu0 }
 0x19f   : > { %v1204_v22 = vadd.f32 %v1203_v5, %v1091_v23  ;;  %v299_v5 = vld [vmem:[%s2738_s22 + $0x3d0] sm:$0xff] }
 0x1a0   : > { %v1093_v40 = vpop.f32.mrf.mxu1  ;;  %v1316_v15 = vpop.f32.mrf.mxu3 }
 0x1a1   : > { %v1317_v1 = vadd.f32 %v1316_v15, %v1204_v22  ;;  %1832 = vmatmul.f32.gmra.mxu0 %v263_v63  ;;  %v1094_v32 = vadd.f32 %v1093_v40, %v3231_v21  ;;  %v762_v21 = vld [vmem:[%s4142_s1 + $0x548] sm:$0xff]  ;;  %v301_v63 = vld [vmem:[%s2738_s22 + $0x3e0] sm:$0xff] }
 0x1a2   : > { %2030 = vmatpush.msrb.mxu2 %v762_v21  ;;  %v789_v40 = vld [vmem:[%s4142_s1 + $0x620] sm:$0xff] }
 0x1a3   : > { %v3549_v62 = vadd.f32 %v1429_v7, %v1317_v1  ;;  %1496 = vmatmul.f32.gmra.mxu1 %v273_v17  ;;  %1609 = vmatmul.f32.gmra.mxu2 %v274_v4  ;;  %v302_v4 = vld [vmem:[%s2738_s22 + $0x3e8] sm:$0xff] }
 0x1a4   : > { %2261 = vmatpush.msrb.mxu0 %v789_v40  ;;  %v338_v40 = vld [vmem:[%s2738_s22 + $0x508] sm:$0xff] }
 0x1a5   : > { %1722 = vmatmul.f32.gmra.mxu3 %v275_v24 }
 0x1a6   : > { %v1206_v30 = vpop.f32.mrf.mxu2  ;;  %v1432_v31 = vpop.f32.mrf.mxu0 }
 0x1a7   : > { %v1207_v8 = vadd.f32 %v1206_v30, %v1094_v32  ;;  %v312_v30 = vld [vmem:[%s2738_s22 + $0x438] sm:$0xff] }
 0x1a8   : > { %v1096_v35 = vpop.f32.mrf.mxu1  ;;  %v1319_v37 = vpop.f32.mrf.mxu3 }
 0x1a9   : > { %v1320_v42 = vadd.f32 %v1319_v37, %v1207_v8  ;;  %1835 = vmatmul.f32.gmra.mxu0 %v276_v34  ;;  %v1097_v44 = vadd.f32 %v1096_v35, %v3101_v56  ;;  %v300_v56 = vld [vmem:[%s2738_s22 + $0x3d8] sm:$0xff]  ;;  %v314_v8 = vld [vmem:[%s2738_s22 + $0x448] sm:$0xff] }
 0x1ab   : > { %v3556_v48 = vadd.f32 %v1432_v31, %v1320_v42  ;;  %1499 = vmatmul.f32.gmra.mxu1 %v286_v36  ;;  %1612 = vmatmul.f32.gmra.mxu2 %v287_v39  ;;  %v313_v31 = vld [vmem:[%s2738_s22 + $0x440] sm:$0xff] }
 0x1ac   : > { %v777_v36 = vld [vmem:[%s4142_s1 + $0x5c0] sm:$0xff] }
 0x1ad   : > { %1725 = vmatmul.f32.gmra.mxu3 %v288_v10  ;;  %v315_v10 = vld [vmem:[%s2738_s22 + $0x450] sm:$0xff] }
 0x1ae   : > { %v1209_v55 = vpop.f32.mrf.mxu2  ;;  %v1435_v51 = vpop.f32.mrf.mxu0  ;;  %2144 = vmatpush.msrb.mxu3 %v777_v36 }
 0x1af   : > { %v1210_v58 = vadd.f32 %v1209_v55, %v1097_v44  ;;  %v745_v44 = vld [vmem:[%s4142_s1 + $0x4c0] sm:$0xff] }
 0x1b0   : > { %v1099_v23 = vpop.f32.mrf.mxu1  ;;  %v1322_v2 = vpop.f32.mrf.mxu3  ;;  %1918 = vmatpush.msrb.mxu1 %v745_v44 }
 0x1b1   : > { %v1323_v7 = vadd.f32 %v1322_v2, %v1210_v58  ;;  %1838 = vmatmul.f32.gmra.mxu0 %v289_v50  ;;  %v1100_v11 = vadd.f32 %v1099_v23, %v3118_v3  ;;  %v761_v3 = vld [vmem:[%s4142_s1 + $0x540] sm:$0xff]  ;;  %v327_v58 = vld [vmem:[%s2738_s22 + $0x4b0] sm:$0xff] }
 0x1b2   : > { %2031 = vmatpush.msrb.mxu2 %v761_v3  ;;  %v744_v3 = vld [vmem:[%s4142_s1 + $0x4b8] sm:$0xff] }
 0x1b3   : > { %v3572_v22 = vadd.f32 %v1435_v51, %v1323_v7  ;;  %1502 = vmatmul.f32.gmra.mxu1 %v299_v5  ;;  %1615 = vmatmul.f32.gmra.mxu2 %v300_v56  ;;  %v325_v51 = vld [vmem:[%s2738_s22 + $0x4a0] sm:$0xff]  ;;  %v328_v56 = vld [vmem:[%s2738_s22 + $0x4b8] sm:$0xff] }
 0x1b4   : > { %1919 = vmatpush.msrb.mxu1 %v744_v3 }
 0x1b5   : > { %1728 = vmatmul.f32.gmra.mxu3 %v301_v63 }
 0x1b6   : > { %v1212_v15 = vpop.f32.mrf.mxu2  ;;  %v1438_v17 = vpop.f32.mrf.mxu0 }
 0x1b7   : > { %v1213_v1 = vadd.f32 %v1212_v15, %v1100_v11  ;;  %v339_v15 = vld [vmem:[%s2738_s22 + $0x510] sm:$0xff] }
 0x1b8   : > { %v1102_v24 = vpop.f32.mrf.mxu1  ;;  %v1325_v32 = vpop.f32.mrf.mxu3 }
 0x1b9   : > { %v1326_v34 = vadd.f32 %v1325_v32, %v1213_v1  ;;  %1841 = vmatmul.f32.gmra.mxu0 %v302_v4  ;;  %v1103_v37 = vadd.f32 %v1102_v24, %v3141_v16  ;;  %v326_v16 = vld [vmem:[%s2738_s22 + $0x4a8] sm:$0xff]  ;;  %v340_v4 = vld [vmem:[%s2738_s22 + $0x518] sm:$0xff] }
 0x1ba   : > { %v776_v32 = vld [vmem:[%s4142_s1 + $0x5b8] sm:$0xff] }
 0x1bb   : > { %v3582_v35 = vadd.f32 %v1438_v17, %v1326_v34  ;;  %1505 = vmatmul.f32.gmra.mxu1 %v312_v30  ;;  %1618 = vmatmul.f32.gmra.mxu2 %v313_v31  ;;  %v341_v34 = vld [vmem:[%s2738_s22 + $0x520] sm:$0xff] }
 0x1bc   : > { %2145 = vmatpush.msrb.mxu3 %v776_v32 }
 0x1bd   : > { %1731 = vmatmul.f32.gmra.mxu3 %v314_v8 }
 0x1be   : > { %v1215_v39 = vpop.f32.mrf.mxu2  ;;  %v1441_v42 = vpop.f32.mrf.mxu0 }
 0x1bf   : > { %v1216_v21 = vadd.f32 %v1215_v39, %v1103_v37  ;;  %v351_v39 = vld [vmem:[%s2738_s22 + $0x570] sm:$0xff] }
 0x1c0   : > { %v1105_v53 = vpop.f32.mrf.mxu1  ;;  %v1328_v55 = vpop.f32.mrf.mxu3 }
 0x1c1   : > { %v1329_v50 = vadd.f32 %v1328_v55, %v1216_v21  ;;  %1844 = vmatmul.f32.gmra.mxu0 %v315_v10  ;;  %v1106_v23 = vadd.f32 %v1105_v53, %v3158_v27  ;;  %v760_v27 = vld [vmem:[%s4142_s1 + $0x538] sm:$0xff]  ;;  %v353_v10 = vld [vmem:[%s2738_s22 + $0x580] sm:$0xff] }
 0x1c2   : > { %2032 = vmatpush.msrb.mxu2 %v760_v27  ;;  %v788_v53 = vld [vmem:[%s4142_s1 + $0x618] sm:$0xff] }
 0x1c3   : > { %v3598_v49 = vadd.f32 %v1441_v42, %v1329_v50  ;;  %1508 = vmatmul.f32.gmra.mxu1 %v325_v51  ;;  %1621 = vmatmul.f32.gmra.mxu2 %v326_v16  ;;  %v354_v16 = vld [vmem:[%s2738_s22 + $0x588] sm:$0xff] }
 0x1c4   : > { %2262 = vmatpush.msrb.mxu0 %v788_v53  ;;  %v390_v53 = vld [vmem:[%s2738_s22 + $0x6a8] sm:$0xff] }
 0x1c5   : > { %1734 = vmatmul.f32.gmra.mxu3 %v327_v58 }
 0x1c6   : > { %v1218_v2 = vpop.f32.mrf.mxu2  ;;  %v1444_v5 = vpop.f32.mrf.mxu0 }
 0x1c7   : > { %v1219_v7 = vadd.f32 %v1218_v2, %v1106_v23  ;;  %v364_v2 = vld [vmem:[%s2738_s22 + $0x5d8] sm:$0xff] }
 0x1c8   : > { %v1108_v63 = vpop.f32.mrf.mxu1  ;;  %v1331_v11 = vpop.f32.mrf.mxu3 }
 0x1c9   : > { %v1332_v17 = vadd.f32 %v1331_v11, %v1219_v7  ;;  %1847 = vmatmul.f32.gmra.mxu0 %v328_v56  ;;  %v1109_v24 = vadd.f32 %v1108_v63, %v3181_v41  ;;  %v352_v41 = vld [vmem:[%s2738_s22 + $0x578] sm:$0xff]  ;;  %v366_v7 = vld [vmem:[%s2738_s22 + $0x5e8] sm:$0xff] }
 0x1cb   : > { %v3605_v1 = vadd.f32 %v1444_v5, %v1332_v17  ;;  %1511 = vmatmul.f32.gmra.mxu1 %v338_v40  ;;  %1624 = vmatmul.f32.gmra.mxu2 %v339_v15  ;;  %v365_v5 = vld [vmem:[%s2738_s22 + $0x5e0] sm:$0xff]  ;;  %v775_v40 = vld [vmem:[%s4142_s1 + $0x5b0] sm:$0xff] }
 0x1cc   : > { %2146 = vmatpush.msrb.mxu3 %v775_v40 }
 0x1cd   : > { %1737 = vmatmul.f32.gmra.mxu3 %v340_v4  ;;  %v367_v4 = vld [vmem:[%s2738_s22 + $0x5f0] sm:$0xff] }
 0x1ce   : > { %v1221_v30 = vpop.f32.mrf.mxu2  ;;  %v1447_v31 = vpop.f32.mrf.mxu0 }
 0x1cf   : > { %v1222_v8 = vadd.f32 %v1221_v30, %v1109_v24  ;;  %v743_v24 = vld [vmem:[%s4142_s1 + $0x4b0] sm:$0xff] }
 0x1d0   : > { %v1111_v37 = vpop.f32.mrf.mxu1  ;;  %v1334_v36 = vpop.f32.mrf.mxu3  ;;  %1920 = vmatpush.msrb.mxu1 %v743_v24 }
 0x1d1   : > { %v1335_v42 = vadd.f32 %v1334_v36, %v1222_v8  ;;  %1850 = vmatmul.f32.gmra.mxu0 %v341_v34  ;;  %v1112_v44 = vadd.f32 %v1111_v37, %v3198_v57  ;;  %v759_v57 = vld [vmem:[%s4142_s1 + $0x530] sm:$0xff] }
 0x1d2   : > { %2033 = vmatpush.msrb.mxu2 %v759_v57  ;;  %v379_v8 = vld [vmem:[%s2738_s22 + $0x650] sm:$0xff]  ;;  %v742_v57 = vld [vmem:[%s4142_s1 + $0x4a8] sm:$0xff] }
 0x1d3   : > { %v3621_v21 = vadd.f32 %v1447_v31, %v1335_v42  ;;  %1514 = vmatmul.f32.gmra.mxu1 %v351_v39  ;;  %1627 = vmatmul.f32.gmra.mxu2 %v352_v41  ;;  %v377_v31 = vld [vmem:[%s2738_s22 + $0x640] sm:$0xff]  ;;  %v380_v41 = vld [vmem:[%s2738_s22 + $0x658] sm:$0xff] }
 0x1d4   : > { %1921 = vmatpush.msrb.mxu1 %v742_v57 }
 0x1d5   : > { %1740 = vmatmul.f32.gmra.mxu3 %v353_v10 }
 0x1d6   : > { %v1224_v55 = vpop.f32.mrf.mxu2  ;;  %v1450_v51 = vpop.f32.mrf.mxu0 }
 0x1d7   : > { %v1225_v50 = vadd.f32 %v1224_v55, %v1112_v44  ;;  %v391_v55 = vld [vmem:[%s2738_s22 + $0x6b0] sm:$0xff] }
 0x1d8   : > { %v1114_v58 = vpop.f32.mrf.mxu1  ;;  %v1337_v23 = vpop.f32.mrf.mxu3 }
 0x1d9   : > { %v1338_v56 = vadd.f32 %v1337_v23, %v1225_v50  ;;  %1853 = vmatmul.f32.gmra.mxu0 %v354_v16  ;;  %v1115_v11 = vadd.f32 %v1114_v58, %v3221_v13  ;;  %v378_v13 = vld [vmem:[%s2738_s22 + $0x648] sm:$0xff]  ;;  %v392_v16 = vld [vmem:[%s2738_s22 + $0x6b8] sm:$0xff] }
 0x1da   : > { %v774_v23 = vld [vmem:[%s4142_s1 + $0x5a8] sm:$0xff] }
 0x1db   : > { %v3631_v63 = vadd.f32 %v1450_v51, %v1338_v56  ;;  %1517 = vmatmul.f32.gmra.mxu1 %v364_v2  ;;  %1630 = vmatmul.f32.gmra.mxu2 %v365_v5  ;;  %v393_v56 = vld [vmem:[%s2738_s22 + $0x6c0] sm:$0xff] }
 0x1dc   : > { %2147 = vmatpush.msrb.mxu3 %v774_v23 }
 0x1dd   : > { %1743 = vmatmul.f32.gmra.mxu3 %v366_v7 }
 0x1de   : > { %v1227_v15 = vpop.f32.mrf.mxu2  ;;  %v1453_v17 = vpop.f32.mrf.mxu0 }
 0x1df   : > { %v1228_v27 = vadd.f32 %v1227_v15, %v1115_v11  ;;  %v403_v15 = vld [vmem:[%s2738_s22 + $0x710] sm:$0xff] }
 0x1e0   : > { %v1117_v32 = vpop.f32.mrf.mxu1  ;;  %v1340_v30 = vpop.f32.mrf.mxu3 }
 0x1e1   : > { %v1341_v34 = vadd.f32 %v1340_v30, %v1228_v27  ;;  %1856 = vmatmul.f32.gmra.mxu0 %v367_v4  ;;  %v1118_v37 = vadd.f32 %v1117_v32, %v3236_v29  ;;  %v758_v29 = vld [vmem:[%s4142_s1 + $0x528] sm:$0xff]  ;;  %v405_v4 = vld [vmem:[%s2738_s22 + $0x720] sm:$0xff]  ;;  %v787_v32 = vld [vmem:[%s4142_s1 + $0x610] sm:$0xff] }
 0x1e2   : > { %2034 = vmatpush.msrb.mxu2 %v758_v29  ;;  %2263 = vmatpush.msrb.mxu0 %v787_v32  ;;  %v442_v32 = vld [vmem:[%s2738_s22 + $0x848] sm:$0xff] }
 0x1e3   : > { %v3647_v3 = vadd.f32 %v1453_v17, %v1341_v34  ;;  %1520 = vmatmul.f32.gmra.mxu1 %v377_v31  ;;  %1633 = vmatmul.f32.gmra.mxu2 %v378_v13  ;;  %v406_v13 = vld [vmem:[%s2738_s22 + $0x728] sm:$0xff] }
 0x1e5   : > { %1746 = vmatmul.f32.gmra.mxu3 %v379_v8 }
 0x1e6   : > { %v1230_v36 = vpop.f32.mrf.mxu2  ;;  %v1456_v39 = vpop.f32.mrf.mxu0 }
 0x1e7   : > { %v1231_v42 = vadd.f32 %v1230_v36, %v1118_v37  ;;  %v416_v36 = vld [vmem:[%s2738_s22 + $0x778] sm:$0xff] }
 0x1e8   : > { %v1343_v10 = vpop.f32.mrf.mxu3  ;;  %v1476_v44 = vpop.f32.mrf.mxu1 }
 0x1e9   : > { %v1344_v51 = vadd.f32 %v1343_v10, %v1231_v42  ;;  %1859 = vmatmul.f32.gmra.mxu0 %v380_v41  ;;  %v1477_v58 = vadd.f32 %v1476_v44, %v3256_v61  ;;  %v404_v61 = vld [vmem:[%s2738_s22 + $0x718] sm:$0xff]  ;;  %v418_v42 = vld [vmem:[%s2738_s22 + $0x788] sm:$0xff] }
 0x1eb   : > { %v3654_v50 = vadd.f32 %v1456_v39, %v1344_v51  ;;  %1523 = vmatmul.f32.gmra.mxu1 %v390_v53  ;;  %1636 = vmatmul.f32.gmra.mxu2 %v391_v55  ;;  %v417_v39 = vld [vmem:[%s2738_s22 + $0x780] sm:$0xff] }
 0x1ec   : > { %v773_v53 = vld [vmem:[%s4142_s1 + $0x5a0] sm:$0xff] }
 0x1ed   : > { %1749 = vmatmul.f32.gmra.mxu3 %v392_v16  ;;  %v419_v16 = vld [vmem:[%s2738_s22 + $0x790] sm:$0xff] }
 0x1ee   : > { %v1589_v2 = vpop.f32.mrf.mxu2  ;;  %v1815_v5 = vpop.f32.mrf.mxu0  ;;  %2148 = vmatpush.msrb.mxu3 %v773_v53 }
 0x1ef   : > { %v1590_v7 = vadd.f32 %v1589_v2, %v1477_v58  ;;  %v741_v58 = vld [vmem:[%s4142_s1 + $0x4a0] sm:$0xff] }
 0x1f0   : > { %v1479_v11 = vpop.f32.mrf.mxu1  ;;  %v1702_v40 = vpop.f32.mrf.mxu3  ;;  %1922 = vmatpush.msrb.mxu1 %v741_v58 }
 0x1f1   : > { %v1703_v17 = vadd.f32 %v1702_v40, %v1590_v7  ;;  %1862 = vmatmul.f32.gmra.mxu0 %v393_v56  ;;  %v1480_v24 = vadd.f32 %v1479_v11, %v3267_v26  ;;  %v757_v26 = vld [vmem:[%s4142_s1 + $0x520] sm:$0xff]  ;;  %v431_v7 = vld [vmem:[%s2738_s22 + $0x7f0] sm:$0xff] }
 0x1f2   : > { %2035 = vmatpush.msrb.mxu2 %v757_v26  ;;  %v740_v26 = vld [vmem:[%s4142_s1 + $0x498] sm:$0xff] }
 0x1f3   : > { %v3670_v27 = vadd.f32 %v1815_v5, %v1703_v17  ;;  %1526 = vmatmul.f32.gmra.mxu1 %v403_v15  ;;  %1639 = vmatmul.f32.gmra.mxu2 %v404_v61  ;;  %v429_v5 = vld [vmem:[%s2738_s22 + $0x7e0] sm:$0xff]  ;;  %v432_v61 = vld [vmem:[%s2738_s22 + $0x7f8] sm:$0xff] }
 0x1f4   : > { %1923 = vmatpush.msrb.mxu1 %v740_v26 }
 0x1f5   : > { %1752 = vmatmul.f32.gmra.mxu3 %v405_v4 }
 0x1f6   : > { %v1592_v30 = vpop.f32.mrf.mxu2  ;;  %v1818_v31 = vpop.f32.mrf.mxu0 }
 0x1f7   : > { %v1593_v34 = vadd.f32 %v1592_v30, %v1480_v24  ;;  %v443_v30 = vld [vmem:[%s2738_s22 + $0x850] sm:$0xff] }
 0x1f8   : > { %v1482_v8 = vpop.f32.mrf.mxu1  ;;  %v1705_v37 = vpop.f32.mrf.mxu3 }
 0x1f9   : > { %v1706_v41 = vadd.f32 %v1705_v37, %v1593_v34  ;;  %1865 = vmatmul.f32.gmra.mxu0 %v406_v13  ;;  %v1483_v44 = vadd.f32 %v1482_v8, %v3284_v54  ;;  %v430_v54 = vld [vmem:[%s2738_s22 + $0x7e8] sm:$0xff]  ;;  %v444_v13 = vld [vmem:[%s2738_s22 + $0x858] sm:$0xff] }
 0x1fa   : > { %v772_v37 = vld [vmem:[%s4142_s1 + $0x598] sm:$0xff] }
 0x1fb   : > { %v3680_v10 = vadd.f32 %v1818_v31, %v1706_v41  ;;  %1529 = vmatmul.f32.gmra.mxu1 %v416_v36  ;;  %1642 = vmatmul.f32.gmra.mxu2 %v417_v39  ;;  %v445_v41 = vld [vmem:[%s2738_s22 + $0x860] sm:$0xff] }
 0x1fc   : > { %2149 = vmatpush.msrb.mxu3 %v772_v37 }
 0x1fd   : > { %1755 = vmatmul.f32.gmra.mxu3 %v418_v42 }
 0x1fe   : > { %v1595_v55 = vpop.f32.mrf.mxu2  ;;  %v1821_v51 = vpop.f32.mrf.mxu0 }
 0x1ff   : > { %v1596_v29 = vadd.f32 %v1595_v55, %v1483_v44  ;;  %v455_v55 = vld [vmem:[%s2738_s22 + $0x8b0] sm:$0xff] }
 0x200   : > { %v1485_v23 = vpop.f32.mrf.mxu1  ;;  %v1708_v2 = vpop.f32.mrf.mxu3 }
 0x201   : > { %v1709_v56 = vadd.f32 %v1708_v2, %v1596_v29  ;;  %1868 = vmatmul.f32.gmra.mxu0 %v419_v16  ;;  %v1486_v11 = vadd.f32 %v1485_v23, %v3295_v60  ;;  %v756_v60 = vld [vmem:[%s4142_s1 + $0x518] sm:$0xff]  ;;  %v457_v16 = vld [vmem:[%s2738_s22 + $0x8c0] sm:$0xff]  ;;  %v786_v23 = vld [vmem:[%s4142_s1 + $0x608] sm:$0xff] }
 0x202   : > { %2036 = vmatpush.msrb.mxu2 %v756_v60  ;;  %2264 = vmatpush.msrb.mxu0 %v786_v23  ;;  %v494_v23 = vld [vmem:[%s2738_s22 + $0x9e8] sm:$0xff] }
 0x203   : > { %v3696_v57 = vadd.f32 %v1821_v51, %v1709_v56  ;;  %1532 = vmatmul.f32.gmra.mxu1 %v429_v5  ;;  %1645 = vmatmul.f32.gmra.mxu2 %v430_v54  ;;  %v458_v54 = vld [vmem:[%s2738_s22 + $0x8c8] sm:$0xff] }
 0x205   : > { %1758 = vmatmul.f32.gmra.mxu3 %v431_v7 }
 0x206   : > { %v1598_v40 = vpop.f32.mrf.mxu2  ;;  %v1824_v15 = vpop.f32.mrf.mxu0 }
 0x207   : > { %v1599_v17 = vadd.f32 %v1598_v40, %v1486_v11  ;;  %v468_v40 = vld [vmem:[%s2738_s22 + $0x918] sm:$0xff] }
 0x208   : > { %v1488_v4 = vpop.f32.mrf.mxu1  ;;  %v1711_v24 = vpop.f32.mrf.mxu3 }
 0x209   : > { %v1712_v31 = vadd.f32 %v1711_v24, %v1599_v17  ;;  %1871 = vmatmul.f32.gmra.mxu0 %v432_v61  ;;  %v1489_v8 = vadd.f32 %v1488_v4, %v3312_v43  ;;  %v456_v43 = vld [vmem:[%s2738_s22 + $0x8b8] sm:$0xff]  ;;  %v470_v17 = vld [vmem:[%s2738_s22 + $0x928] sm:$0xff] }
 0x20b   : > { %v3703_v34 = vadd.f32 %v1824_v15, %v1712_v31  ;;  %1535 = vmatmul.f32.gmra.mxu1 %v442_v32  ;;  %1648 = vmatmul.f32.gmra.mxu2 %v443_v30  ;;  %v469_v15 = vld [vmem:[%s2738_s22 + $0x920] sm:$0xff]  ;;  %v771_v32 = vld [vmem:[%s4142_s1 + $0x590] sm:$0xff] }
 0x20c   : > { %2150 = vmatpush.msrb.mxu3 %v771_v32 }
 0x20d   : > { %1761 = vmatmul.f32.gmra.mxu3 %v444_v13  ;;  %v471_v13 = vld [vmem:[%s2738_s22 + $0x930] sm:$0xff] }
 0x20e   : > { %v1601_v36 = vpop.f32.mrf.mxu2  ;;  %v1827_v39 = vpop.f32.mrf.mxu0 }
 0x20f   : > { %v1602_v42 = vadd.f32 %v1601_v36, %v1489_v8  ;;  %v739_v8 = vld [vmem:[%s4142_s1 + $0x490] sm:$0xff] }
 0x210   : > { %v1491_v44 = vpop.f32.mrf.mxu1  ;;  %v1714_v53 = vpop.f32.mrf.mxu3  ;;  %1924 = vmatpush.msrb.mxu1 %v739_v8 }
 0x211   : > { %v1715_v51 = vadd.f32 %v1714_v53, %v1602_v42  ;;  %1874 = vmatmul.f32.gmra.mxu0 %v445_v41  ;;  %v1492_v58 = vadd.f32 %v1491_v44, %v3323_v20  ;;  %v755_v20 = vld [vmem:[%s4142_s1 + $0x510] sm:$0xff] }
 0x212   : > { %2037 = vmatpush.msrb.mxu2 %v755_v20  ;;  %v483_v42 = vld [vmem:[%s2738_s22 + $0x990] sm:$0xff]  ;;  %v738_v20 = vld [vmem:[%s4142_s1 + $0x488] sm:$0xff] }
 0x213   : > { %v3719_v29 = vadd.f32 %v1827_v39, %v1715_v51  ;;  %1538 = vmatmul.f32.gmra.mxu1 %v455_v55  ;;  %1651 = vmatmul.f32.gmra.mxu2 %v456_v43  ;;  %v481_v39 = vld [vmem:[%s2738_s22 + $0x980] sm:$0xff]  ;;  %v484_v43 = vld [vmem:[%s2738_s22 + $0x998] sm:$0xff] }
 0x214   : > { %1925 = vmatpush.msrb.mxu1 %v738_v20 }
 0x215   : > { %1764 = vmatmul.f32.gmra.mxu3 %v457_v16 }
 0x216   : > { %v1604_v2 = vpop.f32.mrf.mxu2  ;;  %v1830_v5 = vpop.f32.mrf.mxu0 }
 0x217   : > { %v1605_v56 = vadd.f32 %v1604_v2, %v1492_v58  ;;  %v495_v2 = vld [vmem:[%s2738_s22 + $0x9f0] sm:$0xff] }
 0x218   : > { %v1494_v7 = vpop.f32.mrf.mxu1  ;;  %v1717_v11 = vpop.f32.mrf.mxu3 }
 0x219   : > { %v1718_v61 = vadd.f32 %v1717_v11, %v1605_v56  ;;  %1877 = vmatmul.f32.gmra.mxu0 %v458_v54  ;;  %v1495_v24 = vadd.f32 %v1494_v7, %v3340_v38  ;;  %v482_v38 = vld [vmem:[%s2738_s22 + $0x988] sm:$0xff]  ;;  %v496_v54 = vld [vmem:[%s2738_s22 + $0x9f8] sm:$0xff] }
 0x21a   : > { %v770_v11 = vld [vmem:[%s4142_s1 + $0x588] sm:$0xff] }
 0x21b   : > { %v3729_v4 = vadd.f32 %v1830_v5, %v1718_v61  ;;  %1541 = vmatmul.f32.gmra.mxu1 %v468_v40  ;;  %1654 = vmatmul.f32.gmra.mxu2 %v469_v15  ;;  %v497_v61 = vld [vmem:[%s2738_s22 + $0xa00] sm:$0xff] }
 0x21c   : > { %2151 = vmatpush.msrb.mxu3 %v770_v11 }
 0x21d   : > { %1767 = vmatmul.f32.gmra.mxu3 %v470_v17 }
 0x21e   : > { %v1607_v30 = vpop.f32.mrf.mxu2  ;;  %v1833_v31 = vpop.f32.mrf.mxu0 }
 0x21f   : > { %v1608_v60 = vadd.f32 %v1607_v30, %v1495_v24  ;;  %v507_v30 = vld [vmem:[%s2738_s22 + $0xa50] sm:$0xff] }
 0x220   : > { %v1497_v37 = vpop.f32.mrf.mxu1  ;;  %v1720_v36 = vpop.f32.mrf.mxu3 }
 0x221   : > { %v1721_v41 = vadd.f32 %v1720_v36, %v1608_v60  ;;  %1880 = vmatmul.f32.gmra.mxu0 %v471_v13  ;;  %v1498_v44 = vadd.f32 %v1497_v37, %v3351_v46  ;;  %v754_v46 = vld [vmem:[%s4142_s1 + $0x508] sm:$0xff]  ;;  %v509_v13 = vld [vmem:[%s2738_s22 + $0xa60] sm:$0xff] }
 0x222   : > { %2038 = vmatpush.msrb.mxu2 %v754_v46  ;;  %v785_v37 = vld [vmem:[%s4142_s1 + $0x600] sm:$0xff] }
 0x223   : > { %v3745_v26 = vadd.f32 %v1833_v31, %v1721_v41  ;;  %1544 = vmatmul.f32.gmra.mxu1 %v481_v39  ;;  %1657 = vmatmul.f32.gmra.mxu2 %v482_v38  ;;  %v510_v38 = vld [vmem:[%s2738_s22 + $0xa68] sm:$0xff] }
 0x224   : > { %2265 = vmatpush.msrb.mxu0 %v785_v37  ;;  %v546_v37 = vld [vmem:[%s2738_s22 + $0xb88] sm:$0xff] }
 0x225   : > { %1770 = vmatmul.f32.gmra.mxu3 %v483_v42 }
 0x226   : > { %v1610_v53 = vpop.f32.mrf.mxu2  ;;  %v1836_v55 = vpop.f32.mrf.mxu0 }
 0x227   : > { %v1611_v51 = vadd.f32 %v1610_v53, %v1498_v44  ;;  %v520_v53 = vld [vmem:[%s2738_s22 + $0xab8] sm:$0xff] }
 0x228   : > { %v1500_v16 = vpop.f32.mrf.mxu1  ;;  %v1723_v58 = vpop.f32.mrf.mxu3 }
 0x229   : > { %v1724_v5 = vadd.f32 %v1723_v58, %v1611_v51  ;;  %1883 = vmatmul.f32.gmra.mxu0 %v484_v43  ;;  %v1501_v7 = vadd.f32 %v1500_v16, %v3368_v33  ;;  %v508_v33 = vld [vmem:[%s2738_s22 + $0xa58] sm:$0xff]  ;;  %v522_v51 = vld [vmem:[%s2738_s22 + $0xac8] sm:$0xff] }
 0x22b   : > { %v3752_v56 = vadd.f32 %v1836_v55, %v1724_v5  ;;  %1547 = vmatmul.f32.gmra.mxu1 %v494_v23  ;;  %1660 = vmatmul.f32.gmra.mxu2 %v495_v2  ;;  %v521_v55 = vld [vmem:[%s2738_s22 + $0xac0] sm:$0xff] }
 0x22c   : > { %v769_v23 = vld [vmem:[%s4142_s1 + $0x580] sm:$0xff] }
 0x22d   : > { %1773 = vmatmul.f32.gmra.mxu3 %v496_v54  ;;  %v523_v54 = vld [vmem:[%s2738_s22 + $0xad0] sm:$0xff] }
 0x22e   : > { %v1613_v40 = vpop.f32.mrf.mxu2  ;;  %v1839_v15 = vpop.f32.mrf.mxu0  ;;  %2152 = vmatpush.msrb.mxu3 %v769_v23 }
 0x22f   : > { %v1614_v17 = vadd.f32 %v1613_v40, %v1501_v7  ;;  %v737_v7 = vld [vmem:[%s4142_s1 + $0x480] sm:$0xff] }
 0x230   : > { %v1503_v24 = vpop.f32.mrf.mxu1  ;;  %v1726_v32 = vpop.f32.mrf.mxu3  ;;  %1926 = vmatpush.msrb.mxu1 %v737_v7  ;;  %v562_v7 = vld [vmem:[%s2738_s22 + $0xc08] sm:$0xff] }
 0x231   : > { %v1727_v31 = vadd.f32 %v1726_v32, %v1614_v17  ;;  %1886 = vmatmul.f32.gmra.mxu0 %v497_v61  ;;  %v1504_v8 = vadd.f32 %v1503_v24, %v3379_v18  ;;  %v753_v18 = vld [vmem:[%s4142_s1 + $0x500] sm:$0xff]  ;;  %v535_v17 = vld [vmem:[%s2738_s22 + $0xb30] sm:$0xff] }
 0x232   : > { %2039 = vmatpush.msrb.mxu2 %v753_v18  ;;  %v559_v18 = vld [vmem:[%s2738_s22 + $0xbf0] sm:$0xff] }
 0x233   : > { %v3768_v60 = vadd.f32 %v1839_v15, %v1727_v31  ;;  %1550 = vmatmul.f32.gmra.mxu1 %v507_v30  ;;  %1663 = vmatmul.f32.gmra.mxu2 %v508_v33  ;;  %v533_v15 = vld [vmem:[%s2738_s22 + $0xb20] sm:$0xff]  ;;  %v536_v33 = vld [vmem:[%s2738_s22 + $0xb38] sm:$0xff] }
 0x235   : > { %1776 = vmatmul.f32.gmra.mxu3 %v509_v13 }
 0x236   : > { %v1616_v36 = vpop.f32.mrf.mxu2  ;;  %v1842_v39 = vpop.f32.mrf.mxu0 }
 0x237   : > { %v1617_v41 = vadd.f32 %v1616_v36, %v1504_v8  ;;  %v547_v36 = vld [vmem:[%s2738_s22 + $0xb90] sm:$0xff] }
 0x238   : > { %v1506_v42 = vpop.f32.mrf.mxu1  ;;  %v1729_v44 = vpop.f32.mrf.mxu3 }
 0x239   : > { %v1730_v43 = vadd.f32 %v1729_v44, %v1617_v41  ;;  %1889 = vmatmul.f32.gmra.mxu0 %v510_v38  ;;  %v1507_v58 = vadd.f32 %v1506_v42, %v3396_v28  ;;  %v534_v28 = vld [vmem:[%s2738_s22 + $0xb28] sm:$0xff]  ;;  %v548_v38 = vld [vmem:[%s2738_s22 + $0xb98] sm:$0xff] }
 0x23b   : > { %v3778_v16 = vadd.f32 %v1842_v39, %v1730_v43  ;;  %1553 = vmatmul.f32.gmra.mxu1 %v520_v53  ;;  %1666 = vmatmul.f32.gmra.mxu2 %v521_v55  ;;  %v549_v53 = vld [vmem:[%s2738_s22 + $0xba0] sm:$0xff] }
 0x23d   : > { %1779 = vmatmul.f32.gmra.mxu3 %v522_v51 }
 0x23e   : > { %v1619_v2 = vpop.f32.mrf.mxu2  ;;  %v1845_v5 = vpop.f32.mrf.mxu0 }
 0x23f   : > { %v1620_v46 = vadd.f32 %v1619_v2, %v1507_v58  ;;  %v560_v58 = vld [vmem:[%s2738_s22 + $0xbf8] sm:$0xff]  ;;  %v561_v2 = vld [vmem:[%s2738_s22 + $0xc00] sm:$0xff] }
 0x240   : > { %v1509_v11 = vpop.f32.mrf.mxu1  ;;  %v1732_v40 = vpop.f32.mrf.mxu3 }
 0x241   : > { %v1733_v61 = vadd.f32 %v1732_v40, %v1620_v46  ;;  %1892 = vmatmul.f32.gmra.mxu0 %v523_v54  ;;  %v1510_v24 = vadd.f32 %v1509_v11, %v3407_v52 }
 0x243   : > { %v3794_v20 = vadd.f32 %v1845_v5, %v1733_v61  ;;  %1556 = vmatmul.f32.gmra.mxu1 %v533_v15  ;;  %1669 = vmatmul.f32.gmra.mxu2 %v534_v28  ;;  %v572_v28 = vld [vmem:[%s2738_s22 + $0xc58] sm:$0xff]  ;;  %v573_v61 = vld [vmem:[%s2738_s22 + $0xc60] sm:$0xff] }
 0x245   : > { %1782 = vmatmul.f32.gmra.mxu3 %v535_v17 }
 0x246   : > { %v1622_v32 = vpop.f32.mrf.mxu2  ;;  %v1848_v30 = vpop.f32.mrf.mxu0 }
 0x247   : > { %v1623_v31 = vadd.f32 %v1622_v32, %v1510_v24  ;;  %v574_v24 = vld [vmem:[%s2738_s22 + $0xc68] sm:$0xff] }
 0x248   : > { %v1512_v13 = vpop.f32.mrf.mxu1  ;;  %v1735_v8 = vpop.f32.mrf.mxu3 }
 0x249   : > { %v1736_v39 = vadd.f32 %v1735_v8, %v1623_v31  ;;  %1895 = vmatmul.f32.gmra.mxu0 %v536_v33  ;;  %v1513_v52 = vadd.f32 %v1512_v13, %v3424_v19  ;;  %v575_v31 = vld [vmem:[%s2738_s22 + $0xc70] sm:$0xff] }
 0x24b   : > { %v3801_v41 = vadd.f32 %v1848_v30, %v1736_v39  ;;  %1559 = vmatmul.f32.gmra.mxu1 %v546_v37  ;;  %1672 = vmatmul.f32.gmra.mxu2 %v547_v36  ;;  %v585_v36 = vld [vmem:[%s2738_s22 + $0xcc0] sm:$0xff]  ;;  %v586_v39 = vld [vmem:[%s2738_s22 + $0xcc8] sm:$0xff] }
 0x24d   : > { %1785 = vmatmul.f32.gmra.mxu3 %v548_v38 }
 0x24e   : > { %v1625_v42 = vpop.f32.mrf.mxu2  ;;  %v1851_v44 = vpop.f32.mrf.mxu0 }
 0x24f   : > { %v1626_v55 = vadd.f32 %v1625_v42, %v1513_v52  ;;  %v587_v52 = vld [vmem:[%s2738_s22 + $0xcd0] sm:$0xff] }
 0x250   : > { %v1515_v43 = vpop.f32.mrf.mxu1  ;;  %v1738_v51 = vpop.f32.mrf.mxu3 }
 0x251   : > { %v1739_v23 = vadd.f32 %v1738_v51, %v1626_v55  ;;  %1898 = vmatmul.f32.gmra.mxu0 %v549_v53  ;;  %v1516_v19 = vadd.f32 %v1515_v43, %v3435_v12  ;;  %v588_v55 = vld [vmem:[%s2738_s22 + $0xcd8] sm:$0xff] }
 0x253   : > { %v3808_v5 = vadd.f32 %v1851_v44, %v1739_v23  ;;  %1562 = vmatmul.f32.gmra.mxu1 %v559_v18  ;;  %1675 = vmatmul.f32.gmra.mxu2 %v560_v58  ;;  %v186_v58 = vld [vmem:[%s2738_s22 + $0x48] sm:$0xff]  ;;  %v187_v23 = vld [vmem:[%s2738_s22 + $0x50] sm:$0xff] }
 0x255   : > { %1788 = vmatmul.f32.gmra.mxu3 %v561_v2 }
 0x256   : > { %v1628_v54 = vpop.f32.mrf.mxu2  ;;  %v1854_v46 = vpop.f32.mrf.mxu0 }
 0x257   : > { %v1629_v11 = vadd.f32 %v1628_v54, %v1516_v19  ;;  %v188_v19 = vld [vmem:[%s2738_s22 + $0x58] sm:$0xff] }
 0x258   : > { %v1518_v40 = vpop.f32.mrf.mxu1  ;;  %v1741_v15 = vpop.f32.mrf.mxu3 }
 0x259   : > { %v1742_v17 = vadd.f32 %v1741_v15, %v1629_v11  ;;  %1901 = vmatmul.f32.gmra.mxu0 %v562_v7  ;;  %v1519_v12 = vadd.f32 %v1518_v40, %v3452_v14  ;;  %v189_v11 = vld [vmem:[%s2738_s22 + $0x60] sm:$0xff] }
 0x25b   : > { %v3815_v32 = vadd.f32 %v1854_v46, %v1742_v17  ;;  %1565 = vmatmul.f32.gmra.mxu1 %v572_v28  ;;  %1678 = vmatmul.f32.gmra.mxu2 %v573_v61  ;;  %v199_v61 = vld [vmem:[%s2738_s22 + $0xb0] sm:$0xff]  ;;  %v200_v17 = vld [vmem:[%s2738_s22 + $0xb8] sm:$0xff] }
 0x25d   : > { %1791 = vmatmul.f32.gmra.mxu3 %v574_v24 }
 0x25e   : > { %v1631_v30 = vpop.f32.mrf.mxu2  ;;  %v1857_v33 = vpop.f32.mrf.mxu0 }
 0x25f   : > { %v1632_v13 = vadd.f32 %v1631_v30, %v1519_v12  ;;  %v201_v12 = vld [vmem:[%s2738_s22 + $0xc0] sm:$0xff] }
 0x260   : > { %v1521_v8 = vpop.f32.mrf.mxu1  ;;  %v1744_v37 = vpop.f32.mrf.mxu3 }
 0x261   : > { %v1745_v38 = vadd.f32 %v1744_v37, %v1632_v13  ;;  %1904 = vmatmul.f32.gmra.mxu0 %v575_v31  ;;  %v1522_v14 = vadd.f32 %v1521_v8, %v3458_v45  ;;  %v202_v13 = vld [vmem:[%s2738_s22 + $0xc8] sm:$0xff] }
 0x263   : > { %v3822_v42 = vadd.f32 %v1857_v33, %v1745_v38  ;;  %1568 = vmatmul.f32.gmra.mxu1 %v585_v36  ;;  %1681 = vmatmul.f32.gmra.mxu2 %v586_v39  ;;  %v212_v39 = vld [vmem:[%s2738_s22 + $0x118] sm:$0xff]  ;;  %v213_v38 = vld [vmem:[%s2738_s22 + $0x120] sm:$0xff] }
 0x265   : > { %1794 = vmatmul.f32.gmra.mxu3 %v587_v52 }
 0x266   : > { %v1634_v44 = vpop.f32.mrf.mxu2  ;;  %v1860_v53 = vpop.f32.mrf.mxu0 }
 0x267   : > { %v1635_v43 = vadd.f32 %v1634_v44, %v1522_v14  ;;  %v214_v14 = vld [vmem:[%s2738_s22 + $0x128] sm:$0xff] }
 0x268   : > { %v1524_v51 = vpop.f32.mrf.mxu1  ;;  %v1747_v18 = vpop.f32.mrf.mxu3 }
 0x269   : > { %v1748_v2 = vadd.f32 %v1747_v18, %v1635_v43  ;;  %1907 = vmatmul.f32.gmra.mxu0 %v588_v55  ;;  %v1525_v45 = vadd.f32 %v1524_v51, %v3474_v0  ;;  %v215_v43 = vld [vmem:[%s2738_s22 + $0x130] sm:$0xff] }
 0x26b   : > { %v3829_v54 = vadd.f32 %v1860_v53, %v1748_v2  ;;  %1927 = vmatmul.f32.vlgmr.msrb.gmra.mxu1 %v186_v58  ;;  %2040 = vmatmul.f32.vlgmr.msrb.gmra.mxu2 %v187_v23  ;;  %v225_v23 = vld [vmem:[%s2738_s22 + $0x180] sm:$0xff]  ;;  %v226_v2 = vld [vmem:[%s2738_s22 + $0x188] sm:$0xff] }
 0x26d   : > { %2153 = vmatmul.f32.vlgmr.msrb.gmra.mxu3 %v188_v19 }
 0x26e   : > { %v1637_v46 = vpop.f32.mrf.mxu2  ;;  %v1863_v7 = vpop.f32.mrf.mxu0 }
 0x26f   : > { %v1638_v40 = vadd.f32 %v1637_v46, %v1525_v45  ;;  %v227_v45 = vld [vmem:[%s2738_s22 + $0x190] sm:$0xff] }
 0x270   : > { %v1527_v15 = vpop.f32.mrf.mxu1  ;;  %v1750_v28 = vpop.f32.mrf.mxu3 }
 0x271   : > { %v1751_v24 = vadd.f32 %v1750_v28, %v1638_v40  ;;  %2557 = vmatmul.msk.f32.vlgmr.msrb.gmra.mxu0 %vm797_vm0, %v189_v11  ;;  %v1528_v0 = vadd.f32 %v1527_v15, %v3484_v25  ;;  %v228_v40 = vld [vmem:[%s2738_s22 + $0x198] sm:$0xff] }
 0x273   : > { %v3837_v30 = vadd.f32 %v1863_v7, %v1751_v24  ;;  %1930 = vmatmul.f32.gmra.mxu1 %v199_v61  ;;  %2043 = vmatmul.f32.gmra.mxu2 %v200_v17  ;;  %v238_v17 = vld [vmem:[%s2738_s22 + $0x1e8] sm:$0xff]  ;;  %v239_v24 = vld [vmem:[%s2738_s22 + $0x1f0] sm:$0xff] }
 0x275   : > { %2156 = vmatmul.f32.gmra.mxu3 %v201_v12 }
 0x276   : > { %v1640_v33 = vpop.f32.mrf.mxu2  ;;  %v1866_v31 = vpop.f32.mrf.mxu0 }
 0x277   : > { %v1641_v8 = vadd.f32 %v1640_v33, %v1528_v0  ;;  %v240_v0 = vld [vmem:[%s2738_s22 + $0x1f8] sm:$0xff] }
 0x278   : > { %v1530_v37 = vpop.f32.mrf.mxu1  ;;  %v1753_v36 = vpop.f32.mrf.mxu3 }
 0x279   : > { %v1754_v52 = vadd.f32 %v1753_v36, %v1641_v8  ;;  %2558 = vmatmul.msk.f32.gmra.mxu0 %vm797_vm0, %v202_v13  ;;  %v1531_v25 = vadd.f32 %v1530_v37, %v3500_v47  ;;  %v241_v8 = vld [vmem:[%s2738_s22 + $0x200] sm:$0xff] }
 0x27b   : > { %v3845_v44 = vadd.f32 %v1866_v31, %v1754_v52  ;;  %1933 = vmatmul.f32.gmra.mxu1 %v212_v39  ;;  %2046 = vmatmul.f32.gmra.mxu2 %v213_v38  ;;  %v251_v38 = vld [vmem:[%s2738_s22 + $0x250] sm:$0xff]  ;;  %v252_v52 = vld [vmem:[%s2738_s22 + $0x258] sm:$0xff] }
 0x27d   : > { %2159 = vmatmul.f32.gmra.mxu3 %v214_v14 }
 0x27e   : > { %v1643_v53 = vpop.f32.mrf.mxu2  ;;  %v1869_v55 = vpop.f32.mrf.mxu0 }
 0x27f   : > { %v1644_v51 = vadd.f32 %v1643_v53, %v1531_v25  ;;  %v253_v25 = vld [vmem:[%s2738_s22 + $0x260] sm:$0xff] }
 0x280   : > { %v1533_v18 = vpop.f32.mrf.mxu1  ;;  %v1756_v58 = vpop.f32.mrf.mxu3 }
 0x281   : > { %v1757_v19 = vadd.f32 %v1756_v58, %v1644_v51  ;;  %2559 = vmatmul.msk.f32.gmra.mxu0 %vm797_vm0, %v215_v43  ;;  %v1534_v47 = vadd.f32 %v1533_v18, %v3507_v9  ;;  %v254_v51 = vld [vmem:[%s2738_s22 + $0x268] sm:$0xff] }
 0x283   : > { %v3853_v46 = vadd.f32 %v1869_v55, %v1757_v19  ;;  %1936 = vmatmul.f32.gmra.mxu1 %v225_v23  ;;  %2049 = vmatmul.f32.gmra.mxu2 %v226_v2  ;;  %v264_v2 = vld [vmem:[%s2738_s22 + $0x2b8] sm:$0xff]  ;;  %v265_v19 = vld [vmem:[%s2738_s22 + $0x2c0] sm:$0xff] }
 0x285   : > { %2162 = vmatmul.f32.gmra.mxu3 %v227_v45 }
 0x286   : > { %v1646_v7 = vpop.f32.mrf.mxu2  ;;  %v1872_v11 = vpop.f32.mrf.mxu0 }
 0x287   : > { %v1647_v15 = vadd.f32 %v1646_v7, %v1534_v47  ;;  %v266_v47 = vld [vmem:[%s2738_s22 + $0x2c8] sm:$0xff] }
 0x288   : > { %v1536_v28 = vpop.f32.mrf.mxu1  ;;  %v1759_v61 = vpop.f32.mrf.mxu3 }
 0x289   : > { %v1760_v12 = vadd.f32 %v1759_v61, %v1647_v15  ;;  %2560 = vmatmul.msk.f32.gmra.mxu0 %vm797_vm0, %v228_v40  ;;  %v1537_v9 = vadd.f32 %v1536_v28, %v3523_v6  ;;  %v267_v15 = vld [vmem:[%s2738_s22 + $0x2d0] sm:$0xff] }
 0x28b   : > { %v3861_v33 = vadd.f32 %v1872_v11, %v1760_v12  ;;  %1939 = vmatmul.f32.gmra.mxu1 %v238_v17  ;;  %2052 = vmatmul.f32.gmra.mxu2 %v239_v24  ;;  %v277_v24 = vld [vmem:[%s2738_s22 + $0x320] sm:$0xff]  ;;  %v278_v12 = vld [vmem:[%s2738_s22 + $0x328] sm:$0xff] }
 0x28d   : > { %2165 = vmatmul.f32.gmra.mxu3 %v240_v0 }
 0x28e   : > { %v1649_v31 = vpop.f32.mrf.mxu2  ;;  %v1875_v13 = vpop.f32.mrf.mxu0 }
 0x28f   : > { %v1650_v37 = vadd.f32 %v1649_v31, %v1537_v9  ;;  %v279_v9 = vld [vmem:[%s2738_s22 + $0x330] sm:$0xff] }
 0x290   : > { %v1539_v36 = vpop.f32.mrf.mxu1  ;;  %v1762_v39 = vpop.f32.mrf.mxu3 }
 0x291   : > { %v1763_v14 = vadd.f32 %v1762_v39, %v1650_v37  ;;  %2561 = vmatmul.msk.f32.gmra.mxu0 %vm797_vm0, %v241_v8  ;;  %v1540_v6 = vadd.f32 %v1539_v36, %v3533_v59  ;;  %v280_v37 = vld [vmem:[%s2738_s22 + $0x338] sm:$0xff] }
 0x293   : > { %v3869_v53 = vadd.f32 %v1875_v13, %v1763_v14  ;;  %1942 = vmatmul.f32.gmra.mxu1 %v251_v38  ;;  %2055 = vmatmul.f32.gmra.mxu2 %v252_v52  ;;  %v290_v52 = vld [vmem:[%s2738_s22 + $0x388] sm:$0xff]  ;;  %v291_v14 = vld [vmem:[%s2738_s22 + $0x390] sm:$0xff] }
 0x295   : > { %2168 = vmatmul.f32.gmra.mxu3 %v253_v25 }
 0x296   : > { %v1652_v55 = vpop.f32.mrf.mxu2  ;;  %v1878_v43 = vpop.f32.mrf.mxu0 }
 0x297   : > { %v1653_v18 = vadd.f32 %v1652_v55, %v1540_v6  ;;  %v292_v6 = vld [vmem:[%s2738_s22 + $0x398] sm:$0xff] }
 0x298   : > { %v1542_v58 = vpop.f32.mrf.mxu1  ;;  %v1765_v23 = vpop.f32.mrf.mxu3 }
 0x299   : > { %v1766_v45 = vadd.f32 %v1765_v23, %v1653_v18  ;;  %2562 = vmatmul.msk.f32.gmra.mxu0 %vm797_vm0, %v254_v51  ;;  %v1543_v59 = vadd.f32 %v1542_v58, %v3549_v62  ;;  %v293_v18 = vld [vmem:[%s2738_s22 + $0x3a0] sm:$0xff] }
 0x29b   : > { %v3877_v7 = vadd.f32 %v1878_v43, %v1766_v45  ;;  %1945 = vmatmul.f32.gmra.mxu1 %v264_v2  ;;  %2058 = vmatmul.f32.gmra.mxu2 %v265_v19  ;;  %v303_v19 = vld [vmem:[%s2738_s22 + $0x3f0] sm:$0xff]  ;;  %v304_v45 = vld [vmem:[%s2738_s22 + $0x3f8] sm:$0xff] }
 0x29d   : > { %2171 = vmatmul.f32.gmra.mxu3 %v266_v47 }
 0x29e   : > { %v1655_v11 = vpop.f32.mrf.mxu2  ;;  %v1881_v40 = vpop.f32.mrf.mxu0 }
 0x29f   : > { %v1656_v28 = vadd.f32 %v1655_v11, %v1543_v59  ;;  %v305_v59 = vld [vmem:[%s2738_s22 + $0x400] sm:$0xff] }
 0x2a0   : > { %v1545_v61 = vpop.f32.mrf.mxu1  ;;  %v1768_v17 = vpop.f32.mrf.mxu3 }
 0x2a1   : > { %v1769_v0 = vadd.f32 %v1768_v17, %v1656_v28  ;;  %2563 = vmatmul.msk.f32.gmra.mxu0 %vm797_vm0, %v267_v15  ;;  %v1546_v62 = vadd.f32 %v1545_v61, %v3556_v48  ;;  %v306_v28 = vld [vmem:[%s2738_s22 + $0x408] sm:$0xff] }
 0x2a3   : > { %v3885_v31 = vadd.f32 %v1881_v40, %v1769_v0  ;;  %1948 = vmatmul.f32.gmra.mxu1 %v277_v24  ;;  %2061 = vmatmul.f32.gmra.mxu2 %v278_v12  ;;  %v316_v12 = vld [vmem:[%s2738_s22 + $0x458] sm:$0xff]  ;;  %v317_v0 = vld [vmem:[%s2738_s22 + $0x460] sm:$0xff] }
 0x2a5   : > { %2174 = vmatmul.f32.gmra.mxu3 %v279_v9 }
 0x2a6   : > { %v1658_v13 = vpop.f32.mrf.mxu2  ;;  %v1884_v8 = vpop.f32.mrf.mxu0 }
 0x2a7   : > { %v1659_v36 = vadd.f32 %v1658_v13, %v1546_v62  ;;  %v318_v62 = vld [vmem:[%s2738_s22 + $0x468] sm:$0xff] }
 0x2a8   : > { %v1548_v39 = vpop.f32.mrf.mxu1  ;;  %v1771_v38 = vpop.f32.mrf.mxu3 }
 0x2a9   : > { %v1772_v25 = vadd.f32 %v1771_v38, %v1659_v36  ;;  %2564 = vmatmul.msk.f32.gmra.mxu0 %vm797_vm0, %v280_v37  ;;  %v1549_v48 = vadd.f32 %v1548_v39, %v3572_v22  ;;  %v319_v36 = vld [vmem:[%s2738_s22 + $0x470] sm:$0xff] }
 0x2ab   : > { %v3893_v55 = vadd.f32 %v1884_v8, %v1772_v25  ;;  %1951 = vmatmul.f32.gmra.mxu1 %v290_v52  ;;  %2064 = vmatmul.f32.gmra.mxu2 %v291_v14  ;;  %v329_v14 = vld [vmem:[%s2738_s22 + $0x4c0] sm:$0xff]  ;;  %v330_v25 = vld [vmem:[%s2738_s22 + $0x4c8] sm:$0xff] }
 0x2ad   : > { %2177 = vmatmul.f32.gmra.mxu3 %v292_v6 }
 0x2ae   : > { %v1661_v43 = vpop.f32.mrf.mxu2  ;;  %v1887_v51 = vpop.f32.mrf.mxu0 }
 0x2af   : > { %v1662_v58 = vadd.f32 %v1661_v43, %v1549_v48  ;;  %v331_v48 = vld [vmem:[%s2738_s22 + $0x4d0] sm:$0xff] }
 0x2b0   : > { %v1551_v23 = vpop.f32.mrf.mxu1  ;;  %v1774_v2 = vpop.f32.mrf.mxu3 }
 0x2b1   : > { %v1775_v47 = vadd.f32 %v1774_v2, %v1662_v58  ;;  %2565 = vmatmul.msk.f32.gmra.mxu0 %vm797_vm0, %v293_v18  ;;  %v1552_v22 = vadd.f32 %v1551_v23, %v3582_v35  ;;  %v332_v58 = vld [vmem:[%s2738_s22 + $0x4d8] sm:$0xff] }
 0x2b3   : > { %v3901_v11 = vadd.f32 %v1887_v51, %v1775_v47  ;;  %1954 = vmatmul.f32.gmra.mxu1 %v303_v19  ;;  %2067 = vmatmul.f32.gmra.mxu2 %v304_v45  ;;  %v342_v45 = vld [vmem:[%s2738_s22 + $0x528] sm:$0xff]  ;;  %v343_v47 = vld [vmem:[%s2738_s22 + $0x530] sm:$0xff] }
 0x2b5   : > { %2180 = vmatmul.f32.gmra.mxu3 %v305_v59 }
 0x2b6   : > { %v1664_v40 = vpop.f32.mrf.mxu2  ;;  %v1890_v15 = vpop.f32.mrf.mxu0 }
 0x2b7   : > { %v1665_v61 = vadd.f32 %v1664_v40, %v1552_v22  ;;  %v344_v22 = vld [vmem:[%s2738_s22 + $0x538] sm:$0xff] }
 0x2b8   : > { %v1554_v17 = vpop.f32.mrf.mxu1  ;;  %v1777_v24 = vpop.f32.mrf.mxu3 }
 0x2b9   : > { %v1778_v9 = vadd.f32 %v1777_v24, %v1665_v61  ;;  %2566 = vmatmul.msk.f32.gmra.mxu0 %vm797_vm0, %v306_v28  ;;  %v1555_v35 = vadd.f32 %v1554_v17, %v3598_v49  ;;  %v345_v61 = vld [vmem:[%s2738_s22 + $0x540] sm:$0xff] }
 0x2bb   : > { %v3909_v13 = vadd.f32 %v1890_v15, %v1778_v9  ;;  %1957 = vmatmul.f32.gmra.mxu1 %v316_v12  ;;  %2070 = vmatmul.f32.gmra.mxu2 %v317_v0  ;;  %v355_v0 = vld [vmem:[%s2738_s22 + $0x590] sm:$0xff]  ;;  %v356_v9 = vld [vmem:[%s2738_s22 + $0x598] sm:$0xff] }
 0x2bd   : > { %2183 = vmatmul.f32.gmra.mxu3 %v318_v62 }
 0x2be   : > { %v1667_v8 = vpop.f32.mrf.mxu2  ;;  %v1893_v37 = vpop.f32.mrf.mxu0 }
 0x2bf   : > { %v1668_v39 = vadd.f32 %v1667_v8, %v1555_v35  ;;  %v357_v35 = vld [vmem:[%s2738_s22 + $0x5a0] sm:$0xff] }
 0x2c0   : > { %v1557_v38 = vpop.f32.mrf.mxu1  ;;  %v1780_v52 = vpop.f32.mrf.mxu3 }
 0x2c1   : > { %v1781_v6 = vadd.f32 %v1780_v52, %v1668_v39  ;;  %2567 = vmatmul.msk.f32.gmra.mxu0 %vm797_vm0, %v319_v36  ;;  %v1558_v49 = vadd.f32 %v1557_v38, %v3605_v1  ;;  %v358_v39 = vld [vmem:[%s2738_s22 + $0x5a8] sm:$0xff] }
 0x2c3   : > { %v3917_v43 = vadd.f32 %v1893_v37, %v1781_v6  ;;  %1960 = vmatmul.f32.gmra.mxu1 %v329_v14  ;;  %2073 = vmatmul.f32.gmra.mxu2 %v330_v25  ;;  %v368_v25 = vld [vmem:[%s2738_s22 + $0x5f8] sm:$0xff]  ;;  %v369_v6 = vld [vmem:[%s2738_s22 + $0x600] sm:$0xff] }
 0x2c5   : > { %2186 = vmatmul.f32.gmra.mxu3 %v331_v48 }
 0x2c6   : > { %v1670_v51 = vpop.f32.mrf.mxu2  ;;  %v1896_v18 = vpop.f32.mrf.mxu0 }
 0x2c7   : > { %v1671_v23 = vadd.f32 %v1670_v51, %v1558_v49  ;;  %v370_v49 = vld [vmem:[%s2738_s22 + $0x608] sm:$0xff] }
 0x2c8   : > { %v1560_v2 = vpop.f32.mrf.mxu1  ;;  %v1783_v19 = vpop.f32.mrf.mxu3 }
 0x2c9   : > { %v1784_v59 = vadd.f32 %v1783_v19, %v1671_v23  ;;  %2568 = vmatmul.msk.f32.gmra.mxu0 %vm797_vm0, %v332_v58  ;;  %v1561_v1 = vadd.f32 %v1560_v2, %v3621_v21  ;;  %v371_v23 = vld [vmem:[%s2738_s22 + $0x610] sm:$0xff] }
 0x2cb   : > { %v3925_v40 = vadd.f32 %v1896_v18, %v1784_v59  ;;  %1963 = vmatmul.f32.gmra.mxu1 %v342_v45  ;;  %2076 = vmatmul.f32.gmra.mxu2 %v343_v47  ;;  %v381_v47 = vld [vmem:[%s2738_s22 + $0x660] sm:$0xff]  ;;  %v382_v59 = vld [vmem:[%s2738_s22 + $0x668] sm:$0xff] }
 0x2cd   : > { %2189 = vmatmul.f32.gmra.mxu3 %v344_v22 }
 0x2ce   : > { %v1673_v15 = vpop.f32.mrf.mxu2  ;;  %v1899_v28 = vpop.f32.mrf.mxu0 }
 0x2cf   : > { %v1674_v17 = vadd.f32 %v1673_v15, %v1561_v1  ;;  %v383_v1 = vld [vmem:[%s2738_s22 + $0x670] sm:$0xff] }
 0x2d0   : > { %v1563_v24 = vpop.f32.mrf.mxu1  ;;  %v1786_v12 = vpop.f32.mrf.mxu3 }
 0x2d1   : > { %v1787_v62 = vadd.f32 %v1786_v12, %v1674_v17  ;;  %2569 = vmatmul.msk.f32.gmra.mxu0 %vm797_vm0, %v345_v61  ;;  %v1564_v21 = vadd.f32 %v1563_v24, %v3631_v63  ;;  %v384_v17 = vld [vmem:[%s2738_s22 + $0x678] sm:$0xff] }
 0x2d3   : > { %v3933_v8 = vadd.f32 %v1899_v28, %v1787_v62  ;;  %1966 = vmatmul.f32.gmra.mxu1 %v355_v0  ;;  %2079 = vmatmul.f32.gmra.mxu2 %v356_v9  ;;  %v394_v9 = vld [vmem:[%s2738_s22 + $0x6c8] sm:$0xff]  ;;  %v395_v62 = vld [vmem:[%s2738_s22 + $0x6d0] sm:$0xff] }
 0x2d5   : > { %2192 = vmatmul.f32.gmra.mxu3 %v357_v35 }
 0x2d6   : > { %v1676_v37 = vpop.f32.mrf.mxu2  ;;  %v1902_v36 = vpop.f32.mrf.mxu0 }
 0x2d7   : > { %v1677_v38 = vadd.f32 %v1676_v37, %v1564_v21  ;;  %v396_v21 = vld [vmem:[%s2738_s22 + $0x6d8] sm:$0xff] }
 0x2d8   : > { %v1566_v52 = vpop.f32.mrf.mxu1  ;;  %v1789_v14 = vpop.f32.mrf.mxu3 }
 0x2d9   : > { %v1790_v48 = vadd.f32 %v1789_v14, %v1677_v38  ;;  %2570 = vmatmul.msk.f32.gmra.mxu0 %vm797_vm0, %v358_v39  ;;  %v1567_v63 = vadd.f32 %v1566_v52, %v3647_v3  ;;  %v397_v38 = vld [vmem:[%s2738_s22 + $0x6e0] sm:$0xff] }
 0x2db   : > { %v3941_v51 = vadd.f32 %v1902_v36, %v1790_v48  ;;  %1969 = vmatmul.f32.gmra.mxu1 %v368_v25  ;;  %2082 = vmatmul.f32.gmra.mxu2 %v369_v6  ;;  %v407_v6 = vld [vmem:[%s2738_s22 + $0x730] sm:$0xff]  ;;  %v408_v48 = vld [vmem:[%s2738_s22 + $0x738] sm:$0xff] }
 0x2dd   : > { %2195 = vmatmul.f32.gmra.mxu3 %v370_v49 }
 0x2de   : > { %v1679_v18 = vpop.f32.mrf.mxu2  ;;  %v1905_v58 = vpop.f32.mrf.mxu0 }
 0x2df   : > { %v1680_v2 = vadd.f32 %v1679_v18, %v1567_v63  ;;  %v409_v63 = vld [vmem:[%s2738_s22 + $0x740] sm:$0xff] }
 0x2e0   : > { %v1569_v19 = vpop.f32.mrf.mxu1  ;;  %v1792_v45 = vpop.f32.mrf.mxu3 }
 0x2e1   : > { %v1793_v22 = vadd.f32 %v1792_v45, %v1680_v2  ;;  %2571 = vmatmul.msk.f32.gmra.mxu0 %vm797_vm0, %v371_v23  ;;  %v1570_v3 = vadd.f32 %v1569_v19, %v3654_v50  ;;  %v410_v19 = vld [vmem:[%s2738_s22 + $0x748] sm:$0xff] }
 0x2e3   : > { %v3949_v15 = vadd.f32 %v1905_v58, %v1793_v22  ;;  %1972 = vmatmul.f32.gmra.mxu1 %v381_v47  ;;  %2085 = vmatmul.f32.gmra.mxu2 %v382_v59 }
 0x2e5   : > { %2198 = vmatmul.f32.gmra.mxu3 %v383_v1  ;;  %v421_v1 = vld [vmem:[%s2738_s22 + $0x7a0] sm:$0xff] }
 0x2e6   : > { %v1682_v28 = vpop.f32.mrf.mxu2  ;;  %v1908_v61 = vpop.f32.mrf.mxu0 }
 0x2e7   : > { %v1683_v24 = vadd.f32 %v1682_v28, %v1570_v3 }
 0x2e8   : > { %v1795_v12 = vpop.f32.mrf.mxu3  ;;  %v1928_v0 = vpop.f32.mrf.mxu1 }
 0x2e9   : > { %v1796_v35 = vadd.f32 %v1795_v12, %v1683_v24  ;;  %2572 = vmatmul.msk.f32.gmra.mxu0 %vm797_vm0, %v384_v17  ;;  %v1929_v50 = vadd.f32 %v1928_v0, %v3670_v27 }
 0x2eb   : > { %v3957_v37 = vadd.f32 %v1908_v61, %v1796_v35  ;;  %1975 = vmatmul.f32.gmra.mxu1 %v394_v9  ;;  %2088 = vmatmul.f32.gmra.mxu2 %v395_v62  ;;  %v422_v61 = vld [vmem:[%s2738_s22 + $0x7a8] sm:$0xff]  ;;  %v423_v62 = vld [vmem:[%s2738_s22 + $0x7b0] sm:$0xff] }
 0x2ed   : > { %2201 = vmatmul.f32.gmra.mxu3 %v396_v21 }
 0x2ee   : > { %v2041_v36 = vpop.f32.mrf.mxu2  ;;  %v2267_v39 = vpop.f32.mrf.mxu0 }
 0x2ef   : > { %v2042_v52 = vadd.f32 %v2041_v36, %v1929_v50 }
 0x2f0   : > { %v1931_v14 = vpop.f32.mrf.mxu1  ;;  %v2154_v25 = vpop.f32.mrf.mxu3 }
 0x2f1   : > { %v2155_v49 = vadd.f32 %v2154_v25, %v2042_v52  ;;  %2573 = vmatmul.msk.f32.gmra.mxu0 %vm797_vm0, %v397_v38  ;;  %v1932_v27 = vadd.f32 %v1931_v14, %v3680_v10  ;;  %v420_v10 = vld [vmem:[%s2738_s22 + $0x798] sm:$0xff]  ;;  %v434_v38 = vld [vmem:[%s2738_s22 + $0x808] sm:$0xff]  ;;  %v435_v25 = vld [vmem:[%s2738_s22 + $0x810] sm:$0xff] }
 0x2f3   : > { %v2268_v18 = vadd.f32 %v2267_v39, %v2155_v49  ;;  %1978 = vmatmul.f32.gmra.mxu1 %v407_v6  ;;  %2091 = vmatmul.f32.gmra.mxu2 %v408_v48  ;;  %v433_v39 = vld [vmem:[%s2738_s22 + $0x800] sm:$0xff] }
 0x2f5   : > { %v2363_v58 = vadd.f32 1.0, %v2268_v18  ;;  %2204 = vmatmul.f32.gmra.mxu3 %v409_v63  ;;  %v436_v18 = vld [vmem:[%s2738_s22 + $0x818] sm:$0xff] }
 0x2f6   : > { %v2044_v23 = vpop.f32.mrf.mxu2  ;;  %v2270_v2 = vpop.f32.mrf.mxu0 }
 0x2f7   : > { %v2395_v45 = vmax.f32 %v2363_v58, 0.0  ;;  %v2045_v47 = vadd.f32 %v2044_v23, %v1932_v27 }
 0x2f8   : > { %v1934_v59 = vpop.f32.mrf.mxu1  ;;  %v2157_v22 = vpop.f32.mrf.mxu3 }
 0x2f9   : > { %v2427_v3 = vadd.f32 1e-08, %v2395_v45  ;;  %v2158_v28 = vadd.f32 %v2157_v22, %v2045_v47  ;;  %2574 = vmatmul.msk.f32.gmra.mxu0 %vm797_vm0, %v410_v19  ;;  %v1935_v24 = vadd.f32 %v1934_v59, %v3696_v57  ;;  %v446_v19 = vld [vmem:[%s2738_s22 + $0x868] sm:$0xff]  ;;  %v447_v45 = vld [vmem:[%s2738_s22 + $0x870] sm:$0xff]  ;;  %v448_v22 = vld [vmem:[%s2738_s22 + $0x878] sm:$0xff] }
 0x2fb   : > { %2460 = vst.msk [vmem:[%s3971_s13] sm:$0xff] %vm2459_vm1, %v2427_v3  ;;  %v2271_v17 = vadd.f32 %v2270_v2, %v2158_v28  ;;  %1981 = vmatmul.f32.gmra.mxu1 %v420_v10  ;;  %2094 = vmatmul.f32.gmra.mxu2 %v421_v1 }
 0x2fd   : > { %v2364_v12 = vadd.f32 1.0, %v2271_v17  ;;  %2207 = vmatmul.f32.gmra.mxu3 %v422_v61  ;;  %v449_v61 = vld [vmem:[%s2738_s22 + $0x880] sm:$0xff] }
 0x2fe   : > { %v2047_v0 = vpop.f32.mrf.mxu2  ;;  %v2273_v9 = vpop.f32.mrf.mxu0 }
 0x2ff   : > { %v2396_v35 = vmax.f32 %v2364_v12, 0.0  ;;  %v2048_v21 = vadd.f32 %v2047_v0, %v1935_v24 }
 0x300   : > { %v1937_v50 = vpop.f32.mrf.mxu1  ;;  %v2160_v36 = vpop.f32.mrf.mxu3 }
 0x301   : > { %v2428_v52 = vadd.f32 1e-08, %v2396_v35  ;;  %v2161_v14 = vadd.f32 %v2160_v36, %v2048_v21  ;;  %2575 = vmatmul.msk.f32.gmra.mxu0 %vm797_vm0, %v423_v62  ;;  %v1938_v6 = vadd.f32 %v1937_v50, %v3703_v34  ;;  %v460_v62 = vld [vmem:[%s2738_s22 + $0x8d8] sm:$0xff]  ;;  %v461_v50 = vld [vmem:[%s2738_s22 + $0x8e0] sm:$0xff] }
 0x303   : > { %2461 = vst.msk [vmem:[%s3971_s13 + $0x8] sm:$0xff] %vm2459_vm1, %v2428_v52  ;;  %v2274_v57 = vadd.f32 %v2273_v9, %v2161_v14  ;;  %1984 = vmatmul.f32.gmra.mxu1 %v433_v39  ;;  %2097 = vmatmul.f32.gmra.mxu2 %v434_v38  ;;  %v459_v9 = vld [vmem:[%s2738_s22 + $0x8d0] sm:$0xff]  ;;  %v462_v14 = vld [vmem:[%s2738_s22 + $0x8e8] sm:$0xff] }
 0x305   : > { %v2365_v48 = vadd.f32 1.0, %v2274_v57  ;;  %2210 = vmatmul.f32.gmra.mxu3 %v435_v25 }
 0x306   : > { %v2050_v49 = vpop.f32.mrf.mxu2  ;;  %v2276_v63 = vpop.f32.mrf.mxu0 }
 0x307   : > { %v2397_v27 = vmax.f32 %v2365_v48, 0.0  ;;  %v2051_v58 = vadd.f32 %v2050_v49, %v1938_v6  ;;  %v472_v49 = vld [vmem:[%s2738_s22 + $0x938] sm:$0xff] }
 0x308   : > { %v1940_v23 = vpop.f32.mrf.mxu1  ;;  %v2163_v2 = vpop.f32.mrf.mxu3 }
 0x309   : > { %v2429_v47 = vadd.f32 1e-08, %v2397_v27  ;;  %v2164_v59 = vadd.f32 %v2163_v2, %v2051_v58  ;;  %2576 = vmatmul.msk.f32.gmra.mxu0 %vm797_vm0, %v436_v18  ;;  %v1941_v10 = vadd.f32 %v1940_v23, %v3719_v29  ;;  %v474_v58 = vld [vmem:[%s2738_s22 + $0x948] sm:$0xff] }
 0x30b   : > { %2462 = vst.msk [vmem:[%s3971_s13 + $0x10] sm:$0xff] %vm2459_vm1, %v2429_v47  ;;  %v2277_v34 = vadd.f32 %v2276_v63, %v2164_v59  ;;  %1987 = vmatmul.f32.gmra.mxu1 %v446_v19  ;;  %2100 = vmatmul.f32.gmra.mxu2 %v447_v45  ;;  %v473_v63 = vld [vmem:[%s2738_s22 + $0x940] sm:$0xff]  ;;  %v475_v47 = vld [vmem:[%s2738_s22 + $0x950] sm:$0xff] }
 0x30d   : > { %v2366_v1 = vadd.f32 1.0, %v2277_v34  ;;  %2213 = vmatmul.f32.gmra.mxu3 %v448_v22 }
 0x30e   : > { %v2053_v3 = vpop.f32.mrf.mxu2  ;;  %v2279_v28 = vpop.f32.mrf.mxu0 }
 0x30f   : > { %v2398_v17 = vmax.f32 %v2366_v1, 0.0  ;;  %v2054_v24 = vadd.f32 %v2053_v3, %v1941_v10  ;;  %v485_v1 = vld [vmem:[%s2738_s22 + $0x9a0] sm:$0xff]  ;;  %v486_v3 = vld [vmem:[%s2738_s22 + $0x9a8] sm:$0xff] }
 0x310   : > { %v1943_v12 = vpop.f32.mrf.mxu1  ;;  %v2166_v0 = vpop.f32.mrf.mxu3 }
 0x311   : > { %v2430_v35 = vadd.f32 1e-08, %v2398_v17  ;;  %v2167_v21 = vadd.f32 %v2166_v0, %v2054_v24  ;;  %2577 = vmatmul.msk.f32.gmra.mxu0 %vm797_vm0, %v449_v61  ;;  %v1944_v36 = vadd.f32 %v1943_v12, %v3729_v4  ;;  %v487_v17 = vld [vmem:[%s2738_s22 + $0x9b0] sm:$0xff] }
 0x313   : > { %2463 = vst.msk [vmem:[%s3971_s13 + $0x18] sm:$0xff] %vm2459_vm1, %v2430_v35  ;;  %v2280_v29 = vadd.f32 %v2279_v28, %v2167_v21  ;;  %1990 = vmatmul.f32.gmra.mxu1 %v459_v9  ;;  %2103 = vmatmul.f32.gmra.mxu2 %v460_v62  ;;  %v488_v62 = vld [vmem:[%s2738_s22 + $0x9b8] sm:$0xff] }
 0x315   : > { %v2367_v39 = vadd.f32 1.0, %v2280_v29  ;;  %2216 = vmatmul.f32.gmra.mxu3 %v461_v50 }
 0x316   : > { %v2056_v38 = vpop.f32.mrf.mxu2  ;;  %v2282_v52 = vpop.f32.mrf.mxu0 }
 0x317   : > { %v2399_v25 = vmax.f32 %v2367_v39, 0.0  ;;  %v2057_v57 = vadd.f32 %v2056_v38, %v1944_v36  ;;  %v498_v36 = vld [vmem:[%s2738_s22 + $0xa08] sm:$0xff]  ;;  %v499_v39 = vld [vmem:[%s2738_s22 + $0xa10] sm:$0xff] }
 0x318   : > { %v1946_v6 = vpop.f32.mrf.mxu1  ;;  %v2169_v48 = vpop.f32.mrf.mxu3 }
 0x319   : > { %v2431_v18 = vadd.f32 1e-08, %v2399_v25  ;;  %v2170_v27 = vadd.f32 %v2169_v48, %v2057_v57  ;;  %2578 = vmatmul.msk.f32.gmra.mxu0 %vm797_vm0, %v462_v14  ;;  %v1947_v23 = vadd.f32 %v1946_v6, %v3745_v26  ;;  %v500_v14 = vld [vmem:[%s2738_s22 + $0xa18] sm:$0xff] }
 0x31b   : > { %2464 = vst.msk [vmem:[%s3971_s13 + $0x20] sm:$0xff] %vm2459_vm1, %v2431_v18  ;;  %v2283_v4 = vadd.f32 %v2282_v52, %v2170_v27  ;;  %1993 = vmatmul.f32.gmra.mxu1 %v472_v49  ;;  %2106 = vmatmul.f32.gmra.mxu2 %v473_v63  ;;  %v501_v49 = vld [vmem:[%s2738_s22 + $0xa20] sm:$0xff] }
 0x31d   : > { %v2368_v2 = vadd.f32 1.0, %v2283_v4  ;;  %2219 = vmatmul.f32.gmra.mxu3 %v474_v58  ;;  %v511_v4 = vld [vmem:[%s2738_s22 + $0xa70] sm:$0xff] }
 0x31e   : > { %v2059_v19 = vpop.f32.mrf.mxu2  ;;  %v2285_v45 = vpop.f32.mrf.mxu0 }
 0x31f   : > { %v2400_v59 = vmax.f32 %v2368_v2, 0.0  ;;  %v2060_v22 = vadd.f32 %v2059_v19, %v1947_v23  ;;  %v512_v23 = vld [vmem:[%s2738_s22 + $0xa78] sm:$0xff] }
 0x320   : > { %v1949_v34 = vpop.f32.mrf.mxu1  ;;  %v2172_v10 = vpop.f32.mrf.mxu3 }
 0x321   : > { %v2432_v28 = vadd.f32 1e-08, %v2400_v59  ;;  %v2173_v61 = vadd.f32 %v2172_v10, %v2060_v22  ;;  %2579 = vmatmul.msk.f32.gmra.mxu0 %vm797_vm0, %v475_v47  ;;  %v1950_v24 = vadd.f32 %v1949_v34, %v3752_v56  ;;  %v514_v10 = vld [vmem:[%s2738_s22 + $0xa88] sm:$0xff] }
 0x323   : > { %2465 = vst.msk [vmem:[%s3971_s13 + $0x28] sm:$0xff] %vm2459_vm1, %v2432_v28  ;;  %v2286_v26 = vadd.f32 %v2285_v45, %v2173_v61  ;;  %1996 = vmatmul.f32.gmra.mxu1 %v485_v1  ;;  %2109 = vmatmul.f32.gmra.mxu2 %v486_v3  ;;  %v513_v45 = vld [vmem:[%s2738_s22 + $0xa80] sm:$0xff] }
 0x325   : > { %v2369_v12 = vadd.f32 1.0, %v2286_v26  ;;  %2222 = vmatmul.f32.gmra.mxu3 %v487_v17  ;;  %v524_v17 = vld [vmem:[%s2738_s22 + $0xad8] sm:$0xff]  ;;  %v525_v26 = vld [vmem:[%s2738_s22 + $0xae0] sm:$0xff] }
 0x326   : > { %v2062_v0 = vpop.f32.mrf.mxu2  ;;  %v2288_v9 = vpop.f32.mrf.mxu0 }
 0x327   : > { %v2401_v35 = vmax.f32 %v2369_v12, 0.0  ;;  %v2063_v21 = vadd.f32 %v2062_v0, %v1950_v24  ;;  %v526_v0 = vld [vmem:[%s2738_s22 + $0xae8] sm:$0xff] }
 0x328   : > { %v1952_v50 = vpop.f32.mrf.mxu1  ;;  %v2175_v29 = vpop.f32.mrf.mxu3 }
 0x329   : > { %v2433_v38 = vadd.f32 1e-08, %v2401_v35  ;;  %v2176_v52 = vadd.f32 %v2175_v29, %v2063_v21  ;;  %2580 = vmatmul.msk.f32.gmra.mxu0 %vm797_vm0, %v488_v62  ;;  %v1953_v25 = vadd.f32 %v1952_v50, %v3768_v60  ;;  %v527_v50 = vld [vmem:[%s2738_s22 + $0xaf0] sm:$0xff] }
 0x32b   : > { %2466 = vst.msk [vmem:[%s3971_s13 + $0x30] sm:$0xff] %vm2459_vm1, %v2433_v38  ;;  %v2289_v56 = vadd.f32 %v2288_v9, %v2176_v52  ;;  %1999 = vmatmul.f32.gmra.mxu1 %v498_v36  ;;  %2112 = vmatmul.f32.gmra.mxu2 %v499_v39  ;;  %v537_v52 = vld [vmem:[%s2738_s22 + $0xb40] sm:$0xff] }
 0x32d   : > { %v2370_v57 = vadd.f32 1.0, %v2289_v56  ;;  %2225 = vmatmul.f32.gmra.mxu3 %v500_v14  ;;  %v538_v14 = vld [vmem:[%s2738_s22 + $0xb48] sm:$0xff] }
 0x32e   : > { %v2065_v6 = vpop.f32.mrf.mxu2  ;;  %v2291_v48 = vpop.f32.mrf.mxu0 }
 0x32f   : > { %v2402_v63 = vmax.f32 %v2370_v57, 0.0  ;;  %v2066_v18 = vadd.f32 %v2065_v6, %v1953_v25  ;;  %v539_v57 = vld [vmem:[%s2738_s22 + $0xb50] sm:$0xff] }
 0x330   : > { %v1955_v27 = vpop.f32.mrf.mxu1  ;;  %v2178_v58 = vpop.f32.mrf.mxu3 }
 0x331   : > { %v2434_v2 = vadd.f32 1e-08, %v2402_v63  ;;  %v2179_v19 = vadd.f32 %v2178_v58, %v2066_v18  ;;  %2581 = vmatmul.msk.f32.gmra.mxu0 %vm797_vm0, %v501_v49  ;;  %v1956_v47 = vadd.f32 %v1955_v27, %v3778_v16  ;;  %v540_v18 = vld [vmem:[%s2738_s22 + $0xb58] sm:$0xff] }
 0x333   : > { %2467 = vst.msk [vmem:[%s3971_s13 + $0x38] sm:$0xff] %vm2459_vm1, %v2434_v2  ;;  %v2292_v60 = vadd.f32 %v2291_v48, %v2179_v19  ;;  %2002 = vmatmul.f32.gmra.mxu1 %v511_v4  ;;  %2115 = vmatmul.f32.gmra.mxu2 %v512_v23  ;;  %v550_v2 = vld [vmem:[%s2738_s22 + $0xba8] sm:$0xff]  ;;  %v551_v19 = vld [vmem:[%s2738_s22 + $0xbb0] sm:$0xff] }
 0x335   : > { %v2371_v59 = vadd.f32 1.0, %v2292_v60  ;;  %2228 = vmatmul.f32.gmra.mxu3 %v513_v45 }
 0x336   : > { %v2068_v22 = vpop.f32.mrf.mxu2  ;;  %v2294_v34 = vpop.f32.mrf.mxu0 }
 0x337   : > { %v2403_v1 = vmax.f32 %v2371_v59, 0.0  ;;  %v2069_v3 = vadd.f32 %v2068_v22, %v1956_v47  ;;  %v552_v47 = vld [vmem:[%s2738_s22 + $0xbb8] sm:$0xff] }
 0x338   : > { %v1958_v28 = vpop.f32.mrf.mxu1  ;;  %v2181_v61 = vpop.f32.mrf.mxu3 }
 0x339   : > { %v2435_v24 = vadd.f32 1e-08, %v2403_v1  ;;  %v2182_v12 = vadd.f32 %v2181_v61, %v2069_v3  ;;  %2582 = vmatmul.msk.f32.gmra.mxu0 %vm797_vm0, %v514_v10  ;;  %v1959_v9 = vadd.f32 %v1958_v28, %v3794_v20  ;;  %v553_v1 = vld [vmem:[%s2738_s22 + $0xbc0] sm:$0xff] }
 0x33b   : > { %2468 = vst.msk [vmem:[%s3971_s13 + $0x40] sm:$0xff] %vm2459_vm1, %v2435_v24  ;;  %v2295_v16 = vadd.f32 %v2294_v34, %v2182_v12  ;;  %2005 = vmatmul.f32.gmra.mxu1 %v524_v17  ;;  %2118 = vmatmul.f32.gmra.mxu2 %v525_v26  ;;  %v563_v26 = vld [vmem:[%s2738_s22 + $0xc10] sm:$0xff]  ;;  %v564_v24 = vld [vmem:[%s2738_s22 + $0xc18] sm:$0xff] }
 0x33d   : > { %v2372_v62 = vadd.f32 1.0, %v2295_v16  ;;  %2231 = vmatmul.f32.gmra.mxu3 %v526_v0  ;;  %v565_v16 = vld [vmem:[%s2738_s22 + $0xc20] sm:$0xff] }
 0x33e   : > { %v2071_v35 = vpop.f32.mrf.mxu2  ;;  %v2297_v21 = vpop.f32.mrf.mxu0 }
 0x33f   : > { %v2404_v29 = vmax.f32 %v2372_v62, 0.0  ;;  %v2072_v36 = vadd.f32 %v2071_v35, %v1959_v9 }
 0x340   : > { %v1961_v39 = vpop.f32.mrf.mxu1  ;;  %v2184_v38 = vpop.f32.mrf.mxu3 }
 0x341   : > { %v2436_v56 = vadd.f32 1e-08, %v2404_v29  ;;  %v2185_v25 = vadd.f32 %v2184_v38, %v2072_v36  ;;  %2583 = vmatmul.msk.f32.gmra.mxu0 %vm797_vm0, %v527_v50  ;;  %v1962_v6 = vadd.f32 %v1961_v39, %v3801_v41  ;;  %v566_v50 = vld [vmem:[%s2738_s22 + $0xc28] sm:$0xff] }
 0x343   : > { %2469 = vst.msk [vmem:[%s3971_s13 + $0x48] sm:$0xff] %vm2459_vm1, %v2436_v56  ;;  %v2298_v20 = vadd.f32 %v2297_v21, %v2185_v25  ;;  %2008 = vmatmul.f32.gmra.mxu1 %v537_v52  ;;  %2121 = vmatmul.f32.gmra.mxu2 %v538_v14  ;;  %v576_v52 = vld [vmem:[%s2738_s22 + $0xc78] sm:$0xff]  ;;  %v577_v14 = vld [vmem:[%s2738_s22 + $0xc80] sm:$0xff] }
 0x345   : > { %v2373_v48 = vadd.f32 1.0, %v2298_v20  ;;  %2234 = vmatmul.f32.gmra.mxu3 %v539_v57  ;;  %v578_v57 = vld [vmem:[%s2738_s22 + $0xc88] sm:$0xff] }
 0x346   : > { %v2074_v49 = vpop.f32.mrf.mxu2  ;;  %v2300_v63 = vpop.f32.mrf.mxu0 }
 0x347   : > { %v2405_v27 = vmax.f32 %v2373_v48, 0.0  ;;  %v2075_v58 = vadd.f32 %v2074_v49, %v1962_v6 }
 0x348   : > { %v1964_v4 = vpop.f32.mrf.mxu1  ;;  %v2187_v23 = vpop.f32.mrf.mxu3 }
 0x349   : > { %v2437_v45 = vadd.f32 1e-08, %v2405_v27  ;;  %v2188_v60 = vadd.f32 %v2187_v23, %v2075_v58  ;;  %2584 = vmatmul.msk.f32.gmra.mxu0 %vm797_vm0, %v540_v18  ;;  %v1965_v59 = vadd.f32 %v1964_v4, %v3808_v5  ;;  %v589_v23 = vld [vmem:[%s2738_s22 + $0xce0] sm:$0xff] }
 0x34b   : > { %2470 = vst.msk [vmem:[%s3971_s13 + $0x50] sm:$0xff] %vm2459_vm1, %v2437_v45  ;;  %v2301_v41 = vadd.f32 %v2300_v63, %v2188_v60  ;;  %2011 = vmatmul.f32.gmra.mxu1 %v550_v2  ;;  %2124 = vmatmul.f32.gmra.mxu2 %v551_v19  ;;  %v579_v63 = vld [vmem:[%s2738_s22 + $0xc90] sm:$0xff]  ;;  %v590_v2 = vld [vmem:[%s2738_s22 + $0xce8] sm:$0xff] }
 0x34c   : > { %v591_v60 = vld [vmem:[%s2738_s22 + $0xcf0] sm:$0xff] }
 0x34d   : > { %v2374_v22 = vadd.f32 1.0, %v2301_v41  ;;  %2237 = vmatmul.f32.gmra.mxu3 %v552_v47 }
 0x34e   : > { %v2077_v34 = vpop.f32.mrf.mxu2  ;;  %v2303_v10 = vpop.f32.mrf.mxu0 }
 0x34f   : > { %v2406_v3 = vmax.f32 %v2374_v22, 0.0  ;;  %v2078_v28 = vadd.f32 %v2077_v34, %v1965_v59  ;;  %v592_v34 = vld [vmem:[%s2738_s22 + $0xcf8] sm:$0xff] }
 0x350   : > { %v1967_v61 = vpop.f32.mrf.mxu1  ;;  %v2190_v17 = vpop.f32.mrf.mxu3 }
 0x351   : > { %v2438_v12 = vadd.f32 1e-08, %v2406_v3  ;;  %v2191_v0 = vadd.f32 %v2190_v17, %v2078_v28  ;;  %2585 = vmatmul.msk.f32.gmra.mxu0 %vm797_vm0, %v553_v1  ;;  %v1968_v9 = vadd.f32 %v1967_v61, %v3815_v32 }
 0x353   : > { %2471 = vst.msk [vmem:[%s3971_s13 + $0x58] sm:$0xff] %vm2459_vm1, %v2438_v12  ;;  %v2304_v5 = vadd.f32 %v2303_v10, %v2191_v0  ;;  %2014 = vmatmul.f32.gmra.mxu1 %v563_v26  ;;  %2127 = vmatmul.f32.gmra.mxu2 %v564_v24 }
 0x355   : > { %v2375_v62 = vadd.f32 1.0, %v2304_v5  ;;  %2240 = vmatmul.f32.gmra.mxu3 %v565_v16 }
 0x356   : > { %v2080_v35 = vpop.f32.mrf.mxu2  ;;  %v2306_v21 = vpop.f32.mrf.mxu0 }
 0x357   : > { %v2407_v29 = vmax.f32 %v2375_v62, 0.0  ;;  %v2081_v36 = vadd.f32 %v2080_v35, %v1968_v9 }
 0x358   : > { %v1970_v39 = vpop.f32.mrf.mxu1  ;;  %v2193_v38 = vpop.f32.mrf.mxu3 }
 0x359   : > { %v2439_v56 = vadd.f32 1e-08, %v2407_v29  ;;  %v2194_v25 = vadd.f32 %v2193_v38, %v2081_v36  ;;  %2586 = vmatmul.msk.f32.gmra.mxu0 %vm797_vm0, %v566_v50  ;;  %v1971_v20 = vadd.f32 %v1970_v39, %v3822_v42 }
 0x35b   : > { %2472 = vst.msk [vmem:[%s3971_s13 + $0x60] sm:$0xff] %vm2459_vm1, %v2439_v56  ;;  %v2307_v32 = vadd.f32 %v2306_v21, %v2194_v25  ;;  %2017 = vmatmul.f32.gmra.mxu1 %v576_v52  ;;  %2130 = vmatmul.f32.gmra.mxu2 %v577_v14 }
 0x35d   : > { %v2376_v6 = vadd.f32 1.0, %v2307_v32  ;;  %2243 = vmatmul.f32.gmra.mxu3 %v578_v57 }
 0x35e   : > { %v2083_v48 = vpop.f32.mrf.mxu2  ;;  %v2309_v49 = vpop.f32.mrf.mxu0 }
 0x35f   : > { %v2408_v18 = vmax.f32 %v2376_v6, 0.0  ;;  %v2084_v27 = vadd.f32 %v2083_v48, %v1971_v20 }
 0x360   : > { %v1973_v58 = vpop.f32.mrf.mxu1  ;;  %v2196_v4 = vpop.f32.mrf.mxu3 }
 0x361   : > { %v2440_v19 = vadd.f32 1e-08, %v2408_v18  ;;  %v2197_v45 = vadd.f32 %v2196_v4, %v2084_v27  ;;  %2587 = vmatmul.msk.f32.gmra.mxu0 %vm797_vm0, %v579_v63  ;;  %v1974_v47 = vadd.f32 %v1973_v58, %v3829_v54 }
 0x363   : > { %2473 = vst.msk [vmem:[%s3971_s13 + $0x68] sm:$0xff] %vm2459_vm1, %v2440_v19  ;;  %v2310_v42 = vadd.f32 %v2309_v49, %v2197_v45  ;;  %2020 = vmatmul.f32.gmra.mxu1 %v589_v23  ;;  %2133 = vmatmul.f32.gmra.mxu2 %v590_v2 }
 0x365   : > { %v2377_v41 = vadd.f32 1.0, %v2310_v42  ;;  %2246 = vmatmul.f32.gmra.mxu3 %v591_v60 }
 0x366   : > { %v2086_v59 = vpop.f32.mrf.mxu2  ;;  %v2312_v22 = vpop.f32.mrf.mxu0 }
 0x367   : > { %v2409_v10 = vmax.f32 %v2377_v41, 0.0  ;;  %v2087_v1 = vadd.f32 %v2086_v59, %v1974_v47 }
 0x368   : > { %v1976_v3 = vpop.f32.mrf.mxu1  ;;  %v2199_v28 = vpop.f32.mrf.mxu3 }
 0x369   : > { %v2441_v61 = vadd.f32 1e-08, %v2409_v10  ;;  %v2200_v17 = vadd.f32 %v2199_v28, %v2087_v1  ;;  %2588 = vmatmul.msk.f32.gmra.mxu0 %vm797_vm0, %v592_v34  ;;  %v1977_v24 = vadd.f32 %v1976_v3, %v3837_v30 }
 0x36b   : > { %2474 = vst.msk [vmem:[%s3971_s13 + $0x70] sm:$0xff] %vm2459_vm1, %v2441_v61  ;;  %v2313_v26 = vadd.f32 %v2312_v22, %v2200_v17 }
 0x36d   : > { %v2378_v54 = vadd.f32 1.0, %v2313_v26 }
 0x36e   : > { %v2089_v12 = vpop.f32.mrf.mxu2  ;;  %v2315_v0 = vpop.f32.mrf.mxu0 }
 0x36f   : > { %v2410_v16 = vmax.f32 %v2378_v54, 0.0  ;;  %v2090_v5 = vadd.f32 %v2089_v12, %v1977_v24 }
 0x370   : > { %v1979_v9 = vpop.f32.mrf.mxu1  ;;  %v2202_v62 = vpop.f32.mrf.mxu3 }
 0x371   : > { %v2442_v35 = vadd.f32 1e-08, %v2410_v16  ;;  %v2203_v21 = vadd.f32 %v2202_v62, %v2090_v5  ;;  %v1980_v29 = vadd.f32 %v1979_v9, %v3845_v44 }
 0x373   : > { %2475 = vst.msk [vmem:[%s3971_s13 + $0x78] sm:$0xff] %vm2459_vm1, %v2442_v35  ;;  %v2316_v50 = vadd.f32 %v2315_v0, %v2203_v21 }
 0x375   : > { %v2379_v36 = vadd.f32 1.0, %v2316_v50 }
 0x376   : > { %v2092_v39 = vpop.f32.mrf.mxu2  ;;  %v2318_v38 = vpop.f32.mrf.mxu0 }
 0x377   : > { %v2411_v52 = vmax.f32 %v2379_v36, 0.0  ;;  %v2093_v30 = vadd.f32 %v2092_v39, %v1980_v29 }
 0x378   : > { %v1982_v14 = vpop.f32.mrf.mxu1  ;;  %v2205_v56 = vpop.f32.mrf.mxu3 }
 0x379   : > { %v2443_v25 = vadd.f32 1e-08, %v2411_v52  ;;  %v2206_v57 = vadd.f32 %v2205_v56, %v2093_v30  ;;  %v1983_v20 = vadd.f32 %v1982_v14, %v3853_v46 }
 0x37b   : > { %2476 = vst.msk [vmem:[%s3971_s13 + $0x80] sm:$0xff] %vm2459_vm1, %v2443_v25  ;;  %v2319_v32 = vadd.f32 %v2318_v38, %v2206_v57 }
 0x37d   : > { %v2380_v6 = vadd.f32 1.0, %v2319_v32 }
 0x37e   : > { %v2095_v48 = vpop.f32.mrf.mxu2  ;;  %v2321_v49 = vpop.f32.mrf.mxu0 }
 0x37f   : > { %v2412_v63 = vmax.f32 %v2380_v6, 0.0  ;;  %v2096_v44 = vadd.f32 %v2095_v48, %v1983_v20 }
 0x380   : > { %v1985_v18 = vpop.f32.mrf.mxu1  ;;  %v2208_v27 = vpop.f32.mrf.mxu3 }
 0x381   : > { %v2444_v58 = vadd.f32 1e-08, %v2412_v63  ;;  %v2209_v4 = vadd.f32 %v2208_v27, %v2096_v44  ;;  %v1986_v2 = vadd.f32 %v1985_v18, %v3861_v33 }
 0x383   : > { %2477 = vst.msk [vmem:[%s3971_s13 + $0x88] sm:$0xff] %vm2459_vm1, %v2444_v58  ;;  %v2322_v23 = vadd.f32 %v2321_v49, %v2209_v4 }
 0x385   : > { %v2381_v19 = vadd.f32 1.0, %v2322_v23 }
 0x386   : > { %v2098_v45 = vpop.f32.mrf.mxu2  ;;  %v2324_v60 = vpop.f32.mrf.mxu0 }
 0x387   : > { %v2413_v42 = vmax.f32 %v2381_v19, 0.0  ;;  %v2099_v46 = vadd.f32 %v2098_v45, %v1986_v2 }
 0x388   : > { %v1988_v47 = vpop.f32.mrf.mxu1  ;;  %v2211_v41 = vpop.f32.mrf.mxu3 }
 0x389   : > { %v2445_v59 = vadd.f32 1e-08, %v2413_v42  ;;  %v2212_v22 = vadd.f32 %v2211_v41, %v2099_v46  ;;  %v1989_v10 = vadd.f32 %v1988_v47, %v3869_v53 }
 0x38b   : > { %2478 = vst.msk [vmem:[%s3971_s13 + $0x90] sm:$0xff] %vm2459_vm1, %v2445_v59  ;;  %v2325_v34 = vadd.f32 %v2324_v60, %v2212_v22 }
 0x38d   : > { %v2382_v1 = vadd.f32 1.0, %v2325_v34 }
 0x38e   : > { %v2101_v3 = vpop.f32.mrf.mxu2  ;;  %v2327_v28 = vpop.f32.mrf.mxu0 }
 0x38f   : > { %v2414_v61 = vmax.f32 %v2382_v1, 0.0  ;;  %v2102_v33 = vadd.f32 %v2101_v3, %v1989_v10 }
 0x390   : > { %v1991_v17 = vpop.f32.mrf.mxu1  ;;  %v2214_v26 = vpop.f32.mrf.mxu3 }
 0x391   : > { %v2446_v24 = vadd.f32 1e-08, %v2414_v61  ;;  %v2215_v54 = vadd.f32 %v2214_v26, %v2102_v33  ;;  %v1992_v0 = vadd.f32 %v1991_v17, %v3877_v7 }
 0x393   : > { %2479 = vst.msk [vmem:[%s3971_s13 + $0x98] sm:$0xff] %vm2459_vm1, %v2446_v24  ;;  %v2328_v12 = vadd.f32 %v2327_v28, %v2215_v54 }
 0x395   : > { %v2383_v16 = vadd.f32 1.0, %v2328_v12 }
 0x396   : > { %v2104_v5 = vpop.f32.mrf.mxu2  ;;  %v2330_v9 = vpop.f32.mrf.mxu0 }
 0x397   : > { %v2415_v62 = vmax.f32 %v2383_v16, 0.0  ;;  %v2105_v53 = vadd.f32 %v2104_v5, %v1992_v0 }
 0x398   : > { %v1994_v35 = vpop.f32.mrf.mxu1  ;;  %v2217_v21 = vpop.f32.mrf.mxu3 }
 0x399   : > { %v2447_v50 = vadd.f32 1e-08, %v2415_v62  ;;  %v2218_v29 = vadd.f32 %v2217_v21, %v2105_v53  ;;  %v1995_v39 = vadd.f32 %v1994_v35, %v3885_v31 }
 0x39b   : > { %2480 = vst.msk [vmem:[%s3971_s13 + $0xa0] sm:$0xff] %vm2459_vm1, %v2447_v50  ;;  %v2331_v36 = vadd.f32 %v2330_v9, %v2218_v29 }
 0x39d   : > { %v2384_v38 = vadd.f32 1.0, %v2331_v36 }
 0x39e   : > { %v2107_v52 = vpop.f32.mrf.mxu2  ;;  %v2333_v30 = vpop.f32.mrf.mxu0 }
 0x39f   : > { %v2416_v14 = vmax.f32 %v2384_v38, 0.0  ;;  %v2108_v7 = vadd.f32 %v2107_v52, %v1995_v39 }
 0x3a0   : > { %v1997_v56 = vpop.f32.mrf.mxu1  ;;  %v2220_v25 = vpop.f32.mrf.mxu3 }
 0x3a1   : > { %v2448_v57 = vadd.f32 1e-08, %v2416_v14  ;;  %v2221_v32 = vadd.f32 %v2220_v25, %v2108_v7  ;;  %v1998_v6 = vadd.f32 %v1997_v56, %v3893_v55 }
 0x3a3   : > { %2481 = vst.msk [vmem:[%s3971_s13 + $0xa8] sm:$0xff] %vm2459_vm1, %v2448_v57  ;;  %v2334_v20 = vadd.f32 %v2333_v30, %v2221_v32 }
 0x3a5   : > { %v2385_v48 = vadd.f32 1.0, %v2334_v20 }
 0x3a6   : > { %v2110_v49 = vpop.f32.mrf.mxu2  ;;  %v2336_v63 = vpop.f32.mrf.mxu0 }
 0x3a7   : > { %v2417_v44 = vmax.f32 %v2385_v48, 0.0  ;;  %v2111_v31 = vadd.f32 %v2110_v49, %v1998_v6 }
 0x3a8   : > { %v2000_v18 = vpop.f32.mrf.mxu1  ;;  %v2223_v27 = vpop.f32.mrf.mxu3 }
 0x3a9   : > { %v2449_v58 = vadd.f32 1e-08, %v2417_v44  ;;  %v2224_v4 = vadd.f32 %v2223_v27, %v2111_v31  ;;  %v2001_v2 = vadd.f32 %v2000_v18, %v3901_v11 }
 0x3ab   : > { %2482 = vst.msk [vmem:[%s3971_s13 + $0xb0] sm:$0xff] %vm2459_vm1, %v2449_v58  ;;  %v2337_v23 = vadd.f32 %v2336_v63, %v2224_v4 }
 0x3ad   : > { %v2386_v19 = vadd.f32 1.0, %v2337_v23 }
 0x3ae   : > { %v2113_v45 = vpop.f32.mrf.mxu2  ;;  %v2339_v60 = vpop.f32.mrf.mxu0 }
 0x3af   : > { %v2418_v42 = vmax.f32 %v2386_v19, 0.0  ;;  %v2114_v55 = vadd.f32 %v2113_v45, %v2001_v2 }
 0x3b0   : > { %v2003_v46 = vpop.f32.mrf.mxu1  ;;  %v2226_v47 = vpop.f32.mrf.mxu3 }
 0x3b1   : > { %v2450_v41 = vadd.f32 1e-08, %v2418_v42  ;;  %v2227_v59 = vadd.f32 %v2226_v47, %v2114_v55  ;;  %v2004_v34 = vadd.f32 %v2003_v46, %v3909_v13 }
 0x3b3   : > { %2483 = vst.msk [vmem:[%s3971_s13 + $0xb8] sm:$0xff] %vm2459_vm1, %v2450_v41  ;;  %v2340_v22 = vadd.f32 %v2339_v60, %v2227_v59 }
 0x3b5   : > { %v2387_v10 = vadd.f32 1.0, %v2340_v22 }
 0x3b6   : > { %v2116_v1 = vpop.f32.mrf.mxu2  ;;  %v2342_v3 = vpop.f32.mrf.mxu0 }
 0x3b7   : > { %v2419_v28 = vmax.f32 %v2387_v10, 0.0  ;;  %v2117_v11 = vadd.f32 %v2116_v1, %v2004_v34 }
 0x3b8   : > { %v2006_v61 = vpop.f32.mrf.mxu1  ;;  %v2229_v33 = vpop.f32.mrf.mxu3 }
 0x3b9   : > { %v2451_v17 = vadd.f32 1e-08, %v2419_v28  ;;  %v2230_v26 = vadd.f32 %v2229_v33, %v2117_v11  ;;  %v2007_v54 = vadd.f32 %v2006_v61, %v3917_v43 }
 0x3bb   : > { %2484 = vst.msk [vmem:[%s3971_s13 + $0xc0] sm:$0xff] %vm2459_vm1, %v2451_v17  ;;  %v2343_v24 = vadd.f32 %v2342_v3, %v2230_v26 }
 0x3bd   : > { %v2388_v12 = vadd.f32 1.0, %v2343_v24 }
 0x3be   : > { %v2119_v0 = vpop.f32.mrf.mxu2  ;;  %v2345_v16 = vpop.f32.mrf.mxu0 }
 0x3bf   : > { %v2420_v5 = vmax.f32 %v2388_v12, 0.0  ;;  %v2120_v13 = vadd.f32 %v2119_v0, %v2007_v54 }
 0x3c0   : > { %v2009_v9 = vpop.f32.mrf.mxu1  ;;  %v2232_v62 = vpop.f32.mrf.mxu3 }
 0x3c1   : > { %v2452_v53 = vadd.f32 1e-08, %v2420_v5  ;;  %v2233_v35 = vadd.f32 %v2232_v62, %v2120_v13  ;;  %v2010_v50 = vadd.f32 %v2009_v9, %v3925_v40 }
 0x3c3   : > { %2485 = vst.msk [vmem:[%s3971_s13 + $0xc8] sm:$0xff] %vm2459_vm1, %v2452_v53  ;;  %v2346_v21 = vadd.f32 %v2345_v16, %v2233_v35 }
 0x3c5   : > { %v2389_v29 = vadd.f32 1.0, %v2346_v21 }
 0x3c6   : > { %v2122_v36 = vpop.f32.mrf.mxu2  ;;  %v2348_v39 = vpop.f32.mrf.mxu0 }
 0x3c7   : > { %v2421_v38 = vmax.f32 %v2389_v29, 0.0  ;;  %v2123_v43 = vadd.f32 %v2122_v36, %v2010_v50 }
 0x3c8   : > { %v2012_v52 = vpop.f32.mrf.mxu1  ;;  %v2235_v30 = vpop.f32.mrf.mxu3 }
 0x3c9   : > { %v2453_v14 = vadd.f32 1e-08, %v2421_v38  ;;  %v2236_v7 = vadd.f32 %v2235_v30, %v2123_v43  ;;  %v2013_v25 = vadd.f32 %v2012_v52, %v3933_v8 }
 0x3cb   : > { %2486 = vst.msk [vmem:[%s3971_s13 + $0xd0] sm:$0xff] %vm2459_vm1, %v2453_v14  ;;  %v2349_v56 = vadd.f32 %v2348_v39, %v2236_v7 }
 0x3cd   : > { %v2390_v57 = vadd.f32 1.0, %v2349_v56 }
 0x3ce   : > { %v2125_v32 = vpop.f32.mrf.mxu2  ;;  %v2351_v20 = vpop.f32.mrf.mxu0 }
 0x3cf   : > { %v2422_v6 = vmax.f32 %v2390_v57, 0.0  ;;  %v2126_v40 = vadd.f32 %v2125_v32, %v2013_v25 }
 0x3d0   : > { %v2015_v48 = vpop.f32.mrf.mxu1  ;;  %v2238_v49 = vpop.f32.mrf.mxu3 }
 0x3d1   : > { %v2454_v63 = vadd.f32 1e-08, %v2422_v6  ;;  %v2239_v44 = vadd.f32 %v2238_v49, %v2126_v40  ;;  %v2016_v18 = vadd.f32 %v2015_v48, %v3941_v51 }
 0x3d3   : > { %2487 = vst.msk [vmem:[%s3971_s13 + $0xd8] sm:$0xff] %vm2459_vm1, %v2454_v63  ;;  %v2352_v31 = vadd.f32 %v2351_v20, %v2239_v44 }
 0x3d5   : > { %v2391_v27 = vadd.f32 1.0, %v2352_v31 }
 0x3d6   : > { %v2128_v58 = vpop.f32.mrf.mxu2  ;;  %v2354_v4 = vpop.f32.mrf.mxu0 }
 0x3d7   : > { %v2423_v23 = vmax.f32 %v2391_v27, 0.0  ;;  %v2129_v8 = vadd.f32 %v2128_v58, %v2016_v18 }
 0x3d8   : > { %v2018_v2 = vpop.f32.mrf.mxu1  ;;  %v2241_v19 = vpop.f32.mrf.mxu3 }
 0x3d9   : > { %v2455_v45 = vadd.f32 1e-08, %v2423_v23  ;;  %v2242_v60 = vadd.f32 %v2241_v19, %v2129_v8  ;;  %v2019_v55 = vadd.f32 %v2018_v2, %v3949_v15 }
 0x3db   : > { %2488 = vst.msk [vmem:[%s3971_s13 + $0xe0] sm:$0xff] %vm2459_vm1, %v2455_v45  ;;  %v2355_v42 = vadd.f32 %v2354_v4, %v2242_v60 }
 0x3dd   : > { %v2392_v46 = vadd.f32 1.0, %v2355_v42 }
 0x3de   : > { %v2131_v47 = vpop.f32.mrf.mxu2  ;;  %v2357_v41 = vpop.f32.mrf.mxu0 }
 0x3df   : > { %v2424_v59 = vmax.f32 %v2392_v46, 0.0  ;;  %v2132_v51 = vadd.f32 %v2131_v47, %v2019_v55 }
 0x3e0   : > { %v2244_v22 = vpop.f32.mrf.mxu3  ;;  %v2021_v1 = vpop.f32.mrf.mxu1 }
 0x3e1   : > { %v2456_v34 = vadd.f32 1e-08, %v2424_v59  ;;  %v2245_v10 = vadd.f32 %v2244_v22, %v2132_v51  ;;  %v2022_v28 = vadd.f32 %v2021_v1, %v3957_v37 }
 0x3e3   : > { %2489 = vst.msk [vmem:[%s3971_s13 + $0xe8] sm:$0xff] %vm2459_vm1, %v2456_v34  ;;  %v2358_v3 = vadd.f32 %v2357_v41, %v2245_v10 }
 0x3e5   : > { %v2393_v11 = vadd.f32 1.0, %v2358_v3 }
 0x3e6   : > { %v2134_v61 = vpop.f32.mrf.mxu2  ;;  %v2360_v26 = vpop.f32.mrf.mxu0 }
 0x3e7   : > { %v2425_v33 = vmax.f32 %v2393_v11, 0.0  ;;  %v2135_v15 = vadd.f32 %v2134_v61, %v2022_v28 }
 0x3e8   : > { %v2247_v17 = vpop.f32.mrf.mxu3 }
 0x3e9   : > { %v2457_v24 = vadd.f32 1e-08, %v2425_v33  ;;  %v2248_v54 = vadd.f32 %v2247_v17, %v2135_v15 }
 0x3eb   : > { %2490 = vst.msk [vmem:[%s3971_s13 + $0xf0] sm:$0xff] %vm2459_vm1, %v2457_v24  ;;  %v2361_v12 = vadd.f32 %v2360_v26, %v2248_v54 }
 0x3ed   : > { %v2394_v0 = vadd.f32 1.0, %v2361_v12 }
 0x3ef   : > { %v2426_v16 = vmax.f32 %v2394_v0, 0.0 }
 0x3f1   : > { %v2458_v5 = vadd.f32 1e-08, %v2426_v16 }
 0x3f3   : > { %2491 = vst.msk [vmem:[%s3971_s13 + $0xf8] sm:$0xff] %vm2459_vm1, %v2458_v5 }
 0x3f4 PF: > { %s13_s12 = sadd.s32 1, %s2655_s12  }
 0x3f5   : > { %p10_p4 = scmp.ge.s32.totalorder %s13_s12, 4  }
 0x3f7   :  { %12 = sbr.rel (!%p10_p4) target bundleno = 1 (0x1), region = 62 }

</bundles_post_ra>
